<compile_context>
chip_gen: v7x
topology: tpu7x:2x2x1
jax: 0.10.0
libtpu: 0.0.40
codegen_flags: <defaults>
</compile_context>

<pallas_src>
import functools

import jax
import jax.numpy as jnp
import numpy as np
from jax.experimental import pallas as pl
from jax.experimental.pallas import tpu as pltpu

_LANES = 128


def _round_up(x, m):
    return (x + m - 1) // m * m


def _conv3x3(xpad_ref, w_ref, H, W):
    """3x3 'same' conv on a zero-padded (H+2, W+2, Cp) VMEM scratch.

    w_ref: (3, 3*Cp, Co) -- per-kh weight matrix with (kw, cin) flattened into
    the contraction (K) dimension.  Returns f32 accumulator (H*W, Co).
    """
    Cp = xpad_ref.shape[2]
    acc = None
    for kh in range(3):
        # Collapse the 3 kw taps into one wide-K matmul per kh.
        taps = [xpad_ref[kh:kh + H, kw:kw + W, :] for kw in range(3)]
        patch = jnp.concatenate(taps, axis=-1).reshape(H * W, 3 * Cp)
        part = jnp.dot(patch, w_ref[kh], preferred_element_type=jnp.float32)
        acc = part if acc is None else acc + part
    return acc


def _fused_block_kernel(x_ref, w1_ref, b1_ref, w2_ref, b2_ref, o_ref,
                        xpad_ref, ypad_ref, *, scale1, scale2, slope):
    # x_ref : (1, H, W, Cin)              unpadded input tile
    # w1_ref: (3, 3*Cp, Cm)   b1_ref: (1, Cm)
    # w2_ref: (3, 3*Cm, Co)   b2_ref: (1, Co)
    # o_ref : (1, H//2, W//2, Co)         lane-dense (Co % 128 == 0)
    # xpad_ref / ypad_ref: (H+2, W+2, Cp|Cm) VMEM scratch (halo + channel pad)
    _, H, W, Cin = x_ref.shape
    Cm = w1_ref.shape[2]
    Co = w2_ref.shape[2]

    # Stage the input into the zero-padded scratch (spatial halo + channel pad
    # to 128 lanes happen here, not via jnp.pad in HBM).
    xpad_ref[...] = jnp.zeros_like(xpad_ref)
    xpad_ref[1:H + 1, 1:W + 1, 0:Cin] = x_ref[0]

    # conv1 -> equalized-lr scale -> bias -> LeakyReLU(0.2); stays in VMEM.
    a1 = _conv3x3(xpad_ref, w1_ref, H, W) * scale1 + b1_ref[...]
    a1 = jnp.where(a1 > 0, a1, slope * a1)
    ypad_ref[...] = jnp.zeros_like(ypad_ref)
    ypad_ref[1:H + 1, 1:W + 1, :] = a1.reshape(H, W, Cm)

    # conv2 -> scale -> bias -> LeakyReLU(0.2).
    a2 = _conv3x3(ypad_ref, w2_ref, H, W) * scale2 + b2_ref[...]
    a2 = jnp.where(a2 > 0, a2, slope * a2)

    # AvgPool2d(2): four unit-stride slice adds in the matmul layout (VPU).
    y = a2.reshape(H // 2, 2, W // 2, 2, Co)
    pooled = 0.25 * (y[:, 0, :, 0, :] + y[:, 0, :, 1, :] +
                     y[:, 1, :, 0, :] + y[:, 1, :, 1, :])
    o_ref[...] = pooled.reshape(1, H // 2, W // 2, Co).astype(o_ref.dtype)


def dis_general_conv_block(x_nchw, w1_hwio, b1, w2_hwio, b2):
    """Forward pass of DisGeneralConvBlock.

    x_nchw: (B, Cin, H, W) f32.  w1_hwio: (3,3,Cin,Cin), w2_hwio: (3,3,Cin,Cout)
    are *unscaled* weights; the equalized-lr scale is applied inside the kernel
    (matching torch forward).  Returns (B, Cout, H//2, W//2).
    """
    B, Cin, H, W = x_nchw.shape
    assert H % 2 == 0 and W % 2 == 0, "AvgPool2d(2) needs even H, W"
    Cmid = w1_hwio.shape[-1]          # conv_1: in_channels -> in_channels
    Cout = w2_hwio.shape[-1]
    Cp = _round_up(Cin, _LANES)
    Cm = _round_up(Cmid, _LANES)
    Co = _round_up(Cout, _LANES)

    # Equalized-lr scales (fan_in = 3*3*in_channels for both convs).
    scale1 = float(np.sqrt(2.0) / np.sqrt(9.0 * Cin))
    scale2 = float(np.sqrt(2.0) / np.sqrt(9.0 * Cmid))

    x = jnp.transpose(x_nchw, (0, 2, 3, 1))   # NCHW -> NHWC (no spatial pad)

    # Pad weight/bias channels to lane multiples once and pre-flatten (kw, cin)
    # into K so the kernel contracts (H*W, 3*Cp) x (3*Cp, Co) per kh.
    w1p = jnp.pad(w1_hwio, ((0, 0), (0, 0), (0, Cp - Cin), (0, Cm - Cmid)))
    w1p = w1p.reshape(3, 3 * Cp, Cm)
    w2p = jnp.pad(w2_hwio, ((0, 0), (0, 0), (0, Cm - Cmid), (0, Co - Cout)))
    w2p = w2p.reshape(3, 3 * Cm, Co)
    b1p = jnp.pad(b1, (0, Cm - Cmid)).reshape(1, Cm)
    b2p = jnp.pad(b2, (0, Co - Cout)).reshape(1, Co)

    kernel = functools.partial(_fused_block_kernel,
                               scale1=scale1, scale2=scale2, slope=0.2)

    out = pl.pallas_call(
        kernel,
        out_shape=jax.ShapeDtypeStruct((B, H // 2, W // 2, Co), x.dtype),
        grid=(B,),
        in_specs=[
            pl.BlockSpec((1, H, W, Cin), lambda b: (b, 0, 0, 0)),
            pl.BlockSpec((3, 3 * Cp, Cm), lambda b: (0, 0, 0)),
            pl.BlockSpec((1, Cm), lambda b: (0, 0)),
            pl.BlockSpec((3, 3 * Cm, Co), lambda b: (0, 0, 0)),
            pl.BlockSpec((1, Co), lambda b: (0, 0)),
        ],
        out_specs=pl.BlockSpec((1, H // 2, W // 2, Co),
                               lambda b: (b, 0, 0, 0)),
        scratch_shapes=[
            pltpu.VMEM((H + 2, W + 2, Cp), jnp.float32),   # padded input
            pltpu.VMEM((H + 2, W + 2, Cm), jnp.float32),   # padded conv1 out
        ],
        compiler_params=pltpu.CompilerParams(
            dimension_semantics=("parallel",),
            vmem_limit_bytes=32 * 1024 * 1024),
    )(x, w1p, b1p, w2p, b2p)

    # Drop the channel padding and return NCHW like the torch module.
    return jnp.transpose(out[:, :, :, :Cout], (0, 3, 1, 2))


def _reference(x_nchw, w1_hwio, b1, w2_hwio, b2):
    """Plain-JAX reference (for correctness check only)."""
    Cin = x_nchw.shape[1]
    scale = np.sqrt(2.0) / np.sqrt(3 * 3 * Cin)
    x = jnp.transpose(x_nchw, (0, 2, 3, 1))
    dn = jax.lax.conv_dimension_numbers(x.shape, w1_hwio.shape,
                                        ("NHWC", "HWIO", "NHWC"))

    def conv(inp, w, b):
        out = jax.lax.conv_general_dilated(inp, w * scale, (1, 1), "SAME",
                                           dimension_numbers=dn)
        out = out + b.reshape(1, 1, 1, -1)
        return jnp.where(out > 0, out, 0.2 * out)

    y = conv(x, w1_hwio, b1)
    y = conv(y, w2_hwio, b2)
    B, H, W, C = y.shape
    y = y.reshape(B, H // 2, 2, W // 2, 2, C).mean(axis=(2, 4))
    return jnp.transpose(y, (0, 3, 1, 2))


if __name__ == "__main__":
    B, Cin, Cout, H, W = 2, 4, 8, 16, 16

    key = jax.random.PRNGKey(0)
    kx, kw1, kw2 = jax.random.split(key, 3)
    x = jax.random.normal(kx, (B, Cin, H, W), jnp.float32)        # NCHW input
    # EqualizedConv2d.__init__: weight ~ N(0,1), bias = 0.
    w1 = jax.random.normal(kw1, (3, 3, Cin, Cin), jnp.float32)    # HWIO
    b1 = jnp.zeros((Cin,), jnp.float32)
    w2 = jax.random.normal(kw2, (3, 3, Cin, Cout), jnp.float32)   # HWIO
    b2 = jnp.zeros((Cout,), jnp.float32)

    out = dis_general_conv_block(x, w1, b1, w2, b2)
    out = jax.block_until_ready(out)

    ref = jax.block_until_ready(_reference(x, w1, b1, w2, b2))
    assert out.shape == (B, Cout, H // 2, W // 2), out.shape
    np.testing.assert_allclose(np.asarray(out), np.asarray(ref),
                               rtol=1e-5, atol=1e-5)
    print("KERNEL_OK")
</pallas_src>

<mosaic_0001>
module attributes {stable_mosaic.version = 11 : i64} {
  func.func @_fused_block_kernel(%arg0: i32, %arg1: memref<1x16x16x4xf32, #tpu.memory_space<vmem>>, %arg2: memref<3x384x128xf32, #tpu.memory_space<vmem>>, %arg3: memref<1x128xf32, #tpu.memory_space<vmem>>, %arg4: memref<3x384x128xf32, #tpu.memory_space<vmem>>, %arg5: memref<1x128xf32, #tpu.memory_space<vmem>>, %arg6: memref<1x8x8x128xf32, #tpu.memory_space<vmem>>, %arg7: memref<18x18x128xf32, #tpu.memory_space<vmem>>, %arg8: memref<18x18x128xf32, #tpu.memory_space<vmem>>) attributes {dimension_semantics = [#tpu.dimension_semantics<parallel>], iteration_bounds = array<i64: 2>, scalar_prefetch = 0 : i64, scratch_operands = 2 : i64, tpu.core_type = #tpu.core_type<tc>, window_params = [{transform_indices = @transform_0, window_bounds = array<i64: 1, 16, 16, 4>}, {pipeline_mode = #tpu.pipeline_mode<synchronous>, transform_indices = @transform_1, window_bounds = array<i64: 3, 384, 128>}, {pipeline_mode = #tpu.pipeline_mode<synchronous>, transform_indices = @transform_2, window_bounds = array<i64: 1, 128>}, {pipeline_mode = #tpu.pipeline_mode<synchronous>, transform_indices = @transform_3, window_bounds = array<i64: 3, 384, 128>}, {pipeline_mode = #tpu.pipeline_mode<synchronous>, transform_indices = @transform_4, window_bounds = array<i64: 1, 128>}, {transform_indices = @transform_5, window_bounds = array<i64: 1, 8, 8, 128>}]} {
    %cst = arith.constant 0.000000e+00 : f32
    %0 = vector.broadcast %cst : f32 to vector<18x18x128xf32>
    %c0 = arith.constant 0 : index
    %c0_0 = arith.constant 0 : index
    %c0_1 = arith.constant 0 : index
    %1 = vector.load %arg7[%c0, %c0_0, %c0_1] : memref<18x18x128xf32, #tpu.memory_space<vmem>>, vector<18x18x128xf32>
    tpu.vector_store %arg7[%c0, %c0_0, %c0_1], %0 {strides = array<i32>} : memref<18x18x128xf32, #tpu.memory_space<vmem>>, vector<18x18x128xf32>,
    %c0_2 = arith.constant 0 : index
    %c0_3 = arith.constant 0 : index
    %c0_4 = arith.constant 0 : index
    %c0_5 = arith.constant 0 : index
    %2 = vector.load %arg1[%c0_2, %c0_3, %c0_4, %c0_5] : memref<1x16x16x4xf32, #tpu.memory_space<vmem>>, vector<1x16x16x4xf32>
    %3 = vector.shape_cast %2 : vector<1x16x16x4xf32> to vector<16x16x4xf32>
    %c1 = arith.constant 1 : index
    %c1_6 = arith.constant 1 : index
    %c0_7 = arith.constant 0 : index
    %4 = vector.load %arg7[%c1, %c1_6, %c0_7] : memref<18x18x128xf32, #tpu.memory_space<vmem>>, vector<16x16x4xf32>
    tpu.vector_store %arg7[%c1, %c1_6, %c0_7], %3 {strides = array<i32>} : memref<18x18x128xf32, #tpu.memory_space<vmem>>, vector<16x16x4xf32>,
    %c0_8 = arith.constant 0 : index
    %c0_9 = arith.constant 0 : index
    %c0_10 = arith.constant 0 : index
    %5 = vector.load %arg7[%c0_8, %c0_9, %c0_10] : memref<18x18x128xf32, #tpu.memory_space<vmem>>, vector<16x16x128xf32>
    %c0_11 = arith.constant 0 : index
    %c1_12 = arith.constant 1 : index
    %c0_13 = arith.constant 0 : index
    %6 = vector.load %arg7[%c0_11, %c1_12, %c0_13] : memref<18x18x128xf32, #tpu.memory_space<vmem>>, vector<16x16x128xf32>
    %c0_14 = arith.constant 0 : index
    %c2 = arith.constant 2 : index
    %c0_15 = arith.constant 0 : index
    %7 = vector.load %arg7[%c0_14, %c2, %c0_15] : memref<18x18x128xf32, #tpu.memory_space<vmem>>, vector<16x16x128xf32>
    %8 = tpu.concatenate %5, %6, %7 in 2 : vector<16x16x128xf32>, vector<16x16x128xf32>, vector<16x16x128xf32> -> vector<16x16x384xf32>
    %9 = vector.shape_cast %8 : vector<16x16x384xf32> to vector<256x384xf32>
    %c0_16 = arith.constant 0 : index
    %c0_17 = arith.constant 0 : index
    %c0_18 = arith.constant 0 : index
    %10 = vector.load %arg2[%c0_16, %c0_17, %c0_18] : memref<3x384x128xf32, #tpu.memory_space<vmem>>, vector<1x384x128xf32>
    %11 = vector.shape_cast %10 : vector<1x384x128xf32> to vector<384x128xf32>
    %cst_19 = arith.constant dense<0.000000e+00> : vector<256x128xf32>
    %12 = tpu.matmul %9, %11, %cst_19 {dimension_numbers = #tpu.dot_dimension_numbers<[1], [0], [0], [1], [0, 0, 1, 1], [], []>} : vector<256x384xf32>, vector<384x128xf32>, vector<256x128xf32> -> vector<256x128xf32>
    %c1_20 = arith.constant 1 : index
    %c0_21 = arith.constant 0 : index
    %c0_22 = arith.constant 0 : index
    %13 = vector.load %arg7[%c1_20, %c0_21, %c0_22] : memref<18x18x128xf32, #tpu.memory_space<vmem>>, vector<16x16x128xf32>
    %c1_23 = arith.constant 1 : index
    %c1_24 = arith.constant 1 : index
    %c0_25 = arith.constant 0 : index
    %14 = vector.load %arg7[%c1_23, %c1_24, %c0_25] : memref<18x18x128xf32, #tpu.memory_space<vmem>>, vector<16x16x128xf32>
    %c1_26 = arith.constant 1 : index
    %c2_27 = arith.constant 2 : index
    %c0_28 = arith.constant 0 : index
    %15 = vector.load %arg7[%c1_26, %c2_27, %c0_28] : memref<18x18x128xf32, #tpu.memory_space<vmem>>, vector<16x16x128xf32>
    %16 = tpu.concatenate %13, %14, %15 in 2 : vector<16x16x128xf32>, vector<16x16x128xf32>, vector<16x16x128xf32> -> vector<16x16x384xf32>
    %17 = vector.shape_cast %16 : vector<16x16x384xf32> to vector<256x384xf32>
    %c1_29 = arith.constant 1 : index
    %c0_30 = arith.constant 0 : index
    %c0_31 = arith.constant 0 : index
    %18 = vector.load %arg2[%c1_29, %c0_30, %c0_31] : memref<3x384x128xf32, #tpu.memory_space<vmem>>, vector<1x384x128xf32>
    %19 = vector.shape_cast %18 : vector<1x384x128xf32> to vector<384x128xf32>
    %cst_32 = arith.constant dense<0.000000e+00> : vector<256x128xf32>
    %20 = tpu.matmul %17, %19, %cst_32 {dimension_numbers = #tpu.dot_dimension_numbers<[1], [0], [0], [1], [0, 0, 1, 1], [], []>} : vector<256x384xf32>, vector<384x128xf32>, vector<256x128xf32> -> vector<256x128xf32>
    %21 = arith.addf %12, %20 : vector<256x128xf32>
    %c2_33 = arith.constant 2 : index
    %c0_34 = arith.constant 0 : index
    %c0_35 = arith.constant 0 : index
    %22 = vector.load %arg7[%c2_33, %c0_34, %c0_35] : memref<18x18x128xf32, #tpu.memory_space<vmem>>, vector<16x16x128xf32>
    %c2_36 = arith.constant 2 : index
    %c1_37 = arith.constant 1 : index
    %c0_38 = arith.constant 0 : index
    %23 = vector.load %arg7[%c2_36, %c1_37, %c0_38] : memref<18x18x128xf32, #tpu.memory_space<vmem>>, vector<16x16x128xf32>
    %c2_39 = arith.constant 2 : index
    %c2_40 = arith.constant 2 : index
    %c0_41 = arith.constant 0 : index
    %24 = vector.load %arg7[%c2_39, %c2_40, %c0_41] : memref<18x18x128xf32, #tpu.memory_space<vmem>>, vector<16x16x128xf32>
    %25 = tpu.concatenate %22, %23, %24 in 2 : vector<16x16x128xf32>, vector<16x16x128xf32>, vector<16x16x128xf32> -> vector<16x16x384xf32>
    %26 = vector.shape_cast %25 : vector<16x16x384xf32> to vector<256x384xf32>
    %c2_42 = arith.constant 2 : index
    %c0_43 = arith.constant 0 : index
    %c0_44 = arith.constant 0 : index
    %27 = vector.load %arg2[%c2_42, %c0_43, %c0_44] : memref<3x384x128xf32, #tpu.memory_space<vmem>>, vector<1x384x128xf32>
    %28 = vector.shape_cast %27 : vector<1x384x128xf32> to vector<384x128xf32>
    %cst_45 = arith.constant dense<0.000000e+00> : vector<256x128xf32>
    %29 = tpu.matmul %26, %28, %cst_45 {dimension_numbers = #tpu.dot_dimension_numbers<[1], [0], [0], [1], [0, 0, 1, 1], [], []>} : vector<256x384xf32>, vector<384x128xf32>, vector<256x128xf32> -> vector<256x128xf32>
    %30 = arith.addf %21, %29 : vector<256x128xf32>
    %cst_46 = arith.constant 0.235702261 : f32
    %31 = vector.broadcast %cst_46 : f32 to vector<256x128xf32>
    %32 = arith.mulf %30, %31 : vector<256x128xf32>
    %c0_47 = arith.constant 0 : index
    %c0_48 = arith.constant 0 : index
    %33 = vector.load %arg3[%c0_47, %c0_48] : memref<1x128xf32, #tpu.memory_space<vmem>>, vector<1x128xf32>
    %34 = vector.broadcast %33 : vector<1x128xf32> to vector<256x128xf32>
    %35 = arith.addf %32, %34 : vector<256x128xf32>
    %cst_49 = arith.constant 0.000000e+00 : f32
    %36 = vector.broadcast %cst_49 : f32 to vector<256x128xf32>
    %37 = arith.cmpf ogt, %35, %36 : vector<256x128xf32>
    %cst_50 = arith.constant 2.000000e-01 : f32
    %38 = vector.broadcast %cst_50 : f32 to vector<256x128xf32>
    %39 = arith.mulf %38, %35 : vector<256x128xf32>
    %40 = arith.select %37, %35, %39 : vector<256x128xi1>, vector<256x128xf32>
    %cst_51 = arith.constant 0.000000e+00 : f32
    %41 = vector.broadcast %cst_51 : f32 to vector<18x18x128xf32>
    %c0_52 = arith.constant 0 : index
    %c0_53 = arith.constant 0 : index
    %c0_54 = arith.constant 0 : index
    %42 = vector.load %arg8[%c0_52, %c0_53, %c0_54] : memref<18x18x128xf32, #tpu.memory_space<vmem>>, vector<18x18x128xf32>
    tpu.vector_store %arg8[%c0_52, %c0_53, %c0_54], %41 {strides = array<i32>} : memref<18x18x128xf32, #tpu.memory_space<vmem>>, vector<18x18x128xf32>,
    %43 = vector.shape_cast %40 : vector<256x128xf32> to vector<16x16x128xf32>
    %c1_55 = arith.constant 1 : index
    %c1_56 = arith.constant 1 : index
    %c0_57 = arith.constant 0 : index
    %44 = vector.load %arg8[%c1_55, %c1_56, %c0_57] : memref<18x18x128xf32, #tpu.memory_space<vmem>>, vector<16x16x128xf32>
    tpu.vector_store %arg8[%c1_55, %c1_56, %c0_57], %43 {strides = array<i32>} : memref<18x18x128xf32, #tpu.memory_space<vmem>>, vector<16x16x128xf32>,
    %c0_58 = arith.constant 0 : index
    %c0_59 = arith.constant 0 : index
    %c0_60 = arith.constant 0 : index
    %45 = vector.load %arg8[%c0_58, %c0_59, %c0_60] : memref<18x18x128xf32, #tpu.memory_space<vmem>>, vector<16x16x128xf32>
    %c0_61 = arith.constant 0 : index
    %c1_62 = arith.constant 1 : index
    %c0_63 = arith.constant 0 : index
    %46 = vector.load %arg8[%c0_61, %c1_62, %c0_63] : memref<18x18x128xf32, #tpu.memory_space<vmem>>, vector<16x16x128xf32>
    %c0_64 = arith.constant 0 : index
    %c2_65 = arith.constant 2 : index
    %c0_66 = arith.constant 0 : index
    %47 = vector.load %arg8[%c0_64, %c2_65, %c0_66] : memref<18x18x128xf32, #tpu.memory_space<vmem>>, vector<16x16x128xf32>
    %48 = tpu.concatenate %45, %46, %47 in 2 : vector<16x16x128xf32>, vector<16x16x128xf32>, vector<16x16x128xf32> -> vector<16x16x384xf32>
    %49 = vector.shape_cast %48 : vector<16x16x384xf32> to vector<256x384xf32>
    %c0_67 = arith.constant 0 : index
    %c0_68 = arith.constant 0 : index
    %c0_69 = arith.constant 0 : index
    %50 = vector.load %arg4[%c0_67, %c0_68, %c0_69] : memref<3x384x128xf32, #tpu.memory_space<vmem>>, vector<1x384x128xf32>
    %51 = vector.shape_cast %50 : vector<1x384x128xf32> to vector<384x128xf32>
    %cst_70 = arith.constant dense<0.000000e+00> : vector<256x128xf32>
    %52 = tpu.matmul %49, %51, %cst_70 {dimension_numbers = #tpu.dot_dimension_numbers<[1], [0], [0], [1], [0, 0, 1, 1], [], []>} : vector<256x384xf32>, vector<384x128xf32>, vector<256x128xf32> -> vector<256x128xf32>
    %c1_71 = arith.constant 1 : index
    %c0_72 = arith.constant 0 : index
    %c0_73 = arith.constant 0 : index
    %53 = vector.load %arg8[%c1_71, %c0_72, %c0_73] : memref<18x18x128xf32, #tpu.memory_space<vmem>>, vector<16x16x128xf32>
    %c1_74 = arith.constant 1 : index
    %c1_75 = arith.constant 1 : index
    %c0_76 = arith.constant 0 : index
    %54 = vector.load %arg8[%c1_74, %c1_75, %c0_76] : memref<18x18x128xf32, #tpu.memory_space<vmem>>, vector<16x16x128xf32>
    %c1_77 = arith.constant 1 : index
    %c2_78 = arith.constant 2 : index
    %c0_79 = arith.constant 0 : index
    %55 = vector.load %arg8[%c1_77, %c2_78, %c0_79] : memref<18x18x128xf32, #tpu.memory_space<vmem>>, vector<16x16x128xf32>
    %56 = tpu.concatenate %53, %54, %55 in 2 : vector<16x16x128xf32>, vector<16x16x128xf32>, vector<16x16x128xf32> -> vector<16x16x384xf32>
    %57 = vector.shape_cast %56 : vector<16x16x384xf32> to vector<256x384xf32>
    %c1_80 = arith.constant 1 : index
    %c0_81 = arith.constant 0 : index
    %c0_82 = arith.constant 0 : index
    %58 = vector.load %arg4[%c1_80, %c0_81, %c0_82] : memref<3x384x128xf32, #tpu.memory_space<vmem>>, vector<1x384x128xf32>
    %59 = vector.shape_cast %58 : vector<1x384x128xf32> to vector<384x128xf32>
    %cst_83 = arith.constant dense<0.000000e+00> : vector<256x128xf32>
    %60 = tpu.matmul %57, %59, %cst_83 {dimension_numbers = #tpu.dot_dimension_numbers<[1], [0], [0], [1], [0, 0, 1, 1], [], []>} : vector<256x384xf32>, vector<384x128xf32>, vector<256x128xf32> -> vector<256x128xf32>
    %61 = arith.addf %52, %60 : vector<256x128xf32>
    %c2_84 = arith.constant 2 : index
    %c0_85 = arith.constant 0 : index
    %c0_86 = arith.constant 0 : index
    %62 = vector.load %arg8[%c2_84, %c0_85, %c0_86] : memref<18x18x128xf32, #tpu.memory_space<vmem>>, vector<16x16x128xf32>
    %c2_87 = arith.constant 2 : index
    %c1_88 = arith.constant 1 : index
    %c0_89 = arith.constant 0 : index
    %63 = vector.load %arg8[%c2_87, %c1_88, %c0_89] : memref<18x18x128xf32, #tpu.memory_space<vmem>>, vector<16x16x128xf32>
    %c2_90 = arith.constant 2 : index
    %c2_91 = arith.constant 2 : index
    %c0_92 = arith.constant 0 : index
    %64 = vector.load %arg8[%c2_90, %c2_91, %c0_92] : memref<18x18x128xf32, #tpu.memory_space<vmem>>, vector<16x16x128xf32>
    %65 = tpu.concatenate %62, %63, %64 in 2 : vector<16x16x128xf32>, vector<16x16x128xf32>, vector<16x16x128xf32> -> vector<16x16x384xf32>
    %66 = vector.shape_cast %65 : vector<16x16x384xf32> to vector<256x384xf32>
    %c2_93 = arith.constant 2 : index
    %c0_94 = arith.constant 0 : index
    %c0_95 = arith.constant 0 : index
    %67 = vector.load %arg4[%c2_93, %c0_94, %c0_95] : memref<3x384x128xf32, #tpu.memory_space<vmem>>, vector<1x384x128xf32>
    %68 = vector.shape_cast %67 : vector<1x384x128xf32> to vector<384x128xf32>
    %cst_96 = arith.constant dense<0.000000e+00> : vector<256x128xf32>
    %69 = tpu.matmul %66, %68, %cst_96 {dimension_numbers = #tpu.dot_dimension_numbers<[1], [0], [0], [1], [0, 0, 1, 1], [], []>} : vector<256x384xf32>, vector<384x128xf32>, vector<256x128xf32> -> vector<256x128xf32>
    %70 = arith.addf %61, %69 : vector<256x128xf32>
    %cst_97 = arith.constant 0.235702261 : f32
    %71 = vector.broadcast %cst_97 : f32 to vector<256x128xf32>
    %72 = arith.mulf %70, %71 : vector<256x128xf32>
    %c0_98 = arith.constant 0 : index
    %c0_99 = arith.constant 0 : index
    %73 = vector.load %arg5[%c0_98, %c0_99] : memref<1x128xf32, #tpu.memory_space<vmem>>, vector<1x128xf32>
    %74 = vector.broadcast %73 : vector<1x128xf32> to vector<256x128xf32>
    %75 = arith.addf %72, %74 : vector<256x128xf32>
    %cst_100 = arith.constant 0.000000e+00 : f32
    %76 = vector.broadcast %cst_100 : f32 to vector<256x128xf32>
    %77 = arith.cmpf ogt, %75, %76 : vector<256x128xf32>
    %cst_101 = arith.constant 2.000000e-01 : f32
    %78 = vector.broadcast %cst_101 : f32 to vector<256x128xf32>
    %79 = arith.mulf %78, %75 : vector<256x128xf32>
    %80 = arith.select %77, %75, %79 : vector<256x128xi1>, vector<256x128xf32>
    %81 = vector.shape_cast %80 : vector<256x128xf32> to vector<8x2x8x2x128xf32>
    %82 = vector.extract_strided_slice %81 {offsets = [0, 0, 0, 0, 0], sizes = [8, 1, 8, 1, 128], strides = [1, 1, 1, 1, 1]} : vector<8x2x8x2x128xf32> to vector<8x1x8x1x128xf32>
    %83 = vector.shape_cast %82 : vector<8x1x8x1x128xf32> to vector<8x8x128xf32>
    %84 = vector.extract_strided_slice %81 {offsets = [0, 0, 0, 1, 0], sizes = [8, 1, 8, 1, 128], strides = [1, 1, 1, 1, 1]} : vector<8x2x8x2x128xf32> to vector<8x1x8x1x128xf32>
    %85 = vector.shape_cast %84 : vector<8x1x8x1x128xf32> to vector<8x8x128xf32>
    %86 = arith.addf %83, %85 : vector<8x8x128xf32>
    %87 = vector.extract_strided_slice %81 {offsets = [0, 1, 0, 0, 0], sizes = [8, 1, 8, 1, 128], strides = [1, 1, 1, 1, 1]} : vector<8x2x8x2x128xf32> to vector<8x1x8x1x128xf32>
    %88 = vector.shape_cast %87 : vector<8x1x8x1x128xf32> to vector<8x8x128xf32>
    %89 = arith.addf %86, %88 : vector<8x8x128xf32>
    %90 = vector.extract_strided_slice %81 {offsets = [0, 1, 0, 1, 0], sizes = [8, 1, 8, 1, 128], strides = [1, 1, 1, 1, 1]} : vector<8x2x8x2x128xf32> to vector<8x1x8x1x128xf32>
    %91 = vector.shape_cast %90 : vector<8x1x8x1x128xf32> to vector<8x8x128xf32>
    %92 = arith.addf %89, %91 : vector<8x8x128xf32>
    %cst_102 = arith.constant 2.500000e-01 : f32
    %93 = vector.broadcast %cst_102 : f32 to vector<8x8x128xf32>
    %94 = arith.mulf %93, %92 : vector<8x8x128xf32>
    %95 = vector.shape_cast %94 : vector<8x8x128xf32> to vector<1x8x8x128xf32>
    %c0_103 = arith.constant 0 : index
    %c0_104 = arith.constant 0 : index
    %c0_105 = arith.constant 0 : index
    %c0_106 = arith.constant 0 : index
    %96 = vector.load %arg6[%c0_103, %c0_104, %c0_105, %c0_106] : memref<1x8x8x128xf32, #tpu.memory_space<vmem>>, vector<1x8x8x128xf32>
    tpu.vector_store %arg6[%c0_103, %c0_104, %c0_105, %c0_106], %95 {strides = array<i32>} : memref<1x8x8x128xf32, #tpu.memory_space<vmem>>, vector<1x8x8x128xf32>,
    return
  }
  func.func @transform_0(%arg0: i32) -> (i32, i32, i32, i32) {
    %c0_i32 = arith.constant 0 : i32
    %c0_i32_0 = arith.constant 0 : i32
    %c0_i32_1 = arith.constant 0 : i32
    %c0_i32_2 = arith.constant 0 : i32
    return %arg0, %c0_i32, %c0_i32_0, %c0_i32_1 : i32, i32, i32, i32
  }
  func.func @transform_1(%arg0: i32) -> (i32, i32, i32) {
    %c0_i32 = arith.constant 0 : i32
    %c0_i32_0 = arith.constant 0 : i32
    %c0_i32_1 = arith.constant 0 : i32
    %c0_i32_2 = arith.constant 0 : i32
    return %c0_i32, %c0_i32_0, %c0_i32_1 : i32, i32, i32
  }
  func.func @transform_2(%arg0: i32) -> (i32, i32) {
    %c0_i32 = arith.constant 0 : i32
    %c0_i32_0 = arith.constant 0 : i32
    %c0_i32_1 = arith.constant 0 : i32
    return %c0_i32, %c0_i32_0 : i32, i32
  }
  func.func @transform_3(%arg0: i32) -> (i32, i32, i32) {
    %c0_i32 = arith.constant 0 : i32
    %c0_i32_0 = arith.constant 0 : i32
    %c0_i32_1 = arith.constant 0 : i32
    %c0_i32_2 = arith.constant 0 : i32
    return %c0_i32, %c0_i32_0, %c0_i32_1 : i32, i32, i32
  }
  func.func @transform_4(%arg0: i32) -> (i32, i32) {
    %c0_i32 = arith.constant 0 : i32
    %c0_i32_0 = arith.constant 0 : i32
    %c0_i32_1 = arith.constant 0 : i32
    return %c0_i32, %c0_i32_0 : i32, i32
  }
  func.func @transform_5(%arg0: i32) -> (i32, i32, i32, i32) {
    %c0_i32 = arith.constant 0 : i32
    %c0_i32_0 = arith.constant 0 : i32
    %c0_i32_1 = arith.constant 0 : i32
    %c0_i32_2 = arith.constant 0 : i32
    return %arg0, %c0_i32, %c0_i32_0, %c0_i32_1 : i32, i32, i32, i32
  }
}

</mosaic_0001>

<bundles_post_ra>
// kernel: tpu_custom_call.1
= control target key start
LH: loop header
LB: loop body
LE: loop exit
PB: predicated region body
PF: predicated region fallthrough
CT: control target
= control target key end

     0   :  { %10 = vsyncpa [#allocation5], 0  ;;  %s10437_s0 = inlined_call_operand.vmem [shape: f32[2,16,16,4], index: 0, kind: input, shape index: {}]   ;;  %s10438_s1 = inlined_call_operand.hbm [shape: f32[3,384,128], index: 1, kind: input, shape index: {}]   ;;  %s10439_s2 = inlined_call_operand.vmem [shape: f32[1,128], index: 2, kind: input, shape index: {}]   ;;  %s10440_s3 = inlined_call_operand.hbm [shape: f32[3,384,128], index: 3, kind: input, shape index: {}]   ;;  %s10441_s4 = inlined_call_operand.vmem [shape: f32[1,128], index: 4, kind: input, shape index: {}]   ;;  %s10442_s5 = inlined_call_operand.hbm [shape: f32[2,8,8,128], index: 5, kind: output, shape index: {}]  }
   0x1   :  { %11 = vsyncpa [#allocation8], 0 }
   0x2   :  { %12 = vsyncpa [#allocation6], 0 }
   0x3   :  { %14 = vsyncpa [#allocation6 + $0x1], 0  ;;  %s7907_s18 = smov 0   ;;  %s7909_s19 = smov 0  }
   0x4   :  { %s7911_s20 = smov 0   ;;  %s7913_s21 = smov 0  }
   0x5 LB: > { %s7928_s22 = sadd.s32 4294967295, %s7865_s21   ;;  %s6269_s23 = sadd.s32 4294967294, %s7865_s21   ;;  %s7865_s21 = sphi %s7913_s21, %s10604_s21   ;;  %s7861_s20 = sphi %s7911_s20, %s10603_s20   ;;  %s7857_s19 = sphi %s7909_s19, %s10602_s19   ;;  %s7853_s18 = sphi %s7907_s18, %s10601_s18  }
   0x6   : > { %s7932_s24 = sadd.s32 1, %s7865_s21   ;;  %s137_s25 = sadd.s32 1, %s7861_s20 }
   0x7   : > { %s134_s26 = ssub.s32 %s7865_s21, %s7932_s24  ;;  %p147_p0 = scmp.ne.s32.totalorder %s7861_s20, %s7857_s19 }
   0x8   : > { %p135_p1 = scmp.eq.s32.totalorder %s134_s26, 0  ;;  %p148_p2 = scmp.eq.s32.totalorder %s7928_s22, 1 }
   0x9   : > { %p153_p3 = scmp.ne.s32.totalorder %s7857_s19, %s7853_s18  ;;  %p154_p4 = scmp.eq.s32.totalorder %s6269_s23, 1 }
   0xa   : > { %s7943_s27 = scalar_select %p135_p1, %s7861_s20, %s137_s25  }
   0xb   : > { %p7945_p5 = por %p148_p2, %p147_p0  ;;  %p7949_p6 = por %p154_p4, %p153_p3 }
   0xc   : > { %p6270_p7 = scmp.ge.s32.totalorder %s7865_s21, 1  ;;  %p161_p8 = scmp.lt.s32.totalorder %s7865_s21, 3 }
   0xd   : > { %s10475_s28 = scalar_select %p7945_p5, 1, 0 }
   0xe   : > { %s10476_s29 = scalar_select %p7949_p6, 1, 0 }
   0xf   : > { %p10443_p9 = scmp.eq.s32.totalorder %s7928_s22, 0  ;;  %p7956_p10 = pnand %p6270_p7, %p161_p8 }
  0x10   : > { %s7867_s6 = smov [#allocation4]   ;;  %s7868_s9 = smov [#allocation7]  }
  0x11   : > { %s10477_s30 = scalar_select %p7956_p10, 1, 0 }
  0x12   : > { %s173_s7 = sshll.u32 %s7867_s6, 4  ;;  %p7675_p11 = pneg %p7956_p10  ;;  %s174_s7 = int_to_ptr.vmem [resolvable:$true] %s173_s7 }
  0x13   : > { %s189_s10 = sshll.u32 %s7868_s9, 4  ;;  %s7739_s13 = scalar_lea.hbm %s10438_s1, 18432  ;;  %s7968_s10 = int_to_ptr.vmem [resolvable:$true] %s189_s10 }
  0x14   : > { %p7964_p12 = pnand %p10443_p9, %p7675_p11  ;;  %p7740_p13 = scmp.ne.s32.totalorder %s10438_s1, %s7739_s13 }
  0x15   : > { %p7746_p3 = scmp.lt.u32.totalorder %s7739_s13, %s10438_s1 }
  0x16   : > { %p7741_p0 = pneg %p7964_p12 }
  0x18   : > { %p7742_p1 = pnand %p7741_p0, %p7740_p13 }
  0x1a   : > { %p7743_p2 = pneg %p7742_p1 }
  0x1c   : > { %p7748_p4 = pnand %p7746_p3, %p7743_p2 }
  0x1e   : > { %7751 = shalt.err (!%p7748_p4)
}
  0x1f   : > { %s7752_s23 = scalar_lea.vmem %s174_s7, 18432  ;;  %p7760_p9 = scmp.lt.s32.totalorder %s174_s7, %s174_s7 }
  0x20   : > { %p7753_p7 = scmp.ne.s32.totalorder %s174_s7, %s7752_s23  ;;  %p7761_p6 = scmp.lt.s32.totalorder %s7752_s23, %s7752_s23 }
  0x22   : > { %p7755_p8 = pnand %p7753_p7, %p7741_p0  ;;  %p7762_p5 = por %p7761_p6, %p7760_p9 }
  0x24   : > { %p7756_p11 = pneg %p7755_p8 }
  0x26   : > { %p7763_p10 = pnand %p7762_p5, %p7756_p11 }
  0x28   : > { %7766 = shalt.err (!%p7763_p10)
}
  0x29   : > { %s7869_s25 = smov 128   ;;  %s7870_s26 = smov 8  }
  0x2a   : > { %7678 = dma.hbm_to_vmem [thread:$0]  (!%p7964_p12), %s10438_s1, 18432, %s174_s7, [#allocation5], %s7869_s25, %s7869_s25, %s7870_s26  }
  0x2b   : > { %s7767_s13 = scalar_lea.hbm %s10440_s3, 18432 }
  0x2c   : > { %p7768_p13 = scmp.ne.s32.totalorder %s10440_s3, %s7767_s13  ;;  %p7774_p9 = scmp.lt.u32.totalorder %s7767_s13, %s10440_s3 }
  0x2e   : > { %p7770_p5 = pnand %p7768_p13, %p7741_p0 }
  0x30   : > { %p7771_p6 = pneg %p7770_p5 }
  0x32   : > { %p7776_p10 = pnand %p7774_p9, %p7771_p6 }
  0x34   : > { %7779 = shalt.err (!%p7776_p10)
}
  0x35   : > { %s7780_s7 = scalar_lea.vmem %s7968_s10, 18432  ;;  %p7788_p4 = scmp.lt.s32.totalorder %s7968_s10, %s7968_s10 }
  0x36   : > { %p7781_p1 = scmp.ne.s32.totalorder %s7968_s10, %s7780_s7  ;;  %p7789_p7 = scmp.lt.s32.totalorder %s7780_s7, %s7780_s7 }
  0x38   : > { %p7783_p2 = pnand %p7781_p1, %p7741_p0  ;;  %p7790_p8 = por %p7789_p7, %p7788_p4 }
  0x3a   : > { %p7784_p3 = pneg %p7783_p2 }
  0x3c   : > { %p7791_p11 = pnand %p7790_p8, %p7784_p3 }
  0x3e   : > { %7794 = shalt.err (!%p7791_p11)
}
  0x3f   : > { %7681 = dma.hbm_to_vmem [thread:$0]  (!%p7964_p12), %s10440_s3, 18432, %s7968_s10, [#allocation8], %s7869_s25, %s7869_s25, %s7870_s26  }
  0x40   : > { %p10479_p13 = scmp.ne.s32.totalorder %s10477_s30, 0 }
  0x42   : > { %216 = sbr.rel (%p10479_p13) target bundleno = 1285 (0x505), region = 40 }
  0x49   : > { %p10480_p5 = scmp.eq.s32.totalorder %s7928_s22, 0 }
  0x4b   : > { %7840 = dma.done.wait (%p10480_p5), [#allocation5], 18432   ;;  %p10481_p0 = pmov %p10480_p5 }
  0x4d   : > { %7842 = vsyncadd (%p10481_p0), [#allocation5], 4294948864  ;;  %p10482_p6 = pmov %p10481_p0 }
  0x4e   : > { %p10483_p9 = pmov %p10481_p0 }
  0x4f   : > { %7844 = dma.done.wait (%p10482_p6), [#allocation8], 18432  }
  0x50   : > { %7846 = vsyncadd (%p10483_p9), [#allocation8], 4294948864  ;;  %v10446_v0 = vmov 0.0|0.0   ;;  %v7872_v1 = vmov 0.0   ;;  %p248_p12 = scmp.lt.s32.totalorder %s7928_s22, 1  ;;  %v614_v2 = vld [vmem:[#allocation4 + $0x180] sm:$0xff] }
  0x51   : > { %7185 = vmatprep.subr.bf16.mxu0 %v10446_v0  ;;  %256 = vst [vmem:[#allocation2 + $0x18] sm:$0xff] %v7872_v1  ;;  %257 = vst [vmem:[#allocation2 + $0x20] sm:$0xff] %v7872_v1  ;;  %v615_v3 = vld [vmem:[#allocation4 + $0x188] sm:$0xff]  ;;  %v646_v4 = vld [vmem:[#allocation4 + $0x280] sm:$0xff]  ;;  %vm340_vm0 = vcmask 31744   ;;  %s245_s16 = sand.u32 1, %s7857_s19  }
  0x52   : > { %258 = vst [vmem:[#allocation2 + $0x28] sm:$0x3] %v7872_v1  ;;  %253 = vst [vmem:[#allocation2] sm:$0xff] %v7872_v1  ;;  %s249_s30 = scalar_select %p248_p12, %s7928_s22, 1  ;;  %v7186_v5 = vpack.c.bf16 %v615_v3, %v614_v2  ;;  %v647_v6 = vld [vmem:[#allocation4 + $0x288] sm:$0xff]  ;;  %v616_v7 = vld [vmem:[#allocation4 + $0x190] sm:$0xff] }
  0x53   : > { %254 = vst [vmem:[#allocation2 + $0x8] sm:$0xff] %v7872_v1  ;;  %255 = vst [vmem:[#allocation2 + $0x10] sm:$0x3] %v7872_v1  ;;  %v617_v8 = vld [vmem:[#allocation4 + $0x198] sm:$0xff]  ;;  %v7233_v9 = vpack.c.bf16 %v647_v6, %v646_v4  ;;  %v648_v10 = vld [vmem:[#allocation4 + $0x290] sm:$0xff]  ;;  %s9983_s17 = sshll.u32 %s245_s16, 6 }
  0x54   : > { %259 = vst [vmem:[#allocation2 + $0x30] sm:$0xff] %v7872_v1  ;;  %260 = vst [vmem:[#allocation2 + $0x38] sm:$0xff] %v7872_v1  ;;  %v649_v11 = vld [vmem:[#allocation4 + $0x298] sm:$0xff]  ;;  %7187 = vmatpush1.bf16.msra.mxu0 %v7186_v5  ;;  %v7189_v12 = vpack.c.bf16 %v617_v8, %v616_v7  ;;  %v650_v14 = vld [vmem:[#allocation4 + $0x2a0] sm:$0xff]  ;;  %s6415_s8 = sshll.u32 %s249_s30, 8  ;;  %s10016_s7 = scalar_lea.vmem [#allocation9], %s9983_s17 }
  0x55   : > { %261 = vst [vmem:[#allocation2 + $0x40] sm:$0x3] %v7872_v1  ;;  %262 = vst [vmem:[#allocation2 + $0x48] sm:$0xff] %v7872_v1  ;;  %v7237_v13 = vpack.c.bf16 %v649_v11, %v648_v10  ;;  %v651_v15 = vld [vmem:[#allocation4 + $0x2a8] sm:$0xff]  ;;  %7234 = vmatprep.subr.bf16.mxu1 %v7233_v9  ;;  %7188 = vmatprep.subr.bf16.mxu0 %v10446_v0  ;;  %v618_v16 = vld [vmem:[#allocation4 + $0x1a0] sm:$0xff]  ;;  %s8142_s26 = scalar_lea.vmem %s10437_s0, %s6415_s8  ;;  %s6416_s30 = sshll.u32 %s7928_s22, 10 }
  0x56   : > { %263 = vst [vmem:[#allocation2 + $0x50] sm:$0xff] %v7872_v1  ;;  %264 = vst [vmem:[#allocation2 + $0x58] sm:$0x3] %v7872_v1  ;;  %v619_v17 = vld [vmem:[#allocation4 + $0x1a8] sm:$0xff]  ;;  %7236 = vmatpush3.bf16.msra.mxu1 %v7233_v9  ;;  %v7241_v18 = vpack.c.bf16 %v651_v15, %v650_v14  ;;  %v652_v20 = vld [vmem:[#allocation4 + $0x2b0] sm:$0xff]  ;;  %s6185_s8 = sshll.u32 %s10016_s7, 4  ;;  %s10389_s8 = int_to_ptr.vmem [resolvable:$true] %s6185_s8 }
  0x57   : > { %265 = vst [vmem:[#allocation2 + $0x60] sm:$0xff] %v7872_v1  ;;  %266 = vst [vmem:[#allocation2 + $0x68] sm:$0xff] %v7872_v1  ;;  %7238 = vmatprep.subr.bf16.mxu1 %v7237_v13  ;;  %v7192_v19 = vpack.c.bf16 %v619_v17, %v618_v16  ;;  %v653_v21 = vld [vmem:[#allocation4 + $0x2b8] sm:$0xff]  ;;  %v620_v22 = vld [vmem:[#allocation4 + $0x1b0] sm:$0xff]  ;;  %s10396_s22 = scalar_lea.sflag [#allocation6], %s245_s16  ;;  %s7795_s9 = scalar_lea.vmem %s10389_s8, 1024 }
  0x58   : > { %267 = vst [vmem:[#allocation2 + $0x70] sm:$0x3] %v7872_v1  ;;  %268 = vst [vmem:[#allocation2 + $0x78] sm:$0xff] %v7872_v1  ;;  %7190 = vmatpush1.bf16.msra.mxu0 %v7189_v12  ;;  %v621_v23 = vld [vmem:[#allocation4 + $0x1b8] sm:$0xff]  ;;  %v7245_v24 = vpack.c.bf16 %v653_v21, %v652_v20  ;;  %v307_v25 = vld [vmem:[%s8142_s26] sm:$0xff]  ;;  %p7796_p10 = scmp.ne.s32.totalorder %s10389_s8, %s7795_s9  ;;  %p10599_p1 = scmp.ne.s32.totalorder %s10475_s28, 0 }
  0x59   : > { %269 = vst [vmem:[#allocation2 + $0x80] sm:$0xff] %v7872_v1  ;;  %270 = vst [vmem:[#allocation2 + $0x88] sm:$0x3] %v7872_v1  ;;  %7191 = vmatprep.subr.bf16.mxu0 %v10446_v0  ;;  %v7195_v26 = vpack.c.bf16 %v621_v23, %v620_v22  ;;  %v654_v27 = vld [vmem:[#allocation4 + $0x2c0] sm:$0xff]  ;;  %v655_v28 = vld [vmem:[#allocation4 + $0x2c8] sm:$0xff]  ;;  %s7874_s11 = smov [#allocation9]  }
  0x5a   : > { %271 = vst [vmem:[#allocation2 + $0x90] sm:$0xff] %v7872_v1  ;;  %272 = vst [vmem:[#allocation2 + $0x98] sm:$0xff] %v7872_v1  ;;  %7240 = vmatpush3.bf16.msra.mxu1 %v7237_v13  ;;  %v308_v29 = vld [vmem:[%s8142_s26 + $0x8] sm:$0xff]  ;;  %v622_v30 = vld [vmem:[#allocation4 + $0x1c0] sm:$0xff]  ;;  %v7249_v34 = vpack.c.bf16 %v655_v28, %v654_v27  ;;  %p7797_p2 = pnand %p7796_p10, %p10599_p1  ;;  %s7799_s12 = sshll.u32 %s7874_s11, 4  ;;  %s7800_s12 = int_to_ptr.vmem [resolvable:$false] %s7799_s12 }
  0x5b   : > { %273 = vst [vmem:[#allocation2 + $0xa0] sm:$0x3] %v7872_v1  ;;  %274 = vst [vmem:[#allocation2 + $0xa8] sm:$0xff] %v7872_v1  ;;  %7242 = vmatprep.subr.bf16.mxu1 %v7241_v18  ;;  %v623_v31 = vld [vmem:[#allocation4 + $0x1c8] sm:$0xff]  ;;  %v309_v32 = vld [vmem:[%s8142_s26 + $0x10] sm:$0xff]  ;;  %s7801_s13 = scalar_lea.vmem %s7800_s12, 2048  ;;  %p7802_p4 = scmp.lt.s32.totalorder %s10389_s8, %s7800_s12 }
  0x5c   : > { %275 = vst [vmem:[#allocation2 + $0xb0] sm:$0xff] %v7872_v1  ;;  %276 = vst [vmem:[#allocation2 + $0xb8] sm:$0x3] %v7872_v1  ;;  %7193 = vmatpush1.bf16.msra.mxu0 %v7192_v19  ;;  %v310_v33 = vld [vmem:[%s8142_s26 + $0x18] sm:$0xff]  ;;  %v311_v35 = vld [vmem:[%s8142_s26 + $0x20] sm:$0xff]  ;;  %v7198_v36 = vpack.c.bf16 %v623_v31, %v622_v30  ;;  %p7798_p3 = pneg %p7797_p2  ;;  %p7803_p7 = scmp.lt.s32.totalorder %s7801_s13, %s7795_s9 }
  0x5d   : > { %277 = vst [vmem:[#allocation2 + $0xc0] sm:$0xff] %v7872_v1  ;;  %278 = vst [vmem:[#allocation2 + $0xc8] sm:$0xff] %v7872_v1  ;;  %7194 = vmatprep.subr.bf16.mxu0 %v10446_v0  ;;  %v656_v37 = vld [vmem:[#allocation4 + $0x2d0] sm:$0xff]  ;;  %v657_v38 = vld [vmem:[#allocation4 + $0x2d8] sm:$0xff] }
  0x5e   : > { %279 = vst [vmem:[#allocation2 + $0xd0] sm:$0x3] %v7872_v1  ;;  %280 = vst [vmem:[#allocation2 + $0xd8] sm:$0xff] %v7872_v1  ;;  %7244 = vmatpush3.bf16.msra.mxu1 %v7241_v18  ;;  %v312_v39 = vld [vmem:[%s8142_s26 + $0x28] sm:$0xff]  ;;  %v624_v40 = vld [vmem:[#allocation4 + $0x1d0] sm:$0xff]  ;;  %v7253_v44 = vpack.c.bf16 %v657_v38, %v656_v37  ;;  %p7804_p8 = por %p7803_p7, %p7802_p4 }
  0x5f   : > { %281 = vst [vmem:[#allocation2 + $0xe0] sm:$0xff] %v7872_v1  ;;  %282 = vst [vmem:[#allocation2 + $0xe8] sm:$0x3] %v7872_v1  ;;  %7246 = vmatprep.subr.bf16.mxu1 %v7245_v24  ;;  %v625_v41 = vld [vmem:[#allocation4 + $0x1d8] sm:$0xff]  ;;  %v313_v42 = vld [vmem:[%s8142_s26 + $0x30] sm:$0xff] }
  0x60   : > { %283 = vst [vmem:[#allocation2 + $0xf0] sm:$0xff] %v7872_v1  ;;  %284 = vst [vmem:[#allocation2 + $0xf8] sm:$0xff] %v7872_v1  ;;  %7196 = vmatpush1.bf16.msra.mxu0 %v7195_v26  ;;  %v314_v43 = vld [vmem:[%s8142_s26 + $0x38] sm:$0xff]  ;;  %v658_v45 = vld [vmem:[#allocation4 + $0x2e0] sm:$0xff]  ;;  %v7201_v47 = vpack.c.bf16 %v625_v41, %v624_v40  ;;  %p7805_p11 = pnand %p7804_p8, %p7798_p3 }
  0x61   : > { %285 = vst [vmem:[#allocation2 + $0x100] sm:$0x3] %v7872_v1  ;;  %286 = vst [vmem:[#allocation2 + $0x108] sm:$0xff] %v7872_v1  ;;  %7197 = vmatprep.subr.bf16.mxu0 %v10446_v0  ;;  %v315_v46 = vld [vmem:[%s8142_s26 + $0x40] sm:$0xff]  ;;  %v659_v48 = vld [vmem:[#allocation4 + $0x2e8] sm:$0xff] }
  0x62   : > { %287 = vst [vmem:[#allocation2 + $0x110] sm:$0xff] %v7872_v1  ;;  %288 = vst [vmem:[#allocation2 + $0x118] sm:$0x3] %v7872_v1  ;;  %7248 = vmatpush3.bf16.msra.mxu1 %v7245_v24  ;;  %v316_v50 = vld [vmem:[%s8142_s26 + $0x48] sm:$0xff]  ;;  %v626_v51 = vld [vmem:[#allocation4 + $0x1e0] sm:$0xff]  ;;  %v7257_v53 = vpack.c.bf16 %v659_v48, %v658_v45 }
  0x63   : > { %289 = vst [vmem:[#allocation2 + $0x120] sm:$0xff] %v7872_v1  ;;  %290 = vst [vmem:[#allocation2 + $0x128] sm:$0xff] %v7872_v1  ;;  %7250 = vmatprep.subr.bf16.mxu1 %v7249_v34  ;;  %v627_v52 = vld [vmem:[#allocation4 + $0x1e8] sm:$0xff]  ;;  %v317_v54 = vld [vmem:[%s8142_s26 + $0x50] sm:$0xff] }
  0x64   : > { %291 = vst [vmem:[#allocation2 + $0x130] sm:$0x3] %v7872_v1  ;;  %292 = vst [vmem:[#allocation2 + $0x138] sm:$0xff] %v7872_v1  ;;  %7199 = vmatpush1.bf16.msra.mxu0 %v7198_v36  ;;  %v318_v55 = vld [vmem:[%s8142_s26 + $0x58] sm:$0xff]  ;;  %v7204_v56 = vpack.c.bf16 %v627_v52, %v626_v51  ;;  %v660_v57 = vld [vmem:[#allocation4 + $0x2f0] sm:$0xff] }
  0x65   : > { %293 = vst [vmem:[#allocation2 + $0x140] sm:$0xff] %v7872_v1  ;;  %294 = vst [vmem:[#allocation2 + $0x148] sm:$0x3] %v7872_v1  ;;  %7200 = vmatprep.subr.bf16.mxu0 %v10446_v0  ;;  %v661_v58 = vld [vmem:[#allocation4 + $0x2f8] sm:$0xff]  ;;  %v628_v59 = vld [vmem:[#allocation4 + $0x1f0] sm:$0xff] }
  0x66   : > { %295 = vst [vmem:[#allocation2 + $0x150] sm:$0xff] %v7872_v1  ;;  %296 = vst [vmem:[#allocation2 + $0x158] sm:$0xff] %v7872_v1  ;;  %7252 = vmatpush3.bf16.msra.mxu1 %v7249_v34  ;;  %v629_v60 = vld [vmem:[#allocation4 + $0x1f8] sm:$0xff]  ;;  %v319_v61 = vld [vmem:[%s8142_s26 + $0x60] sm:$0xff]  ;;  %v7261_v63 = vpack.c.bf16 %v661_v58, %v660_v57 }
  0x67   : > { %297 = vst [vmem:[#allocation2 + $0x160] sm:$0x3] %v7872_v1  ;;  %298 = vst [vmem:[#allocation2 + $0x168] sm:$0xff] %v7872_v1  ;;  %7254 = vmatprep.subr.bf16.mxu1 %v7253_v44  ;;  %v320_v62 = vld [vmem:[%s8142_s26 + $0x68] sm:$0xff]  ;;  %v630_v2 = vld [vmem:[#allocation4 + $0x200] sm:$0xff] }
  0x68   : > { %299 = vst [vmem:[#allocation2 + $0x170] sm:$0xff] %v7872_v1  ;;  %300 = vst [vmem:[#allocation2 + $0x178] sm:$0x3] %v7872_v1  ;;  %7202 = vmatpush1.bf16.msra.mxu0 %v7201_v47  ;;  %v631_v3 = vld [vmem:[#allocation4 + $0x208] sm:$0xff]  ;;  %v321_v4 = vld [vmem:[%s8142_s26 + $0x70] sm:$0xff] }
  0x69   : > { %301 = vst [vmem:[#allocation2 + $0x180] sm:$0xff] %v7872_v1  ;;  %302 = vst [vmem:[#allocation2 + $0x188] sm:$0xff] %v7872_v1  ;;  %7203 = vmatprep.subr.bf16.mxu0 %v10446_v0  ;;  %v322_v5 = vld [vmem:[%s8142_s26 + $0x78] sm:$0xff]  ;;  %v469_v6 = vld [vmem:[#allocation4] sm:$0xff]  ;;  %v7210_v9 = vpack.c.bf16 %v631_v3, %v630_v2 }
  0x6a   : > { %303 = vst [vmem:[#allocation2 + $0x190] sm:$0x3] %v7872_v1  ;;  %304 = vst [vmem:[#allocation2 + $0x198] sm:$0xff] %v7872_v1  ;;  %7256 = vmatpush3.bf16.msra.mxu1 %v7253_v44  ;;  %v470_v7 = vld [vmem:[#allocation4 + $0x8] sm:$0xff]  ;;  %v323_v10 = vld [vmem:[%s8142_s26 + $0x80] sm:$0xff] }
  0x6b   : > { %305 = vst [vmem:[#allocation2 + $0x1a0] sm:$0xff] %v7872_v1  ;;  %306 = vst [vmem:[#allocation2 + $0x1a8] sm:$0x3] %v7872_v1  ;;  %7258 = vmatprep.subr.bf16.mxu1 %v7257_v53  ;;  %v324_v11 = vld [vmem:[%s8142_s26 + $0x88] sm:$0xff]  ;;  %v632_v12 = vld [vmem:[#allocation4 + $0x210] sm:$0xff]  ;;  %v7266_v15 = vpack.c.bf16 %v470_v7, %v469_v6 }
  0x6c   : > { %2357 = vst [vmem:[#allocation3] sm:$0xff] %v7872_v1  ;;  %2358 = vst [vmem:[#allocation3 + $0x8] sm:$0xff] %v7872_v1  ;;  %7205 = vmatpush1.bf16.msra.mxu0 %v7204_v56  ;;  %v633_v13 = vld [vmem:[#allocation4 + $0x218] sm:$0xff]  ;;  %v471_v16 = vld [vmem:[#allocation4 + $0x10] sm:$0xff] }
  0x6d   : > { %2359 = vst [vmem:[#allocation3 + $0x10] sm:$0x3] %v7872_v1  ;;  %2360 = vst [vmem:[#allocation3 + $0x18] sm:$0xff] %v7872_v1  ;;  %7206 = vmatprep.subr.bf16.mxu0 %v10446_v0  ;;  %v472_v18 = vld [vmem:[#allocation4 + $0x18] sm:$0xff]  ;;  %v325_v19 = vld [vmem:[%s8142_s26 + $0x90] sm:$0xff]  ;;  %v7213_v20 = vpack.c.bf16 %v633_v13, %v632_v12 }
  0x6e   : > { %2361 = vst [vmem:[#allocation3 + $0x20] sm:$0xff] %v7872_v1  ;;  %2362 = vst [vmem:[#allocation3 + $0x28] sm:$0x3] %v7872_v1  ;;  %7260 = vmatpush3.bf16.msra.mxu1 %v7257_v53  ;;  %v326_v21 = vld [vmem:[%s8142_s26 + $0x98] sm:$0xff]  ;;  %v634_v22 = vld [vmem:[#allocation4 + $0x220] sm:$0xff] }
  0x6f   : > { %2363 = vst [vmem:[#allocation3 + $0x30] sm:$0xff] %v7872_v1  ;;  %2364 = vst [vmem:[#allocation3 + $0x38] sm:$0xff] %v7872_v1  ;;  %7262 = vmatprep.subr.bf16.mxu1 %v7261_v63  ;;  %v635_v23 = vld [vmem:[#allocation4 + $0x228] sm:$0xff]  ;;  %v327_v26 = vld [vmem:[%s8142_s26 + $0xa0] sm:$0xff] }
  0x70   : > { %2365 = vst [vmem:[#allocation3 + $0x40] sm:$0x3] %v7872_v1  ;;  %2366 = vst [vmem:[#allocation3 + $0x48] sm:$0xff] %v7872_v1  ;;  %v328_v27 = vld [vmem:[%s8142_s26 + $0xa8] sm:$0xff]  ;;  %v7216_v31 = vpack.c.bf16 %v635_v23, %v634_v22  ;;  %v329_v34 = vld [vmem:[%s8142_s26 + $0xb0] sm:$0xff] }
  0x71   : > { %2367 = vst [vmem:[#allocation3 + $0x50] sm:$0xff] %v7872_v1  ;;  %2368 = vst [vmem:[#allocation3 + $0x58] sm:$0x3] %v7872_v1  ;;  %v474_v30 = vld [vmem:[#allocation4 + $0x28] sm:$0xff]  ;;  %v475_v38 = vld [vmem:[#allocation4 + $0x30] sm:$0xff] }
  0x72   : > { %2369 = vst [vmem:[#allocation3 + $0x60] sm:$0xff] %v7872_v1  ;;  %2370 = vst [vmem:[#allocation3 + $0x68] sm:$0xff] %v7872_v1  ;;  %7264 = vmatpush3.bf16.msra.mxu1 %v7261_v63  ;;  %v331_v41 = vld [vmem:[%s8142_s26 + $0xc0] sm:$0xff]  ;;  %v639_v45 = vld [vmem:[#allocation4 + $0x248] sm:$0xff] }
  0x73   : > { %2371 = vst [vmem:[#allocation3 + $0x70] sm:$0x3] %v7872_v1  ;;  %2372 = vst [vmem:[#allocation3 + $0x78] sm:$0xff] %v7872_v1  ;;  %7265 = vmatprep.subr.bf16.mxu1 %v10446_v0  ;;  %v638_v44 = vld [vmem:[#allocation4 + $0x240] sm:$0xff]  ;;  %v333_v51 = vld [vmem:[%s8142_s26 + $0xd0] sm:$0xff] }
  0x74   : > { %2373 = vst [vmem:[#allocation3 + $0x80] sm:$0xff] %v7872_v1  ;;  %2374 = vst [vmem:[#allocation3 + $0x88] sm:$0x3] %v7872_v1  ;;  %v477_v48 = vld [vmem:[#allocation4 + $0x40] sm:$0xff]  ;;  %v334_v52 = vld [vmem:[%s8142_s26 + $0xd8] sm:$0xff]  ;;  %v7222_v53 = vpack.c.bf16 %v639_v45, %v638_v44 }
  0x75   : > { %2375 = vst [vmem:[#allocation3 + $0x90] sm:$0xff] %v7872_v1  ;;  %2376 = vst [vmem:[#allocation3 + $0x98] sm:$0xff] %v7872_v1  ;;  %v335_v56 = vld [vmem:[%s8142_s26 + $0xe0] sm:$0xff]  ;;  %v338_v2 = vld [vmem:[%s8142_s26 + $0xf8] sm:$0xff] }
  0x76   : > { %2377 = vst [vmem:[#allocation3 + $0xa0] sm:$0x3] %v7872_v1  ;;  %2378 = vst [vmem:[#allocation3 + $0xa8] sm:$0xff] %v7872_v1  ;;  %v642_v3 = vld [vmem:[#allocation4 + $0x260] sm:$0xff]  ;;  %v644_v12 = vld [vmem:[#allocation4 + $0x270] sm:$0xff] }
  0x77   : > { %2379 = vst [vmem:[#allocation3 + $0xb0] sm:$0xff] %v7872_v1  ;;  %2380 = vst [vmem:[#allocation3 + $0xb8] sm:$0x3] %v7872_v1  ;;  %v645_v13 = vld [vmem:[#allocation4 + $0x278] sm:$0xff]  ;;  %v507_v45 = vld [vmem:[#allocation4 + $0x130] sm:$0xff] }
  0x78   : > { %2381 = vst [vmem:[#allocation3 + $0xc0] sm:$0xff] %v7872_v1  ;;  %2382 = vst [vmem:[#allocation3 + $0xc8] sm:$0xff] %v7872_v1 }
  0x79   : > { %2383 = vst [vmem:[#allocation3 + $0xd0] sm:$0x3] %v7872_v1  ;;  %2384 = vst [vmem:[#allocation3 + $0xd8] sm:$0xff] %v7872_v1 }
  0x7a   : > { %2385 = vst [vmem:[#allocation3 + $0xe0] sm:$0xff] %v7872_v1  ;;  %2386 = vst [vmem:[#allocation3 + $0xe8] sm:$0x3] %v7872_v1 }
  0x7b   : > { %2387 = vst [vmem:[#allocation3 + $0xf0] sm:$0xff] %v7872_v1  ;;  %2388 = vst [vmem:[#allocation3 + $0xf8] sm:$0xff] %v7872_v1 }
  0x7c   : > { %2389 = vst [vmem:[#allocation3 + $0x100] sm:$0x3] %v7872_v1  ;;  %2390 = vst [vmem:[#allocation3 + $0x108] sm:$0xff] %v7872_v1 }
  0x7d   : > { %2391 = vst [vmem:[#allocation3 + $0x110] sm:$0xff] %v7872_v1  ;;  %2392 = vst [vmem:[#allocation3 + $0x118] sm:$0x3] %v7872_v1 }
  0x7e   : > { %2393 = vst [vmem:[#allocation3 + $0x120] sm:$0xff] %v7872_v1  ;;  %2394 = vst [vmem:[#allocation3 + $0x128] sm:$0xff] %v7872_v1 }
  0x7f   : > { %2395 = vst [vmem:[#allocation3 + $0x130] sm:$0x3] %v7872_v1  ;;  %2396 = vst [vmem:[#allocation3 + $0x138] sm:$0xff] %v7872_v1 }
  0x80   : > { %2397 = vst [vmem:[#allocation3 + $0x140] sm:$0xff] %v7872_v1  ;;  %2398 = vst [vmem:[#allocation3 + $0x148] sm:$0x3] %v7872_v1 }
  0x81   : > { %2399 = vst [vmem:[#allocation3 + $0x150] sm:$0xff] %v7872_v1  ;;  %2400 = vst [vmem:[#allocation3 + $0x158] sm:$0xff] %v7872_v1 }
  0x82   : > { %2401 = vst [vmem:[#allocation3 + $0x160] sm:$0x3] %v7872_v1  ;;  %2402 = vst [vmem:[#allocation3 + $0x168] sm:$0xff] %v7872_v1 }
  0x83   : > { %2403 = vst [vmem:[#allocation3 + $0x170] sm:$0xff] %v7872_v1  ;;  %2404 = vst [vmem:[#allocation3 + $0x178] sm:$0x3] %v7872_v1 }
  0x84   : > { %2405 = vst [vmem:[#allocation3 + $0x180] sm:$0xff] %v7872_v1  ;;  %2406 = vst [vmem:[#allocation3 + $0x188] sm:$0xff] %v7872_v1 }
  0x85   : > { %2407 = vst [vmem:[#allocation3 + $0x190] sm:$0x3] %v7872_v1  ;;  %2408 = vst [vmem:[#allocation3 + $0x198] sm:$0xff] %v7872_v1 }
  0x86   : > { %2409 = vst [vmem:[#allocation3 + $0x1a0] sm:$0xff] %v7872_v1  ;;  %2410 = vst [vmem:[#allocation3 + $0x1a8] sm:$0x3] %v7872_v1  ;;  %v7207_v1 = vpack.c.bf16 %v629_v60, %v628_v59  ;;  %v336_v59 = vld [vmem:[%s8142_s26 + $0xe8] sm:$0xff] }
  0x87   : > { %341 = vst.msk [vmem:[#allocation2 + $0x19] sm:$0xff] %vm340_vm0, %v307_v25  ;;  %342 = vst.msk [vmem:[#allocation2 + $0x21] sm:$0xff] %vm340_vm0, %v308_v29  ;;  %v7269_v25 = vpack.c.bf16 %v472_v18, %v471_v16  ;;  %v473_v29 = vld [vmem:[#allocation4 + $0x20] sm:$0xff] }
  0x88   : > { %343 = vst.msk [vmem:[#allocation2 + $0x31] sm:$0xff] %vm340_vm0, %v309_v32  ;;  %344 = vst.msk [vmem:[#allocation2 + $0x39] sm:$0xff] %vm340_vm0, %v310_v33  ;;  %7208 = vmatpush1.bf16.msra.mxu0 %v7207_v1  ;;  %v636_v32 = vld [vmem:[#allocation4 + $0x230] sm:$0xff]  ;;  %v637_v33 = vld [vmem:[#allocation4 + $0x238] sm:$0xff]  ;;  %v7272_v37 = vpack.c.bf16 %v474_v30, %v473_v29 }
  0x89   : > { %345 = vst.msk [vmem:[#allocation2 + $0x49] sm:$0xff] %vm340_vm0, %v311_v35  ;;  %346 = vst.msk [vmem:[#allocation2 + $0x51] sm:$0xff] %vm340_vm0, %v312_v39  ;;  %7209 = vmatprep.subr.bf16.mxu0 %v10446_v0  ;;  %v330_v35 = vld [vmem:[%s8142_s26 + $0xb8] sm:$0xff]  ;;  %v337_v1 = vld [vmem:[%s8142_s26 + $0xf0] sm:$0xff] }
  0x8a   : > { %347 = vst.msk [vmem:[#allocation2 + $0x61] sm:$0xff] %vm340_vm0, %v313_v42  ;;  %348 = vst.msk [vmem:[#allocation2 + $0x69] sm:$0xff] %vm340_vm0, %v314_v43  ;;  %v476_v39 = vld [vmem:[#allocation4 + $0x38] sm:$0xff]  ;;  %v332_v42 = vld [vmem:[%s8142_s26 + $0xc8] sm:$0xff]  ;;  %v7219_v43 = vpack.c.bf16 %v637_v33, %v636_v32  ;;  %s10387_s26 = scalar_lea.hbm %s10442_s5, %s6416_s30 }
  0x8b   : > { %349 = vst.msk [vmem:[#allocation2 + $0x79] sm:$0xff] %vm340_vm0, %v315_v46  ;;  %350 = vst.msk [vmem:[#allocation2 + $0x81] sm:$0xff] %vm340_vm0, %v316_v50  ;;  %v7275_v47 = vpack.c.bf16 %v476_v39, %v475_v38  ;;  %v501_v16 = vld [vmem:[#allocation4 + $0x100] sm:$0xff]  ;;  %v486_v29 = vld [vmem:[#allocation4 + $0x88] sm:$0xff] }
  0x8c   : > { %351 = vst.msk [vmem:[#allocation2 + $0x91] sm:$0xff] %vm340_vm0, %v317_v54  ;;  %352 = vst.msk [vmem:[#allocation2 + $0x99] sm:$0xff] %vm340_vm0, %v318_v55  ;;  %7211 = vmatpush1.bf16.msra.mxu0 %v7210_v9  ;;  %v640_v54 = vld [vmem:[#allocation4 + $0x250] sm:$0xff]  ;;  %v641_v55 = vld [vmem:[#allocation4 + $0x258] sm:$0xff] }
  0x8d   : > { %353 = vst.msk [vmem:[#allocation2 + $0xa9] sm:$0xff] %vm340_vm0, %v319_v61  ;;  %354 = vst.msk [vmem:[#allocation2 + $0xb1] sm:$0xff] %vm340_vm0, %v320_v62  ;;  %7212 = vmatprep.subr.bf16.mxu0 %v10446_v0  ;;  %v479_v61 = vld [vmem:[#allocation4 + $0x50] sm:$0xff]  ;;  %v480_v62 = vld [vmem:[#allocation4 + $0x58] sm:$0xff]  ;;  %v7225_v63 = vpack.c.bf16 %v641_v55, %v640_v54 }
  0x8e   : > { %v581_v49 = vld [vmem:[#allocation2 + $0x1a] sm:$0xff]  ;;  %355 = vst.msk [vmem:[#allocation2 + $0xc1] sm:$0xff] %vm340_vm0, %v321_v4  ;;  %356 = vst.msk [vmem:[#allocation2 + $0xc9] sm:$0xff] %vm340_vm0, %v322_v5  ;;  %v582_v14 = vld [vmem:[#allocation2 + $0x22] sm:$0xff]  ;;  %v7281_v6 = vpack.c.bf16 %v480_v62, %v479_v61 }
  0x8f   : > { %6737 = vmatprep.mubr.f32.mxu1 %v581_v49  ;;  %v8182_v8 = vld [vmem:[#allocation2 + $0x19] sm:$0xff]  ;;  %357 = vst.msk [vmem:[#allocation2 + $0xd9] sm:$0xff] %vm340_vm0, %v323_v10  ;;  %358 = vst.msk [vmem:[#allocation2 + $0xe1] sm:$0xff] %vm340_vm0, %v324_v11  ;;  %v478_v49 = vld [vmem:[#allocation4 + $0x48] sm:$0xff] }
  0x90   : > { %726 = vmatprep.mubr.f32.mxu0 %v8182_v8  ;;  %v583_v17 = vld [vmem:[#allocation2 + $0x32] sm:$0xff]  ;;  %359 = vst.msk [vmem:[#allocation2 + $0xf1] sm:$0xff] %vm340_vm0, %v325_v19  ;;  %6738 = vmatmul.mubr.f32.vlgmr.msra.gmra.mrb[0].mxu1 %v582_v14  ;;  %360 = vst.msk [vmem:[#allocation2 + $0xf9] sm:$0xff] %vm340_vm0, %v326_v21  ;;  %v584_v24 = vld [vmem:[#allocation2 + $0x3a] sm:$0xff]  ;;  %v7278_v58 = vpack.c.bf16 %v478_v49, %v477_v48  ;;  %v7231_v21 = vpack.c.bf16 %v645_v13, %v644_v12 }
  0x91   : > { %7267 = vmatpush1.bf16.msra.mxu1 %v7266_v15  ;;  %6740 = vmatprep.mubr.f32.mxu1 %v583_v17  ;;  %v585_v28 = vld [vmem:[#allocation2 + $0x4a] sm:$0xff]  ;;  %361 = vst.msk [vmem:[#allocation2 + $0x109] sm:$0xff] %vm340_vm0, %v327_v26  ;;  %362 = vst.msk [vmem:[#allocation2 + $0x111] sm:$0xff] %vm340_vm0, %v328_v27  ;;  %v586_v36 = vld [vmem:[#allocation2 + $0x52] sm:$0xff] }
  0x92   : > { %7268 = vmatprep.subr.bf16.mxu1 %v10446_v0  ;;  %7214 = vmatpush1.bf16.msra.mxu0 %v7213_v20  ;;  %363 = vst.msk [vmem:[#allocation2 + $0x121] sm:$0xff] %vm340_vm0, %v329_v34  ;;  %364 = vst.msk [vmem:[#allocation2 + $0x129] sm:$0xff] %vm340_vm0, %v330_v35  ;;  %v587_v40 = vld [vmem:[#allocation2 + $0x62] sm:$0xff]  ;;  %v588_v46 = vld [vmem:[#allocation2 + $0x6a] sm:$0xff] }
  0x93   : > { %7215 = vmatprep.subr.bf16.mxu0 %v10446_v0  ;;  %365 = vst.msk [vmem:[#allocation2 + $0x139] sm:$0xff] %vm340_vm0, %v331_v41  ;;  %366 = vst.msk [vmem:[#allocation2 + $0x141] sm:$0xff] %vm340_vm0, %v332_v42  ;;  %v589_v50 = vld [vmem:[#allocation2 + $0x7a] sm:$0xff]  ;;  %v590_v57 = vld [vmem:[#allocation2 + $0x82] sm:$0xff] }
  0x94   : > { %6741 = vmatmul.mubr.f32.gmra.mrb[2].mxu1 %v584_v24  ;;  %367 = vst.msk [vmem:[#allocation2 + $0x151] sm:$0xff] %vm340_vm0, %v333_v51  ;;  %368 = vst.msk [vmem:[#allocation2 + $0x159] sm:$0xff] %vm340_vm0, %v334_v52  ;;  %v591_v60 = vld [vmem:[#allocation2 + $0x92] sm:$0xff]  ;;  %v643_v4 = vld [vmem:[#allocation4 + $0x268] sm:$0xff] }
  0x95   : > { %7270 = vmatpush1.bf16.msra.mxu1 %v7269_v25  ;;  %6743 = vmatprep.mubr.f32.mxu1 %v585_v28  ;;  %369 = vst.msk [vmem:[#allocation2 + $0x169] sm:$0xff] %vm340_vm0, %v335_v56  ;;  %370 = vst.msk [vmem:[#allocation2 + $0x171] sm:$0xff] %vm340_vm0, %v336_v59  ;;  %v592_v5 = vld [vmem:[#allocation2 + $0x9a] sm:$0xff]  ;;  %v593_v7 = vld [vmem:[#allocation2 + $0xaa] sm:$0xff]  ;;  %v7228_v11 = vpack.c.bf16 %v643_v4, %v642_v3 }
  0x96   : > { %7271 = vmatprep.subr.bf16.mxu1 %v10446_v0  ;;  %7217 = vmatpush1.bf16.msra.mxu0 %v7216_v31  ;;  %371 = vst.msk [vmem:[#allocation2 + $0x181] sm:$0xff] %vm340_vm0, %v337_v1  ;;  %372 = vst.msk [vmem:[#allocation2 + $0x189] sm:$0xff] %vm340_vm0, %v338_v2  ;;  %v481_v9 = vld [vmem:[#allocation4 + $0x60] sm:$0xff]  ;;  %v482_v10 = vld [vmem:[#allocation4 + $0x68] sm:$0xff] }
  0x97   : > { %7218 = vmatprep.subr.bf16.mxu0 %v10446_v0  ;;  %v594_v14 = vld [vmem:[#allocation2 + $0xb2] sm:$0xff]  ;;  %v7284_v15 = vpack.c.bf16 %v482_v10, %v481_v9  ;;  %v502_v17 = vld [vmem:[#allocation4 + $0x108] sm:$0xff]  ;;  %v597_v27 = vld [vmem:[#allocation2 + $0xda] sm:$0xff] }
  0x98   : > { %6744 = vmatmul.mubr.f32.gmra.mrb[4].mxu1 %v586_v36  ;;  %v595_v18 = vld [vmem:[#allocation2 + $0xc2] sm:$0xff]  ;;  %v483_v19 = vld [vmem:[#allocation4 + $0x70] sm:$0xff]  ;;  %v484_v20 = vld [vmem:[#allocation4 + $0x78] sm:$0xff]  ;;  %v7313_v22 = vpack.c.bf16 %v502_v17, %v501_v16 }
  0x99   : > { %7273 = vmatpush1.bf16.msra.mxu1 %v7272_v37  ;;  %6746 = vmatprep.mubr.f32.mxu1 %v587_v40  ;;  %v596_v23 = vld [vmem:[#allocation2 + $0xca] sm:$0xff]  ;;  %v7287_v24 = vpack.c.bf16 %v484_v20, %v483_v19  ;;  %v504_v26 = vld [vmem:[#allocation4 + $0x118] sm:$0xff]  ;;  %v485_v28 = vld [vmem:[#allocation4 + $0x80] sm:$0xff] }
  0x9a   : > { %7274 = vmatprep.subr.bf16.mxu1 %v10446_v0  ;;  %7220 = vmatpush1.bf16.msra.mxu0 %v7219_v43  ;;  %v503_v25 = vld [vmem:[#allocation4 + $0x110] sm:$0xff]  ;;  %v8233_v30 = vld [vmem:[#allocation2 + $0x18] sm:$0xff]  ;;  %v8235_v31 = vld [vmem:[#allocation2 + $0x21] sm:$0xff]  ;;  %v7290_v34 = vpack.c.bf16 %v486_v29, %v485_v28 }
  0x9b   : > { %7221 = vmatprep.subr.bf16.mxu0 %v10446_v0  ;;  %v7317_v32 = vpack.c.bf16 %v504_v26, %v503_v25  ;;  %v598_v33 = vld [vmem:[#allocation2 + $0xe2] sm:$0xff]  ;;  %v599_v37 = vld [vmem:[#allocation2 + $0xf2] sm:$0xff]  ;;  %v600_v43 = vld [vmem:[#allocation2 + $0xfa] sm:$0xff] }
  0x9c   : > { %6747 = vmatmul.mubr.f32.gmra.mrb[6].mxu1 %v588_v46  ;;  %v505_v35 = vld [vmem:[#allocation4 + $0x120] sm:$0xff]  ;;  %v506_v36 = vld [vmem:[#allocation4 + $0x128] sm:$0xff]  ;;  %v487_v38 = vld [vmem:[#allocation4 + $0x90] sm:$0xff] }
  0x9d   : > { %7276 = vmatpush1.bf16.msra.mxu1 %v7275_v47  ;;  %6749 = vmatprep.mubr.f32.mxu1 %v589_v50  ;;  %v488_v39 = vld [vmem:[#allocation4 + $0x98] sm:$0xff]  ;;  %v8240_v40 = vld [vmem:[#allocation2 + $0x20] sm:$0xff]  ;;  %v7321_v42 = vpack.c.bf16 %v506_v36, %v505_v35  ;;  %v601_v47 = vld [vmem:[#allocation2 + $0x10a] sm:$0xff] }
  0x9e   : > { %7277 = vmatprep.subr.bf16.mxu1 %v10446_v0  ;;  %7223 = vmatpush1.bf16.msra.mxu0 %v7222_v53  ;;  %v8242_v41 = vld [vmem:[#allocation2 + $0x31] sm:$0xff]  ;;  %v7293_v44 = vpack.c.bf16 %v488_v39, %v487_v38  ;;  %v489_v48 = vld [vmem:[#allocation4 + $0xa0] sm:$0xff]  ;;  %v490_v49 = vld [vmem:[#allocation4 + $0xa8] sm:$0xff] }
  0x9f   : > { %7224 = vmatprep.subr.bf16.mxu0 %v10446_v0  ;;  %v508_v46 = vld [vmem:[#allocation4 + $0x138] sm:$0xff]  ;;  %v8247_v50 = vld [vmem:[#allocation2 + $0x30] sm:$0xff]  ;;  %v7296_v54 = vpack.c.bf16 %v490_v49, %v489_v48  ;;  %v509_v55 = vld [vmem:[#allocation4 + $0x140] sm:$0xff] }
  0xa0   : > { %6750 = vmatmul.mubr.f32.gmra.mrb[8].mxu1 %v590_v57  ;;  %v8249_v51 = vld [vmem:[#allocation2 + $0x39] sm:$0xff]  ;;  %v7325_v52 = vpack.c.bf16 %v508_v46, %v507_v45  ;;  %v510_v56 = vld [vmem:[#allocation4 + $0x148] sm:$0xff]  ;;  %v511_v2 = vld [vmem:[#allocation4 + $0x150] sm:$0xff] }
  0xa1   : > { %7279 = vmatpush1.bf16.msra.mxu1 %v7278_v58  ;;  %6752 = vmatprep.mubr.f32.mxu1 %v591_v60  ;;  %v602_v53 = vld [vmem:[#allocation2 + $0x112] sm:$0xff]  ;;  %v8253_v57 = vld [vmem:[#allocation2 + $0x122] sm:$0xff]  ;;  %v7329_v62 = vpack.c.bf16 %v510_v56, %v509_v55  ;;  %v8265_v4 = vld [vmem:[#allocation2 + $0x13a] sm:$0xff] }
  0xa2   : > { %7280 = vmatprep.subr.bf16.mxu1 %v10446_v0  ;;  %7226 = vmatpush1.bf16.msra.mxu0 %v7225_v63  ;;  %v491_v58 = vld [vmem:[#allocation4 + $0xb0] sm:$0xff]  ;;  %v492_v59 = vld [vmem:[#allocation4 + $0xb8] sm:$0xff]  ;;  %v513_v13 = vld [vmem:[#allocation4 + $0x160] sm:$0xff] }
  0xa3   : > { %7227 = vmatprep.subr.bf16.mxu0 %v10446_v0  ;;  %v8256_v60 = vld [vmem:[#allocation2 + $0x38] sm:$0xff]  ;;  %v8258_v61 = vld [vmem:[#allocation2 + $0x49] sm:$0xff]  ;;  %v7299_v1 = vpack.c.bf16 %v492_v59, %v491_v58  ;;  %v8284_v19 = vld [vmem:[#allocation2 + $0x61] sm:$0xff] }
  0xa4   : > { %6753 = vmatmul.mubr.f32.gmra.mrb[10].mxu1 %v592_v5  ;;  %v8261_v63 = vld [vmem:[#allocation2 + $0x12a] sm:$0xff]  ;;  %v512_v3 = vld [vmem:[#allocation4 + $0x158] sm:$0xff]  ;;  %v493_v5 = vld [vmem:[#allocation4 + $0xc0] sm:$0xff] }
  0xa5   : > { %7282 = vmatpush1.bf16.msra.mxu1 %v7281_v6  ;;  %6755 = vmatprep.mubr.f32.mxu1 %v593_v7  ;;  %v494_v6 = vld [vmem:[#allocation4 + $0xc8] sm:$0xff]  ;;  %v8271_v9 = vld [vmem:[#allocation2 + $0x51] sm:$0xff]  ;;  %v7333_v10 = vpack.c.bf16 %v512_v3, %v511_v2  ;;  %v497_v26 = vld [vmem:[#allocation4 + $0xe0] sm:$0xff] }
  0xa6   : > { %7283 = vmatprep.subr.bf16.mxu1 %v10446_v0  ;;  %7229 = vmatpush1.bf16.msra.mxu0 %v7228_v11  ;;  %v8268_v7 = vld [vmem:[#allocation2 + $0x48] sm:$0xff]  ;;  %v7302_v12 = vpack.c.bf16 %v494_v6, %v493_v5  ;;  %v495_v16 = vld [vmem:[#allocation4 + $0xd0] sm:$0xff]  ;;  %v496_v17 = vld [vmem:[#allocation4 + $0xd8] sm:$0xff] }
  0xa7   : > { %7230 = vmatprep.subr.bf16.mxu0 %v10446_v0  ;;  %v8274_v11 = vld [vmem:[#allocation2 + $0x142] sm:$0xff]  ;;  %v8291_v25 = vld [vmem:[#allocation2 + $0x16a] sm:$0xff]  ;;  %v500_v39 = vld [vmem:[#allocation4 + $0xf8] sm:$0xff] }
  0xa8   : > { %6756 = vmatmul.mubr.f32.gmra.mrb[12].mxu1 %v594_v14  ;;  %v514_v14 = vld [vmem:[#allocation4 + $0x168] sm:$0xff]  ;;  %v8294_v28 = vld [vmem:[#allocation2 + $0x60] sm:$0xff]  ;;  %v499_v38 = vld [vmem:[#allocation4 + $0xf0] sm:$0xff] }
  0xa9   : > { %7285 = vmatpush1.bf16.msra.mxu1 %v7284_v15  ;;  %6758 = vmatprep.mubr.f32.mxu1 %v595_v18  ;;  %v8278_v15 = vld [vmem:[#allocation2 + $0x152] sm:$0xff]  ;;  %v7337_v20 = vpack.c.bf16 %v514_v14, %v513_v13  ;;  %v8297_v29 = vld [vmem:[#allocation2 + $0x69] sm:$0xff]  ;;  %v1692_v35 = vld [vmem:[#allocation4 + $0x400] sm:$0xff]  ;;  %v7311_v46 = vpack.c.bf16 %v500_v39, %v499_v38 }
  0xaa   : > { %7286 = vmatprep.subr.bf16.mxu1 %v10446_v0  ;;  %7232 = vmatpush1.bf16.msra.mxu0 %v7231_v21  ;;  %v8281_v18 = vld [vmem:[#allocation2 + $0x50] sm:$0xff]  ;;  %v8287_v21 = vld [vmem:[#allocation2 + $0x15a] sm:$0xff]  ;;  %v1693_v36 = vld [vmem:[#allocation4 + $0x408] sm:$0xff] }
  0xab   : > { %7314 = vmatprep.subr.bf16.mxu0 %v7313_v22  ;;  %v612_v45 = vld [vmem:[#allocation2 + $0x18a] sm:$0xff]  ;;  %v1660_v48 = vld [vmem:[#allocation4 + $0x300] sm:$0xff]  ;;  %v1663_v58 = vld [vmem:[#allocation4 + $0x318] sm:$0xff] }
  0xac   : > { %6759 = vmatmul.mubr.f32.gmra.mrb[14].mxu1 %v596_v23  ;;  %v515_v23 = vld [vmem:[#allocation4 + $0x170] sm:$0xff]  ;;  %v1661_v49 = vld [vmem:[#allocation4 + $0x308] sm:$0xff]  ;;  %v8323_v59 = vld [vmem:[#allocation2 + $0x80] sm:$0xff] }
  0xad   : > { %7288 = vmatpush1.bf16.msra.mxu1 %v7287_v24  ;;  %6761 = vmatprep.mubr.f32.mxu1 %v597_v27  ;;  %v516_v24 = vld [vmem:[#allocation4 + $0x178] sm:$0xff]  ;;  %v498_v27 = vld [vmem:[#allocation4 + $0xe8] sm:$0xff]  ;;  %v1662_v56 = vld [vmem:[#allocation4 + $0x310] sm:$0xff] }
  0xae   : > { %727 = vmatmul.mubr.f32.vlgmr.msra.gmra.mrb[0].mxu0 %v8233_v30  ;;  %7289 = vmatprep.subr.bf16.mxu1 %v10446_v0  ;;  %v406_v55 = vld [vmem:[#allocation2 + $0x9] sm:$0xff]  ;;  %v7349_v2 = vpack.c.bf16 %v1663_v58, %v1662_v56  ;;  %v1664_v3 = vld [vmem:[#allocation4 + $0x320] sm:$0xff]  ;;  %v1667_v14 = vld [vmem:[#allocation4 + $0x338] sm:$0xff] }
  0xaf   : > { %7316 = vmatpush3.bf16.msra.mxu0 %v7313_v22  ;;  %731 = vmatprep.mubr.f32.mxu0 %v8235_v31  ;;  %v7305_v22 = vpack.c.bf16 %v496_v17, %v495_v16  ;;  %v1665_v5 = vld [vmem:[#allocation4 + $0x328] sm:$0xff]  ;;  %v8330_v6 = vld [vmem:[#allocation2 + $0x90] sm:$0xff]  ;;  %v8338_v16 = vld [vmem:[#allocation2 + $0x98] sm:$0xff] }
  0xb0   : > { %6762 = vmatmul.mubr.f32.gmra.mrb[16].mxu1 %v598_v33  ;;  %7318 = vmatprep.subr.bf16.mxu0 %v7317_v32  ;;  %v8300_v33 = vld [vmem:[#allocation2 + $0x172] sm:$0xff]  ;;  %v8341_v17 = vld [vmem:[#allocation2 + $0xa9] sm:$0xff]  ;;  %v8386_v56 = vld [vmem:[#allocation2 + $0xe1] sm:$0xff] }
  0xb1   : > { %7291 = vmatpush1.bf16.msra.mxu1 %v7290_v34  ;;  %6764 = vmatprep.mubr.f32.mxu1 %v599_v37  ;;  %v7308_v34 = vpack.c.bf16 %v498_v27, %v497_v26  ;;  %v611_v37 = vld [vmem:[#allocation2 + $0x182] sm:$0xff]  ;;  %v1666_v13 = vld [vmem:[#allocation4 + $0x330] sm:$0xff]  ;;  %v1671_v26 = vld [vmem:[#allocation4 + $0x358] sm:$0xff]  ;;  %10487 = vst [vmem:[#allocation16_spill] sm:$0xff] %v8386_v56 }
  0xb2   : > { %732 = vmatmul.mubr.f32.gmra.mrb[2].mxu0 %v8240_v40  ;;  %7292 = vmatprep.subr.bf16.mxu1 %v10446_v0  ;;  %v8356_v27 = vld [vmem:[#allocation2 + $0xb0] sm:$0xff] }
  0xb3   : > { %736 = vmatprep.mubr.f32.mxu0 %v8242_v41  ;;  %7320 = vmatpush3.bf16.msra.mxu0 %v7317_v32  ;;  %v7341_v32 = vpack.c.bf16 %v516_v24, %v515_v23  ;;  %v8347_v23 = vld [vmem:[#allocation2 + $0xa8] sm:$0xff]  ;;  %v8350_v24 = vld [vmem:[#allocation2 + $0xb1] sm:$0xff] }
  0xb4   : > { %6765 = vmatmul.mubr.f32.gmra.mrb[18].mxu1 %v600_v43  ;;  %7322 = vmatprep.subr.bf16.mxu0 %v7321_v42  ;;  %v8308_v43 = vld [vmem:[#allocation2 + $0x79] sm:$0xff]  ;;  %v1674_v39 = vld [vmem:[#allocation4 + $0x370] sm:$0xff] }
  0xb5   : > { %7294 = vmatpush1.bf16.msra.mxu1 %v7293_v44  ;;  %6767 = vmatprep.mubr.f32.mxu1 %v601_v47  ;;  %v8310_v44 = vpack.c.bf16 %v1693_v36, %v1692_v35  ;;  %v405_v47 = vld [vmem:[#allocation2 + $0x1] sm:$0xff] }
  0xb6   : > { %737 = vmatmul.mubr.f32.gmra.mrb[4].mxu0 %v8247_v50  ;;  %7295 = vmatprep.subr.bf16.mxu1 %v10446_v0  ;;  %v1673_v35 = vld [vmem:[#allocation4 + $0x368] sm:$0xff]  ;;  %v8365_v36 = vld [vmem:[#allocation2 + $0xc0] sm:$0xff] }
  0xb7   : > { %741 = vmatprep.mubr.f32.mxu0 %v8249_v51  ;;  %7324 = vmatpush3.bf16.msra.mxu0 %v7321_v42  ;;  %v8305_v42 = vld [vmem:[#allocation2 + $0x68] sm:$0xff] }
  0xb8   : > { %6768 = vmatmul.mubr.f32.gmra.mrb[20].mxu1 %v602_v53  ;;  %7326 = vmatprep.subr.bf16.mxu0 %v7325_v52  ;;  %v8317_v53 = vld [vmem:[#allocation2 + $0x81] sm:$0xff] }
  0xb9   : > { %7297 = vmatpush1.bf16.msra.mxu1 %v7296_v54  ;;  %6770 = vmatprep.mubr.f32.mxu1 %v8253_v57  ;;  %v7346_v54 = vpack.c.bf16 %v1661_v49, %v1660_v48  ;;  %v1676_v49 = vld [vmem:[#allocation4 + $0x380] sm:$0xff] }
  0xba   : > { %742 = vmatmul.mubr.f32.gmra.mrb[6].mxu0 %v8256_v60  ;;  %7298 = vmatprep.subr.bf16.mxu1 %v10446_v0 }
  0xbb   : > { %746 = vmatprep.mubr.f32.mxu0 %v8258_v61  ;;  %7328 = vmatpush3.bf16.msra.mxu0 %v7325_v52  ;;  %v8315_v52 = vld [vmem:[#allocation2 + $0x78] sm:$0xff] }
  0xbc   : > { %6771 = vmatmul.mubr.f32.gmra.mrb[22].mxu1 %v8261_v63  ;;  %7330 = vmatprep.subr.bf16.mxu0 %v7329_v62 }
  0xbd   : > { %7300 = vmatpush1.bf16.msra.mxu1 %v7299_v1  ;;  %6773 = vmatprep.mubr.f32.mxu1 %v8265_v4  ;;  %v8325_v1 = vld [vmem:[#allocation2 + $0x91] sm:$0xff] }
  0xbe   : > { %747 = vmatmul.mubr.f32.gmra.mrb[8].mxu0 %v8268_v7  ;;  %7301 = vmatprep.subr.bf16.mxu1 %v10446_v0 }
  0xbf   : > { %751 = vmatprep.mubr.f32.mxu0 %v8271_v9  ;;  %7332 = vmatpush3.bf16.msra.mxu0 %v7329_v62  ;;  %v7732_v62 = vld [vmem:[#allocation2] sm:$0xff] }
  0xc0   : > { %6774 = vmatmul.mubr.f32.gmra.mrb[24].mxu1 %v8274_v11  ;;  %7334 = vmatprep.subr.bf16.mxu0 %v7333_v10 }
  0xc1   : > { %7303 = vmatpush1.bf16.msra.mxu1 %v7302_v12  ;;  %6776 = vmatprep.mubr.f32.mxu1 %v8278_v15  ;;  %v7352_v12 = vpack.c.bf16 %v1665_v5, %v1664_v3  ;;  %v8392_v3 = vld [vmem:[#allocation2 + $0xe0] sm:$0xff]  ;;  %v8395_v5 = vld [vmem:[#allocation2 + $0xf1] sm:$0xff] }
  0xc2   : > { %752 = vmatmul.mubr.f32.gmra.mrb[10].mxu0 %v8281_v18  ;;  %7304 = vmatprep.subr.bf16.mxu1 %v10446_v0  ;;  %10488 = vst [vmem:[#allocation17_spill] sm:$0xff] %v8392_v3  ;;  %10489 = vst [vmem:[#allocation18_spill] sm:$0xff] %v8395_v5 }
  0xc3   : > { %756 = vmatprep.mubr.f32.mxu0 %v8284_v19  ;;  %7336 = vmatpush3.bf16.msra.mxu0 %v7333_v10  ;;  %v8332_v10 = vld [vmem:[#allocation2 + $0x99] sm:$0xff] }
  0xc4   : > { %6777 = vmatmul.mubr.f32.gmra.mrb[26].mxu1 %v8287_v21  ;;  %7338 = vmatprep.subr.bf16.mxu0 %v7337_v20 }
  0xc5   : > { %7306 = vmatpush1.bf16.msra.mxu1 %v7305_v22  ;;  %6779 = vmatprep.mubr.f32.mxu1 %v8291_v25  ;;  %v1669_v22 = vld [vmem:[#allocation4 + $0x348] sm:$0xff] }
  0xc6   : > { %757 = vmatmul.mubr.f32.gmra.mrb[12].mxu0 %v8294_v28  ;;  %7307 = vmatprep.subr.bf16.mxu1 %v10446_v0 }
  0xc7   : > { %761 = vmatprep.mubr.f32.mxu0 %v8297_v29  ;;  %7340 = vmatpush3.bf16.msra.mxu0 %v7337_v20  ;;  %v1668_v20 = vld [vmem:[#allocation4 + $0x340] sm:$0xff] }
  0xc8   : > { %6780 = vmatmul.mubr.f32.gmra.mrb[28].mxu1 %v8300_v33  ;;  %7342 = vmatprep.subr.bf16.mxu0 %v7341_v32 }
  0xc9   : > { %7309 = vmatpush1.bf16.msra.mxu1 %v7308_v34  ;;  %6782 = vmatprep.mubr.f32.mxu1 %v611_v37  ;;  %v1672_v34 = vld [vmem:[#allocation4 + $0x360] sm:$0xff]  ;;  %v8368_v37 = vld [vmem:[#allocation2 + $0xc9] sm:$0xff] }
  0xca   : > { %762 = vmatmul.mubr.f32.gmra.mrb[14].mxu0 %v8305_v42  ;;  %7310 = vmatprep.subr.bf16.mxu1 %v10446_v0  ;;  %v7364_v38 = vpack.c.bf16 %v1673_v35, %v1672_v34  ;;  %v1684_v35 = vld [vmem:[#allocation4 + $0x3c0] sm:$0xff] }
  0xcb   : > { %766 = vmatprep.mubr.f32.mxu0 %v8308_v43  ;;  %7344 = vmatpush3.bf16.msra.mxu0 %v7341_v32  ;;  %v8359_v32 = vld [vmem:[#allocation2 + $0xc1] sm:$0xff] }
  0xcc   : > { %6783 = vmatmul.mubr.f32.gmra.mrb[30].mxu1 %v612_v45  ;;  %7394 = vmatprep.subr.bf16.mxu0 %v8310_v44  ;;  %v1675_v45 = vld [vmem:[#allocation4 + $0x378] sm:$0xff] }
  0xcd   : > { %7312 = vmatpush1.bf16.msra.mxu1 %v7311_v46  ;;  %1176 = vmatprep.mubr.f32.mxu1 %v405_v47  ;;  %v8374_v46 = vld [vmem:[#allocation2 + $0xc8] sm:$0xff]  ;;  %v8377_v47 = vld [vmem:[#allocation2 + $0xd9] sm:$0xff]  ;;  %v7367_v48 = vpack.c.bf16 %v1675_v45, %v1674_v39  ;;  %v8422_v45 = vld [vmem:[#allocation2 + $0x111] sm:$0xff] }
  0xce   : > { %767 = vmatmul.mubr.f32.gmra.mrb[16].mxu0 %v8315_v52  ;;  %7345 = vmatprep.subr.bf16.mxu1 %v10446_v0  ;;  %10484 = vst [vmem:[#allocation13_spill] sm:$0xff] %v8374_v46  ;;  %10485 = vst [vmem:[#allocation14_spill] sm:$0xff] %v8377_v47  ;;  %v8419_v39 = vld [vmem:[#allocation2 + $0x108] sm:$0xff] }
  0xcf   : > { %771 = vmatprep.mubr.f32.mxu0 %v8317_v53  ;;  %10494 = vst [vmem:[#allocation23_spill] sm:$0xff] %v8419_v39  ;;  %10495 = vst [vmem:[#allocation24_spill] sm:$0xff] %v8422_v45 }
  0xd0   : > { %1177 = vmatmul.mubr.f32.vlgmr.msra.gmra.mrb[32].mxu1 %v7732_v62 }
  0xd1   : > { %1181 = vmatprep.mubr.f32.mxu1 %v406_v55  ;;  %7347 = vmatpush1.bf16.msra.mxu1 %v7346_v54  ;;  %v1677_v54 = vld [vmem:[#allocation4 + $0x388] sm:$0xff]  ;;  %v8383_v55 = vld [vmem:[#allocation2 + $0xd8] sm:$0xff] }
  0xd2   : > { %772 = vmatmul.mubr.f32.gmra.mrb[18].mxu0 %v8323_v59  ;;  %7348 = vmatprep.subr.bf16.mxu1 %v10446_v0  ;;  %10486 = vst [vmem:[#allocation15_spill] sm:$0xff] %v8383_v55  ;;  %v7370_v58 = vpack.c.bf16 %v1677_v54, %v1676_v49  ;;  %v1686_v49 = vld [vmem:[#allocation4 + $0x3d0] sm:$0xff]  ;;  %v1687_v54 = vld [vmem:[#allocation4 + $0x3d8] sm:$0xff] }
  0xd3   : > { %776 = vmatprep.mubr.f32.mxu0 %v8325_v1 }
  0xd4   : > { %1182 = vmatmul.mubr.f32.gmra.mrb[34].mxu1 %v7732_v62  ;;  %v1678_v62 = vld [vmem:[#allocation4 + $0x390] sm:$0xff] }
  0xd5   : > { %1186 = vmatprep.mubr.f32.mxu1 %v8182_v8  ;;  %7350 = vmatpush1.bf16.msra.mxu1 %v7349_v2  ;;  %v7355_v8 = vpack.c.bf16 %v1667_v14, %v1666_v13  ;;  %v1679_v2 = vld [vmem:[#allocation4 + $0x398] sm:$0xff]  ;;  %v1680_v13 = vld [vmem:[#allocation4 + $0x3a0] sm:$0xff]  ;;  %v1681_v14 = vld [vmem:[#allocation4 + $0x3a8] sm:$0xff] }
  0xd6   : > { %777 = vmatmul.mubr.f32.gmra.mrb[20].mxu0 %v8330_v6  ;;  %7351 = vmatprep.subr.bf16.mxu1 %v10446_v0 }
  0xd7   : > { %781 = vmatprep.mubr.f32.mxu0 %v8332_v10 }
  0xd8   : > { %1187 = vmatmul.mubr.f32.gmra.mrb[36].mxu1 %v8233_v30  ;;  %v7358_v30 = vpack.c.bf16 %v1669_v22, %v1668_v20  ;;  %v8404_v20 = vld [vmem:[#allocation2 + $0xf9] sm:$0xff]  ;;  %v7376_v22 = vpack.c.bf16 %v1681_v14, %v1680_v13  ;;  %v1689_v13 = vld [vmem:[#allocation4 + $0x3e8] sm:$0xff] }
  0xd9   : > { %1191 = vmatprep.mubr.f32.mxu1 %v8235_v31  ;;  %7353 = vmatpush1.bf16.msra.mxu1 %v7352_v12  ;;  %v1670_v31 = vld [vmem:[#allocation4 + $0x350] sm:$0xff]  ;;  %v7373_v12 = vpack.c.bf16 %v1679_v2, %v1678_v62  ;;  %10491 = vst [vmem:[#allocation20_spill] sm:$0xff] %v8404_v20  ;;  %v8431_v62 = vld [vmem:[#allocation2 + $0x121] sm:$0xff]  ;;  %v7385_v2 = vpack.c.bf16 %v1687_v54, %v1686_v49  ;;  %v8455_v49 = vld [vmem:[#allocation2 + $0x138] sm:$0xff] }
  0xda   : > { %782 = vmatmul.mubr.f32.gmra.mrb[22].mxu0 %v8338_v16  ;;  %7354 = vmatprep.subr.bf16.mxu1 %v10446_v0  ;;  %v8437_v14 = vld [vmem:[#allocation2 + $0x120] sm:$0xff]  ;;  %10497 = vst [vmem:[#allocation26_spill] sm:$0xff] %v8455_v49 }
  0xdb   : > { %786 = vmatprep.mubr.f32.mxu0 %v8341_v17  ;;  %v8458_v54 = vld [vmem:[#allocation2 + $0x141] sm:$0xff] }
  0xdc   : > { %1192 = vmatmul.mubr.f32.gmra.mrb[38].mxu1 %v8240_v40  ;;  %v7361_v40 = vpack.c.bf16 %v1671_v26, %v1670_v31  ;;  %v1683_v31 = vld [vmem:[#allocation4 + $0x3b8] sm:$0xff]  ;;  %10498 = vst [vmem:[#allocation27_spill] sm:$0xff] %v8458_v54 }
  0xdd   : > { %1196 = vmatprep.mubr.f32.mxu1 %v8242_v41  ;;  %7356 = vmatpush1.bf16.msra.mxu1 %v7355_v8  ;;  %v8401_v8 = vld [vmem:[#allocation2 + $0xf0] sm:$0xff]  ;;  %v8410_v26 = vld [vmem:[#allocation2 + $0xf8] sm:$0xff] }
  0xde   : > { %787 = vmatmul.mubr.f32.gmra.mrb[24].mxu0 %v8347_v23  ;;  %7357 = vmatprep.subr.bf16.mxu1 %v10446_v0  ;;  %10490 = vst [vmem:[#allocation19_spill] sm:$0xff] %v8401_v8  ;;  %10492 = vst [vmem:[#allocation21_spill] sm:$0xff] %v8410_v26 }
  0xdf   : > { %791 = vmatprep.mubr.f32.mxu0 %v8350_v24 }
  0xe0   : > { %1197 = vmatmul.mubr.f32.gmra.mrb[40].mxu1 %v8247_v50 }
  0xe1   : > { %1201 = vmatprep.mubr.f32.mxu1 %v8249_v51  ;;  %7359 = vmatpush1.bf16.msra.mxu1 %v7358_v30  ;;  %v1682_v30 = vld [vmem:[#allocation4 + $0x3b0] sm:$0xff] }
  0xe2   : > { %792 = vmatmul.mubr.f32.gmra.mrb[26].mxu0 %v8356_v27  ;;  %7360 = vmatprep.subr.bf16.mxu1 %v10446_v0  ;;  %v7379_v34 = vpack.c.bf16 %v1683_v31, %v1682_v30  ;;  %v1690_v31 = vld [vmem:[#allocation4 + $0x3f0] sm:$0xff] }
  0xe3   : > { %796 = vmatprep.mubr.f32.mxu0 %v8359_v32 }
  0xe4   : > { %1202 = vmatmul.mubr.f32.gmra.mrb[42].mxu1 %v8256_v60 }
  0xe5   : > { %1206 = vmatprep.mubr.f32.mxu1 %v8258_v61  ;;  %7362 = vmatpush1.bf16.msra.mxu1 %v7361_v40  ;;  %v8413_v40 = vld [vmem:[#allocation2 + $0x109] sm:$0xff] }
  0xe6   : > { %797 = vmatmul.mubr.f32.gmra.mrb[28].mxu0 %v8365_v36  ;;  %7363 = vmatprep.subr.bf16.mxu1 %v10446_v0  ;;  %10493 = vst [vmem:[#allocation22_spill] sm:$0xff] %v8413_v40 }
  0xe7   : > { %801 = vmatprep.mubr.f32.mxu0 %v8368_v37 }
  0xe8   : > { %1207 = vmatmul.mubr.f32.gmra.mrb[44].mxu1 %v8268_v7 }
  0xe9   : > { %1211 = vmatprep.mubr.f32.mxu1 %v8271_v9  ;;  %7365 = vmatpush1.bf16.msra.mxu1 %v7364_v38  ;;  %v1685_v38 = vld [vmem:[#allocation4 + $0x3c8] sm:$0xff] }
  0xea   : > { %802 = vmatmul.mubr.f32.gmra.mrb[30].mxu0 %v8374_v46  ;;  %7366 = vmatprep.subr.bf16.mxu1 %v10446_v0 }
  0xeb   : > { %806 = vmatprep.mubr.f32.mxu0 %v8377_v47 }
  0xec   : > { %1212 = vmatmul.mubr.f32.gmra.mrb[46].mxu1 %v8281_v18 }
  0xed   : > { %1216 = vmatprep.mubr.f32.mxu1 %v8284_v19  ;;  %7368 = vmatpush1.bf16.msra.mxu1 %v7367_v48  ;;  %v7382_v48 = vpack.c.bf16 %v1685_v38, %v1684_v35  ;;  %v8446_v35 = vld [vmem:[#allocation2 + $0x128] sm:$0xff]  ;;  %v8449_v38 = vld [vmem:[#allocation2 + $0x139] sm:$0xff] }
  0xee   : > { %807 = vmatmul.mubr.f32.gmra.mrb[32].mxu0 %v8383_v55  ;;  %7369 = vmatprep.subr.bf16.mxu1 %v10446_v0 }
  0xef   : > { %811 = vmatprep.mubr.f32.mxu0 %v8386_v56 }
  0xf0   : > { %1217 = vmatmul.mubr.f32.gmra.mrb[48].mxu1 %v8294_v28 }
  0xf1   : > { %1221 = vmatprep.mubr.f32.mxu1 %v8297_v29  ;;  %7371 = vmatpush1.bf16.msra.mxu1 %v7370_v58  ;;  %v8428_v58 = vld [vmem:[#allocation2 + $0x110] sm:$0xff] }
  0xf2   : > { %812 = vmatmul.mubr.f32.gmra.mrb[34].mxu0 %v8392_v3  ;;  %7372 = vmatprep.subr.bf16.mxu1 %v10446_v0  ;;  %10496 = vst [vmem:[#allocation25_spill] sm:$0xff] %v8428_v58 }
  0xf3   : > { %816 = vmatprep.mubr.f32.mxu0 %v8395_v5 }
  0xf4   : > { %1222 = vmatmul.mubr.f32.gmra.mrb[50].mxu1 %v8305_v42 }
  0xf5   : > { %1226 = vmatprep.mubr.f32.mxu1 %v8308_v43  ;;  %7374 = vmatpush1.bf16.msra.mxu1 %v7373_v12  ;;  %v1688_v12 = vld [vmem:[#allocation4 + $0x3e0] sm:$0xff] }
  0xf6   : > { %817 = vmatmul.mubr.f32.gmra.mrb[36].mxu0 %v8401_v8  ;;  %7375 = vmatprep.subr.bf16.mxu1 %v10446_v0  ;;  %v7388_v30 = vpack.c.bf16 %v1689_v13, %v1688_v12  ;;  %v8466_v12 = vld [vmem:[#allocation2 + $0x151] sm:$0xff] }
  0xf7   : > { %821 = vmatprep.mubr.f32.mxu0 %v8404_v20  ;;  %10500 = vst [vmem:[#allocation29_spill] sm:$0xff] %v8466_v12  ;;  %v8471_v13 = vld [vmem:[#allocation2 + $0x150] sm:$0xff] }
  0xf8   : > { %1227 = vmatmul.mubr.f32.gmra.mrb[52].mxu1 %v8315_v52  ;;  %10501 = vst [vmem:[#allocation30_spill] sm:$0xff] %v8471_v13 }
  0xf9   : > { %1231 = vmatprep.mubr.f32.mxu1 %v8317_v53  ;;  %7377 = vmatpush1.bf16.msra.mxu1 %v7376_v22  ;;  %v8440_v22 = vld [vmem:[#allocation2 + $0x129] sm:$0xff] }
  0xfa   : > { %822 = vmatmul.mubr.f32.gmra.mrb[38].mxu0 %v8410_v26  ;;  %7378 = vmatprep.subr.bf16.mxu1 %v10446_v0 }
  0xfb   : > { %826 = vmatprep.mubr.f32.mxu0 %v8413_v40 }
  0xfc   : > { %1232 = vmatmul.mubr.f32.gmra.mrb[54].mxu1 %v8323_v59 }
  0xfd   : > { %1236 = vmatprep.mubr.f32.mxu1 %v8325_v1  ;;  %7380 = vmatpush1.bf16.msra.mxu1 %v7379_v34  ;;  %v1691_v34 = vld [vmem:[#allocation4 + $0x3f8] sm:$0xff] }
  0xfe   : > { %827 = vmatmul.mubr.f32.gmra.mrb[40].mxu0 %v8419_v39  ;;  %7381 = vmatprep.subr.bf16.mxu1 %v10446_v0 }
  0xff   : > { %831 = vmatprep.mubr.f32.mxu0 %v8422_v45 }
 0x100   : > { %1237 = vmatmul.mubr.f32.gmra.mrb[56].mxu1 %v8330_v6 }
 0x101   : > { %1241 = vmatprep.mubr.f32.mxu1 %v8332_v10  ;;  %7383 = vmatpush1.bf16.msra.mxu1 %v7382_v48  ;;  %v7391_v48 = vpack.c.bf16 %v1691_v34, %v1690_v31  ;;  %v8479_v31 = vld [vmem:[#allocation2 + $0x158] sm:$0xff]  ;;  %v8482_v34 = vld [vmem:[#allocation2 + $0x169] sm:$0xff] }
 0x102   : > { %832 = vmatmul.mubr.f32.gmra.mrb[42].mxu0 %v8428_v58  ;;  %7384 = vmatprep.subr.bf16.mxu1 %v10446_v0 }
 0x103   : > { %836 = vmatprep.mubr.f32.mxu0 %v8431_v62 }
 0x104   : > { %1242 = vmatmul.mubr.f32.gmra.mrb[58].mxu1 %v8338_v16 }
 0x105   : > { %1246 = vmatprep.mubr.f32.mxu1 %v8341_v17  ;;  %7386 = vmatpush1.bf16.msra.mxu1 %v7385_v2  ;;  %v8463_v2 = vld [vmem:[#allocation2 + $0x140] sm:$0xff] }
 0x106   : > { %837 = vmatmul.mubr.f32.gmra.mrb[44].mxu0 %v8437_v14  ;;  %7387 = vmatprep.subr.bf16.mxu1 %v10446_v0  ;;  %10499 = vst [vmem:[#allocation28_spill] sm:$0xff] %v8463_v2 }
 0x107   : > { %841 = vmatprep.mubr.f32.mxu0 %v8440_v22 }
 0x108   : > { %1247 = vmatmul.mubr.f32.gmra.mrb[60].mxu1 %v8347_v23 }
 0x109   : > { %1251 = vmatprep.mubr.f32.mxu1 %v8350_v24  ;;  %7389 = vmatpush1.bf16.msra.mxu1 %v7388_v30  ;;  %v8474_v30 = vld [vmem:[#allocation2 + $0x159] sm:$0xff] }
 0x10a   : > { %842 = vmatmul.mubr.f32.gmra.mrb[46].mxu0 %v8446_v35  ;;  %7390 = vmatprep.subr.bf16.mxu1 %v10446_v0  ;;  %v8490_v0 = vld [vmem:[#allocation2 + $0x171] sm:$0xff] }
 0x10b   : > { %846 = vmatprep.mubr.f32.mxu0 %v8449_v38  ;;  %10502 = vst [vmem:[#allocation31_spill] sm:$0xff] %v8490_v0 }
 0x10c   : > { %1252 = vmatmul.mubr.f32.gmra.mrb[62].mxu1 %v8356_v27 }
 0x10d   : > { %1256 = vmatprep.mubr.f32.mxu1 %v8359_v32  ;;  %7392 = vmatpush1.bf16.msra.mxu1 %v7391_v48  ;;  %v8487_v48 = vld [vmem:[#allocation2 + $0x168] sm:$0xff] }
 0x10e   : > { %847 = vmatmul.mubr.f32.gmra.mrb[48].mxu0 %v8455_v49 }
 0x10f   : > { %851 = vmatprep.mubr.f32.mxu0 %v8458_v54 }
 0x110   : > { %1257 = vmatmul.mubr.f32.gmra.mrb[64].mxu1 %v8365_v36 }
 0x111   : > { %1261 = vmatprep.mubr.f32.mxu1 %v8368_v37 }
 0x112   : > { %852 = vmatmul.mubr.f32.gmra.mrb[50].mxu0 %v8463_v2 }
 0x113   : > { %856 = vmatprep.mubr.f32.mxu0 %v8466_v12 }
 0x114   : > { %1262 = vmatmul.mubr.f32.gmra.mrb[66].mxu1 %v8374_v46 }
 0x115   : > { %1266 = vmatprep.mubr.f32.mxu1 %v8377_v47  ;;  %v1695_v47 = vld [vmem:[#allocation4 + $0x418] sm:$0xff] }
 0x116   : > { %857 = vmatmul.mubr.f32.gmra.mrb[52].mxu0 %v8471_v13 }
 0x117   : > { %861 = vmatprep.mubr.f32.mxu0 %v8474_v30 }
 0x118   : > { %1267 = vmatmul.mubr.f32.gmra.mrb[68].mxu1 %v8383_v55  ;;  %v8495_v55 = vld [vmem:[#allocation2 + $0x170] sm:$0xff] }
 0x119   : > { %1271 = vmatprep.mubr.f32.mxu1 %v8386_v56  ;;  %v8498_v56 = vld [vmem:[#allocation2 + $0x181] sm:$0xff] }
 0x11a   : > { %862 = vmatmul.mubr.f32.gmra.mrb[54].mxu0 %v8479_v31  ;;  %10503 = vst [vmem:[#allocation32_spill] sm:$0xff] %v8498_v56 }
 0x11b   : > { %866 = vmatprep.mubr.f32.mxu0 %v8482_v34 }
 0x11c   : > { %1272 = vmatmul.mubr.f32.gmra.mrb[70].mxu1 %v8392_v3  ;;  %v8503_v3 = vld [vmem:[#allocation2 + $0x180] sm:$0xff] }
 0x11d   : > { %1276 = vmatprep.mubr.f32.mxu1 %v8395_v5  ;;  %10504 = vst [vmem:[#allocation33_spill] sm:$0xff] %v8503_v3  ;;  %v8506_v5 = vld [vmem:[#allocation2 + $0x189] sm:$0xff] }
 0x11e   : > { %867 = vmatmul.mubr.f32.gmra.mrb[56].mxu0 %v8487_v48  ;;  %10505 = vst [vmem:[#allocation34_spill] sm:$0xff] %v8506_v5 }
 0x11f   : > { %871 = vmatprep.mubr.f32.mxu0 %v8490_v0 }
 0x120   : > { %1277 = vmatmul.mubr.f32.gmra.mrb[72].mxu1 %v8401_v8  ;;  %v8511_v8 = vld [vmem:[#allocation2 + $0x188] sm:$0xff] }
 0x121   : > { %1281 = vmatprep.mubr.f32.mxu1 %v8404_v20  ;;  %10506 = vst [vmem:[#allocation35_spill] sm:$0xff] %v8511_v8  ;;  %v437_v20 = vld [vmem:[#allocation2 + $0x2] sm:$0xff] }
 0x122   : > { %872 = vmatmul.mubr.f32.gmra.mrb[58].mxu0 %v8495_v55 }
 0x123   : > { %876 = vmatprep.mubr.f32.mxu0 %v8498_v56  ;;  %v1694_v56 = vld [vmem:[#allocation4 + $0x410] sm:$0xff] }
 0x124   : > { %1282 = vmatmul.mubr.f32.gmra.mrb[74].mxu1 %v8410_v26  ;;  %v438_v26 = vld [vmem:[#allocation2 + $0xa] sm:$0xff]  ;;  %v7397_v46 = vpack.c.bf16 %v1695_v47, %v1694_v56  ;;  %v8524_v47 = vld [vmem:[#allocation2 + $0x3a] sm:$0xff] }
 0x125   : > { %1286 = vmatprep.mubr.f32.mxu1 %v8413_v40  ;;  %v439_v40 = vld [vmem:[#allocation2 + $0x1a] sm:$0xff] }
 0x126   : > { %877 = vmatmul.mubr.f32.gmra.mrb[60].mxu0 %v8503_v3  ;;  %v1697_v3 = vld [vmem:[#allocation4 + $0x428] sm:$0xff] }
 0x127   : > { %881 = vmatprep.mubr.f32.mxu0 %v8506_v5  ;;  %v1696_v5 = vld [vmem:[#allocation4 + $0x420] sm:$0xff] }
 0x128   : > { %1287 = vmatmul.mubr.f32.gmra.mrb[76].mxu1 %v8419_v39  ;;  %v440_v39 = vld [vmem:[#allocation2 + $0x22] sm:$0xff] }
 0x129   : > { %1291 = vmatprep.mubr.f32.mxu1 %v8422_v45  ;;  %v8520_v45 = vld [vmem:[#allocation2 + $0x32] sm:$0xff] }
 0x12a   : > { %882 = vmatmul.mubr.f32.gmra.mrb[62].mxu0 %v8511_v8  ;;  %v1698_v8 = vld [vmem:[#allocation4 + $0x430] sm:$0xff] }
 0x12b   : > { %6817 = vmatprep.mubr.f32.mxu0 %v437_v20  ;;  %v7401_v20 = vpack.c.bf16 %v1697_v3, %v1696_v5  ;;  %v1701_v3 = vld [vmem:[#allocation4 + $0x448] sm:$0xff]  ;;  %v8532_v5 = vld [vmem:[#allocation2 + $0x52] sm:$0xff] }
 0x12c   : > { %1292 = vmatmul.mubr.f32.gmra.mrb[78].mxu1 %v8428_v58  ;;  %v1699_v58 = vld [vmem:[#allocation4 + $0x438] sm:$0xff] }
 0x12d   : > { %1296 = vmatprep.mubr.f32.mxu1 %v8431_v62  ;;  %v7405_v56 = vpack.c.bf16 %v1699_v58, %v1698_v8  ;;  %v1702_v8 = vld [vmem:[#allocation4 + $0x450] sm:$0xff] }
 0x12e   : > { %6818 = vmatmul.mubr.f32.vlgmr.msra.gmra.mrb[64].mxu0 %v438_v26  ;;  %v1700_v26 = vld [vmem:[#allocation4 + $0x440] sm:$0xff]  ;;  %v8540_v58 = vld [vmem:[#allocation2 + $0x6a] sm:$0xff] }
 0x12f   : > { %7396 = vmatpush3.bf16.msra.mxu0 %v8310_v44  ;;  %6820 = vmatprep.mubr.f32.mxu0 %v439_v40  ;;  %v8527_v44 = vld [vmem:[#allocation2 + $0x4a] sm:$0xff]  ;;  %v7409_v40 = vpack.c.bf16 %v1701_v3, %v1700_v26  ;;  %v1704_v26 = vld [vmem:[#allocation4 + $0x460] sm:$0xff] }
 0x130   : > { %1297 = vmatmul.mubr.f32.gmra.mrb[80].mxu1 %v8437_v14  ;;  %7398 = vmatprep.subr.bf16.mxu0 %v7397_v46  ;;  %v1705_v3 = vld [vmem:[#allocation4 + $0x468] sm:$0xff] }
 0x131   : > { %1301 = vmatprep.mubr.f32.mxu1 %v8440_v22 }
 0x132   : > { %6821 = vmatmul.mubr.f32.gmra.mrb[66].mxu0 %v440_v39  ;;  %v1703_v39 = vld [vmem:[#allocation4 + $0x458] sm:$0xff] }
 0x133   : > { %6823 = vmatprep.mubr.f32.mxu0 %v8520_v45  ;;  %7400 = vmatpush3.bf16.msra.mxu0 %v7397_v46  ;;  %v8535_v46 = vld [vmem:[#allocation2 + $0x62] sm:$0xff] }
 0x134   : > { %1302 = vmatmul.mubr.f32.gmra.mrb[82].mxu1 %v8446_v35  ;;  %7402 = vmatprep.subr.bf16.mxu0 %v7401_v20 }
 0x135   : > { %1306 = vmatprep.mubr.f32.mxu1 %v8449_v38 }
 0x136   : > { %6824 = vmatmul.mubr.f32.gmra.mrb[68].mxu0 %v8524_v47 }
 0x137   : > { %6826 = vmatprep.mubr.f32.mxu0 %v8527_v44  ;;  %7404 = vmatpush3.bf16.msra.mxu0 %v7401_v20  ;;  %v8543_v20 = vld [vmem:[#allocation2 + $0x7a] sm:$0xff] }
 0x138   : > { %1307 = vmatmul.mubr.f32.gmra.mrb[84].mxu1 %v8455_v49  ;;  %7406 = vmatprep.subr.bf16.mxu0 %v7405_v56  ;;  %v7413_v49 = vpack.c.bf16 %v1703_v39, %v1702_v8  ;;  %v1706_v8 = vld [vmem:[#allocation4 + $0x470] sm:$0xff]  ;;  %v1707_v39 = vld [vmem:[#allocation4 + $0x478] sm:$0xff] }
 0x139   : > { %1311 = vmatprep.mubr.f32.mxu1 %v8458_v54  ;;  %v8548_v54 = vld [vmem:[#allocation2 + $0x82] sm:$0xff] }
 0x13a   : > { %6827 = vmatmul.mubr.f32.gmra.mrb[70].mxu0 %v8532_v5 }
 0x13b   : > { %6829 = vmatprep.mubr.f32.mxu0 %v8535_v46  ;;  %7408 = vmatpush3.bf16.msra.mxu0 %v7405_v56  ;;  %v8551_v56 = vld [vmem:[#allocation2 + $0x92] sm:$0xff] }
 0x13c   : > { %1312 = vmatmul.mubr.f32.gmra.mrb[86].mxu1 %v8463_v2  ;;  %7410 = vmatprep.subr.bf16.mxu0 %v7409_v40  ;;  %v7417_v2 = vpack.c.bf16 %v1705_v3, %v1704_v26  ;;  %v8564_v26 = vld [vmem:[#allocation2 + $0xb2] sm:$0xff]  ;;  %v8567_v3 = vld [vmem:[#allocation2 + $0xc2] sm:$0xff] }
 0x13d   : > { %1316 = vmatprep.mubr.f32.mxu1 %v8466_v12  ;;  %v8556_v12 = vld [vmem:[#allocation2 + $0x9a] sm:$0xff] }
 0x13e   : > { %6830 = vmatmul.mubr.f32.gmra.mrb[72].mxu0 %v8540_v58 }
 0x13f   : > { %6832 = vmatprep.mubr.f32.mxu0 %v8543_v20  ;;  %7412 = vmatpush3.bf16.msra.mxu0 %v7409_v40  ;;  %v8559_v40 = vld [vmem:[#allocation2 + $0xaa] sm:$0xff] }
 0x140   : > { %1317 = vmatmul.mubr.f32.gmra.mrb[88].mxu1 %v8471_v13  ;;  %7414 = vmatprep.subr.bf16.mxu0 %v7413_v49  ;;  %v7421_v13 = vpack.c.bf16 %v1707_v39, %v1706_v8  ;;  %v8575_v8 = vld [vmem:[#allocation2 + $0xda] sm:$0xff]  ;;  %v10507_v39 = vmov 0.0|0.0  }
 0x141   : > { %1321 = vmatprep.mubr.f32.mxu1 %v8474_v30 }
 0x142   : > { %6833 = vmatmul.mubr.f32.gmra.mrb[74].mxu0 %v8548_v54 }
 0x143   : > { %6835 = vmatprep.mubr.f32.mxu0 %v8551_v56  ;;  %7416 = vmatpush3.bf16.msra.mxu0 %v7413_v49  ;;  %v8572_v49 = vld [vmem:[#allocation2 + $0xca] sm:$0xff] }
 0x144   : > { %1322 = vmatmul.mubr.f32.gmra.mrb[90].mxu1 %v8479_v31  ;;  %7418 = vmatprep.subr.bf16.mxu0 %v7417_v2 }
 0x145   : > { %1326 = vmatprep.mubr.f32.mxu1 %v8482_v34 }
 0x146   : > { %6836 = vmatmul.mubr.f32.gmra.mrb[76].mxu0 %v8556_v12 }
 0x147   : > { %6838 = vmatprep.mubr.f32.mxu0 %v8559_v40  ;;  %7420 = vmatpush3.bf16.msra.mxu0 %v7417_v2  ;;  %v8581_v2 = vld [vmem:[#allocation2 + $0xe2] sm:$0xff] }
 0x148   : > { %1327 = vmatmul.mubr.f32.gmra.mrb[92].mxu1 %v8487_v48  ;;  %7422 = vmatprep.subr.bf16.mxu0 %v7421_v13 }
 0x149   : > { %1331 = vmatprep.mubr.f32.mxu1 %v8490_v0  ;;  %v8584_v0 = vld [vmem:[#allocation2 + $0xf2] sm:$0xff] }
 0x14a   : > { %6839 = vmatmul.mubr.f32.gmra.mrb[78].mxu0 %v8564_v26 }
 0x14b   : > { %6841 = vmatprep.mubr.f32.mxu0 %v8567_v3  ;;  %7424 = vmatpush3.bf16.msra.mxu0 %v7421_v13  ;;  %v8589_v13 = vld [vmem:[#allocation2 + $0xfa] sm:$0xff] }
 0x14c   : > { %1332 = vmatmul.mubr.f32.gmra.mrb[94].mxu1 %v8495_v55  ;;  %7425 = vmatprep.subr.bf16.mxu0 %v10507_v39 }
 0x14d   : > { %1772 = vmatprep.mubr.f32.mxu1 %v8242_v41  ;;  %v8592_v41 = vld [vmem:[#allocation2 + $0x10a] sm:$0xff] }
 0x14e   : > { %6842 = vmatmul.mubr.f32.gmra.mrb[80].mxu0 %v8572_v49 }
 0x14f   : > { %6844 = vmatprep.mubr.f32.mxu0 %v8575_v8 }
 0x150   : > { %1773 = vmatmul.mubr.f32.vlgmr.msra.gmra.mrb[96].mxu1 %v8247_v50  ;;  %v8597_v50 = vld [vmem:[#allocation2 + $0x112] sm:$0xff] }
 0x151   : > { %1777 = vmatprep.mubr.f32.mxu1 %v8249_v51 }
 0x152   : > { %6845 = vmatmul.mubr.f32.gmra.mrb[82].mxu0 %v8581_v2 }
 0x153   : > { %6847 = vmatprep.mubr.f32.mxu0 %v8584_v0 }
 0x154   : > { %1778 = vmatmul.mubr.f32.gmra.mrb[98].mxu1 %v8256_v60 }
 0x155   : > { %1782 = vmatprep.mubr.f32.mxu1 %v8258_v61 }
 0x156   : > { %6848 = vmatmul.mubr.f32.gmra.mrb[84].mxu0 %v8589_v13 }
 0x157   : > { %6850 = vmatprep.mubr.f32.mxu0 %v8592_v41 }
 0x158   : > { %1783 = vmatmul.mubr.f32.gmra.mrb[100].mxu1 %v8268_v7 }
 0x159   : > { %1787 = vmatprep.mubr.f32.mxu1 %v8271_v9 }
 0x15a   : > { %6851 = vmatmul.mubr.f32.gmra.mrb[86].mxu0 %v8597_v50 }
 0x15b   : > { %6853 = vmatprep.mubr.f32.mxu0 %v8253_v57 }
 0x15c   : > { %1788 = vmatmul.mubr.f32.gmra.mrb[102].mxu1 %v8281_v18 }
 0x15d   : > { %1792 = vmatprep.mubr.f32.mxu1 %v8284_v19 }
 0x15e   : > { %6854 = vmatmul.mubr.f32.gmra.mrb[88].mxu0 %v8261_v63 }
 0x15f   : > { %6856 = vmatprep.mubr.f32.mxu0 %v8265_v4 }
 0x160   : > { %1793 = vmatmul.mubr.f32.gmra.mrb[104].mxu1 %v8294_v28 }
 0x161   : > { %1797 = vmatprep.mubr.f32.mxu1 %v8297_v29 }
 0x162   : > { %6857 = vmatmul.mubr.f32.gmra.mrb[90].mxu0 %v8274_v11 }
 0x163   : > { %6859 = vmatprep.mubr.f32.mxu0 %v8278_v15  ;;  %v6739_v51 = vpop.f32.mrb[0].mxu1 }
 0x164   : > { %1798 = vmatmul.mubr.f32.gmra.mrb[106].mxu1 %v8305_v42  ;;  %v953_v57 = vpop.f32.mrb[1].mxu1 }
 0x165   : > { %1802 = vmatprep.mubr.f32.mxu1 %v8308_v43 }
 0x166   : > { %6860 = vmatmul.mubr.f32.gmra.mrb[92].mxu0 %v8287_v21 }
 0x167   : > { %6862 = vmatprep.mubr.f32.mxu0 %v8291_v25  ;;  %v8615_v60 = vpop.f32.mrb[2].mxu1 }
 0x168   : > { %1803 = vmatmul.mubr.f32.gmra.mrb[108].mxu1 %v8315_v52  ;;  %v963_v61 = vpop.f32.mrb[3].mxu1 }
 0x169   : > { %1807 = vmatprep.mubr.f32.mxu1 %v8317_v53  ;;  %v10508_v53 = vld [vmem:[#allocation13_spill] sm:$0xff] }
 0x16a   : > { %6863 = vmatmul.mubr.f32.gmra.mrb[94].mxu0 %v8300_v33 }
 0x16b   : > { %6897 = vmatprep.mubr.f32.mxu0 %v8520_v45  ;;  %v8621_v63 = vpop.f32.mrb[4].mxu1 }
 0x16c   : > { %1808 = vmatmul.mubr.f32.gmra.mrb[110].mxu1 %v8323_v59  ;;  %v8624_v4 = vpop.f32.mrb[5].mxu1 }
 0x16d   : > { %1812 = vmatprep.mubr.f32.mxu1 %v8325_v1 }
 0x16e   : > { %6898 = vmatmul.mubr.f32.vlgmr.msra.gmra.mrb[96].mxu0 %v8524_v47 }
 0x16f   : > { %6900 = vmatprep.mubr.f32.mxu0 %v8527_v44  ;;  %v8629_v7 = vpop.f32.mrb[6].mxu1  ;;  %v10513_v44 = vld [vmem:[#allocation18_spill] sm:$0xff] }
 0x170   : > { %1813 = vmatmul.mubr.f32.gmra.mrb[112].mxu1 %v8330_v6  ;;  %v8632_v9 = vpop.f32.mrb[7].mxu1  ;;  %v10509_v6 = vld [vmem:[#allocation14_spill] sm:$0xff] }
 0x171   : > { %1817 = vmatprep.mubr.f32.mxu1 %v8332_v10 }
 0x172   : > { %6901 = vmatmul.mubr.f32.gmra.mrb[98].mxu0 %v8532_v5 }
 0x173   : > { %6903 = vmatprep.mubr.f32.mxu0 %v8535_v46  ;;  %v8637_v11 = vpop.f32.mrb[8].mxu1 }
 0x174   : > { %1818 = vmatmul.mubr.f32.gmra.mrb[114].mxu1 %v8338_v16  ;;  %v8640_v15 = vpop.f32.mrb[9].mxu1 }
 0x175   : > { %1822 = vmatprep.mubr.f32.mxu1 %v8341_v17 }
 0x176   : > { %6904 = vmatmul.mubr.f32.gmra.mrb[100].mxu0 %v8540_v58 }
 0x177   : > { %6906 = vmatprep.mubr.f32.mxu0 %v8543_v20  ;;  %v8645_v18 = vpop.f32.mrb[10].mxu1 }
 0x178   : > { %1823 = vmatmul.mubr.f32.gmra.mrb[116].mxu1 %v8347_v23  ;;  %v8648_v19 = vpop.f32.mrb[11].mxu1  ;;  %v10510_v23 = vld [vmem:[#allocation15_spill] sm:$0xff] }
 0x179   : > { %1827 = vmatprep.mubr.f32.mxu1 %v8350_v24 }
 0x17a   : > { %6907 = vmatmul.mubr.f32.gmra.mrb[102].mxu0 %v8548_v54  ;;  %v10512_v54 = vld [vmem:[#allocation17_spill] sm:$0xff] }
 0x17b   : > { %6909 = vmatprep.mubr.f32.mxu0 %v8551_v56  ;;  %v8653_v21 = vpop.f32.mrb[12].mxu1  ;;  %v1647_v56 = vld [vmem:[#allocation2 + $0x122] sm:$0xff] }
 0x17c   : > { %1828 = vmatmul.mubr.f32.gmra.mrb[118].mxu1 %v8356_v27  ;;  %v8656_v25 = vpop.f32.mrb[13].mxu1 }
 0x17d   : > { %1832 = vmatprep.mubr.f32.mxu1 %v8359_v32  ;;  %v10511_v32 = vld [vmem:[#allocation16_spill] sm:$0xff] }
 0x17e   : > { %6910 = vmatmul.mubr.f32.gmra.mrb[104].mxu0 %v8556_v12 }
 0x17f   : > { %6912 = vmatprep.mubr.f32.mxu0 %v8559_v40  ;;  %v8661_v28 = vpop.f32.mrb[14].mxu1 }
 0x180   : > { %1833 = vmatmul.mubr.f32.gmra.mrb[120].mxu1 %v8365_v36  ;;  %v8664_v29 = vpop.f32.mrb[15].mxu1 }
 0x181   : > { %v728_v33 = vpop.f32.mrb[0].mxu0  ;;  %1837 = vmatprep.mubr.f32.mxu1 %v8368_v37 }
 0x182   : > { %v730_v42 = vpop.f32.mrb[1].mxu0  ;;  %6913 = vmatmul.mubr.f32.gmra.mrb[106].mxu0 %v8564_v26  ;;  %v8668_v43 = vadd.f32 %v953_v57, %v728_v33  ;;  %v10515_v26 = vld [vmem:[#allocation20_spill] sm:$0xff]  ;;  %v2717_v57 = vld [vmem:[#allocation7 + $0x280] sm:$0xff]  ;;  %v10517_v33 = vld [vmem:[#allocation22_spill] sm:$0xff] }
 0x183   : > { %6915 = vmatprep.mubr.f32.mxu0 %v8567_v3  ;;  %v8671_v52 = vpop.f32.mrb[16].mxu1 }
 0x184   : > { %1838 = vmatmul.mubr.f32.gmra.mrb[122].mxu1 %v10508_v53  ;;  %v8674_v59 = vpop.f32.mrb[17].mxu1  ;;  %v2685_v53 = vld [vmem:[#allocation7 + $0x180] sm:$0xff] }
 0x185   : > { %v733_v1 = vpop.f32.mrb[2].mxu0  ;;  %1842 = vmatprep.mubr.f32.mxu1 %v10509_v6 }
 0x186   : > { %v735_v10 = vpop.f32.mrb[3].mxu0  ;;  %6916 = vmatmul.mubr.f32.gmra.mrb[108].mxu0 %v8572_v49  ;;  %v8678_v16 = vadd.f32 %v6739_v51, %v733_v1  ;;  %v1649_v51 = vld [vmem:[#allocation2 + $0x13a] sm:$0xff] }
 0x187   : > { %6918 = vmatprep.mubr.f32.mxu0 %v8575_v8  ;;  %v8681_v17 = vpop.f32.mrb[18].mxu1 }
 0x188   : > { %1843 = vmatmul.mubr.f32.gmra.mrb[124].mxu1 %v10510_v23  ;;  %v8684_v24 = vpop.f32.mrb[19].mxu1  ;;  %v1650_v23 = vld [vmem:[#allocation2 + $0x142] sm:$0xff] }
 0x189   : > { %v738_v27 = vpop.f32.mrb[4].mxu0  ;;  %1847 = vmatprep.mubr.f32.mxu1 %v10511_v32 }
 0x18a   : > { %v740_v36 = vpop.f32.mrb[5].mxu0  ;;  %6919 = vmatmul.mubr.f32.gmra.mrb[110].mxu0 %v8581_v2  ;;  %v8688_v37 = vadd.f32 %v963_v61, %v738_v27  ;;  %v1648_v2 = vld [vmem:[#allocation2 + $0x12a] sm:$0xff] }
 0x18b   : > { %6921 = vmatprep.mubr.f32.mxu0 %v8584_v0  ;;  %v8691_v45 = vpop.f32.mrb[20].mxu1  ;;  %v10514_v0 = vld [vmem:[#allocation19_spill] sm:$0xff] }
 0x18c   : > { %1848 = vmatmul.mubr.f32.gmra.mrb[126].mxu1 %v10512_v54  ;;  %v8694_v12 = vpop.f32.mrb[21].mxu1  ;;  %v10518_v27 = vld [vmem:[#allocation23_spill] sm:$0xff] }
 0x18d   : > { %v743_v47 = vpop.f32.mrb[6].mxu0  ;;  %1852 = vmatprep.mubr.f32.mxu1 %v10513_v44  ;;  %v1651_v36 = vld [vmem:[#allocation2 + $0x152] sm:$0xff] }
 0x18e   : > { %v745_v5 = vpop.f32.mrb[7].mxu0  ;;  %6922 = vmatmul.mubr.f32.gmra.mrb[112].mxu0 %v8589_v13  ;;  %v8699_v46 = vadd.f32 %v8615_v60, %v743_v47  ;;  %v10516_v13 = vld [vmem:[#allocation21_spill] sm:$0xff]  ;;  %v2718_v60 = vld [vmem:[#allocation7 + $0x288] sm:$0xff]  ;;  %v10519_v47 = vld [vmem:[#allocation24_spill] sm:$0xff] }
 0x18f   : > { %6924 = vmatprep.mubr.f32.mxu0 %v8592_v41  ;;  %v8702_v58 = vpop.f32.mrb[22].mxu1  ;;  %v7473_v42 = vpack.c.bf16 %v2718_v60, %v2717_v57  ;;  %v2687_v44 = vld [vmem:[#allocation7 + $0x190] sm:$0xff]  ;;  %v2688_v5 = vld [vmem:[#allocation7 + $0x198] sm:$0xff]  ;;  %v2690_v57 = vld [vmem:[#allocation7 + $0x1a8] sm:$0xff] }
 0x190   : > { %1853 = vmatmul.mubr.f32.gmra.mrb[128].mxu1 %v10514_v0  ;;  %v8705_v20 = vpop.f32.mrb[23].mxu1 }
 0x191   : > { %v748_v40 = vpop.f32.mrb[8].mxu0  ;;  %1857 = vmatprep.mubr.f32.mxu1 %v10515_v26  ;;  %7474 = vmatprep.subr.bf16.mxu1 %v7473_v42  ;;  %v1652_v26 = vld [vmem:[#allocation2 + $0x15a] sm:$0xff] }
 0x192   : > { %v750_v3 = vpop.f32.mrb[9].mxu0  ;;  %6925 = vmatmul.mubr.f32.gmra.mrb[114].mxu0 %v8597_v50  ;;  %v8710_v49 = vadd.f32 %v8624_v4, %v748_v40  ;;  %v2686_v50 = vld [vmem:[#allocation7 + $0x188] sm:$0xff]  ;;  %7476 = vmatpush3.bf16.msra.mxu1 %v7473_v42 }
 0x193   : > { %v8712_v8 = vpop.f32.mrb[24].mxu1  ;;  %6927 = vmatprep.mubr.f32.mxu0 %v1647_v56  ;;  %v7426_v6 = vpack.c.bf16 %v2686_v50, %v2685_v53  ;;  %v7429_v56 = vpack.c.bf16 %v2688_v5, %v2687_v44  ;;  %v10520_v3 = vld [vmem:[#allocation25_spill] sm:$0xff]  ;;  %v1654_v53 = vld [vmem:[#allocation2 + $0x172] sm:$0xff] }
 0x194   : > { %1858 = vmatmul.mubr.f32.gmra.mrb[130].mxu1 %v10516_v13  ;;  %v8715_v41 = vpop.f32.mrb[25].mxu1  ;;  %v1653_v13 = vld [vmem:[#allocation2 + $0x16a] sm:$0xff]  ;;  %v2720_v44 = vld [vmem:[#allocation7 + $0x298] sm:$0xff] }
 0x195   : > { %v753_v61 = vpop.f32.mrb[10].mxu0  ;;  %1862 = vmatprep.mubr.f32.mxu1 %v10517_v33  ;;  %7427 = vmatpush1.bf16.msra.mxu0 %v7426_v6  ;;  %v2691_v6 = vld [vmem:[#allocation7 + $0x1b0] sm:$0xff] }
 0x196   : > { %v755_v1 = vpop.f32.mrb[11].mxu0  ;;  %6928 = vmatmul.mubr.f32.gmra.mrb[116].mxu0 %v1648_v2  ;;  %v8719_v4 = vadd.f32 %v8621_v63, %v753_v61  ;;  %7428 = vmatprep.subr.bf16.mxu0 %v10507_v39 }
 0x197   : > { %v8721_v10 = vpop.f32.mrb[26].mxu1  ;;  %6930 = vmatprep.mubr.f32.mxu0 %v1649_v51  ;;  %v1655_v1 = vld [vmem:[#allocation2 + $0x182] sm:$0xff] }
 0x198   : > { %1863 = vmatmul.mubr.f32.gmra.mrb[132].mxu1 %v10518_v27  ;;  %v8724_v32 = vpop.f32.mrb[27].mxu1 }
 0x199   : > { %v758_v54 = vpop.f32.mrb[12].mxu0  ;;  %1867 = vmatprep.mubr.f32.mxu1 %v10519_v47  ;;  %7430 = vmatpush1.bf16.msra.mxu0 %v7429_v56  ;;  %v2719_v47 = vld [vmem:[#allocation7 + $0x290] sm:$0xff] }
 0x19a   : > { %v760_v63 = vpop.f32.mrb[13].mxu0  ;;  %6931 = vmatmul.mubr.f32.gmra.mrb[118].mxu0 %v1650_v23  ;;  %v8728_v0 = vadd.f32 %v8632_v9, %v758_v54  ;;  %7431 = vmatprep.subr.bf16.mxu0 %v10507_v39  ;;  %v2689_v9 = vld [vmem:[#allocation7 + $0x1a0] sm:$0xff]  ;;  %v2692_v23 = vld [vmem:[#allocation7 + $0x1b8] sm:$0xff]  ;;  %v7477_v56 = vpack.c.bf16 %v2720_v44, %v2719_v47 }
 0x19b   : > { %v8731_v40 = vpop.f32.mrb[28].mxu1  ;;  %6933 = vmatprep.mubr.f32.mxu0 %v1651_v36  ;;  %v7432_v33 = vpack.c.bf16 %v2690_v57, %v2689_v9  ;;  %v7435_v36 = vpack.c.bf16 %v2692_v23, %v2691_v6  ;;  %v1657_v63 = vld [vmem:[#allocation2 + $0x19a] sm:$0xff] }
 0x19c   : > { %1868 = vmatmul.mubr.f32.gmra.mrb[134].mxu1 %v10520_v3  ;;  %v8734_v2 = vpop.f32.mrb[29].mxu1  ;;  %v2694_v3 = vld [vmem:[#allocation7 + $0x1c8] sm:$0xff]  ;;  %7478 = vmatprep.subr.bf16.mxu1 %v7477_v56  ;;  %v10524_v47 = vld [vmem:[#allocation29_spill] sm:$0xff] }
 0x19d   : > { %v763_v51 = vpop.f32.mrb[14].mxu0  ;;  %1872 = vmatprep.mubr.f32.mxu1 %v8431_v62  ;;  %7433 = vmatpush1.bf16.msra.mxu0 %v7432_v33  ;;  %v2697_v44 = vld [vmem:[#allocation7 + $0x1e0] sm:$0xff] }
 0x19e   : > { %v765_v60 = vpop.f32.mrb[15].mxu0  ;;  %6934 = vmatmul.mubr.f32.gmra.mrb[120].mxu0 %v1652_v26  ;;  %v8739_v61 = vadd.f32 %v8629_v7, %v763_v51  ;;  %7434 = vmatprep.subr.bf16.mxu0 %v10507_v39 }
 0x19f   : > { %v8741_v42 = vpop.f32.mrb[30].mxu1  ;;  %6936 = vmatprep.mubr.f32.mxu0 %v1653_v13  ;;  %7480 = vmatpush3.bf16.msra.mxu1 %v7477_v56  ;;  %v10521_v60 = vld [vmem:[#allocation26_spill] sm:$0xff] }
 0x1a0   : > { %1873 = vmatmul.mubr.f32.gmra.mrb[136].mxu1 %v8437_v14  ;;  %v8744_v50 = vpop.f32.mrb[31].mxu1  ;;  %v1656_v14 = vld [vmem:[#allocation2 + $0x18a] sm:$0xff] }
 0x1a1   : > { %v768_v62 = vpop.f32.mrb[16].mxu0  ;;  %1877 = vmatprep.mubr.f32.mxu1 %v8440_v22  ;;  %7436 = vmatpush1.bf16.msra.mxu0 %v7435_v36  ;;  %v10523_v36 = vld [vmem:[#allocation28_spill] sm:$0xff] }
 0x1a2   : > { %v770_v7 = vpop.f32.mrb[17].mxu0  ;;  %6937 = vmatmul.mubr.f32.gmra.mrb[122].mxu0 %v1654_v53  ;;  %v8749_v27 = vadd.f32 %v8640_v15, %v768_v62  ;;  %7437 = vmatprep.subr.bf16.mxu0 %v10507_v39  ;;  %v2693_v15 = vld [vmem:[#allocation7 + $0x1c0] sm:$0xff]  ;;  %v10522_v53 = vld [vmem:[#allocation27_spill] sm:$0xff] }
 0x1a3   : > { %v1178_v54 = vpop.f32.mrb[32].mxu1  ;;  %6939 = vmatprep.mubr.f32.mxu0 %v1655_v1  ;;  %v2696_v1 = vld [vmem:[#allocation7 + $0x1d8] sm:$0xff] }
 0x1a4   : > { %v8752_v5 = vadd.f32 %v1178_v54, %v8668_v43  ;;  %1878 = vmatmul.mubr.f32.gmra.mrb[138].mxu1 %v8446_v35  ;;  %v1180_v22 = vpop.f32.mrb[33].mxu1  ;;  %v7438_v43 = vpack.c.bf16 %v2694_v3, %v2693_v15  ;;  %v1658_v35 = vld [vmem:[#allocation2 + $0x1a2] sm:$0xff] }
 0x1a5   : > { %v773_v26 = vpop.f32.mrb[18].mxu0  ;;  %1882 = vmatprep.mubr.f32.mxu1 %v8449_v38  ;;  %v2698_v22 = vld [vmem:[#allocation7 + $0x1e8] sm:$0xff] }
 0x1a6   : > { %v775_v13 = vpop.f32.mrb[19].mxu0  ;;  %6940 = vmatmul.mubr.f32.gmra.mrb[124].mxu0 %v1656_v14  ;;  %v8758_v51 = vadd.f32 %v8637_v11, %v773_v26  ;;  %v2695_v11 = vld [vmem:[#allocation7 + $0x1d0] sm:$0xff]  ;;  %v7444_v56 = vpack.c.bf16 %v2698_v22, %v2697_v44  ;;  %v10525_v15 = vld [vmem:[#allocation30_spill] sm:$0xff]  ;;  %v2704_v44 = vld [vmem:[#allocation7 + $0x218] sm:$0xff] }
 0x1a7   : > { %v1183_v9 = vpop.f32.mrb[34].mxu1  ;;  %6942 = vmatprep.mubr.f32.mxu0 %v1657_v63  ;;  %7439 = vmatpush1.bf16.msra.mxu0 %v7438_v43  ;;  %v7441_v23 = vpack.c.bf16 %v2696_v1, %v2695_v11  ;;  %v2699_v43 = vld [vmem:[#allocation7 + $0x1f0] sm:$0xff] }
 0x1a8   : > { %v8761_v57 = vadd.f32 %v1183_v9, %v8678_v16  ;;  %1883 = vmatmul.mubr.f32.gmra.mrb[140].mxu1 %v10521_v60  ;;  %v1185_v38 = vpop.f32.mrb[35].mxu1  ;;  %7440 = vmatprep.subr.bf16.mxu0 %v10507_v39  ;;  %v2700_v9 = vld [vmem:[#allocation7 + $0x1f8] sm:$0xff] }
 0x1a9   : > { %v778_v33 = vpop.f32.mrb[20].mxu0  ;;  %1887 = vmatprep.mubr.f32.mxu1 %v10522_v53  ;;  %v7447_v60 = vpack.c.bf16 %v2700_v9, %v2699_v43 }
 0x1aa   : > { %v780_v62 = vpop.f32.mrb[21].mxu0  ;;  %6943 = vmatmul.mubr.f32.gmra.mrb[126].mxu0 %v1658_v35  ;;  %v8767_v6 = vadd.f32 %v8648_v19, %v778_v33  ;;  %v2721_v33 = vld [vmem:[#allocation7 + $0x2a0] sm:$0xff] }
 0x1ab   : > { %v1188_v7 = vpop.f32.mrb[36].mxu1  ;;  %7442 = vmatpush1.bf16.msra.mxu0 %v7441_v23  ;;  %v2701_v62 = vld [vmem:[#allocation7 + $0x200] sm:$0xff] }
 0x1ac   : > { %v8770_v16 = vadd.f32 %v1188_v7, %v8688_v37  ;;  %1888 = vmatmul.mubr.f32.gmra.mrb[142].mxu1 %v10523_v36  ;;  %v1190_v54 = vpop.f32.mrb[37].mxu1  ;;  %7443 = vmatprep.subr.bf16.mxu0 %v10507_v39 }
 0x1ad   : > { %v783_v14 = vpop.f32.mrb[22].mxu0  ;;  %1892 = vmatprep.mubr.f32.mxu1 %v10524_v47  ;;  %v2703_v47 = vld [vmem:[#allocation7 + $0x210] sm:$0xff] }
 0x1ae   : > { %v785_v63 = vpop.f32.mrb[23].mxu0  ;;  %v8776_v19 = vadd.f32 %v8645_v18, %v783_v14  ;;  %v10526_v14 = vld [vmem:[#allocation31_spill] sm:$0xff] }
 0x1af   : > { %v1193_v26 = vpop.f32.mrb[38].mxu1  ;;  %7445 = vmatpush1.bf16.msra.mxu0 %v7444_v56  ;;  %v7453_v63 = vpack.c.bf16 %v2704_v44, %v2703_v47  ;;  %v2725_v47 = vld [vmem:[#allocation7 + $0x2c0] sm:$0xff]  ;;  %v2726_v44 = vld [vmem:[#allocation7 + $0x2c8] sm:$0xff] }
 0x1b0   : > { %v8779_v37 = vadd.f32 %v1193_v26, %v8699_v46  ;;  %1893 = vmatmul.mubr.f32.gmra.mrb[144].mxu1 %v10525_v15  ;;  %v1195_v3 = vpop.f32.mrb[39].mxu1  ;;  %7446 = vmatprep.subr.bf16.mxu0 %v10507_v39  ;;  %v2722_v46 = vld [vmem:[#allocation7 + $0x2a8] sm:$0xff]  ;;  %v10527_v15 = vld [vmem:[#allocation32_spill] sm:$0xff] }
 0x1b1   : > { %v788_v13 = vpop.f32.mrb[24].mxu0  ;;  %1897 = vmatprep.mubr.f32.mxu1 %v8474_v30  ;;  %v7481_v1 = vpack.c.bf16 %v2722_v46, %v2721_v33  ;;  %v2705_v3 = vld [vmem:[#allocation7 + $0x220] sm:$0xff]  ;;  %v10529_v33 = vld [vmem:[#allocation34_spill] sm:$0xff]  ;;  %v2723_v46 = vld [vmem:[#allocation7 + $0x2b0] sm:$0xff] }
 0x1b2   : > { %v790_v35 = vpop.f32.mrb[25].mxu0  ;;  %v8785_v18 = vadd.f32 %v8656_v25, %v788_v13  ;;  %v2702_v25 = vld [vmem:[#allocation7 + $0x208] sm:$0xff] }
 0x1b3   : > { %v1198_v38 = vpop.f32.mrb[40].mxu1  ;;  %7448 = vmatpush1.bf16.msra.mxu0 %v7447_v60  ;;  %7482 = vmatprep.subr.bf16.mxu1 %v7481_v1  ;;  %v7450_v36 = vpack.c.bf16 %v2702_v25, %v2701_v62  ;;  %v2706_v13 = vld [vmem:[#allocation7 + $0x228] sm:$0xff]  ;;  %v10528_v60 = vld [vmem:[#allocation33_spill] sm:$0xff] }
 0x1b4   : > { %v8788_v53 = vadd.f32 %v1198_v38, %v8710_v49  ;;  %1898 = vmatmul.mubr.f32.gmra.mrb[146].mxu1 %v8479_v31  ;;  %v1200_v11 = vpop.f32.mrb[41].mxu1  ;;  %7449 = vmatprep.subr.bf16.mxu0 %v10507_v39  ;;  %v7456_v9 = vpack.c.bf16 %v2706_v13, %v2705_v3  ;;  %v1625_v62 = vld [vmem:[#allocation2 + $0x199] sm:$0xff] }
 0x1b5   : > { %v793_v30 = vpop.f32.mrb[26].mxu0  ;;  %1902 = vmatprep.mubr.f32.mxu1 %v8482_v34  ;;  %7484 = vmatpush3.bf16.msra.mxu1 %v7481_v1  ;;  %v2724_v11 = vld [vmem:[#allocation7 + $0x2b8] sm:$0xff]  ;;  %v2707_v1 = vld [vmem:[#allocation7 + $0x230] sm:$0xff]  ;;  %v7733_v13 = vld [vmem:[#allocation2] sm:$0xff] }
 0x1b6   : > { %v795_v23 = vpop.f32.mrb[27].mxu0  ;;  %v8794_v7 = vadd.f32 %v8653_v21, %v793_v30  ;;  %v7485_v25 = vpack.c.bf16 %v2724_v11, %v2723_v46  ;;  %v2712_v46 = vld [vmem:[#allocation7 + $0x258] sm:$0xff] }
 0x1b7   : > { %v1203_v49 = vpop.f32.mrb[42].mxu1  ;;  %7451 = vmatpush1.bf16.msra.mxu0 %v7450_v36 }
 0x1b8   : > { %v8797_v31 = vadd.f32 %v1203_v49, %v8719_v4  ;;  %1903 = vmatmul.mubr.f32.gmra.mrb[148].mxu1 %v8487_v48  ;;  %v1205_v54 = vpop.f32.mrb[43].mxu1  ;;  %7452 = vmatprep.subr.bf16.mxu0 %v10507_v39 }
 0x1b9   : > { %v798_v34 = vpop.f32.mrb[28].mxu0  ;;  %1907 = vmatprep.mubr.f32.mxu1 %v10526_v14  ;;  %v10530_v54 = vld [vmem:[#allocation35_spill] sm:$0xff]  ;;  %7486 = vmatprep.subr.bf16.mxu1 %v7485_v25 }
 0x1ba   : > { %v800_v21 = vpop.f32.mrb[29].mxu0  ;;  %v8803_v22 = vadd.f32 %v8664_v29, %v798_v34  ;;  %7488 = vmatpush3.bf16.msra.mxu1 %v7485_v25  ;;  %v2729_v25 = vld [vmem:[#allocation7 + $0x2e0] sm:$0xff] }
 0x1bb   : > { %v1208_v56 = vpop.f32.mrb[44].mxu1  ;;  %7454 = vmatpush1.bf16.msra.mxu0 %v7453_v63 }
 0x1bc   : > { %v8806_v4 = vadd.f32 %v1208_v56, %v8728_v0  ;;  %1908 = vmatmul.mubr.f32.gmra.mrb[150].mxu1 %v8495_v55  ;;  %v1210_v48 = vpop.f32.mrb[45].mxu1  ;;  %7455 = vmatprep.subr.bf16.mxu0 %v10507_v39  ;;  %v1626_v56 = vld [vmem:[#allocation2 + $0x1a1] sm:$0xff] }
 0x1bd   : > { %v803_v26 = vpop.f32.mrb[30].mxu0  ;;  %1912 = vmatprep.mubr.f32.mxu1 %v10527_v15  ;;  %v7489_v48 = vpack.c.bf16 %v2726_v44, %v2725_v47 }
 0x1be   : > { %v805_v43 = vpop.f32.mrb[31].mxu0  ;;  %v8812_v29 = vadd.f32 %v8661_v28, %v803_v26  ;;  %v2710_v26 = vld [vmem:[#allocation7 + $0x248] sm:$0xff] }
 0x1bf   : > { %v1213_v35 = vpop.f32.mrb[46].mxu1  ;;  %7457 = vmatpush1.bf16.msra.mxu0 %v7456_v9  ;;  %7490 = vmatprep.subr.bf16.mxu1 %v7489_v48 }
 0x1c0   : > { %v8815_v0 = vadd.f32 %v1213_v35, %v8739_v61  ;;  %1913 = vmatmul.mubr.f32.gmra.mrb[152].mxu1 %v10528_v60  ;;  %v1215_v55 = vpop.f32.mrb[47].mxu1  ;;  %7458 = vmatprep.subr.bf16.mxu0 %v10507_v39  ;;  %v2708_v61 = vld [vmem:[#allocation7 + $0x238] sm:$0xff]  ;;  %v2711_v60 = vld [vmem:[#allocation7 + $0x250] sm:$0xff] }
 0x1c1   : > { %v808_v38 = vpop.f32.mrb[32].mxu0  ;;  %1917 = vmatprep.mubr.f32.mxu1 %v10529_v33  ;;  %v7459_v36 = vpack.c.bf16 %v2708_v61, %v2707_v1  ;;  %7492 = vmatpush3.bf16.msra.mxu1 %v7489_v48  ;;  %v2728_v35 = vld [vmem:[#allocation7 + $0x2d8] sm:$0xff]  ;;  %v2730_v61 = vld [vmem:[#allocation7 + $0x2e8] sm:$0xff]  ;;  %v2715_v48 = vld [vmem:[#allocation7 + $0x270] sm:$0xff] }
 0x1c2   : > { %v8821_v28 = vadd.f32 %v8674_v59, %v808_v38  ;;  %v810_v30 = vpop.f32.mrb[33].mxu0  ;;  %v2709_v59 = vld [vmem:[#allocation7 + $0x240] sm:$0xff] }
 0x1c3   : > { %v1218_v23 = vpop.f32.mrb[48].mxu1  ;;  %7460 = vmatpush1.bf16.msra.mxu0 %v7459_v36  ;;  %v7462_v15 = vpack.c.bf16 %v2710_v26, %v2709_v59 }
 0x1c4   : > { %v8824_v49 = vadd.f32 %v1218_v23, %v8749_v27  ;;  %1918 = vmatmul.mubr.f32.gmra.mrb[154].mxu1 %v10530_v54  ;;  %v1220_v34 = vpop.f32.mrb[49].mxu1  ;;  %7461 = vmatprep.subr.bf16.mxu0 %v10507_v39  ;;  %v7497_v54 = vpack.c.bf16 %v2730_v61, %v2729_v25 }
 0x1c5   : > { %v813_v14 = vpop.f32.mrb[34].mxu0  ;;  %1922 = vmatprep.mubr.f32.mxu1 %v1625_v62  ;;  %v2714_v34 = vld [vmem:[#allocation7 + $0x268] sm:$0xff] }
 0x1c6   : > { %v8828_v21 = vadd.f32 %v8671_v52, %v813_v14  ;;  %v815_v63 = vpop.f32.mrb[35].mxu0  ;;  %v2727_v52 = vld [vmem:[#allocation7 + $0x2d0] sm:$0xff] }
 0x1c7   : > { %v1223_v27 = vpop.f32.mrb[50].mxu1  ;;  %7463 = vmatpush1.bf16.msra.mxu0 %v7462_v15  ;;  %v7493_v33 = vpack.c.bf16 %v2728_v35, %v2727_v52  ;;  %v2731_v63 = vld [vmem:[#allocation7 + $0x2f0] sm:$0xff]  ;;  %v2716_v15 = vld [vmem:[#allocation7 + $0x278] sm:$0xff] }
 0x1c8   : > { %v8832_v3 = vadd.f32 %v1223_v27, %v8758_v51  ;;  %1923 = vmatmul.mubr.f32.gmra.mrb[156].mxu1 %v7733_v13  ;;  %v1225_v43 = vpop.f32.mrb[51].mxu1  ;;  %7464 = vmatprep.subr.bf16.mxu0 %v10507_v39  ;;  %v7465_v51 = vpack.c.bf16 %v2712_v46, %v2711_v60 }
 0x1c9   : > { %v818_v9 = vpop.f32.mrb[36].mxu0  ;;  %1927 = vmatprep.mubr.f32.mxu1 %v1626_v56  ;;  %7494 = vmatprep.subr.bf16.mxu1 %v7493_v33  ;;  %v2732_v56 = vld [vmem:[#allocation7 + $0x2f8] sm:$0xff]  ;;  %v7471_v43 = vpack.c.bf16 %v2716_v15, %v2715_v48 }
 0x1ca   : > { %v8835_v55 = vadd.f32 %v8684_v24, %v818_v9  ;;  %v820_v38 = vpop.f32.mrb[37].mxu0  ;;  %7496 = vmatpush3.bf16.msra.mxu1 %v7493_v33  ;;  %v2713_v24 = vld [vmem:[#allocation7 + $0x260] sm:$0xff]  ;;  %v7501_v27 = vpack.c.bf16 %v2732_v56, %v2731_v63 }
 0x1cb   : > { %v1228_v11 = vpop.f32.mrb[52].mxu1  ;;  %7466 = vmatpush1.bf16.msra.mxu0 %v7465_v51  ;;  %7498 = vmatprep.subr.bf16.mxu1 %v7497_v54 }
 0x1cc   : > { %v8839_v1 = vadd.f32 %v1228_v11, %v8767_v6  ;;  %1928 = vmatmul.mubr.f32.gmra.mrb[158].mxu1 %v7733_v13  ;;  %v1230_v30 = vpop.f32.mrb[53].mxu1  ;;  %7467 = vmatprep.subr.bf16.mxu0 %v10507_v39  ;;  %v7468_v6 = vpack.c.bf16 %v2714_v34, %v2713_v24 }
 0x1cd   : > { %v823_v62 = vpop.f32.mrb[38].mxu0 }
 0x1ce   : > { %v8842_v23 = vadd.f32 %v8681_v17, %v823_v62  ;;  %v825_v36 = vpop.f32.mrb[39].mxu0  ;;  %7500 = vmatpush3.bf16.msra.mxu1 %v7497_v54 }
 0x1cf   : > { %v1233_v14 = vpop.f32.mrb[54].mxu1  ;;  %7469 = vmatpush1.bf16.msra.mxu0 %v7468_v6  ;;  %7502 = vmatprep.subr.bf16.mxu1 %v7501_v27  ;;  %v2573_v6 = vld [vmem:[#allocation7 + $0x108] sm:$0xff] }
 0x1d0   : > { %v8846_v47 = vadd.f32 %v1233_v14, %v8776_v19  ;;  %v1235_v44 = vpop.f32.mrb[55].mxu1  ;;  %7470 = vmatprep.subr.bf16.mxu0 %v10507_v39 }
 0x1d1   : > { %v828_v59 = vpop.f32.mrb[40].mxu0 }
 0x1d2   : > { %v8849_v17 = vadd.f32 %v8694_v12, %v828_v59  ;;  %v830_v26 = vpop.f32.mrb[41].mxu0  ;;  %7504 = vmatpush3.bf16.msra.mxu1 %v7501_v27 }
 0x1d3   : > { %v1238_v13 = vpop.f32.mrb[56].mxu1  ;;  %7472 = vmatpush1.bf16.msra.mxu0 %v7471_v43  ;;  %7505 = vmatprep.subr.bf16.mxu1 %v10507_v39 }
 0x1d4   : > { %v8853_v19 = vadd.f32 %v1238_v13, %v8785_v18  ;;  %v1240_v9 = vpop.f32.mrb[57].mxu1 }
 0x1d5   : > { %v833_v52 = vpop.f32.mrb[42].mxu0 }
 0x1d6   : > { %v1059_v35 = vadd.f32 %v8691_v45, %v833_v52  ;;  %v835_v60 = vpop.f32.mrb[43].mxu0 }
 0x1d7   : > { %v1243_v12 = vpop.f32.mrb[58].mxu1 }
 0x1d8   : > { %v8858_v38 = vadd.f32 %v1243_v12, %v8794_v7  ;;  %v1245_v33 = vpop.f32.mrb[59].mxu1 }
 0x1d9   : > { %v838_v46 = vpop.f32.mrb[44].mxu0 }
 0x1da   : > { %v1064_v11 = vadd.f32 %v8705_v20, %v838_v46  ;;  %v840_v18 = vpop.f32.mrb[45].mxu0  ;;  %v2572_v20 = vld [vmem:[#allocation7 + $0x100] sm:$0xff] }
 0x1db   : > { %v1248_v51 = vpop.f32.mrb[60].mxu1  ;;  %v8869_v59 = vpack.c.bf16 %v2573_v6, %v2572_v20 }
 0x1dc   : > { %v8862_v30 = vadd.f32 %v1248_v51, %v8803_v22  ;;  %v1250_v62 = vpop.f32.mrb[61].mxu1 }
 0x1dd   : > { %v843_v25 = vpop.f32.mrb[46].mxu0  ;;  %7554 = vmatprep.subr.bf16.mxu0 %v8869_v59 }
 0x1de   : > { %v1069_v45 = vadd.f32 %v8702_v58, %v843_v25  ;;  %v845_v61 = vpop.f32.mrb[47].mxu0 }
 0x1df   : > { %v1253_v24 = vpop.f32.mrb[62].mxu1 }
 0x1e0   : > { %v8866_v36 = vadd.f32 %v1253_v24, %v8812_v29  ;;  %v1255_v7 = vpop.f32.mrb[63].mxu1 }
 0x1e1   : > { %v848_v54 = vpop.f32.mrb[48].mxu0 }
 0x1e2   : > { %v1074_v34 = vadd.f32 %v8715_v41, %v848_v54  ;;  %v850_v14 = vpop.f32.mrb[49].mxu0 }
 0x1e3   : > { %v1258_v44 = vpop.f32.mrb[64].mxu1 }
 0x1e4   : > { %v8872_v22 = vadd.f32 %v1258_v44, %v8821_v28  ;;  %v1260_v63 = vpop.f32.mrb[65].mxu1 }
 0x1e5   : > { %v853_v58 = vpop.f32.mrb[50].mxu0 }
 0x1e6   : > { %v1079_v29 = vadd.f32 %v8712_v8, %v853_v58  ;;  %v855_v56 = vpop.f32.mrb[51].mxu0 }
 0x1e7   : > { %v1263_v48 = vpop.f32.mrb[66].mxu1 }
 0x1e8   : > { %v8877_v26 = vadd.f32 %v1263_v48, %v8828_v21  ;;  %v1265_v41 = vpop.f32.mrb[67].mxu1 }
 0x1e9   : > { %v858_v27 = vpop.f32.mrb[52].mxu0 }
 0x1ea   : > { %v1084_v15 = vadd.f32 %v8724_v32, %v858_v27  ;;  %v860_v13 = vpop.f32.mrb[53].mxu0 }
 0x1eb   : > { %v1268_v43 = vpop.f32.mrb[68].mxu1 }
 0x1ec   : > { %v8881_v28 = vadd.f32 %v1268_v43, %v8835_v55  ;;  %v1270_v9 = vpop.f32.mrb[69].mxu1 }
 0x1ed   : > { %v863_v52 = vpop.f32.mrb[54].mxu0 }
 0x1ee   : > { %v1089_v60 = vadd.f32 %v8721_v10, %v863_v52  ;;  %v865_v12 = vpop.f32.mrb[55].mxu0 }
 0x1ef   : > { %v1273_v8 = vpop.f32.mrb[70].mxu1 }
 0x1f0   : > { %v8885_v33 = vadd.f32 %v1273_v8, %v8842_v23  ;;  %v1275_v21 = vpop.f32.mrb[71].mxu1 }
 0x1f1   : > { %v868_v46 = vpop.f32.mrb[56].mxu0 }
 0x1f2   : > { %v1094_v18 = vadd.f32 %v8734_v2, %v868_v46  ;;  %v870_v51 = vpop.f32.mrb[57].mxu0 }
 0x1f3   : > { %v1278_v32 = vpop.f32.mrb[72].mxu1 }
 0x1f4   : > { %v8889_v62 = vadd.f32 %v1278_v32, %v8849_v17  ;;  %v1280_v55 = vpop.f32.mrb[73].mxu1 }
 0x1f5   : > { %v873_v25 = vpop.f32.mrb[58].mxu0 }
 0x1f6   : > { %v1099_v61 = vadd.f32 %v8731_v40, %v873_v25  ;;  %v875_v24 = vpop.f32.mrb[59].mxu0 }
 0x1f7   : > { %v1283_v10 = vpop.f32.mrb[74].mxu1 }
 0x1f8   : > { %v8892_v7 = vadd.f32 %v1283_v10, %v1059_v35  ;;  %v1285_v54 = vpop.f32.mrb[75].mxu1 }
 0x1f9   : > { %v878_v23 = vpop.f32.mrb[60].mxu0 }
 0x1fa   : > { %v1104_v14 = vadd.f32 %v8744_v50, %v878_v23  ;;  %v880_v20 = vpop.f32.mrb[61].mxu0 }
 0x1fb   : > { %v1288_v6 = vpop.f32.mrb[76].mxu1 }
 0x1fc   : > { %v8895_v2 = vadd.f32 %v1288_v6, %v1064_v11  ;;  %v1290_v44 = vpop.f32.mrb[77].mxu1 }
 0x1fd   : > { %v883_v63 = vpop.f32.mrb[62].mxu0 }
 0x1fe   : > { %v1109_v17 = vadd.f32 %v8741_v42, %v883_v63  ;;  %v885_v58 = vpop.f32.mrb[63].mxu0 }
 0x1ff   : > { %v1293_v56 = vpop.f32.mrb[78].mxu1 }
 0x200   : > { %v8898_v48 = vadd.f32 %v1293_v56, %v1069_v45  ;;  %v1295_v40 = vpop.f32.mrb[79].mxu1 }
 0x201   : > { %v6819_v41 = vpop.f32.mrb[64].mxu0 }
 0x202   : > { %v8901_v35 = vadd.f32 %v6819_v41, %v8761_v57  ;;  %v1403_v27 = vpop.f32.mrb[65].mxu0 }
 0x203   : > { %v1298_v13 = vpop.f32.mrb[80].mxu1  ;;  %v8904_v50 = vadd.f32 %v1403_v27, %v8752_v5 }
 0x204   : > { %v8906_v11 = vadd.f32 %v1298_v13, %v1074_v34  ;;  %v1300_v43 = vpop.f32.mrb[81].mxu1 }
 0x205   : > { %v6822_v9 = vpop.f32.mrb[66].mxu0 }
 0x206   : > { %v8909_v42 = vadd.f32 %v6822_v9, %v8779_v37  ;;  %v1413_v52 = vpop.f32.mrb[67].mxu0 }
 0x207   : > { %v1303_v45 = vpop.f32.mrb[82].mxu1  ;;  %v8912_v12 = vadd.f32 %v1413_v52, %v8770_v16 }
 0x208   : > { %v8914_v8 = vadd.f32 %v1303_v45, %v1079_v29  ;;  %v1305_v57 = vpop.f32.mrb[83].mxu1 }
 0x209   : > { %v6825_v21 = vpop.f32.mrb[68].mxu0 }
 0x20a   : > { %v8917_v46 = vadd.f32 %v6825_v21, %v8797_v31  ;;  %v1423_v5 = vpop.f32.mrb[69].mxu0 }
 0x20b   : > { %v1308_v34 = vpop.f32.mrb[84].mxu1  ;;  %v8920_v51 = vadd.f32 %v1423_v5, %v8788_v53 }
 0x20c   : > { %v8922_v32 = vadd.f32 %v1308_v34, %v1084_v15  ;;  %v1310_v37 = vpop.f32.mrb[85].mxu1 }
 0x20d   : > { %v6828_v55 = vpop.f32.mrb[70].mxu0 }
 0x20e   : > { %v8925_v25 = vadd.f32 %v6828_v55, %v8815_v0  ;;  %v1433_v16 = vpop.f32.mrb[71].mxu0 }
 0x20f   : > { %v1313_v29 = vpop.f32.mrb[86].mxu1  ;;  %v8928_v24 = vadd.f32 %v1433_v16, %v8806_v4 }
 0x210   : > { %v1314_v10 = vadd.f32 %v1313_v29, %v1089_v60  ;;  %v1315_v31 = vpop.f32.mrb[87].mxu1 }
 0x211   : > { %v6831_v54 = vpop.f32.mrb[72].mxu0 }
 0x212   : > { %v8931_v23 = vadd.f32 %v6831_v54, %v8832_v3  ;;  %v1443_v53 = vpop.f32.mrb[73].mxu0 }
 0x213   : > { %v1318_v20 = vpop.f32.mrb[88].mxu1  ;;  %v8934_v15 = vadd.f32 %v1443_v53, %v8824_v49 }
 0x214   : > { %v1319_v6 = vadd.f32 %v1318_v20, %v1094_v18  ;;  %v1320_v44 = vpop.f32.mrb[89].mxu1 }
 0x215   : > { %v6834_v0 = vpop.f32.mrb[74].mxu0 }
 0x216   : > { %v8937_v63 = vadd.f32 %v6834_v0, %v8846_v47  ;;  %v1453_v58 = vpop.f32.mrb[75].mxu0 }
 0x217   : > { %v1323_v4 = vpop.f32.mrb[90].mxu1  ;;  %v8940_v60 = vadd.f32 %v1453_v58, %v8839_v1 }
 0x218   : > { %v1324_v56 = vadd.f32 %v1323_v4, %v1099_v61  ;;  %v1325_v40 = vpop.f32.mrb[91].mxu1 }
 0x219   : > { %v6837_v3 = vpop.f32.mrb[76].mxu0 }
 0x21a   : > { %v8943_v41 = vadd.f32 %v6837_v3, %v8858_v38  ;;  %v1463_v27 = vpop.f32.mrb[77].mxu0 }
 0x21b   : > { %v1328_v49 = vpop.f32.mrb[92].mxu1  ;;  %v8946_v18 = vadd.f32 %v1463_v27, %v8853_v19 }
 0x21c   : > { %v1329_v13 = vadd.f32 %v1328_v49, %v1104_v14  ;;  %v1330_v43 = vpop.f32.mrb[93].mxu1 }
 0x21d   : > { %v6840_v47 = vpop.f32.mrb[78].mxu0 }
 0x21e   : > { %v8949_v9 = vadd.f32 %v6840_v47, %v8866_v36  ;;  %v1473_v52 = vpop.f32.mrb[79].mxu0 }
 0x21f   : > { %v1333_v1 = vpop.f32.mrb[94].mxu1  ;;  %v8952_v61 = vadd.f32 %v1473_v52, %v8862_v30 }
 0x220   : > { %v1334_v45 = vadd.f32 %v1333_v1, %v1109_v17  ;;  %v1335_v57 = vpop.f32.mrb[95].mxu1 }
 0x221   : > { %v6843_v38 = vpop.f32.mrb[80].mxu0 }
 0x222   : > { %v8955_v21 = vadd.f32 %v6843_v38, %v8877_v26  ;;  %v1483_v5 = vpop.f32.mrb[81].mxu0 }
 0x223   : > { %v8958_v19 = vadd.f32 %v1483_v5, %v8872_v22  ;;  %v1774_v14 = vpop.f32.mrb[96].mxu1 }
 0x224   : > { %v1776_v34 = vpop.f32.mrb[97].mxu1 }
 0x225   : > { %v6846_v37 = vpop.f32.mrb[82].mxu0 }
 0x226   : > { %v8961_v36 = vadd.f32 %v6846_v37, %v8885_v33  ;;  %v1493_v55 = vpop.f32.mrb[83].mxu0 }
 0x227   : > { %v8964_v30 = vadd.f32 %v1493_v55, %v8881_v28  ;;  %v1779_v17 = vpop.f32.mrb[98].mxu1 }
 0x228   : > { %v1781_v16 = vpop.f32.mrb[99].mxu1 }
 0x229   : > { %v6849_v29 = vpop.f32.mrb[84].mxu0 }
 0x22a   : > { %v8967_v26 = vadd.f32 %v6849_v29, %v8892_v7  ;;  %v1503_v31 = vpop.f32.mrb[85].mxu0 }
 0x22b   : > { %v8970_v22 = vadd.f32 %v1503_v31, %v8889_v62  ;;  %v1784_v54 = vpop.f32.mrb[100].mxu1 }
 0x22c   : > { %v1786_v53 = vpop.f32.mrb[101].mxu1 }
 0x22d   : > { %v6852_v20 = vpop.f32.mrb[86].mxu0 }
 0x22e   : > { %v8973_v33 = vadd.f32 %v6852_v20, %v8898_v48  ;;  %v1513_v44 = vpop.f32.mrb[87].mxu0 }
 0x22f   : > { %v8976_v28 = vadd.f32 %v1513_v44, %v8895_v2  ;;  %v1789_v0 = vpop.f32.mrb[102].mxu1 }
 0x230   : > { %v1791_v58 = vpop.f32.mrb[103].mxu1 }
 0x231   : > { %v6855_v4 = vpop.f32.mrb[88].mxu0  ;;  %v9005_v58 = vld [vmem:[%s10439_s2] ss:$0 sm:$0xff] }
 0x232   : > { %v8979_v7 = vadd.f32 %v6855_v4, %v8914_v8  ;;  %v1523_v40 = vpop.f32.mrb[89].mxu0 }
 0x233   : > { %v8982_v62 = vadd.f32 %v1523_v40, %v8906_v11  ;;  %v1794_v3 = vpop.f32.mrb[104].mxu1 }
 0x234   : > { %v1796_v27 = vpop.f32.mrb[105].mxu1 }
 0x235   : > { %v6858_v49 = vpop.f32.mrb[90].mxu0 }
 0x236   : > { %v8984_v43 = vadd.f32 %v6858_v49, %v1314_v10  ;;  %v1533_v48 = vpop.f32.mrb[91].mxu0  ;;  %v2574_v49 = vld [vmem:[#allocation7 + $0x110] sm:$0xff] }
 0x237   : > { %v8987_v47 = vadd.f32 %v1533_v48, %v8922_v32  ;;  %v1799_v2 = vpop.f32.mrb[106].mxu1 }
 0x238   : > { %v1801_v52 = vpop.f32.mrb[107].mxu1 }
 0x239   : > { %v6861_v1 = vpop.f32.mrb[92].mxu0 }
 0x23a   : > { %v8989_v57 = vadd.f32 %v6861_v1, %v1324_v56  ;;  %v1543_v8 = vpop.f32.mrb[93].mxu0 }
 0x23b   : > { %v8991_v38 = vadd.f32 %v1543_v8, %v1319_v6  ;;  %v8993_v5 = vpop.f32.mrb[108].mxu1 }
 0x23c   : > { %v1806_v11 = vpop.f32.mrb[109].mxu1 }
 0x23d   : > { %v6864_v34 = vpop.f32.mrb[94].mxu0  ;;  %v9012_v11 = vld [vmem:[#allocation7] sm:$0xff] }
 0x23e   : > { %v8995_v37 = vadd.f32 %v6864_v34, %v1334_v45  ;;  %v1553_v10 = vpop.f32.mrb[95].mxu0 }
 0x23f   : > { %v8997_v55 = vadd.f32 %v1553_v10, %v1329_v13  ;;  %v1809_v16 = vpop.f32.mrb[110].mxu1 }
 0x240   : > { %10531 = vst [vmem:[#allocation13_spill] sm:$0xff] %v8995_v37  ;;  %v1811_v32 = vpop.f32.mrb[111].mxu1 }
 0x241   : > { %v6899_v29 = vpop.f32.mrb[96].mxu0  ;;  %v9018_v32 = vld [vmem:[#allocation7 + $0x8] sm:$0xff] }
 0x242   : > { %v2005_v31 = vadd.f32 %v6899_v29, %v1779_v17  ;;  %v1999_v53 = vpop.f32.mrb[97].mxu0  ;;  %v2575_v17 = vld [vmem:[#allocation7 + $0x118] sm:$0xff]  ;;  %v9020_v29 = vld [vmem:[#allocation7 + $0x10] sm:$0xff] }
 0x243   : > { %v2000_v20 = vadd.f32 %v1999_v53, %v1774_v14  ;;  %v8999_v56 = vpop.f32.mrb[112].mxu1 }
 0x244   : > { %v2159_v6 = vadd.f32 %v2005_v31, %v8901_v35  ;;  %v1816_v44 = vpop.f32.mrb[113].mxu1 }
 0x245   : > { %v2158_v45 = vadd.f32 %v2000_v20, %v8904_v50  ;;  %v6902_v13 = vpop.f32.mrb[98].mxu0 }
 0x246   : > { %v2191_v4 = vmul.f32 0.23570226, %v2159_v6  ;;  %v2015_v40 = vadd.f32 %v6902_v13, %v1789_v0  ;;  %v2009_v27 = vpop.f32.mrb[99].mxu0  ;;  %v9016_v0 = vpack.c.bf16 %v2575_v17, %v2574_v49  ;;  %v9032_v17 = vld [vmem:[#allocation7 + $0x20] sm:$0xff] }
 0x247   : > { %v2190_v48 = vmul.f32 0.23570226, %v2158_v45  ;;  %v2010_v14 = vadd.f32 %v2009_v27, %v1784_v54  ;;  %v9008_v52 = vpop.f32.mrb[114].mxu1  ;;  %v9022_v54 = vld [vmem:[#allocation7 + $0x18] sm:$0xff] }
 0x248   : > { %v2230_v35 = vadd.f32 %v9005_v58, %v2191_v4  ;;  %v2161_v1 = vadd.f32 %v2015_v40, %v8909_v42  ;;  %v1821_v8 = vpop.f32.mrb[115].mxu1 }
 0x249   : > { %v2229_v34 = vadd.f32 %v9005_v58, %v2190_v48  ;;  %v2160_v50 = vadd.f32 %v2010_v14, %v8912_v12  ;;  %v6905_v10 = vpop.f32.mrb[100].mxu0  ;;  %v9043_v8 = vld [vmem:[#allocation7 + $0x38] sm:$0xff] }
 0x24a   : > { %vm2262_vm1 = vcmp.gt.f32.partialorder %v2230_v35, 0.0  ;;  %v2294_v31 = vmul.f32 0.2, %v2230_v35  ;;  %v2193_v53 = vmul.f32 0.23570226, %v2161_v1  ;;  %v2025_v42 = vadd.f32 %v6905_v10, %v1799_v2  ;;  %v2019_v20 = vpop.f32.mrb[101].mxu0 }
 0x24b   : > { %vm2261_vm2 = vcmp.gt.f32.partialorder %v2229_v34, 0.0  ;;  %v2293_v6 = vmul.f32 0.2, %v2229_v34  ;;  %v2192_v44 = vmul.f32 0.23570226, %v2160_v50  ;;  %v2020_v45 = vadd.f32 %v2019_v20, %v1794_v3  ;;  %v9024_v13 = vpop.f32.mrb[116].mxu1 }
 0x24c   : > { %v9026_v12 = vsel %vm2262_vm1, %v2230_v35, %v2294_v31  ;;  %v2232_v4 = vadd.f32 %v9005_v58, %v2193_v53  ;;  %v2163_v40 = vadd.f32 %v2025_v42, %v8917_v46  ;;  %v1826_v27 = vpop.f32.mrb[117].mxu1  ;;  %v9039_v1 = vld [vmem:[#allocation7 + $0x28] sm:$0xff]  ;;  %v9041_v46 = vld [vmem:[#allocation7 + $0x30] sm:$0xff]  ;;  %v2576_v35 = vld [vmem:[#allocation7 + $0x120] sm:$0xff] }
 0x24d   : > { %2413 = vst [vmem:[#allocation3 + $0x21] sm:$0xff] %v9026_v12  ;;  %v2325_v2 = vsel %vm2261_vm2, %v2229_v34, %v2293_v6  ;;  %v2231_v48 = vadd.f32 %v9005_v58, %v2192_v44  ;;  %v2162_v3 = vadd.f32 %v2020_v45, %v8920_v51  ;;  %v6908_v14 = vpop.f32.mrb[102].mxu0 }
 0x24e   : > { %2412 = vst [vmem:[#allocation3 + $0x19] sm:$0xff] %v2325_v2  ;;  %vm2264_vm3 = vcmp.gt.f32.partialorder %v2232_v4, 0.0  ;;  %v2296_v50 = vmul.f32 0.2, %v2232_v4  ;;  %v2195_v10 = vmul.f32 0.23570226, %v2163_v40  ;;  %v2035_v31 = vadd.f32 %v6908_v14, %v1809_v16  ;;  %2797 = vmatprep.mubr.f32.mxu0 %v2325_v2 }
 0x24f   : > { %v2029_v34 = vpop.f32.mrb[103].mxu0  ;;  %vm2263_vm4 = vcmp.gt.f32.partialorder %v2231_v48, 0.0  ;;  %v2295_v53 = vmul.f32 0.2, %v2231_v48  ;;  %v2194_v51 = vmul.f32 0.23570226, %v2162_v3 }
 0x250   : > { %v2030_v42 = vadd.f32 %v2029_v34, %v8993_v5  ;;  %v1829_v20 = vpop.f32.mrb[118].mxu1  ;;  %v9046_v6 = vsel %vm2264_vm3, %v2232_v4, %v2296_v50  ;;  %v2234_v44 = vadd.f32 %v9005_v58, %v2195_v10  ;;  %v2165_v45 = vadd.f32 %v2035_v31, %v8925_v25  ;;  %v2577_v4 = vld [vmem:[#allocation7 + $0x128] sm:$0xff]  ;;  %v2578_v50 = vld [vmem:[#allocation7 + $0x130] sm:$0xff]  ;;  %v2579_v25 = vld [vmem:[#allocation7 + $0x138] sm:$0xff] }
 0x251   : > { %v1831_v27 = vpop.f32.mrb[119].mxu1  ;;  %2415 = vst [vmem:[#allocation3 + $0x39] sm:$0xff] %v9046_v6  ;;  %v9053_v16 = vsel %vm2263_vm4, %v2231_v48, %v2295_v53  ;;  %v2233_v2 = vadd.f32 %v9005_v58, %v2194_v51  ;;  %v6911_v3 = vpop.f32.mrb[104].mxu0  ;;  %v9066_v37 = vpack.c.bf16 %v2577_v4, %v2576_v35 }
 0x252   : > { %v2164_v5 = vadd.f32 %v2030_v42, %v8928_v24  ;;  %2414 = vst [vmem:[#allocation3 + $0x31] sm:$0xff] %v9053_v16  ;;  %vm2266_vm5 = vcmp.gt.f32.partialorder %v2234_v44, 0.0  ;;  %v2298_v10 = vmul.f32 0.2, %v2234_v44  ;;  %v2197_v31 = vmul.f32 0.23570226, %v2165_v45 }
 0x253   : > { %v2045_v34 = vadd.f32 %v6911_v3, %v9008_v52  ;;  %v2039_v48 = vpop.f32.mrb[105].mxu0  ;;  %vm2265_vm6 = vcmp.gt.f32.partialorder %v2233_v2, 0.0  ;;  %v2297_v53 = vmul.f32 0.2, %v2233_v2  ;;  %v1834_v42 = vpop.f32.mrb[120].mxu1 }
 0x254   : > { %v2196_v51 = vmul.f32 0.23570226, %v2164_v5  ;;  %v2040_v24 = vadd.f32 %v2039_v48, %v8999_v56  ;;  %v9062_v27 = vsel %vm2266_vm5, %v2234_v44, %v2298_v10  ;;  %v2236_v14 = vadd.f32 %v9005_v58, %v2197_v31  ;;  %v1836_v49 = vpop.f32.mrb[121].mxu1  ;;  %v2653_v44 = vld [vmem:[#allocation3 + $0x22] sm:$0xff] }
 0x255   : > { %v2167_v40 = vadd.f32 %v2045_v34, %v8931_v23  ;;  %2417 = vst [vmem:[#allocation3 + $0x51] sm:$0xff] %v9062_v27  ;;  %v9069_v45 = vsel %vm2265_vm6, %v2233_v2, %v2297_v53  ;;  %v6914_v3 = vpop.f32.mrb[106].mxu0  ;;  %v2652_v56 = vld [vmem:[#allocation3 + $0x1a] sm:$0xff]  ;;  %v9073_v10 = vpack.c.bf16 %v2579_v25, %v2578_v50 }
 0x256   : > { %v2235_v52 = vadd.f32 %v9005_v58, %v2196_v51  ;;  %v2166_v5 = vadd.f32 %v2040_v24, %v8934_v15  ;;  %v2588_v48 = vld [vmem:[#allocation3 + $0x18] sm:$0xff]  ;;  %2416 = vst [vmem:[#allocation3 + $0x49] sm:$0xff] %v9069_v45  ;;  %vm2268_vm7 = vcmp.gt.f32.partialorder %v2236_v14, 0.0  ;;  %v2300_v23 = vmul.f32 0.2, %v2236_v14  ;;  %v2049_v4 = vpop.f32.mrb[107].mxu0  ;;  %6977 = vmatprep.mubr.f32.mxu1 %v2652_v56 }
 0x257   : > { %v2199_v49 = vmul.f32 0.23570226, %v2167_v40  ;;  %v2055_v35 = vadd.f32 %v6914_v3, %v1829_v20  ;;  %2798 = vmatmul.mubr.f32.vlgmr.msra.gmra.mrb[128].mxu0 %v2588_v48  ;;  %v2050_v15 = vadd.f32 %v2049_v4, %v9024_v13  ;;  %6978 = vmatmul.mubr.f32.vlgmr.msra.gmra.mrb[160].mxu1 %v2653_v44  ;;  %v1839_v34 = vpop.f32.mrb[122].mxu1  ;;  %v10532_v40 = vpack.c.bf16 %v9018_v32, %v9012_v11  ;;  %v2581_v11 = vld [vmem:[#allocation7 + $0x148] sm:$0xff] }
 0x258   : > { %vm2267_vm8 = vcmp.gt.f32.partialorder %v2235_v52, 0.0  ;;  %v2299_v2 = vmul.f32 0.2, %v2235_v52  ;;  %v2198_v31 = vmul.f32 0.23570226, %v2166_v5  ;;  %2802 = vmatprep.mubr.f32.mxu0 %v9026_v12  ;;  %v9078_v50 = vsel %vm2268_vm7, %v2236_v14, %v2300_v23  ;;  %7556 = vmatpush3.bf16.msra.mxu0 %v8869_v59  ;;  %v1841_v20 = vpop.f32.mrb[123].mxu1 }
 0x259   : > { %v2238_v25 = vadd.f32 %v9005_v58, %v2199_v49  ;;  %v2169_v53 = vadd.f32 %v2055_v35, %v8937_v63  ;;  %7507 = vmatpush1.bf16.msra.mxu1 %v10532_v40  ;;  %2419 = vst [vmem:[#allocation3 + $0x69] sm:$0xff] %v9078_v50  ;;  %v2168_v14 = vadd.f32 %v2050_v15, %v8940_v60  ;;  %v6917_v51 = vpop.f32.mrb[108].mxu0  ;;  %v2654_v24 = vld [vmem:[#allocation3 + $0x32] sm:$0xff]  ;;  %v9091_v5 = vld [vmem:[#allocation3 + $0x20] sm:$0xff] }
 0x25a   : > { %v9087_v13 = vsel %vm2267_vm8, %v2235_v52, %v2299_v2  ;;  %v2237_v12 = vadd.f32 %v9005_v58, %v2198_v31  ;;  %v2655_v63 = vld [vmem:[#allocation3 + $0x3a] sm:$0xff]  ;;  %7558 = vmatprep.subr.bf16.mxu0 %v9016_v0  ;;  %7508 = vmatprep.subr.bf16.mxu1 %v10507_v39  ;;  %v2580_v59 = vld [vmem:[#allocation7 + $0x140] sm:$0xff]  ;;  %v2065_v3 = vadd.f32 %v6917_v51, %v1839_v34  ;;  %v2059_v56 = vpop.f32.mrb[109].mxu0 }
 0x25b   : > { %2418 = vst [vmem:[#allocation3 + $0x61] sm:$0xff] %v9087_v13  ;;  %vm2270_vm9 = vcmp.gt.f32.partialorder %v2238_v25, 0.0  ;;  %v2302_v32 = vmul.f32 0.2, %v2238_v25  ;;  %v2201_v52 = vmul.f32 0.23570226, %v2169_v53  ;;  %6980 = vmatprep.mubr.f32.mxu1 %v2654_v24  ;;  %2803 = vmatmul.mubr.f32.gmra.mrb[130].mxu0 %v9091_v5  ;;  %v2060_v44 = vadd.f32 %v2059_v56, %v1834_v42 }
 0x25c   : > { %vm2269_vm10 = vcmp.gt.f32.partialorder %v2237_v12, 0.0  ;;  %v2301_v60 = vmul.f32 0.2, %v2237_v12  ;;  %v2200_v48 = vmul.f32 0.23570226, %v2168_v14  ;;  %6981 = vmatmul.mubr.f32.gmra.mrb[162].mxu1 %v2655_v63  ;;  %v1844_v23 = vpop.f32.mrb[124].mxu1  ;;  %2807 = vmatprep.mubr.f32.mxu0 %v9053_v16  ;;  %v2171_v4 = vadd.f32 %v2065_v3, %v8943_v41 }
 0x25d   : > { %v9098_v49 = vsel %vm2270_vm9, %v2238_v25, %v2302_v32  ;;  %v2240_v35 = vadd.f32 %v9005_v58, %v2201_v52  ;;  %v1846_v2 = vpop.f32.mrb[125].mxu1  ;;  %7560 = vmatpush3.bf16.msra.mxu0 %v9016_v0  ;;  %v10533_v31 = vpack.c.bf16 %v9022_v54, %v9020_v29  ;;  %v2170_v16 = vadd.f32 %v2060_v44, %v8946_v18  ;;  %v6920_v34 = vpop.f32.mrb[110].mxu0  ;;  %v2656_v25 = vld [vmem:[#allocation3 + $0x4a] sm:$0xff]  ;;  %v2657_v41 = vld [vmem:[#allocation3 + $0x52] sm:$0xff] }
 0x25e   : > { %2421 = vst [vmem:[#allocation3 + $0x81] sm:$0xff] %v9098_v49  ;;  %v9107_v42 = vsel %vm2269_vm10, %v2237_v12, %v2301_v60  ;;  %v2239_v15 = vadd.f32 %v9005_v58, %v2200_v48  ;;  %v9111_v53 = vld [vmem:[#allocation3 + $0x30] sm:$0xff]  ;;  %7562 = vmatprep.subr.bf16.mxu0 %v9066_v37  ;;  %v2203_v29 = vmul.f32 0.23570226, %v2171_v4  ;;  %v2069_v54 = vpop.f32.mrb[111].mxu0  ;;  %6983 = vmatprep.mubr.f32.mxu1 %v2656_v25  ;;  %v9129_v52 = vld [vmem:[#allocation7 + $0x48] sm:$0xff] }
 0x25f   : > { %7510 = vmatpush1.bf16.msra.mxu1 %v10533_v31  ;;  %2420 = vst [vmem:[#allocation3 + $0x79] sm:$0xff] %v9107_v42  ;;  %vm2272_vm11 = vcmp.gt.f32.partialorder %v2240_v35, 0.0  ;;  %v2304_v0 = vmul.f32 0.2, %v2240_v35  ;;  %2808 = vmatmul.mubr.f32.gmra.mrb[132].mxu0 %v9111_v53  ;;  %v9117_v20 = vpack.c.bf16 %v2581_v11, %v2580_v59  ;;  %v2202_v40 = vmul.f32 0.23570226, %v2170_v16 }
 0x260   : > { %7511 = vmatprep.subr.bf16.mxu1 %v10507_v39  ;;  %vm2271_vm12 = vcmp.gt.f32.partialorder %v2239_v15, 0.0  ;;  %v2303_v18 = vmul.f32 0.2, %v2239_v15  ;;  %v1849_v12 = vpop.f32.mrb[126].mxu1  ;;  %v2070_v14 = vadd.f32 %v2069_v54, %v1844_v23  ;;  %6984 = vmatmul.mubr.f32.gmra.mrb[164].mxu1 %v2657_v41  ;;  %v2242_v24 = vadd.f32 %v9005_v58, %v2203_v29  ;;  %v9127_v11 = vld [vmem:[#allocation7 + $0x40] sm:$0xff]  ;;  %v2551_v29 = vld [vmem:[#allocation7 + $0x58] sm:$0xff] }
 0x261   : > { %2812 = vmatprep.mubr.f32.mxu0 %v9046_v6  ;;  %v9120_v51 = vsel %vm2272_vm11, %v2240_v35, %v2304_v0  ;;  %v2075_v63 = vadd.f32 %v6920_v34, %v1849_v12  ;;  %v1851_v32 = vpop.f32.mrb[127].mxu1  ;;  %7564 = vmatpush3.bf16.msra.mxu0 %v9066_v37  ;;  %v10534_v59 = vpack.c.bf16 %v9039_v1, %v9032_v17  ;;  %v6923_v60 = vpop.f32.mrb[112].mxu0  ;;  %v9137_v37 = vld [vmem:[#allocation3 + $0x38] sm:$0xff]  ;;  %v2582_v17 = vld [vmem:[#allocation7 + $0x150] sm:$0xff]  ;;  %v2583_v35 = vld [vmem:[#allocation7 + $0x158] sm:$0xff] }
 0x262   : > { %2423 = vst [vmem:[#allocation3 + $0x99] sm:$0xff] %v9120_v51  ;;  %v9133_v6 = vsel %vm2271_vm12, %v2239_v15, %v2303_v18  ;;  %v2241_v3 = vadd.f32 %v9005_v58, %v2202_v40  ;;  %v2172_v56 = vadd.f32 %v2070_v14, %v8952_v61  ;;  %v2658_v48 = vld [vmem:[#allocation3 + $0x62] sm:$0xff]  ;;  %7566 = vmatprep.subr.bf16.mxu0 %v9073_v10  ;;  %vm2274_vm13 = vcmp.gt.f32.partialorder %v2242_v24, 0.0  ;;  %v2079_v23 = vpop.f32.mrb[113].mxu0  ;;  %v2659_v61 = vld [vmem:[#allocation3 + $0x6a] sm:$0xff]  ;;  %v2585_v32 = vld [vmem:[#allocation7 + $0x168] sm:$0xff] }
 0x263   : > { %7513 = vmatpush1.bf16.msra.mxu1 %v10534_v59  ;;  %2422 = vst [vmem:[#allocation3 + $0x91] sm:$0xff] %v9133_v6  ;;  %v2306_v1 = vmul.f32 0.2, %v2242_v24  ;;  %v2173_v44 = vadd.f32 %v2075_v63, %v8949_v9  ;;  %6986 = vmatprep.mubr.f32.mxu1 %v2658_v48  ;;  %v1854_v31 = vpop.f32.mrb[128].mxu1  ;;  %v10535_v9 = vpack.c.bf16 %v9043_v8, %v9041_v46  ;;  %v2550_v0 = vld [vmem:[#allocation7 + $0x50] sm:$0xff]  ;;  %v9158_v40 = vld [vmem:[#allocation3 + $0x48] sm:$0xff] }
 0x264   : > { %7514 = vmatprep.subr.bf16.mxu1 %v10507_v39  ;;  %2813 = vmatmul.mubr.f32.gmra.mrb[134].mxu0 %v9137_v37  ;;  %vm2273_vm14 = vcmp.gt.f32.partialorder %v2241_v3, 0.0  ;;  %v2305_v4 = vmul.f32 0.2, %v2241_v3  ;;  %v2204_v2 = vmul.f32 0.23570226, %v2172_v56  ;;  %v2080_v34 = vadd.f32 %v2079_v23, %v1854_v31  ;;  %v1856_v25 = vpop.f32.mrb[129].mxu1 }
 0x265   : > { %6987 = vmatmul.mubr.f32.gmra.mrb[166].mxu1 %v2659_v61  ;;  %2817 = vmatprep.mubr.f32.mxu0 %v9069_v45  ;;  %v9145_v15 = vsel %vm2274_vm13, %v2242_v24, %v2306_v1  ;;  %v2205_v16 = vmul.f32 0.23570226, %v2173_v44  ;;  %v7518_v41 = vpack.c.bf16 %v9129_v52, %v9127_v11  ;;  %v9160_v12 = vpop.f32.mrb[114].mxu0  ;;  %v7573_v46 = vpack.c.bf16 %v2583_v35, %v2582_v17  ;;  %v2661_v14 = vld [vmem:[#allocation3 + $0x82] sm:$0xff]  ;;  %v2584_v63 = vld [vmem:[#allocation7 + $0x160] sm:$0xff]  ;;  %v2553_v56 = vld [vmem:[#allocation7 + $0x68] sm:$0xff] }
 0x266   : > { %7568 = vmatpush3.bf16.msra.mxu0 %v9073_v10  ;;  %2425 = vst [vmem:[#allocation3 + $0xb1] sm:$0xff] %v9145_v15  ;;  %v9155_v45 = vsel %vm2273_vm14, %v2241_v3, %v2305_v4  ;;  %v2243_v54 = vadd.f32 %v9005_v58, %v2204_v2  ;;  %v2660_v18 = vld [vmem:[#allocation3 + $0x7a] sm:$0xff]  ;;  %v2174_v10 = vadd.f32 %v2080_v34, %v8958_v19  ;;  %v2089_v24 = vpop.f32.mrb[115].mxu0  ;;  %v2552_v3 = vld [vmem:[#allocation7 + $0x60] sm:$0xff]  ;;  %v2587_v34 = vld [vmem:[#allocation7 + $0x178] sm:$0xff] }
 0x267   : > { %7516 = vmatpush1.bf16.msra.mxu1 %v10535_v9  ;;  %7570 = vmatprep.subr.bf16.mxu0 %v9117_v20  ;;  %2424 = vst [vmem:[#allocation3 + $0xa9] sm:$0xff] %v9155_v45  ;;  %v2244_v8 = vadd.f32 %v9005_v58, %v2205_v16  ;;  %v1859_v11 = vpop.f32.mrb[130].mxu1  ;;  %v7521_v52 = vpack.c.bf16 %v2551_v29, %v2550_v0  ;;  %v9172_v61 = vld [vmem:[#allocation3 + $0x50] sm:$0xff]  ;;  %v2586_v16 = vld [vmem:[#allocation7 + $0x170] sm:$0xff] }
 0x268   : > { %7517 = vmatprep.subr.bf16.mxu1 %v10507_v39  ;;  %6989 = vmatprep.mubr.f32.mxu1 %v2660_v18  ;;  %vm2275_vm15 = vcmp.gt.f32.partialorder %v2243_v54, 0.0  ;;  %v2307_v59 = vmul.f32 0.2, %v2243_v54  ;;  %v2206_v17 = vmul.f32 0.23570226, %v2174_v10  ;;  %v2085_v19 = vadd.f32 %v6923_v60, %v1859_v11  ;;  %v1861_v1 = vpop.f32.mrb[131].mxu1 }
 0x269   : > { %2818 = vmatmul.mubr.f32.gmra.mrb[136].mxu0 %v9158_v40  ;;  %6990 = vmatmul.mubr.f32.gmra.mrb[168].mxu1 %v2661_v14  ;;  %vm2276_vm0 = vcmp.gt.f32.partialorder %v2244_v8, 0.0  ;;  %v2308_v48 = vmul.f32 0.2, %v2244_v8  ;;  %v9174_v35 = vpop.f32.mrb[116].mxu0  ;;  %v7524_v9 = vpack.c.bf16 %v2553_v56, %v2552_v3  ;;  %v9185_v18 = vld [vmem:[#allocation3 + $0x60] sm:$0xff]  ;;  %v7581_v10 = vpack.c.bf16 %v2587_v34, %v2586_v16  ;;  %v2556_v1 = vld [vmem:[#allocation7 + $0x80] sm:$0xff] }
 0x26a   : > { %2822 = vmatprep.mubr.f32.mxu0 %v9062_v27  ;;  %7572 = vmatpush3.bf16.msra.mxu0 %v9117_v20  ;;  %v9170_v44 = vsel %vm2275_vm15, %v2243_v54, %v2307_v59  ;;  %v2662_v23 = vld [vmem:[#allocation3 + $0x92] sm:$0xff]  ;;  %v7577_v27 = vpack.c.bf16 %v2585_v32, %v2584_v63  ;;  %v2245_v60 = vadd.f32 %v9005_v58, %v2206_v17  ;;  %v2663_v20 = vld [vmem:[#allocation3 + $0x9a] sm:$0xff]  ;;  %v2099_v31 = vpop.f32.mrb[117].mxu0  ;;  %v2555_v59 = vld [vmem:[#allocation7 + $0x78] sm:$0xff] }
 0x26b   : > { %7519 = vmatpush1.bf16.msra.mxu1 %v7518_v41  ;;  %7574 = vmatprep.subr.bf16.mxu0 %v7573_v46  ;;  %v9177_v4 = vsel %vm2276_vm0, %v2244_v8, %v2308_v48  ;;  %2426 = vst [vmem:[#allocation3 + $0xc1] sm:$0xff] %v9170_v44  ;;  %v2175_v2 = vadd.f32 %v2085_v19, %v8955_v21  ;;  %v1864_v25 = vpop.f32.mrb[132].mxu1  ;;  %v2554_v32 = vld [vmem:[#allocation7 + $0x70] sm:$0xff]  ;;  %v9200_v48 = vld [vmem:[#allocation3 + $0x68] sm:$0xff] }
 0x26c   : > { %7520 = vmatprep.subr.bf16.mxu1 %v10507_v39  ;;  %6992 = vmatprep.mubr.f32.mxu1 %v2662_v23  ;;  %2427 = vst [vmem:[#allocation3 + $0xc9] sm:$0xff] %v9177_v4  ;;  %vm2277_vm1 = vcmp.gt.f32.partialorder %v2245_v60, 0.0  ;;  %v2309_v41 = vmul.f32 0.2, %v2245_v60  ;;  %v2090_v29 = vadd.f32 %v2089_v24, %v1864_v25  ;;  %v1866_v54 = vpop.f32.mrb[133].mxu1  ;;  %v7527_v19 = vpack.c.bf16 %v2555_v59, %v2554_v32 }
 0x26d   : > { %2823 = vmatmul.mubr.f32.gmra.mrb[138].mxu0 %v9172_v61  ;;  %6993 = vmatmul.mubr.f32.gmra.mrb[170].mxu1 %v2663_v20  ;;  %v2207_v0 = vmul.f32 0.23570226, %v2175_v2  ;;  %v9187_v8 = vpop.f32.mrb[118].mxu0  ;;  %v2665_v24 = vld [vmem:[#allocation3 + $0xb2] sm:$0xff] }
 0x26e   : > { %2827 = vmatprep.mubr.f32.mxu0 %v9087_v13  ;;  %7576 = vmatpush3.bf16.msra.mxu0 %v7573_v46  ;;  %v2664_v21 = vld [vmem:[#allocation3 + $0xaa] sm:$0xff]  ;;  %v9190_v14 = vsel %vm2277_vm1, %v2245_v60, %v2309_v41  ;;  %v2176_v63 = vadd.f32 %v2090_v29, %v8964_v30  ;;  %v9195_v46 = vpop.f32.mrb[119].mxu0  ;;  %v2557_v20 = vld [vmem:[#allocation7 + $0x88] sm:$0xff] }
 0x26f   : > { %7522 = vmatpush1.bf16.msra.mxu1 %v7521_v52  ;;  %7578 = vmatprep.subr.bf16.mxu0 %v7577_v27  ;;  %v2246_v13 = vadd.f32 %v9005_v58, %v2207_v0  ;;  %2428 = vst [vmem:[#allocation3 + $0xd9] sm:$0xff] %v9190_v14  ;;  %v1869_v11 = vpop.f32.mrb[134].mxu1  ;;  %v7530_v29 = vpack.c.bf16 %v2557_v20, %v2556_v1 }
 0x270   : > { %7523 = vmatprep.subr.bf16.mxu1 %v10507_v39  ;;  %6995 = vmatprep.mubr.f32.mxu1 %v2664_v21  ;;  %v2208_v3 = vmul.f32 0.23570226, %v2176_v63  ;;  %v2095_v56 = vadd.f32 %v9160_v12, %v1869_v11  ;;  %v1871_v30 = vpop.f32.mrb[135].mxu1 }
 0x271   : > { %2828 = vmatmul.mubr.f32.gmra.mrb[140].mxu0 %v9185_v18  ;;  %6996 = vmatmul.mubr.f32.gmra.mrb[172].mxu1 %v2665_v24  ;;  %vm2278_vm2 = vcmp.gt.f32.partialorder %v2246_v13, 0.0  ;;  %v2310_v52 = vmul.f32 0.2, %v2246_v13  ;;  %v9202_v17 = vpop.f32.mrb[120].mxu0 }
 0x272   : > { %2832 = vmatprep.mubr.f32.mxu0 %v9078_v50  ;;  %7580 = vmatpush3.bf16.msra.mxu0 %v7577_v27  ;;  %v2247_v50 = vadd.f32 %v9005_v58, %v2208_v3  ;;  %v2177_v60 = vadd.f32 %v2095_v56, %v8961_v36  ;;  %v9210_v27 = vpop.f32.mrb[121].mxu0  ;;  %v9214_v36 = vld [vmem:[#allocation3 + $0x78] sm:$0xff]  ;;  %v2560_v56 = vld [vmem:[#allocation7 + $0xa0] sm:$0xff] }
 0x273   : > { %7525 = vmatpush1.bf16.msra.mxu1 %v7524_v9  ;;  %7582 = vmatprep.subr.bf16.mxu0 %v7581_v10  ;;  %v9205_v23 = vsel %vm2278_vm2, %v2246_v13, %v2310_v52  ;;  %v2666_v2 = vld [vmem:[#allocation3 + $0xc2] sm:$0xff]  ;;  %v2667_v12 = vld [vmem:[#allocation3 + $0xca] sm:$0xff]  ;;  %v1874_v16 = vpop.f32.mrb[136].mxu1 }
 0x274   : > { %7526 = vmatprep.subr.bf16.mxu1 %v10507_v39  ;;  %2429 = vst [vmem:[#allocation3 + $0xe1] sm:$0xff] %v9205_v23  ;;  %6998 = vmatprep.mubr.f32.mxu1 %v2666_v2  ;;  %vm2279_vm3 = vcmp.gt.f32.partialorder %v2247_v50, 0.0  ;;  %v2311_v34 = vmul.f32 0.2, %v2247_v50  ;;  %v2209_v25 = vmul.f32 0.23570226, %v2177_v60  ;;  %v2100_v9 = vadd.f32 %v2099_v31, %v1874_v16 }
 0x275   : > { %2833 = vmatmul.mubr.f32.gmra.mrb[142].mxu0 %v9200_v48  ;;  %6999 = vmatmul.mubr.f32.gmra.mrb[174].mxu1 %v2667_v12  ;;  %v1876_v41 = vpop.f32.mrb[137].mxu1  ;;  %v9216_v0 = vpop.f32.mrb[122].mxu0  ;;  %v2559_v13 = vld [vmem:[#allocation7 + $0x98] sm:$0xff]  ;;  %v2561_v60 = vld [vmem:[#allocation7 + $0xa8] sm:$0xff] }
 0x276   : > { %2837 = vmatprep.mubr.f32.mxu0 %v9107_v42  ;;  %7584 = vmatpush3.bf16.msra.mxu0 %v7581_v10  ;;  %v9219_v54 = vsel %vm2279_vm3, %v2247_v50, %v2311_v34  ;;  %v2248_v21 = vadd.f32 %v9005_v58, %v2209_v25  ;;  %v2178_v42 = vadd.f32 %v2100_v9, %v8970_v22  ;;  %v9224_v31 = vpop.f32.mrb[123].mxu0  ;;  %v2558_v10 = vld [vmem:[#allocation7 + $0x90] sm:$0xff]  ;;  %v9251_v34 = vld [vmem:[#allocation3 + $0x90] sm:$0xff] }
 0x277   : > { %7528 = vmatpush1.bf16.msra.mxu1 %v7527_v19  ;;  %7585 = vmatprep.subr.bf16.mxu0 %v10507_v39  ;;  %2430 = vst [vmem:[#allocation3 + $0xf1] sm:$0xff] %v9219_v54  ;;  %v1879_v63 = vpop.f32.mrb[138].mxu1  ;;  %v9230_v22 = vld [vmem:[#allocation3 + $0x80] sm:$0xff]  ;;  %v7533_v3 = vpack.c.bf16 %v2559_v13, %v2558_v10  ;;  %v7536_v9 = vpack.c.bf16 %v2561_v60, %v2560_v56 }
 0x278   : > { %7529 = vmatprep.subr.bf16.mxu1 %v10507_v39  ;;  %vm2280_vm4 = vcmp.gt.f32.partialorder %v2248_v21, 0.0  ;;  %v2312_v24 = vmul.f32 0.2, %v2248_v21  ;;  %v2210_v32 = vmul.f32 0.23570226, %v2178_v42  ;;  %v2105_v59 = vadd.f32 %v9174_v35, %v1879_v63  ;;  %v1881_v11 = vpop.f32.mrb[139].mxu1 }
 0x279   : > { %2838 = vmatmul.mubr.f32.gmra.mrb[144].mxu0 %v9214_v36  ;;  %v9232_v52 = vpop.f32.mrb[124].mxu0  ;;  %v2563_v42 = vld [vmem:[#allocation7 + $0xb8] sm:$0xff]  ;;  %v2564_v11 = vld [vmem:[#allocation7 + $0xc0] sm:$0xff] }
 0x27a   : > { %2842 = vmatprep.mubr.f32.mxu0 %v9098_v49  ;;  %v9234_v30 = vsel %vm2280_vm4, %v2248_v21, %v2312_v24  ;;  %v2249_v19 = vadd.f32 %v9005_v58, %v2210_v32  ;;  %v2179_v1 = vadd.f32 %v2105_v59, %v8967_v26  ;;  %v9243_v35 = vpop.f32.mrb[125].mxu0 }
 0x27b   : > { %7531 = vmatpush1.bf16.msra.mxu1 %v7530_v29  ;;  %v9238_v49 = vld [vmem:[#allocation3 + $0xda] sm:$0xff]  ;;  %v9241_v50 = vld [vmem:[#allocation3 + $0xe2] sm:$0xff]  ;;  %2431 = vst [vmem:[#allocation3 + $0xf9] sm:$0xff] %v9234_v30  ;;  %v1884_v2 = vpop.f32.mrb[140].mxu1 }
 0x27c   : > { %7532 = vmatprep.subr.bf16.mxu1 %v10507_v39  ;;  %7001 = vmatprep.mubr.f32.mxu1 %v9238_v49  ;;  %vm2281_vm5 = vcmp.gt.f32.partialorder %v2249_v19, 0.0  ;;  %v2313_v26 = vmul.f32 0.2, %v2249_v19  ;;  %v2211_v12 = vmul.f32 0.23570226, %v2179_v1  ;;  %v2110_v20 = vadd.f32 %v9195_v46, %v1884_v2  ;;  %v1886_v16 = vpop.f32.mrb[141].mxu1 }
 0x27d   : > { %2843 = vmatmul.mubr.f32.gmra.mrb[146].mxu0 %v9230_v22  ;;  %7002 = vmatmul.mubr.f32.gmra.mrb[176].mxu1 %v9241_v50  ;;  %v9253_v25 = vpop.f32.mrb[126].mxu0  ;;  %v2562_v46 = vld [vmem:[#allocation7 + $0xb0] sm:$0xff] }
 0x27e   : > { %2847 = vmatprep.mubr.f32.mxu0 %v9133_v6  ;;  %v9255_v41 = vsel %vm2281_vm5, %v2249_v19, %v2313_v26  ;;  %v2250_v29 = vadd.f32 %v9005_v58, %v2211_v12  ;;  %v2180_v6 = vadd.f32 %v2110_v20, %v8976_v28  ;;  %v9260_v21 = vpop.f32.mrb[127].mxu0  ;;  %v9266_v28 = vld [vmem:[#allocation3 + $0x98] sm:$0xff]  ;;  %v7539_v59 = vpack.c.bf16 %v2563_v42, %v2562_v46  ;;  %v9283_v20 = vld [vmem:[#allocation3 + $0xa8] sm:$0xff] }
 0x27f   : > { %7534 = vmatpush1.bf16.msra.mxu1 %v7533_v3  ;;  %2432 = vst [vmem:[#allocation3 + $0x109] sm:$0xff] %v9255_v41  ;;  %v1889_v10 = vpop.f32.mrb[142].mxu1  ;;  %v2567_v46 = vld [vmem:[#allocation7 + $0xd8] sm:$0xff]  ;;  %vm6092_vm5 = vcmask 1041409  }
 0x280   : > { %7535 = vmatprep.subr.bf16.mxu1 %v10507_v39  ;;  %vm2282_vm6 = vcmp.gt.f32.partialorder %v2250_v29, 0.0  ;;  %v2314_v13 = vmul.f32 0.2, %v2250_v29  ;;  %v2212_v63 = vmul.f32 0.23570226, %v2180_v6  ;;  %v2115_v24 = vadd.f32 %v9187_v8, %v1889_v10  ;;  %v1891_v32 = vpop.f32.mrb[143].mxu1 }
 0x281   : > { %2848 = vmatmul.mubr.f32.gmra.mrb[148].mxu0 %v9251_v34  ;;  %v2565_v8 = vld [vmem:[#allocation7 + $0xc8] sm:$0xff]  ;;  %v2568_v32 = vld [vmem:[#allocation7 + $0xe0] sm:$0xff] }
 0x282   : > { %2852 = vmatprep.mubr.f32.mxu0 %v9120_v51  ;;  %v9268_v3 = vsel %vm2282_vm6, %v2250_v29, %v2314_v13  ;;  %v2251_v56 = vadd.f32 %v9005_v58, %v2212_v63  ;;  %v2181_v19 = vadd.f32 %v2115_v24, %v8973_v33  ;;  %v9272_v1 = vld [vmem:[#allocation3 + $0xf2] sm:$0xff]  ;;  %v9275_v51 = vld [vmem:[#allocation3 + $0xfa] sm:$0xff]  ;;  %v7542_v16 = vpack.c.bf16 %v2565_v8, %v2564_v11 }
 0x283   : > { %7537 = vmatpush1.bf16.msra.mxu1 %v7536_v9  ;;  %2433 = vst [vmem:[#allocation3 + $0x111] sm:$0xff] %v9268_v3  ;;  %v1894_v60 = vpop.f32.mrb[144].mxu1  ;;  %7004 = vmatprep.mubr.f32.mxu1 %v9272_v1  ;;  %v9294_v24 = vld [vmem:[#allocation3 + $0xb0] sm:$0xff]  ;;  %vm6094_vm6 = vcmask 1042434  }
 0x284   : > { %7538 = vmatprep.subr.bf16.mxu1 %v10507_v39  ;;  %vm2283_vm7 = vcmp.gt.f32.partialorder %v2251_v56, 0.0  ;;  %v2315_v2 = vmul.f32 0.2, %v2251_v56  ;;  %v2213_v26 = vmul.f32 0.23570226, %v2181_v19  ;;  %v2120_v33 = vadd.f32 %v9210_v27, %v1894_v60  ;;  %7005 = vmatmul.mubr.f32.gmra.mrb[178].mxu1 %v9275_v51  ;;  %v1896_v12 = vpop.f32.mrb[145].mxu1 }
 0x285   : > { %2853 = vmatmul.mubr.f32.gmra.mrb[150].mxu0 %v9266_v28 }
 0x286   : > { %2857 = vmatprep.mubr.f32.mxu0 %v9155_v45  ;;  %v9285_v9 = vsel %vm2283_vm7, %v2251_v56, %v2315_v2  ;;  %v2252_v29 = vadd.f32 %v9005_v58, %v2213_v26  ;;  %v2182_v6 = vadd.f32 %v2120_v33, %v8982_v62  ;;  %v2566_v45 = vld [vmem:[#allocation7 + $0xd0] sm:$0xff]  ;;  %vm6096_vm7 = vcmask 1043459  }
 0x287   : > { %7540 = vmatpush1.bf16.msra.mxu1 %v7539_v59  ;;  %2434 = vst [vmem:[#allocation3 + $0x121] sm:$0xff] %v9285_v9  ;;  %v1899_v27 = vpop.f32.mrb[146].mxu1  ;;  %v7545_v62 = vpack.c.bf16 %v2567_v46, %v2566_v45  ;;  %v9311_v33 = vld [vmem:[#allocation3 + $0xc0] sm:$0xff]  ;;  %v3764_v46 = vld [vmem:[#allocation7 + $0x408] sm:$0xff] }
 0x288   : > { %7541 = vmatprep.subr.bf16.mxu1 %v10507_v39  ;;  %vm2284_vm8 = vcmp.gt.f32.partialorder %v2252_v29, 0.0  ;;  %v2316_v42 = vmul.f32 0.2, %v2252_v29  ;;  %v2214_v10 = vmul.f32 0.23570226, %v2182_v6  ;;  %v2125_v13 = vadd.f32 %v9202_v17, %v1899_v27  ;;  %v1901_v63 = vpop.f32.mrb[147].mxu1 }
 0x289   : > { %2858 = vmatmul.mubr.f32.gmra.mrb[152].mxu0 %v9283_v20  ;;  %v2569_v17 = vld [vmem:[#allocation7 + $0xe8] sm:$0xff] }
 0x28a   : > { %2862 = vmatprep.mubr.f32.mxu0 %v9145_v15  ;;  %v9296_v59 = vsel %vm2284_vm8, %v2252_v29, %v2316_v42  ;;  %v2253_v11 = vadd.f32 %v9005_v58, %v2214_v10  ;;  %v2183_v56 = vadd.f32 %v2125_v13, %v8979_v7  ;;  %v9300_v19 = vld [vmem:[#allocation3 + $0x10a] sm:$0xff]  ;;  %v9303_v15 = vld [vmem:[#allocation3 + $0x112] sm:$0xff]  ;;  %v7548_v12 = vpack.c.bf16 %v2569_v17, %v2568_v32 }
 0x28b   : > { %7543 = vmatpush1.bf16.msra.mxu1 %v7542_v16  ;;  %2435 = vst [vmem:[#allocation3 + $0x129] sm:$0xff] %v9296_v59  ;;  %v1904_v8 = vpop.f32.mrb[148].mxu1  ;;  %7007 = vmatprep.mubr.f32.mxu1 %v9300_v19  ;;  %v2570_v16 = vld [vmem:[#allocation7 + $0xf0] sm:$0xff]  ;;  %vm6098_vm8 = vcmask 1044484  }
 0x28c   : > { %7544 = vmatprep.subr.bf16.mxu1 %v10507_v39  ;;  %vm2285_vm9 = vcmp.gt.f32.partialorder %v2253_v11, 0.0  ;;  %v2317_v60 = vmul.f32 0.2, %v2253_v11  ;;  %v2215_v2 = vmul.f32 0.23570226, %v2183_v56  ;;  %v2130_v7 = vadd.f32 %v9224_v31, %v1904_v8  ;;  %7008 = vmatmul.mubr.f32.gmra.mrb[180].mxu1 %v9303_v15  ;;  %v1906_v26 = vpop.f32.mrb[149].mxu1 }
 0x28d   : > { %2863 = vmatmul.mubr.f32.gmra.mrb[154].mxu0 %v9294_v24  ;;  %v3763_v31 = vld [vmem:[#allocation7 + $0x400] sm:$0xff]  ;;  %v9341_v26 = vld [vmem:[#allocation3 + $0xd8] sm:$0xff] }
 0x28e   : > { %2867 = vmatprep.mubr.f32.mxu0 %v9170_v44  ;;  %v9313_v29 = vsel %vm2285_vm9, %v2253_v11, %v2317_v60  ;;  %v2254_v6 = vadd.f32 %v9005_v58, %v2215_v2  ;;  %v2184_v45 = vadd.f32 %v2130_v7, %v8987_v47  ;;  %v2571_v44 = vld [vmem:[#allocation7 + $0xf8] sm:$0xff]  ;;  %v9324_v32 = vpack.c.bf16 %v3764_v46, %v3763_v31  ;;  %v9352_v46 = vld [vmem:[#allocation3 + $0xe0] sm:$0xff] }
 0x28f   : > { %7546 = vmatpush1.bf16.msra.mxu1 %v7545_v62  ;;  %2436 = vst [vmem:[#allocation3 + $0x139] sm:$0xff] %v9313_v29  ;;  %v1909_v27 = vpop.f32.mrb[150].mxu1  ;;  %v9322_v62 = vld [vmem:[#allocation3 + $0xc8] sm:$0xff]  ;;  %v7551_v47 = vpack.c.bf16 %v2571_v44, %v2570_v16  ;;  %vm6100_vm9 = vcmask 1045509  }
 0x290   : > { %7547 = vmatprep.subr.bf16.mxu1 %v10507_v39  ;;  %vm2286_vm10 = vcmp.gt.f32.partialorder %v2254_v6, 0.0  ;;  %v2318_v42 = vmul.f32 0.2, %v2254_v6  ;;  %v2216_v10 = vmul.f32 0.23570226, %v2184_v45  ;;  %v2135_v13 = vadd.f32 %v9216_v0, %v1909_v27  ;;  %v1911_v63 = vpop.f32.mrb[151].mxu1 }
 0x291   : > { %2868 = vmatmul.mubr.f32.gmra.mrb[156].mxu0 %v9311_v33 }
 0x292   : > { %2872 = vmatprep.mubr.f32.mxu0 %v9177_v4  ;;  %v9326_v11 = vsel %vm2286_vm10, %v2254_v6, %v2318_v42  ;;  %v2255_v56 = vadd.f32 %v9005_v58, %v2216_v10  ;;  %v2185_v17 = vadd.f32 %v2135_v13, %v8984_v43  ;;  %v9330_v8 = vld [vmem:[#allocation3 + $0x122] sm:$0xff]  ;;  %v9333_v4 = vld [vmem:[#allocation3 + $0x12a] sm:$0xff] }
 0x293   : > { %7549 = vmatpush1.bf16.msra.mxu1 %v7548_v12  ;;  %2437 = vst [vmem:[#allocation3 + $0x141] sm:$0xff] %v9326_v11  ;;  %v1914_v0 = vpop.f32.mrb[152].mxu1  ;;  %7010 = vmatprep.mubr.f32.mxu1 %v9330_v8 }
 0x294   : > { %7550 = vmatprep.subr.bf16.mxu1 %v10507_v39  ;;  %vm2287_vm11 = vcmp.gt.f32.partialorder %v2255_v56, 0.0  ;;  %v2319_v60 = vmul.f32 0.2, %v2255_v56  ;;  %v2217_v2 = vmul.f32 0.23570226, %v2185_v17  ;;  %v2140_v43 = vadd.f32 %v9243_v35, %v1914_v0  ;;  %7011 = vmatmul.mubr.f32.gmra.mrb[182].mxu1 %v9333_v4  ;;  %v1916_v7 = vpop.f32.mrb[153].mxu1 }
 0x295   : > { %2873 = vmatmul.mubr.f32.gmra.mrb[158].mxu0 %v9322_v62 }
 0x296   : > { %2877 = vmatprep.mubr.f32.mxu0 %v9190_v14  ;;  %v9343_v12 = vsel %vm2287_vm11, %v2255_v56, %v2319_v60  ;;  %v2256_v16 = vadd.f32 %v9005_v58, %v2217_v2  ;;  %v2186_v6 = vadd.f32 %v2140_v43, %v8991_v38  ;;  %v7734_v38 = vld [vmem:[%s10439_s2] ss:$0 sm:$0xff]  ;;  %vm6102_vm11 = vcmask 1046534  }
 0x297   : > { %7552 = vmatpush1.bf16.msra.mxu1 %v7551_v47  ;;  %2438 = vst [vmem:[#allocation3 + $0x151] sm:$0xff] %v9343_v12  ;;  %v1919_v14 = vpop.f32.mrb[154].mxu1  ;;  %v9370_v56 = vld [vmem:[#allocation3 + $0xf0] sm:$0xff] }
 0x298   : > { %7634 = vmatprep.subr.bf16.mxu1 %v9324_v32  ;;  %vm2288_vm12 = vcmp.gt.f32.partialorder %v2256_v16, 0.0  ;;  %v2320_v35 = vmul.f32 0.2, %v2256_v16  ;;  %v2218_v45 = vmul.f32 0.23570226, %v2186_v6  ;;  %v2145_v44 = vadd.f32 %v9232_v52, %v1919_v14  ;;  %v1921_v31 = vpop.f32.mrb[155].mxu1 }
 0x299   : > { %2878 = vmatmul.mubr.f32.gmra.mrb[160].mxu0 %v9341_v26  ;;  %v9393_v31 = vld [vmem:[#allocation3 + $0x108] sm:$0xff] }
 0x29a   : > { %2882 = vmatprep.mubr.f32.mxu0 %v9205_v23  ;;  %v9354_v58 = vsel %vm2288_vm12, %v2256_v16, %v2320_v35  ;;  %v2257_v27 = vadd.f32 %v7734_v38, %v2218_v45  ;;  %v2187_v42 = vadd.f32 %v2145_v44, %v8989_v57  ;;  %v9360_v10 = vld [vmem:[#allocation3 + $0x13a] sm:$0xff]  ;;  %v9363_v23 = vld [vmem:[#allocation3 + $0x142] sm:$0xff]  ;;  %v10536_v35 = vld [vmem:[#allocation13_spill] sm:$0xff]  ;;  %vm6104_vm12 = vcmask 1047559  }
 0x29b   : > { %2439 = vst [vmem:[#allocation3 + $0x159] sm:$0xff] %v9354_v58  ;;  %v1924_v52 = vpop.f32.mrb[156].mxu1  ;;  %7013 = vmatprep.mubr.f32.mxu1 %v9360_v10  ;;  %v9379_v16 = vld [vmem:[#allocation3 + $0xf8] sm:$0xff] }
 0x29c   : > { %vm2289_vm13 = vcmp.gt.f32.partialorder %v2257_v27, 0.0  ;;  %v2321_v13 = vmul.f32 0.2, %v2257_v27  ;;  %v2219_v63 = vmul.f32 0.23570226, %v2187_v42  ;;  %v2150_v47 = vadd.f32 %v9260_v21, %v1924_v52  ;;  %7014 = vmatmul.mubr.f32.gmra.mrb[184].mxu1 %v9363_v23  ;;  %v1926_v57 = vpop.f32.mrb[157].mxu1 }
 0x29d   : > { %2883 = vmatmul.mubr.f32.gmra.mrb[162].mxu0 %v9352_v46 }
 0x29e   : > { %2887 = vmatprep.mubr.f32.mxu0 %v9219_v54  ;;  %v9372_v17 = vsel %vm2289_vm13, %v2257_v27, %v2321_v13  ;;  %v2258_v0 = vadd.f32 %v7734_v38, %v2219_v63  ;;  %v2188_v60 = vadd.f32 %v2150_v47, %v8997_v55  ;;  %v9400_v13 = vld [vmem:[#allocation3 + $0x110] sm:$0xff] }
 0x29f   : > { %2440 = vst [vmem:[#allocation3 + $0x169] sm:$0xff] %v9372_v17  ;;  %v1929_v54 = vpop.f32.mrb[158].mxu1 }
 0x2a0   : > { %vm2290_vm14 = vcmp.gt.f32.partialorder %v2258_v0, 0.0  ;;  %v2322_v2 = vmul.f32 0.2, %v2258_v0  ;;  %v2220_v21 = vmul.f32 0.23570226, %v2188_v60  ;;  %v2155_v43 = vadd.f32 %v9253_v25, %v1929_v54  ;;  %v1931_v7 = vpop.f32.mrb[159].mxu1 }
 0x2a1   : > { %2888 = vmatmul.mubr.f32.gmra.mrb[164].mxu0 %v9370_v56  ;;  %v2476_v60 = vld [vmem:[#allocation3 + $0x1] sm:$0xff]  ;;  %v3768_v7 = vld [vmem:[#allocation7 + $0x428] sm:$0xff] }
 0x2a2   : > { %2892 = vmatprep.mubr.f32.mxu0 %v9234_v30  ;;  %v9381_v6 = vsel %vm2290_vm14, %v2258_v0, %v2322_v2  ;;  %v2259_v14 = vadd.f32 %v7734_v38, %v2220_v21  ;;  %v2189_v55 = vadd.f32 %v2155_v43, %v10536_v35  ;;  %v9384_v45 = vld [vmem:[#allocation3 + $0x152] sm:$0xff]  ;;  %v9387_v44 = vld [vmem:[#allocation3 + $0x15a] sm:$0xff]  ;;  %v2477_v21 = vld [vmem:[#allocation3 + $0x9] sm:$0xff] }
 0x2a3   : > { %2441 = vst [vmem:[#allocation3 + $0x171] sm:$0xff] %v9381_v6  ;;  %7016 = vmatprep.mubr.f32.mxu1 %v9384_v45  ;;  %v3765_v54 = vld [vmem:[#allocation7 + $0x410] sm:$0xff]  ;;  %v9421_v2 = vld [vmem:[#allocation3 + $0x138] sm:$0xff]  ;;  %v3767_v43 = vld [vmem:[#allocation7 + $0x420] sm:$0xff] }
 0x2a4   : > { %vm2291_vm15 = vcmp.gt.f32.partialorder %v2259_v14, 0.0  ;;  %v2323_v30 = vmul.f32 0.2, %v2259_v14  ;;  %v2221_v25 = vmul.f32 0.23570226, %v2189_v55  ;;  %7017 = vmatmul.mubr.f32.gmra.mrb[186].mxu1 %v9387_v44  ;;  %v9425_v35 = vld [vmem:[#allocation3 + $0x140] sm:$0xff] }
 0x2a5   : > { %2893 = vmatmul.mubr.f32.gmra.mrb[166].mxu0 %v9379_v16  ;;  %v3769_v55 = vld [vmem:[#allocation7 + $0x430] sm:$0xff] }
 0x2a6   : > { %2897 = vmatprep.mubr.f32.mxu0 %v9255_v41  ;;  %v9395_v27 = vsel %vm2291_vm15, %v2259_v14, %v2323_v30  ;;  %v2260_v42 = vadd.f32 %v7734_v38, %v2221_v25  ;;  %v9417_v38 = vld [vmem:[#allocation3 + $0x128] sm:$0xff]  ;;  %v7735_v14 = vld [vmem:[#allocation2] sm:$0xff]  ;;  %v2478_v25 = vld [vmem:[#allocation3 + $0x19] sm:$0xff] }
 0x2a7   : > { %2442 = vst [vmem:[#allocation3 + $0x181] sm:$0xff] %v9395_v27  ;;  %v3770_v30 = vld [vmem:[#allocation7 + $0x438] sm:$0xff] }
 0x2a8   : > { %vm2292_vm0 = vcmp.gt.f32.partialorder %v2260_v42, 0.0  ;;  %v2324_v52 = vmul.f32 0.2, %v2260_v42 }
 0x2a9   : > { %2898 = vmatmul.mubr.f32.gmra.mrb[168].mxu0 %v9393_v31 }
 0x2aa   : > { %2902 = vmatprep.mubr.f32.mxu0 %v9268_v3  ;;  %v9402_v41 = vsel %vm2292_vm0, %v2260_v42, %v2324_v52  ;;  %v9404_v63 = vld [vmem:[#allocation3 + $0x16a] sm:$0xff]  ;;  %v9407_v47 = vld [vmem:[#allocation3 + $0x172] sm:$0xff]  ;;  %v9413_v3 = vld [vmem:[#allocation3 + $0x120] sm:$0xff]  ;;  %v7645_v42 = vpack.c.bf16 %v3770_v30, %v3769_v55 }
 0x2ab   : > { %2443 = vst [vmem:[#allocation3 + $0x189] sm:$0xff] %v9402_v41  ;;  %7019 = vmatprep.mubr.f32.mxu1 %v9404_v63  ;;  %v3772_v52 = vld [vmem:[#allocation7 + $0x448] sm:$0xff]  ;;  %v3777_v55 = vld [vmem:[#allocation7 + $0x470] sm:$0xff]  ;;  %v3778_v30 = vld [vmem:[#allocation7 + $0x478] sm:$0xff] }
 0x2ac   : > { %7020 = vmatmul.mubr.f32.gmra.mrb[188].mxu1 %v9407_v47 }
 0x2ad   : > { %2903 = vmatmul.mubr.f32.gmra.mrb[170].mxu0 %v9400_v13 }
 0x2ae   : > { %2907 = vmatprep.mubr.f32.mxu0 %v9285_v9  ;;  %v3766_v9 = vld [vmem:[#allocation7 + $0x418] sm:$0xff] }
 0x2b1   : > { %2908 = vmatmul.mubr.f32.gmra.mrb[172].mxu0 %v9413_v3 }
 0x2b2   : > { %2912 = vmatprep.mubr.f32.mxu0 %v9296_v59  ;;  %v2682_v57 = vld [vmem:[#allocation3 + $0x182] sm:$0xff]  ;;  %v2683_v0 = vld [vmem:[#allocation3 + $0x18a] sm:$0xff]  ;;  %v7637_v59 = vpack.c.bf16 %v3766_v9, %v3765_v54 }
 0x2b3   : > { %7022 = vmatprep.mubr.f32.mxu1 %v2682_v57  ;;  %v7736_v57 = vld [vmem:[#allocation3 + $0x18] sm:$0xff]  ;;  %v3773_v54 = vld [vmem:[#allocation7 + $0x450] sm:$0xff]  ;;  %v3774_v9 = vld [vmem:[#allocation7 + $0x458] sm:$0xff] }
 0x2b4   : > { %7023 = vmatmul.mubr.f32.gmra.mrb[190].mxu1 %v2683_v0  ;;  %v2479_v0 = vld [vmem:[#allocation3 + $0x21] sm:$0xff] }
 0x2b5   : > { %2913 = vmatmul.mubr.f32.gmra.mrb[174].mxu0 %v9417_v38  ;;  %3247 = vmatprep.mubr.f32.mxu1 %v2476_v60 }
 0x2b6   : > { %2917 = vmatprep.mubr.f32.mxu0 %v9313_v29  ;;  %v7641_v29 = vpack.c.bf16 %v3768_v7, %v3767_v43  ;;  %v3775_v43 = vld [vmem:[#allocation7 + $0x460] sm:$0xff]  ;;  %v3776_v7 = vld [vmem:[#allocation7 + $0x468] sm:$0xff] }
 0x2b8   : > { %3248 = vmatmul.mubr.f32.vlgmr.msra.gmra.mrb[192].mxu1 %v7735_v14 }
 0x2b9   : > { %2918 = vmatmul.mubr.f32.gmra.mrb[176].mxu0 %v9421_v2  ;;  %3252 = vmatprep.mubr.f32.mxu1 %v2477_v21  ;;  %v9442_v21 = vld [vmem:[#allocation3 + $0x168] sm:$0xff] }
 0x2ba   : > { %2922 = vmatprep.mubr.f32.mxu0 %v9326_v11  ;;  %7636 = vmatpush3.bf16.msra.mxu1 %v9324_v32  ;;  %v9430_v11 = vld [vmem:[#allocation3 + $0x150] sm:$0xff] }
 0x2bb   : > { %7638 = vmatprep.subr.bf16.mxu1 %v7637_v59  ;;  %v3771_v32 = vld [vmem:[#allocation7 + $0x440] sm:$0xff] }
 0x2bc   : > { %3253 = vmatmul.mubr.f32.gmra.mrb[194].mxu1 %v7735_v14  ;;  %v7649_v60 = vpack.c.bf16 %v3772_v52, %v3771_v32  ;;  %v9447_v14 = vld [vmem:[#allocation3 + $0x39] sm:$0xff]  ;;  %v9459_v32 = vld [vmem:[#allocation3 + $0x51] sm:$0xff] }
 0x2bd   : > { %2923 = vmatmul.mubr.f32.gmra.mrb[178].mxu0 %v9425_v35  ;;  %3257 = vmatprep.mubr.f32.mxu1 %v2478_v25  ;;  %v9455_v25 = vld [vmem:[#allocation3 + $0x49] sm:$0xff] }
 0x2be   : > { %2927 = vmatprep.mubr.f32.mxu0 %v9343_v12  ;;  %7640 = vmatpush3.bf16.msra.mxu1 %v7637_v59  ;;  %v9434_v12 = vld [vmem:[#allocation3 + $0x158] sm:$0xff]  ;;  %v7653_v59 = vpack.c.bf16 %v3774_v9, %v3773_v54  ;;  %v3731_v52 = vld [vmem:[#allocation7 + $0x300] sm:$0xff]  ;;  %v9464_v54 = vld [vmem:[#allocation3 + $0x61] sm:$0xff] }
 0x2bf   : > { %7642 = vmatprep.subr.bf16.mxu1 %v7641_v29  ;;  %v3734_v9 = vld [vmem:[#allocation7 + $0x318] sm:$0xff] }
 0x2c0   : > { %3258 = vmatmul.mubr.f32.gmra.mrb[196].mxu1 %v7736_v57  ;;  %v3732_v57 = vld [vmem:[#allocation7 + $0x308] sm:$0xff] }
 0x2c1   : > { %2928 = vmatmul.mubr.f32.gmra.mrb[180].mxu0 %v9430_v11  ;;  %3262 = vmatprep.mubr.f32.mxu1 %v2479_v0  ;;  %v2509_v0 = vld [vmem:[#allocation3 + $0xa] sm:$0xff] }
 0x2c2   : > { %2932 = vmatprep.mubr.f32.mxu0 %v9354_v58  ;;  %7644 = vmatpush3.bf16.msra.mxu1 %v7641_v29  ;;  %v9439_v58 = vld [vmem:[#allocation3 + $0x31] sm:$0xff]  ;;  %v7657_v29 = vpack.c.bf16 %v3776_v7, %v3775_v43  ;;  %v9468_v43 = vld [vmem:[#allocation3 + $0x69] sm:$0xff] }
 0x2c3   : > { %7646 = vmatprep.subr.bf16.mxu1 %v7645_v42  ;;  %v3735_v7 = vld [vmem:[#allocation7 + $0x320] sm:$0xff] }
 0x2c4   : > { %3263 = vmatmul.mubr.f32.gmra.mrb[198].mxu1 %v9091_v5  ;;  %v9450_v5 = vld [vmem:[#allocation3 + $0x170] sm:$0xff] }
 0x2c5   : > { %2933 = vmatmul.mubr.f32.gmra.mrb[182].mxu0 %v9434_v12  ;;  %3267 = vmatprep.mubr.f32.mxu1 %v9439_v58 }
 0x2c6   : > { %2937 = vmatprep.mubr.f32.mxu0 %v9372_v17  ;;  %7648 = vmatpush3.bf16.msra.mxu1 %v7645_v42  ;;  %v7661_v42 = vpack.c.bf16 %v3778_v30, %v3777_v55  ;;  %v9472_v55 = vld [vmem:[#allocation3 + $0x32] sm:$0xff] }
 0x2c7   : > { %7650 = vmatprep.subr.bf16.mxu1 %v7649_v60 }
 0x2c8   : > { %3268 = vmatmul.mubr.f32.gmra.mrb[200].mxu1 %v9111_v53  ;;  %v2618_v53 = vld [vmem:[#allocation3 + $0x180] sm:$0xff] }
 0x2c9   : > { %2938 = vmatmul.mubr.f32.gmra.mrb[184].mxu0 %v9442_v21  ;;  %3272 = vmatprep.mubr.f32.mxu1 %v9447_v14 }
 0x2ca   : > { %2942 = vmatprep.mubr.f32.mxu0 %v9381_v6  ;;  %7652 = vmatpush3.bf16.msra.mxu1 %v7649_v60  ;;  %v7586_v60 = vpack.c.bf16 %v3732_v57, %v3731_v52  ;;  %v9483_v52 = vld [vmem:[#allocation3 + $0x4a] sm:$0xff] }
 0x2cb   : > { %7654 = vmatprep.subr.bf16.mxu1 %v7653_v59 }
 0x2cc   : > { %3273 = vmatmul.mubr.f32.gmra.mrb[202].mxu1 %v9137_v37  ;;  %v2619_v37 = vld [vmem:[#allocation3 + $0x188] sm:$0xff] }
 0x2cd   : > { %2943 = vmatmul.mubr.f32.gmra.mrb[186].mxu0 %v9450_v5  ;;  %3277 = vmatprep.mubr.f32.mxu1 %v9455_v25 }
 0x2ce   : > { %2947 = vmatprep.mubr.f32.mxu0 %v9395_v27  ;;  %7656 = vmatpush3.bf16.msra.mxu1 %v7653_v59  ;;  %v2508_v27 = vld [vmem:[#allocation3 + $0x2] sm:$0xff] }
 0x2cf   : > { %7658 = vmatprep.subr.bf16.mxu1 %v7657_v29 }
 0x2d0   : > { %3278 = vmatmul.mubr.f32.gmra.mrb[204].mxu1 %v9158_v40  ;;  %v2510_v40 = vld [vmem:[#allocation3 + $0x1a] sm:$0xff] }
 0x2d1   : > { %2948 = vmatmul.mubr.f32.gmra.mrb[188].mxu0 %v2618_v53  ;;  %3282 = vmatprep.mubr.f32.mxu1 %v9459_v32  ;;  %v9476_v53 = vld [vmem:[#allocation3 + $0x79] sm:$0xff] }
 0x2d2   : > { %2952 = vmatprep.mubr.f32.mxu0 %v9402_v41  ;;  %7660 = vmatpush3.bf16.msra.mxu1 %v7657_v29  ;;  %v3733_v41 = vld [vmem:[#allocation7 + $0x310] sm:$0xff] }
 0x2d3   : > { %7662 = vmatprep.subr.bf16.mxu1 %v7661_v42  ;;  %v7589_v59 = vpack.c.bf16 %v3734_v9, %v3733_v41  ;;  %v2511_v29 = vld [vmem:[#allocation3 + $0x22] sm:$0xff] }
 0x2d4   : > { %3283 = vmatmul.mubr.f32.gmra.mrb[206].mxu1 %v9172_v61  ;;  %v3736_v61 = vld [vmem:[#allocation7 + $0x328] sm:$0xff]  ;;  %v9494_v41 = vld [vmem:[#allocation3 + $0x62] sm:$0xff] }
 0x2d5   : > { %2953 = vmatmul.mubr.f32.gmra.mrb[190].mxu0 %v2619_v37  ;;  %3287 = vmatprep.mubr.f32.mxu1 %v9464_v54  ;;  %v7592_v30 = vpack.c.bf16 %v3736_v61, %v3735_v7  ;;  %v3739_v37 = vld [vmem:[#allocation7 + $0x340] sm:$0xff]  ;;  %v9505_v61 = vld [vmem:[#allocation3 + $0x7a] sm:$0xff] }
 0x2d6   : > { %7057 = vmatprep.mubr.f32.mxu0 %v2508_v27  ;;  %7664 = vmatpush3.bf16.msra.mxu1 %v7661_v42  ;;  %v3738_v42 = vld [vmem:[#allocation7 + $0x338] sm:$0xff]  ;;  %v9480_v27 = vld [vmem:[#allocation3 + $0x3a] sm:$0xff] }
 0x2d7   : > { %v9502_v7 = vld [vmem:[#allocation3 + $0x6a] sm:$0xff] }
 0x2d8   : > { %3288 = vmatmul.mubr.f32.gmra.mrb[208].mxu1 %v9185_v18  ;;  %v3737_v18 = vld [vmem:[#allocation7 + $0x330] sm:$0xff] }
 0x2d9   : > { %7058 = vmatmul.mubr.f32.vlgmr.msra.gmra.mrb[192].mxu0 %v2509_v0  ;;  %3292 = vmatprep.mubr.f32.mxu1 %v9468_v43  ;;  %v7595_v57 = vpack.c.bf16 %v3738_v42, %v3737_v18  ;;  %v3740_v0 = vld [vmem:[#allocation7 + $0x348] sm:$0xff]  ;;  %v9513_v42 = vld [vmem:[#allocation3 + $0x82] sm:$0xff] }
 0x2da   : > { %7060 = vmatprep.mubr.f32.mxu0 %v2510_v40  ;;  %7587 = vmatpush1.bf16.msra.mxu0 %v7586_v60  ;;  %v9491_v60 = vld [vmem:[#allocation3 + $0x52] sm:$0xff]  ;;  %v7598_v9 = vpack.c.bf16 %v3740_v0, %v3739_v37  ;;  %v3741_v40 = vld [vmem:[#allocation7 + $0x350] sm:$0xff] }
 0x2db   : > { %7588 = vmatprep.subr.bf16.mxu0 %v10507_v39  ;;  %v3744_v18 = vld [vmem:[#allocation7 + $0x368] sm:$0xff]  ;;  %v3745_v0 = vld [vmem:[#allocation7 + $0x370] sm:$0xff] }
 0x2dc   : > { %3293 = vmatmul.mubr.f32.gmra.mrb[210].mxu1 %v9200_v48  ;;  %v9487_v48 = vld [vmem:[#allocation3 + $0x81] sm:$0xff] }
 0x2dd   : > { %7061 = vmatmul.mubr.f32.gmra.mrb[194].mxu0 %v2511_v29  ;;  %3297 = vmatprep.mubr.f32.mxu1 %v9476_v53 }
 0x2de   : > { %7063 = vmatprep.mubr.f32.mxu0 %v9472_v55  ;;  %7590 = vmatpush1.bf16.msra.mxu0 %v7589_v59  ;;  %v3742_v59 = vld [vmem:[#allocation7 + $0x358] sm:$0xff] }
 0x2df   : > { %7591 = vmatprep.subr.bf16.mxu0 %v10507_v39  ;;  %v7601_v29 = vpack.c.bf16 %v3742_v59, %v3741_v40  ;;  %v9524_v40 = vld [vmem:[#allocation3 + $0x9a] sm:$0xff]  ;;  %v9527_v59 = vld [vmem:[#allocation3 + $0xaa] sm:$0xff] }
 0x2e0   : > { %3298 = vmatmul.mubr.f32.gmra.mrb[212].mxu1 %v9214_v36  ;;  %v9498_v36 = vld [vmem:[#allocation3 + $0x91] sm:$0xff]  ;;  %10538 = vst [vmem:[#allocation15_spill] sm:$0xff] %v9524_v40  ;;  %10539 = vst [vmem:[#allocation16_spill] sm:$0xff] %v9527_v59 }
 0x2e1   : > { %7064 = vmatmul.mubr.f32.gmra.mrb[196].mxu0 %v9480_v27  ;;  %3302 = vmatprep.mubr.f32.mxu1 %v9487_v48 }
 0x2e2   : > { %7066 = vmatprep.mubr.f32.mxu0 %v9483_v52  ;;  %7593 = vmatpush1.bf16.msra.mxu0 %v7592_v30  ;;  %v3743_v30 = vld [vmem:[#allocation7 + $0x360] sm:$0xff] }
 0x2e3   : > { %7594 = vmatprep.subr.bf16.mxu0 %v10507_v39  ;;  %v7604_v37 = vpack.c.bf16 %v3744_v18, %v3743_v30  ;;  %v3747_v30 = vld [vmem:[#allocation7 + $0x380] sm:$0xff]  ;;  %v3748_v18 = vld [vmem:[#allocation7 + $0x388] sm:$0xff] }
 0x2e4   : > { %3303 = vmatmul.mubr.f32.gmra.mrb[214].mxu1 %v9230_v22  ;;  %v9509_v22 = vld [vmem:[#allocation3 + $0x99] sm:$0xff] }
 0x2e5   : > { %7067 = vmatmul.mubr.f32.gmra.mrb[198].mxu0 %v9491_v60  ;;  %3307 = vmatprep.mubr.f32.mxu1 %v9498_v36 }
 0x2e6   : > { %7069 = vmatprep.mubr.f32.mxu0 %v9494_v41  ;;  %7596 = vmatpush1.bf16.msra.mxu0 %v7595_v57  ;;  %v9516_v57 = vld [vmem:[#allocation3 + $0x92] sm:$0xff] }
 0x2e7   : > { %7597 = vmatprep.subr.bf16.mxu0 %v10507_v39  ;;  %10537 = vst [vmem:[#allocation14_spill] sm:$0xff] %v9516_v57 }
 0x2e8   : > { %3308 = vmatmul.mubr.f32.gmra.mrb[216].mxu1 %v9251_v34  ;;  %v9520_v34 = vld [vmem:[#allocation3 + $0xa9] sm:$0xff] }
 0x2e9   : > { %7070 = vmatmul.mubr.f32.gmra.mrb[200].mxu0 %v9502_v7  ;;  %3312 = vmatprep.mubr.f32.mxu1 %v9509_v22 }
 0x2ea   : > { %7072 = vmatprep.mubr.f32.mxu0 %v9505_v61  ;;  %7599 = vmatpush1.bf16.msra.mxu0 %v7598_v9  ;;  %v3746_v9 = vld [vmem:[#allocation7 + $0x378] sm:$0xff] }
 0x2eb   : > { %7600 = vmatprep.subr.bf16.mxu0 %v10507_v39 }
 0x2ec   : > { %3313 = vmatmul.mubr.f32.gmra.mrb[218].mxu1 %v9266_v28  ;;  %v9531_v28 = vld [vmem:[#allocation3 + $0xb1] sm:$0xff] }
 0x2ed   : > { %7073 = vmatmul.mubr.f32.gmra.mrb[202].mxu0 %v9513_v42  ;;  %3317 = vmatprep.mubr.f32.mxu1 %v9520_v34 }
 0x2ee   : > { %7075 = vmatprep.mubr.f32.mxu0 %v9516_v57  ;;  %7602 = vmatpush1.bf16.msra.mxu0 %v7601_v29  ;;  %v7607_v29 = vpack.c.bf16 %v3746_v9, %v3745_v0  ;;  %v9535_v57 = vld [vmem:[#allocation3 + $0xb2] sm:$0xff]  ;;  %v3749_v0 = vld [vmem:[#allocation7 + $0x390] sm:$0xff]  ;;  %v3750_v9 = vld [vmem:[#allocation7 + $0x398] sm:$0xff] }
 0x2ef   : > { %7603 = vmatprep.subr.bf16.mxu0 %v10507_v39 }
 0x2f0   : > { %3318 = vmatmul.mubr.f32.gmra.mrb[220].mxu1 %v9283_v20  ;;  %v9542_v20 = vld [vmem:[#allocation3 + $0xc1] sm:$0xff] }
 0x2f1   : > { %7076 = vmatmul.mubr.f32.gmra.mrb[204].mxu0 %v9524_v40  ;;  %3322 = vmatprep.mubr.f32.mxu1 %v9531_v28  ;;  %v9538_v40 = vld [vmem:[#allocation3 + $0xc2] sm:$0xff] }
 0x2f2   : > { %7078 = vmatprep.mubr.f32.mxu0 %v9527_v59  ;;  %7605 = vmatpush1.bf16.msra.mxu0 %v7604_v37  ;;  %10540 = vst [vmem:[#allocation17_spill] sm:$0xff] %v9538_v40  ;;  %v7610_v37 = vpack.c.bf16 %v3748_v18, %v3747_v30  ;;  %v9546_v59 = vld [vmem:[#allocation3 + $0xca] sm:$0xff]  ;;  %v3752_v30 = vld [vmem:[#allocation7 + $0x3a8] sm:$0xff] }
 0x2f3   : > { %7606 = vmatprep.subr.bf16.mxu0 %v10507_v39 }
 0x2f4   : > { %3323 = vmatmul.mubr.f32.gmra.mrb[222].mxu1 %v9294_v24  ;;  %v3751_v24 = vld [vmem:[#allocation7 + $0x3a0] sm:$0xff] }
 0x2f5   : > { %7079 = vmatmul.mubr.f32.gmra.mrb[206].mxu0 %v9535_v57  ;;  %3327 = vmatprep.mubr.f32.mxu1 %v9542_v20  ;;  %v7616_v18 = vpack.c.bf16 %v3752_v30, %v3751_v24  ;;  %v3762_v24 = vld [vmem:[#allocation7 + $0x3f8] sm:$0xff] }
 0x2f6   : > { %7081 = vmatprep.mubr.f32.mxu0 %v9538_v40  ;;  %7608 = vmatpush1.bf16.msra.mxu0 %v7607_v29  ;;  %v7613_v40 = vpack.c.bf16 %v3750_v9, %v3749_v0  ;;  %v9551_v29 = vld [vmem:[#allocation3 + $0xc9] sm:$0xff]  ;;  %v3760_v9 = vld [vmem:[#allocation7 + $0x3e8] sm:$0xff] }
 0x2f7   : > { %7609 = vmatprep.subr.bf16.mxu0 %v10507_v39  ;;  %v3758_v0 = vld [vmem:[#allocation7 + $0x3d8] sm:$0xff] }
 0x2f8   : > { %3328 = vmatmul.mubr.f32.gmra.mrb[224].mxu1 %v9311_v33  ;;  %v3753_v33 = vld [vmem:[#allocation7 + $0x3b0] sm:$0xff] }
 0x2f9   : > { %7082 = vmatmul.mubr.f32.gmra.mrb[208].mxu0 %v9546_v59  ;;  %3332 = vmatprep.mubr.f32.mxu1 %v9551_v29 }
 0x2fa   : > { %7084 = vmatprep.mubr.f32.mxu0 %v9238_v49  ;;  %7611 = vmatpush1.bf16.msra.mxu0 %v7610_v37  ;;  %v9558_v49 = vld [vmem:[#allocation3 + $0xd9] sm:$0xff]  ;;  %v3754_v37 = vld [vmem:[#allocation7 + $0x3b8] sm:$0xff] }
 0x2fb   : > { %7612 = vmatprep.subr.bf16.mxu0 %v10507_v39 }
 0x2fc   : > { %3333 = vmatmul.mubr.f32.gmra.mrb[226].mxu1 %v9322_v62  ;;  %v3755_v62 = vld [vmem:[#allocation7 + $0x3c0] sm:$0xff] }
 0x2fd   : > { %7085 = vmatmul.mubr.f32.gmra.mrb[210].mxu0 %v9241_v50  ;;  %3337 = vmatprep.mubr.f32.mxu1 %v9558_v49  ;;  %v7619_v50 = vpack.c.bf16 %v3754_v37, %v3753_v33 }
 0x2fe   : > { %7087 = vmatprep.mubr.f32.mxu0 %v9272_v1  ;;  %7614 = vmatpush1.bf16.msra.mxu0 %v7613_v40  ;;  %v9565_v1 = vld [vmem:[#allocation3 + $0xe1] sm:$0xff]  ;;  %v3756_v40 = vld [vmem:[#allocation7 + $0x3c8] sm:$0xff] }
 0x2ff   : > { %7615 = vmatprep.subr.bf16.mxu0 %v10507_v39 }
 0x300   : > { %3338 = vmatmul.mubr.f32.gmra.mrb[228].mxu1 %v9341_v26  ;;  %v3757_v26 = vld [vmem:[#allocation7 + $0x3d0] sm:$0xff] }
 0x301   : > { %7088 = vmatmul.mubr.f32.gmra.mrb[212].mxu0 %v9275_v51  ;;  %3342 = vmatprep.mubr.f32.mxu1 %v9565_v1  ;;  %v7622_v51 = vpack.c.bf16 %v3756_v40, %v3755_v62  ;;  %v3641_v62 = vld [vmem:[#allocation3 + $0x80] sm:$0xff] }
 0x302   : > { %7090 = vmatprep.mubr.f32.mxu0 %v9300_v19  ;;  %7617 = vmatpush1.bf16.msra.mxu0 %v7616_v18  ;;  %v9572_v19 = vld [vmem:[#allocation3 + $0xf1] sm:$0xff] }
 0x303   : > { %7618 = vmatprep.subr.bf16.mxu0 %v10507_v39 }
 0x304   : > { %3343 = vmatmul.mubr.f32.gmra.mrb[230].mxu1 %v9352_v46  ;;  %v3759_v46 = vld [vmem:[#allocation7 + $0x3e0] sm:$0xff] }
 0x305   : > { %7091 = vmatmul.mubr.f32.gmra.mrb[214].mxu0 %v9303_v15  ;;  %3347 = vmatprep.mubr.f32.mxu1 %v9572_v19  ;;  %v7625_v15 = vpack.c.bf16 %v3758_v0, %v3757_v26 }
 0x306   : > { %7093 = vmatprep.mubr.f32.mxu0 %v9330_v8  ;;  %7620 = vmatpush1.bf16.msra.mxu0 %v7619_v50  ;;  %v9579_v8 = vld [vmem:[#allocation3 + $0xf9] sm:$0xff] }
 0x307   : > { %7621 = vmatprep.subr.bf16.mxu0 %v10507_v39 }
 0x308   : > { %3348 = vmatmul.mubr.f32.gmra.mrb[232].mxu1 %v9370_v56  ;;  %v3761_v56 = vld [vmem:[#allocation7 + $0x3f0] sm:$0xff] }
 0x309   : > { %7094 = vmatmul.mubr.f32.gmra.mrb[216].mxu0 %v9333_v4  ;;  %3352 = vmatprep.mubr.f32.mxu1 %v9579_v8  ;;  %v7628_v4 = vpack.c.bf16 %v3760_v9, %v3759_v46 }
 0x30a   : > { %7096 = vmatprep.mubr.f32.mxu0 %v9360_v10  ;;  %7623 = vmatpush1.bf16.msra.mxu0 %v7622_v51  ;;  %v9586_v10 = vld [vmem:[#allocation3 + $0x109] sm:$0xff] }
 0x30b   : > { %7624 = vmatprep.subr.bf16.mxu0 %v10507_v39 }
 0x30c   : > { %3353 = vmatmul.mubr.f32.gmra.mrb[234].mxu1 %v9379_v16  ;;  %v9600_v16 = vld [vmem:[#allocation3 + $0x121] sm:$0xff] }
 0x30d   : > { %7097 = vmatmul.mubr.f32.gmra.mrb[218].mxu0 %v9363_v23  ;;  %3357 = vmatprep.mubr.f32.mxu1 %v9586_v10  ;;  %v7631_v23 = vpack.c.bf16 %v3762_v24, %v3761_v56 }
 0x30e   : > { %7099 = vmatprep.mubr.f32.mxu0 %v9384_v45  ;;  %7626 = vmatpush1.bf16.msra.mxu0 %v7625_v15  ;;  %v9593_v45 = vld [vmem:[#allocation3 + $0x111] sm:$0xff] }
 0x30f   : > { %7627 = vmatprep.subr.bf16.mxu0 %v10507_v39 }
 0x310   : > { %3358 = vmatmul.mubr.f32.gmra.mrb[236].mxu1 %v9393_v31  ;;  %v3635_v31 = vld [vmem:[#allocation3 + $0x38] sm:$0xff] }
 0x311   : > { %7100 = vmatmul.mubr.f32.gmra.mrb[220].mxu0 %v9387_v44  ;;  %3362 = vmatprep.mubr.f32.mxu1 %v9593_v45  ;;  %v3634_v44 = vld [vmem:[#allocation3 + $0x30] sm:$0xff] }
 0x312   : > { %7102 = vmatprep.mubr.f32.mxu0 %v9404_v63  ;;  %7629 = vmatpush1.bf16.msra.mxu0 %v7628_v4  ;;  %v3636_v63 = vld [vmem:[#allocation3 + $0x48] sm:$0xff] }
 0x313   : > { %7630 = vmatprep.subr.bf16.mxu0 %v10507_v39  ;;  %v9605_v39 = vld [vmem:[#allocation3 + $0x129] sm:$0xff] }
 0x314   : > { %3363 = vmatmul.mubr.f32.gmra.mrb[238].mxu1 %v9400_v13  ;;  %v9610_v13 = vld [vmem:[#allocation3 + $0x139] sm:$0xff] }
 0x315   : > { %7103 = vmatmul.mubr.f32.gmra.mrb[222].mxu0 %v9407_v47  ;;  %3367 = vmatprep.mubr.f32.mxu1 %v9600_v16  ;;  %v9615_v47 = vld [vmem:[#allocation3 + $0x141] sm:$0xff] }
 0x316   : > { %7632 = vmatpush1.bf16.msra.mxu0 %v7631_v23  ;;  %3843 = vmatprep.mubr.f32.mxu0 %v9439_v58  ;;  %v3638_v58 = vld [vmem:[#allocation3 + $0x60] sm:$0xff] }
 0x318   : > { %3368 = vmatmul.mubr.f32.gmra.mrb[240].mxu1 %v9413_v3  ;;  %v3637_v3 = vld [vmem:[#allocation3 + $0x50] sm:$0xff] }
 0x319   : > { %3844 = vmatmul.mubr.f32.vlgmr.msra.gmra.mrb[224].mxu0 %v3634_v44  ;;  %3372 = vmatprep.mubr.f32.mxu1 %v9605_v39 }
 0x31a   : > { %3848 = vmatprep.mubr.f32.mxu0 %v9447_v14 }
 0x31c   : > { %3373 = vmatmul.mubr.f32.gmra.mrb[242].mxu1 %v9417_v38  ;;  %v9620_v38 = vld [vmem:[#allocation3 + $0x151] sm:$0xff] }
 0x31d   : > { %3849 = vmatmul.mubr.f32.gmra.mrb[226].mxu0 %v3635_v31  ;;  %3377 = vmatprep.mubr.f32.mxu1 %v9610_v13 }
 0x31e   : > { %3853 = vmatprep.mubr.f32.mxu0 %v9455_v25  ;;  %v3639_v25 = vld [vmem:[#allocation3 + $0x68] sm:$0xff] }
 0x320   : > { %3378 = vmatmul.mubr.f32.gmra.mrb[244].mxu1 %v9421_v2  ;;  %v9625_v2 = vld [vmem:[#allocation3 + $0x159] sm:$0xff] }
 0x321   : > { %3854 = vmatmul.mubr.f32.gmra.mrb[228].mxu0 %v3636_v63  ;;  %3382 = vmatprep.mubr.f32.mxu1 %v9615_v47 }
 0x322   : > { %3858 = vmatprep.mubr.f32.mxu0 %v9459_v32 }
 0x324   : > { %3383 = vmatmul.mubr.f32.gmra.mrb[246].mxu1 %v9425_v35 }
 0x325   : > { %3859 = vmatmul.mubr.f32.gmra.mrb[230].mxu0 %v3637_v3  ;;  %3387 = vmatprep.mubr.f32.mxu1 %v9620_v38  ;;  %v10541_v3 = vld [vmem:[#allocation14_spill] sm:$0xff] }
 0x326   : > { %3863 = vmatprep.mubr.f32.mxu0 %v9464_v54 }
 0x328   : > { %3388 = vmatmul.mubr.f32.gmra.mrb[248].mxu1 %v9430_v11  ;;  %v3640_v11 = vld [vmem:[#allocation3 + $0x78] sm:$0xff] }
 0x329   : > { %3864 = vmatmul.mubr.f32.gmra.mrb[232].mxu0 %v3638_v58  ;;  %3392 = vmatprep.mubr.f32.mxu1 %v9625_v2  ;;  %v3646_v58 = vld [vmem:[#allocation3 + $0xc0] sm:$0xff] }
 0x32a   : > { %3868 = vmatprep.mubr.f32.mxu0 %v9468_v43  ;;  %v2799_v14 = vpop.f32.mrb[128].mxu0  ;;  %v6979_v32 = vpop.f32.mrb[160].mxu1 }
 0x32b   : > { %v2801_v54 = vpop.f32.mrb[129].mxu0  ;;  %v3024_v35 = vpop.f32.mrb[161].mxu1 }
 0x32c   : > { %v9629_v30 = vadd.f32 %v3024_v35, %v2799_v14  ;;  %3393 = vmatmul.mubr.f32.gmra.mrb[250].mxu1 %v9434_v12  ;;  %v10543_v54 = vld [vmem:[#allocation16_spill] sm:$0xff] }
 0x32d   : > { %3869 = vmatmul.mubr.f32.gmra.mrb[234].mxu0 %v3639_v25  ;;  %3397 = vmatprep.mubr.f32.mxu1 %v9372_v17 }
 0x32e   : > { %3873 = vmatprep.mubr.f32.mxu0 %v9476_v53  ;;  %v2804_v43 = vpop.f32.mrb[130].mxu0 }
 0x32f   : > { %v9633_v18 = vadd.f32 %v6979_v32, %v2804_v43  ;;  %v6982_v33 = vpop.f32.mrb[162].mxu1  ;;  %v2806_v37 = vpop.f32.mrb[131].mxu0  ;;  %v10542_v32 = vld [vmem:[#allocation15_spill] sm:$0xff] }
 0x330   : > { %v3034_v50 = vpop.f32.mrb[163].mxu1  ;;  %3398 = vmatmul.mubr.f32.gmra.mrb[252].mxu1 %v9442_v21 }
 0x331   : > { %3874 = vmatmul.mubr.f32.gmra.mrb[236].mxu0 %v3640_v11  ;;  %3402 = vmatprep.mubr.f32.mxu1 %v9381_v6  ;;  %v10544_v11 = vld [vmem:[#allocation17_spill] sm:$0xff] }
 0x332   : > { %3878 = vmatprep.mubr.f32.mxu0 %v9487_v48  ;;  %v2809_v53 = vpop.f32.mrb[132].mxu0  ;;  %v3642_v48 = vld [vmem:[#allocation3 + $0x90] sm:$0xff] }
 0x333   : > { %v9638_v40 = vadd.f32 %v3034_v50, %v2809_v53  ;;  %v6985_v12 = vpop.f32.mrb[164].mxu1  ;;  %v2811_v17 = vpop.f32.mrb[133].mxu0 }
 0x334   : > { %v3044_v51 = vpop.f32.mrb[165].mxu1  ;;  %3403 = vmatmul.mubr.f32.gmra.mrb[254].mxu1 %v9450_v5 }
 0x335   : > { %3879 = vmatmul.mubr.f32.gmra.mrb[238].mxu0 %v3641_v62  ;;  %7137 = vmatprep.mubr.f32.mxu1 %v9472_v55 }
 0x336   : > { %3883 = vmatprep.mubr.f32.mxu0 %v9498_v36  ;;  %v3643_v36 = vld [vmem:[#allocation3 + $0x98] sm:$0xff] }
 0x337   : > { %v2814_v26 = vpop.f32.mrb[134].mxu0 }
 0x338   : > { %v9643_v0 = vadd.f32 %v6982_v33, %v2814_v26  ;;  %v6988_v21 = vpop.f32.mrb[166].mxu1  ;;  %v2816_v6 = vpop.f32.mrb[135].mxu0  ;;  %7138 = vmatmul.mubr.f32.vlgmr.msra.gmra.mrb[0].mxu1 %v9480_v27  ;;  %v3713_v26 = vld [vmem:[#allocation3 + $0xe2] sm:$0xff] }
 0x339   : > { %3884 = vmatmul.mubr.f32.gmra.mrb[240].mxu0 %v3642_v48  ;;  %v3054_v15 = vpop.f32.mrb[167].mxu1  ;;  %7140 = vmatprep.mubr.f32.mxu1 %v9483_v52  ;;  %v3714_v48 = vld [vmem:[#allocation3 + $0xf2] sm:$0xff] }
 0x33a   : > { %3888 = vmatprep.mubr.f32.mxu0 %v9509_v22  ;;  %v3644_v22 = vld [vmem:[#allocation3 + $0xa8] sm:$0xff] }
 0x33c   : > { %v2819_v46 = vpop.f32.mrb[136].mxu0  ;;  %v6991_v5 = vpop.f32.mrb[168].mxu1  ;;  %7141 = vmatmul.mubr.f32.gmra.mrb[2].mxu1 %v9491_v60 }
 0x33d   : > { %v9648_v9 = vadd.f32 %v3044_v51, %v2819_v46  ;;  %v2821_v55 = vpop.f32.mrb[137].mxu0  ;;  %3889 = vmatmul.mubr.f32.gmra.mrb[242].mxu0 %v3643_v36  ;;  %v3064_v4 = vpop.f32.mrb[169].mxu1  ;;  %7143 = vmatprep.mubr.f32.mxu1 %v9494_v41  ;;  %v3715_v46 = vld [vmem:[#allocation3 + $0xfa] sm:$0xff] }
 0x33e   : > { %3893 = vmatprep.mubr.f32.mxu0 %v9520_v34  ;;  %v3645_v34 = vld [vmem:[#allocation3 + $0xb0] sm:$0xff]  ;;  %v3651_v55 = vld [vmem:[#allocation3 + $0xf8] sm:$0xff] }
 0x340   : > { %v2824_v56 = vpop.f32.mrb[138].mxu0  ;;  %v6994_v27 = vpop.f32.mrb[170].mxu1  ;;  %7144 = vmatmul.mubr.f32.gmra.mrb[4].mxu1 %v9502_v7 }
 0x341   : > { %v9653_v24 = vadd.f32 %v6985_v12, %v2824_v56  ;;  %v2826_v52 = vpop.f32.mrb[139].mxu0  ;;  %3894 = vmatmul.mubr.f32.gmra.mrb[244].mxu0 %v3644_v22  ;;  %v3074_v23 = vpop.f32.mrb[171].mxu1  ;;  %7146 = vmatprep.mubr.f32.mxu1 %v9505_v61  ;;  %v3712_v12 = vld [vmem:[#allocation3 + $0xda] sm:$0xff]  ;;  %v3717_v22 = vld [vmem:[#allocation3 + $0x112] sm:$0xff] }
 0x342   : > { %3898 = vmatprep.mubr.f32.mxu0 %v9531_v28 }
 0x344   : > { %v2829_v44 = vpop.f32.mrb[140].mxu0  ;;  %v9660_v60 = vpop.f32.mrb[172].mxu1  ;;  %7147 = vmatmul.mubr.f32.gmra.mrb[6].mxu1 %v9513_v42  ;;  %v3647_v42 = vld [vmem:[#allocation3 + $0xc8] sm:$0xff] }
 0x345   : > { %v9658_v31 = vadd.f32 %v3054_v15, %v2829_v44  ;;  %v2831_v41 = vpop.f32.mrb[141].mxu0  ;;  %3899 = vmatmul.mubr.f32.gmra.mrb[246].mxu0 %v3645_v34  ;;  %v3084_v63 = vpop.f32.mrb[173].mxu1  ;;  %7149 = vmatprep.mubr.f32.mxu1 %v10541_v3  ;;  %v3720_v3 = vld [vmem:[#allocation3 + $0x13a] sm:$0xff] }
 0x346   : > { %3903 = vmatprep.mubr.f32.mxu0 %v9542_v20  ;;  %v3719_v41 = vld [vmem:[#allocation3 + $0x12a] sm:$0xff] }
 0x348   : > { %v2834_v28 = vpop.f32.mrb[142].mxu0  ;;  %v9667_v14 = vpop.f32.mrb[174].mxu1  ;;  %7150 = vmatmul.mubr.f32.gmra.mrb[8].mxu1 %v10542_v32  ;;  %v3722_v32 = vld [vmem:[#allocation3 + $0x152] sm:$0xff] }
 0x349   : > { %v9665_v7 = vadd.f32 %v6988_v21, %v2834_v28  ;;  %v2836_v61 = vpop.f32.mrb[143].mxu0  ;;  %3904 = vmatmul.mubr.f32.gmra.mrb[248].mxu0 %v3646_v58  ;;  %v9670_v25 = vpop.f32.mrb[175].mxu1  ;;  %7152 = vmatprep.mubr.f32.mxu1 %v10543_v54  ;;  %v3653_v28 = vld [vmem:[#allocation3 + $0x110] sm:$0xff] }
 0x34a   : > { %3908 = vmatprep.mubr.f32.mxu0 %v9551_v29  ;;  %v3648_v29 = vld [vmem:[#allocation3 + $0xd8] sm:$0xff] }
 0x34c   : > { %v2839_v20 = vpop.f32.mrb[144].mxu0  ;;  %7153 = vmatmul.mubr.f32.gmra.mrb[10].mxu1 %v9535_v57  ;;  %v3649_v57 = vld [vmem:[#allocation3 + $0xe0] sm:$0xff] }
 0x34d   : > { %v9674_v35 = vadd.f32 %v3064_v4, %v2839_v20  ;;  %v2841_v43 = vpop.f32.mrb[145].mxu0  ;;  %3909 = vmatmul.mubr.f32.gmra.mrb[250].mxu0 %v3647_v42  ;;  %7155 = vmatprep.mubr.f32.mxu1 %v10544_v11  ;;  %v3723_v11 = vld [vmem:[#allocation3 + $0x15a] sm:$0xff] }
 0x34e   : > { %3913 = vmatprep.mubr.f32.mxu0 %v9558_v49 }
 0x350   : > { %v2844_v33 = vpop.f32.mrb[146].mxu0  ;;  %v9681_v53 = vpop.f32.mrb[176].mxu1  ;;  %7156 = vmatmul.mubr.f32.gmra.mrb[12].mxu1 %v9546_v59 }
 0x351   : > { %v9679_v37 = vadd.f32 %v6991_v5, %v2844_v33  ;;  %v2846_v50 = vpop.f32.mrb[147].mxu0  ;;  %3914 = vmatmul.mubr.f32.gmra.mrb[252].mxu0 %v3648_v29  ;;  %v9684_v62 = vpop.f32.mrb[177].mxu1  ;;  %7158 = vmatprep.mubr.f32.mxu1 %v3712_v12  ;;  %v3716_v5 = vld [vmem:[#allocation3 + $0x10a] sm:$0xff] }
 0x352   : > { %3918 = vmatprep.mubr.f32.mxu0 %v9565_v1  ;;  %v3650_v1 = vld [vmem:[#allocation3 + $0xf0] sm:$0xff]  ;;  %v3655_v29 = vld [vmem:[#allocation3 + $0x128] sm:$0xff] }
 0x353   : > { %v3724_v33 = vld [vmem:[#allocation3 + $0x16a] sm:$0xff] }
 0x354   : > { %v2849_v49 = vpop.f32.mrb[148].mxu0  ;;  %7159 = vmatmul.mubr.f32.gmra.mrb[14].mxu1 %v3713_v26 }
 0x355   : > { %v9687_v17 = vadd.f32 %v3074_v23, %v2849_v49  ;;  %v2851_v51 = vpop.f32.mrb[149].mxu0  ;;  %3919 = vmatmul.mubr.f32.gmra.mrb[254].mxu0 %v3649_v57  ;;  %7161 = vmatprep.mubr.f32.mxu1 %v3714_v48  ;;  %v3652_v23 = vld [vmem:[#allocation3 + $0x108] sm:$0xff]  ;;  %v3728_v48 = vld [vmem:[#allocation3 + $0x19a] sm:$0xff] }
 0x356   : > { %3923 = vmatprep.mubr.f32.mxu0 %v9572_v19  ;;  %v3726_v49 = vld [vmem:[#allocation3 + $0x182] sm:$0xff]  ;;  %v3656_v51 = vld [vmem:[#allocation3 + $0x138] sm:$0xff] }
 0x357   : > { %v9692_v59 = vpop.f32.mrb[178].mxu1 }
 0x358   : > { %v2854_v21 = vpop.f32.mrb[150].mxu0  ;;  %v9695_v36 = vpop.f32.mrb[179].mxu1  ;;  %7162 = vmatmul.mubr.f32.gmra.mrb[16].mxu1 %v3715_v46  ;;  %v3729_v46 = vld [vmem:[#allocation3 + $0x1a2] sm:$0xff] }
 0x359   : > { %v9690_v6 = vadd.f32 %v6994_v27, %v2854_v21  ;;  %v2856_v15 = vpop.f32.mrb[151].mxu0  ;;  %3924 = vmatmul.mubr.f32.gmra.mrb[0].mxu0 %v3650_v1  ;;  %7164 = vmatprep.mubr.f32.mxu1 %v3716_v5  ;;  %v3718_v27 = vld [vmem:[#allocation3 + $0x122] sm:$0xff] }
 0x35a   : > { %3928 = vmatprep.mubr.f32.mxu0 %v9579_v8 }
 0x35c   : > { %v2859_v19 = vpop.f32.mrb[152].mxu0  ;;  %7165 = vmatmul.mubr.f32.gmra.mrb[18].mxu1 %v3717_v22 }
 0x35d   : > { %v9697_v4 = vadd.f32 %v3084_v63, %v2859_v19  ;;  %v2861_v56 = vpop.f32.mrb[153].mxu0  ;;  %3929 = vmatmul.mubr.f32.gmra.mrb[2].mxu0 %v3651_v55  ;;  %7167 = vmatprep.mubr.f32.mxu1 %v3718_v27  ;;  %v3658_v55 = vld [vmem:[#allocation3 + $0x150] sm:$0xff] }
 0x35e   : > { %3933 = vmatprep.mubr.f32.mxu0 %v9586_v10 }
 0x35f   : > { %v9703_v34 = vpop.f32.mrb[180].mxu1 }
 0x360   : > { %v2864_v52 = vpop.f32.mrb[154].mxu0  ;;  %v9706_v63 = vpop.f32.mrb[181].mxu1  ;;  %7168 = vmatmul.mubr.f32.gmra.mrb[20].mxu1 %v3719_v41 }
 0x361   : > { %v9701_v8 = vadd.f32 %v9660_v60, %v2864_v52  ;;  %v2866_v44 = vpop.f32.mrb[155].mxu0  ;;  %3934 = vmatmul.mubr.f32.gmra.mrb[4].mxu0 %v3652_v23  ;;  %7170 = vmatprep.mubr.f32.mxu1 %v3720_v3  ;;  %v3721_v60 = vld [vmem:[#allocation3 + $0x142] sm:$0xff] }
 0x362   : > { %3938 = vmatprep.mubr.f32.mxu0 %v9593_v45  ;;  %v3654_v45 = vld [vmem:[#allocation3 + $0x120] sm:$0xff]  ;;  %v3660_v3 = vld [vmem:[#allocation3 + $0x168] sm:$0xff] }
 0x364   : > { %v2869_v10 = vpop.f32.mrb[156].mxu0  ;;  %7171 = vmatmul.mubr.f32.gmra.mrb[22].mxu1 %v3721_v60 }
 0x365   : > { %v9709_v58 = vadd.f32 %v9670_v25, %v2869_v10  ;;  %v2871_v61 = vpop.f32.mrb[157].mxu0  ;;  %3939 = vmatmul.mubr.f32.gmra.mrb[6].mxu0 %v3653_v28  ;;  %7173 = vmatprep.mubr.f32.mxu1 %v3722_v32  ;;  %v3693_v28 = vld [vmem:[#allocation3 + $0x171] sm:$0xff] }
 0x366   : > { %3943 = vmatprep.mubr.f32.mxu0 %v9600_v16  ;;  %v3661_v32 = vld [vmem:[#allocation3 + $0x170] sm:$0xff] }
 0x367   : > { %v9715_v43 = vpop.f32.mrb[182].mxu1 }
 0x368   : > { %v2874_v54 = vpop.f32.mrb[158].mxu0  ;;  %v3134_v25 = vpop.f32.mrb[183].mxu1  ;;  %7174 = vmatmul.mubr.f32.gmra.mrb[24].mxu1 %v3723_v11  ;;  %v3662_v11 = vld [vmem:[#allocation3 + $0x180] sm:$0xff] }
 0x369   : > { %v9713_v20 = vadd.f32 %v9667_v14, %v2874_v54  ;;  %v2876_v42 = vpop.f32.mrb[159].mxu0  ;;  %3944 = vmatmul.mubr.f32.gmra.mrb[8].mxu0 %v3654_v45  ;;  %7176 = vmatprep.mubr.f32.mxu1 %v3724_v33  ;;  %v3725_v14 = vld [vmem:[#allocation3 + $0x172] sm:$0xff]  ;;  %v3694_v45 = vld [vmem:[#allocation3 + $0x181] sm:$0xff] }
 0x36a   : > { %3948 = vmatprep.mubr.f32.mxu0 %v9605_v39 }
 0x36c   : > { %v2879_v16 = vpop.f32.mrb[160].mxu0  ;;  %7177 = vmatmul.mubr.f32.gmra.mrb[26].mxu1 %v3725_v14  ;;  %v3696_v14 = vld [vmem:[#allocation3 + $0x199] sm:$0xff] }
 0x36d   : > { %v9719_v50 = vadd.f32 %v9684_v62, %v2879_v16  ;;  %v2881_v12 = vpop.f32.mrb[161].mxu0  ;;  %3949 = vmatmul.mubr.f32.gmra.mrb[10].mxu0 %v3655_v29  ;;  %7179 = vmatprep.mubr.f32.mxu1 %v3726_v49  ;;  %v3727_v62 = vld [vmem:[#allocation3 + $0x18a] sm:$0xff] }
 0x36e   : > { %3953 = vmatprep.mubr.f32.mxu0 %v9610_v13  ;;  %v3657_v13 = vld [vmem:[#allocation3 + $0x140] sm:$0xff]  ;;  %v3695_v16 = vld [vmem:[#allocation3 + $0x189] sm:$0xff] }
 0x36f   : > { %v9725_v21 = vpop.f32.mrb[184].mxu1 }
 0x370   : > { %v2884_v57 = vpop.f32.mrb[162].mxu0  ;;  %v3144_v1 = vpop.f32.mrb[185].mxu1  ;;  %7180 = vmatmul.mubr.f32.gmra.mrb[28].mxu1 %v3727_v62 }
 0x371   : > { %v9723_v39 = vadd.f32 %v9681_v53, %v2884_v57  ;;  %v2886_v26 = vpop.f32.mrb[163].mxu0  ;;  %3954 = vmatmul.mubr.f32.gmra.mrb[12].mxu0 %v3656_v51  ;;  %7182 = vmatprep.mubr.f32.mxu1 %v3728_v48  ;;  %v3663_v57 = vld [vmem:[#allocation3 + $0x188] sm:$0xff] }
 0x372   : > { %3958 = vmatprep.mubr.f32.mxu0 %v9615_v47 }
 0x374   : > { %v2889_v15 = vpop.f32.mrb[164].mxu0  ;;  %7183 = vmatmul.mubr.f32.gmra.mrb[30].mxu1 %v3729_v46 }
 0x375   : > { %v9729_v5 = vadd.f32 %v9695_v36, %v2889_v15  ;;  %v2891_v19 = vpop.f32.mrb[165].mxu0  ;;  %3959 = vmatmul.mubr.f32.gmra.mrb[14].mxu0 %v3657_v13  ;;  %v3659_v36 = vld [vmem:[#allocation3 + $0x158] sm:$0xff] }
 0x376   : > { %3963 = vmatprep.mubr.f32.mxu0 %v9620_v38  ;;  %v3692_v38 = vld [vmem:[#allocation3 + $0x169] sm:$0xff] }
 0x377   : > { %v9735_v22 = vpop.f32.mrb[186].mxu1  ;;  %v7737_v19 = vld [vmem:[#allocation2] sm:$0xff] }
 0x378   : > { %v2894_v53 = vpop.f32.mrb[166].mxu0  ;;  %v3154_v27 = vpop.f32.mrb[187].mxu1 }
 0x379   : > { %v9733_v56 = vadd.f32 %v9692_v59, %v2894_v53  ;;  %v2896_v47 = vpop.f32.mrb[167].mxu0  ;;  %3964 = vmatmul.mubr.f32.gmra.mrb[16].mxu0 %v3658_v55 }
 0x37a   : > { %3968 = vmatprep.mubr.f32.mxu0 %v9625_v2 }
 0x37c   : > { %v2899_v52 = vpop.f32.mrb[168].mxu0 }
 0x37d   : > { %v9739_v23 = vadd.f32 %v9706_v63, %v2899_v52  ;;  %v2901_v44 = vpop.f32.mrb[169].mxu0  ;;  %3969 = vmatmul.mubr.f32.gmra.mrb[18].mxu0 %v3659_v36 }
 0x37e   : > { %3973 = vmatprep.mubr.f32.mxu0 %v3692_v38 }
 0x37f   : > { %v7021_v61 = vpop.f32.mrb[188].mxu1 }
 0x380   : > { %v2904_v41 = vpop.f32.mrb[170].mxu0  ;;  %v3164_v2 = vpop.f32.mrb[189].mxu1 }
 0x381   : > { %v9742_v59 = vadd.f32 %v9703_v34, %v2904_v41  ;;  %v2906_v10 = vpop.f32.mrb[171].mxu0  ;;  %3974 = vmatmul.mubr.f32.gmra.mrb[20].mxu0 %v3660_v3 }
 0x382   : > { %3978 = vmatprep.mubr.f32.mxu0 %v3693_v28 }
 0x384   : > { %v2909_v60 = vpop.f32.mrb[172].mxu0 }
 0x385   : > { %v9744_v54 = vadd.f32 %v3134_v25, %v2909_v60  ;;  %v2911_v63 = vpop.f32.mrb[173].mxu0  ;;  %3979 = vmatmul.mubr.f32.gmra.mrb[22].mxu0 %v3661_v32 }
 0x386   : > { %3983 = vmatprep.mubr.f32.mxu0 %v3694_v45 }
 0x387   : > { %v7024_v29 = vpop.f32.mrb[190].mxu1 }
 0x388   : > { %v2914_v42 = vpop.f32.mrb[174].mxu0  ;;  %v3174_v12 = vpop.f32.mrb[191].mxu1 }
 0x389   : > { %v9747_v33 = vadd.f32 %v9715_v43, %v2914_v42  ;;  %v2916_v34 = vpop.f32.mrb[175].mxu0  ;;  %3984 = vmatmul.mubr.f32.gmra.mrb[24].mxu0 %v3662_v11  ;;  %v3697_v43 = vld [vmem:[#allocation3 + $0x1a1] sm:$0xff] }
 0x38a   : > { %3988 = vmatprep.mubr.f32.mxu0 %v3695_v16 }
 0x38b   : > { %v3249_v26 = vpop.f32.mrb[192].mxu1 }
 0x38c   : > { %v2919_v49 = vpop.f32.mrb[176].mxu0  ;;  %v3250_v48 = vadd.f32 %v3249_v26, %v9629_v30  ;;  %v3251_v62 = vpop.f32.mrb[193].mxu1 }
 0x38d   : > { %v9749_v25 = vadd.f32 %v3144_v1, %v2919_v49  ;;  %v2921_v51 = vpop.f32.mrb[177].mxu0  ;;  %3989 = vmatmul.mubr.f32.gmra.mrb[26].mxu0 %v3663_v57 }
 0x38e   : > { %3993 = vmatprep.mubr.f32.mxu0 %v3696_v14 }
 0x38f   : > { %v3254_v53 = vpop.f32.mrb[194].mxu1 }
 0x390   : > { %v2924_v15 = vpop.f32.mrb[178].mxu0  ;;  %v3255_v1 = vadd.f32 %v3254_v53, %v9633_v18  ;;  %v3256_v55 = vpop.f32.mrb[195].mxu1 }
 0x391   : > { %v9753_v13 = vadd.f32 %v9725_v21, %v2924_v15  ;;  %v2926_v46 = vpop.f32.mrb[179].mxu0  ;;  %3994 = vmatmul.mubr.f32.gmra.mrb[28].mxu0 %v7737_v19 }
 0x392   : > { %3998 = vmatprep.mubr.f32.mxu0 %v3697_v43 }
 0x393   : > { %v3259_v30 = vpop.f32.mrb[196].mxu1 }
 0x394   : > { %v2929_v47 = vpop.f32.mrb[180].mxu0  ;;  %v3260_v44 = vadd.f32 %v3259_v30, %v9638_v40  ;;  %v3261_v38 = vpop.f32.mrb[197].mxu1 }
 0x395   : > { %v9756_v52 = vadd.f32 %v3154_v27, %v2929_v47  ;;  %v2931_v36 = vpop.f32.mrb[181].mxu0  ;;  %3999 = vmatmul.mubr.f32.gmra.mrb[30].mxu0 %v7737_v19 }
 0x397   : > { %v3264_v10 = vpop.f32.mrb[198].mxu1 }
 0x398   : > { %v2934_v41 = vpop.f32.mrb[182].mxu0  ;;  %v3265_v28 = vadd.f32 %v3264_v10, %v9643_v0  ;;  %v3266_v60 = vpop.f32.mrb[199].mxu1 }
 0x399   : > { %v9760_v21 = vadd.f32 %v9735_v22, %v2934_v41  ;;  %v2936_v3 = vpop.f32.mrb[183].mxu0 }
 0x39b   : > { %v3269_v63 = vpop.f32.mrb[200].mxu1 }
 0x39c   : > { %v2939_v18 = vpop.f32.mrb[184].mxu0  ;;  %v3270_v45 = vadd.f32 %v3269_v63, %v9648_v9  ;;  %v3271_v42 = vpop.f32.mrb[201].mxu1 }
 0x39d   : > { %v9763_v32 = vadd.f32 %v3164_v2, %v2939_v18  ;;  %v2941_v27 = vpop.f32.mrb[185].mxu0 }
 0x39f   : > { %v3274_v16 = vpop.f32.mrb[202].mxu1 }
 0x3a0   : > { %v2944_v11 = vpop.f32.mrb[186].mxu0  ;;  %v3275_v22 = vadd.f32 %v3274_v16, %v9653_v24  ;;  %v3276_v14 = vpop.f32.mrb[203].mxu1 }
 0x3a1   : > { %v9766_v40 = vadd.f32 %v7021_v61, %v2944_v11  ;;  %v2946_v34 = vpop.f32.mrb[187].mxu0 }
 0x3a3   : > { %v3279_v51 = vpop.f32.mrb[204].mxu1 }
 0x3a4   : > { %v2949_v49 = vpop.f32.mrb[188].mxu0  ;;  %v3280_v2 = vadd.f32 %v3279_v51, %v9658_v31  ;;  %v3281_v26 = vpop.f32.mrb[205].mxu1 }
 0x3a5   : > { %v9769_v57 = vadd.f32 %v3174_v12, %v2949_v49  ;;  %v2951_v0 = vpop.f32.mrb[189].mxu0 }
 0x3a7   : > { %v3284_v15 = vpop.f32.mrb[206].mxu1 }
 0x3a8   : > { %v2954_v62 = vpop.f32.mrb[190].mxu0  ;;  %v3285_v61 = vadd.f32 %v3284_v15, %v9665_v7  ;;  %v3286_v46 = vpop.f32.mrb[207].mxu1 }
 0x3a9   : > { %v9772_v43 = vadd.f32 %v7024_v29, %v2954_v62  ;;  %v2956_v9 = vpop.f32.mrb[191].mxu0 }
 0x3ab   : > { %v3289_v55 = vpop.f32.mrb[208].mxu1 }
 0x3ac   : > { %v7059_v19 = vpop.f32.mrb[192].mxu0  ;;  %v3290_v47 = vadd.f32 %v3289_v55, %v9674_v35  ;;  %v3291_v36 = vpop.f32.mrb[209].mxu1 }
 0x3ad   : > { %v9775_v53 = vadd.f32 %v7059_v19, %v3255_v1  ;;  %v3474_v24 = vpop.f32.mrb[193].mxu0 }
 0x3ae   : > { %v9777_v12 = vadd.f32 %v3474_v24, %v3250_v48 }
 0x3af   : > { %v3294_v38 = vpop.f32.mrb[210].mxu1 }
 0x3b0   : > { %v7062_v31 = vpop.f32.mrb[194].mxu0  ;;  %v3295_v7 = vadd.f32 %v3294_v38, %v9679_v37  ;;  %v3296_v3 = vpop.f32.mrb[211].mxu1 }
 0x3b1   : > { %v9780_v30 = vadd.f32 %v7062_v31, %v3265_v28  ;;  %v3484_v29 = vpop.f32.mrb[195].mxu0 }
 0x3b2   : > { %v9782_v41 = vadd.f32 %v3484_v29, %v3260_v44 }
 0x3b3   : > { %v3299_v18 = vpop.f32.mrb[212].mxu1 }
 0x3b4   : > { %v7065_v10 = vpop.f32.mrb[196].mxu0  ;;  %v3300_v35 = vadd.f32 %v3299_v18, %v9687_v17  ;;  %v3301_v27 = vpop.f32.mrb[213].mxu1 }
 0x3b5   : > { %v9785_v1 = vadd.f32 %v7065_v10, %v3275_v22  ;;  %v3494_v60 = vpop.f32.mrb[197].mxu0 }
 0x3b6   : > { %v9787_v48 = vadd.f32 %v3494_v60, %v3270_v45 }
 0x3b7   : > { %v3304_v11 = vpop.f32.mrb[214].mxu1 }
 0x3b8   : > { %v7068_v63 = vpop.f32.mrb[198].mxu0  ;;  %v3305_v37 = vadd.f32 %v3304_v11, %v9690_v6  ;;  %v3306_v34 = vpop.f32.mrb[215].mxu1 }
 0x3b9   : > { %v9790_v28 = vadd.f32 %v7068_v63, %v3285_v61  ;;  %v3504_v42 = vpop.f32.mrb[199].mxu0 }
 0x3ba   : > { %v9792_v44 = vadd.f32 %v3504_v42, %v3280_v2 }
 0x3bb   : > { %v3309_v49 = vpop.f32.mrb[216].mxu1 }
 0x3bc   : > { %v7071_v16 = vpop.f32.mrb[200].mxu0  ;;  %v3310_v17 = vadd.f32 %v3309_v49, %v9697_v4  ;;  %v3311_v0 = vpop.f32.mrb[217].mxu1 }
 0x3bd   : > { %v9795_v22 = vadd.f32 %v7071_v16, %v3295_v7  ;;  %v3514_v14 = vpop.f32.mrb[201].mxu0 }
 0x3be   : > { %v9797_v45 = vadd.f32 %v3514_v14, %v3290_v47 }
 0x3bf   : > { %v3314_v9 = vpop.f32.mrb[218].mxu1 }
 0x3c0   : > { %v7074_v51 = vpop.f32.mrb[202].mxu0  ;;  %v3315_v6 = vadd.f32 %v3314_v9, %v9701_v8  ;;  %v3316_v15 = vpop.f32.mrb[219].mxu1 }
 0x3c1   : > { %v9800_v26 = vadd.f32 %v7074_v51, %v3305_v37  ;;  %v3524_v62 = vpop.f32.mrb[203].mxu0 }
 0x3c2   : > { %v9802_v2 = vadd.f32 %v3524_v62, %v3300_v35 }
 0x3c3   : > { %v3319_v24 = vpop.f32.mrb[220].mxu1 }
 0x3c4   : > { %v7077_v61 = vpop.f32.mrb[204].mxu0  ;;  %v3320_v4 = vadd.f32 %v3319_v24, %v9709_v58  ;;  %v3321_v47 = vpop.f32.mrb[221].mxu1 }
 0x3c5   : > { %v9805_v46 = vadd.f32 %v7077_v61, %v3315_v6  ;;  %v3534_v19 = vpop.f32.mrb[205].mxu0 }
 0x3c6   : > { %v9807_v55 = vadd.f32 %v3534_v19, %v3310_v17 }
 0x3c7   : > { %v3324_v29 = vpop.f32.mrb[222].mxu1 }
 0x3c8   : > { %v7080_v36 = vpop.f32.mrb[206].mxu0  ;;  %v3325_v7 = vadd.f32 %v3324_v29, %v9713_v20  ;;  %v3326_v3 = vpop.f32.mrb[223].mxu1 }
 0x3c9   : > { %v3544_v31 = vpop.f32.mrb[207].mxu0 }
 0x3ca   : > { %v9810_v38 = vadd.f32 %v3544_v31, %v3320_v4  ;;  %v9813_v10 = vadd.f32 %v7080_v36, %v3325_v7 }
 0x3cb   : > { %v3329_v18 = vpop.f32.mrb[224].mxu1 }
 0x3cc   : > { %v7083_v8 = vpop.f32.mrb[208].mxu0  ;;  %v3330_v35 = vadd.f32 %v3329_v18, %v9719_v50  ;;  %v3331_v27 = vpop.f32.mrb[225].mxu1 }
 0x3cd   : > { %v3554_v60 = vpop.f32.mrb[209].mxu0 }
 0x3ce   : > { %v9816_v42 = vadd.f32 %v3554_v60, %v3330_v35 }
 0x3cf   : > { %v3334_v11 = vpop.f32.mrb[226].mxu1 }
 0x3d0   : > { %v7086_v63 = vpop.f32.mrb[210].mxu0  ;;  %v3335_v37 = vadd.f32 %v3334_v11, %v9723_v39  ;;  %v3336_v34 = vpop.f32.mrb[227].mxu1 }
 0x3d1   : > { %v3564_v58 = vpop.f32.mrb[211].mxu0 }
 0x3d2   : > { %v9819_v14 = vadd.f32 %v7083_v8, %v3335_v37 }
 0x3d3   : > { %v3339_v49 = vpop.f32.mrb[228].mxu1 }
 0x3d4   : > { %v7089_v16 = vpop.f32.mrb[212].mxu0  ;;  %v3340_v17 = vadd.f32 %v3339_v49, %v9729_v5  ;;  %v3341_v0 = vpop.f32.mrb[229].mxu1 }
 0x3d5   : > { %v3574_v20 = vpop.f32.mrb[213].mxu0 }
 0x3d6   : > { %v9822_v62 = vadd.f32 %v3564_v58, %v3340_v17 }
 0x3d7   : > { %v3344_v9 = vpop.f32.mrb[230].mxu1 }
 0x3d8   : > { %v7092_v51 = vpop.f32.mrb[214].mxu0  ;;  %10545 = vst [vmem:[#allocation18_spill] sm:$0xff] %v9822_v62  ;;  %v3345_v6 = vadd.f32 %v3344_v9, %v9733_v56  ;;  %v3346_v15 = vpop.f32.mrb[231].mxu1 }
 0x3d9   : > { %v3584_v50 = vpop.f32.mrb[215].mxu0 }
 0x3da   : > { %v9825_v19 = vadd.f32 %v7086_v63, %v3345_v6 }
 0x3db   : > { %v3349_v24 = vpop.f32.mrb[232].mxu1 }
 0x3dc   : > { %v7095_v61 = vpop.f32.mrb[216].mxu0  ;;  %10546 = vst [vmem:[#allocation19_spill] sm:$0xff] %v9825_v19  ;;  %v3350_v4 = vadd.f32 %v3349_v24, %v9739_v23  ;;  %v3351_v47 = vpop.f32.mrb[233].mxu1 }
 0x3dd   : > { %v3594_v39 = vpop.f32.mrb[217].mxu0 }
 0x3de   : > { %v9828_v31 = vadd.f32 %v3574_v20, %v3350_v4 }
 0x3df   : > { %v3354_v29 = vpop.f32.mrb[234].mxu1 }
 0x3e0   : > { %v7098_v36 = vpop.f32.mrb[218].mxu0  ;;  %10547 = vst [vmem:[#allocation20_spill] sm:$0xff] %v9828_v31  ;;  %v3355_v7 = vadd.f32 %v3354_v29, %v9742_v59  ;;  %v3356_v3 = vpop.f32.mrb[235].mxu1 }
 0x3e1   : > { %v3604_v5 = vpop.f32.mrb[219].mxu0 }
 0x3e2   : > { %v9831_v60 = vadd.f32 %v7089_v16, %v3355_v7 }
 0x3e3   : > { %v3359_v18 = vpop.f32.mrb[236].mxu1 }
 0x3e4   : > { %v7101_v8 = vpop.f32.mrb[220].mxu0  ;;  %10548 = vst [vmem:[#allocation21_spill] sm:$0xff] %v9831_v60  ;;  %v3360_v35 = vadd.f32 %v3359_v18, %v9744_v54  ;;  %v3361_v27 = vpop.f32.mrb[237].mxu1 }
 0x3e5   : > { %v3614_v56 = vpop.f32.mrb[221].mxu0 }
 0x3e6   : > { %v9834_v58 = vadd.f32 %v3584_v50, %v3360_v35 }
 0x3e7   : > { %v3364_v11 = vpop.f32.mrb[238].mxu1 }
 0x3e8   : > { %v7104_v63 = vpop.f32.mrb[222].mxu0  ;;  %10549 = vst [vmem:[#allocation22_spill] sm:$0xff] %v9834_v58  ;;  %v3365_v37 = vadd.f32 %v3364_v11, %v9747_v33  ;;  %v3366_v34 = vpop.f32.mrb[239].mxu1 }
 0x3e9   : > { %v3624_v23 = vpop.f32.mrb[223].mxu0 }
 0x3ea   : > { %v9837_v49 = vadd.f32 %v7092_v51, %v3365_v37 }
 0x3eb   : > { %v3369_v17 = vpop.f32.mrb[240].mxu1 }
 0x3ec   : > { %v3845_v20 = vpop.f32.mrb[224].mxu0  ;;  %10550 = vst [vmem:[#allocation23_spill] sm:$0xff] %v9837_v49  ;;  %v3370_v16 = vadd.f32 %v3369_v17, %v9749_v25  ;;  %v3371_v0 = vpop.f32.mrb[241].mxu1 }
 0x3ed   : > { %v3847_v59 = vpop.f32.mrb[225].mxu0 }
 0x3ee   : > { %v9840_v6 = vadd.f32 %v3594_v39, %v3370_v16 }
 0x3ef   : > { %v3374_v15 = vpop.f32.mrb[242].mxu1 }
 0x3f0   : > { %v3850_v9 = vpop.f32.mrb[226].mxu0  ;;  %10551 = vst [vmem:[#allocation24_spill] sm:$0xff] %v9840_v6  ;;  %v3375_v50 = vadd.f32 %v3374_v15, %v9753_v13  ;;  %v3376_v24 = vpop.f32.mrb[243].mxu1 }
 0x3f1   : > { %v3852_v54 = vpop.f32.mrb[227].mxu0 }
 0x3f2   : > { %v9843_v47 = vadd.f32 %v7095_v61, %v3375_v50 }
 0x3f3   : > { %v3379_v29 = vpop.f32.mrb[244].mxu1 }
 0x3f4   : > { %v3855_v4 = vpop.f32.mrb[228].mxu0  ;;  %10552 = vst [vmem:[#allocation25_spill] sm:$0xff] %v9843_v47  ;;  %v3380_v51 = vadd.f32 %v3379_v29, %v9756_v52  ;;  %v3381_v7 = vpop.f32.mrb[245].mxu1 }
 0x3f5   : > { %v3857_v33 = vpop.f32.mrb[229].mxu0 }
 0x3f6   : > { %v9846_v18 = vadd.f32 %v3604_v5, %v3380_v51 }
 0x3f7   : > { %v3384_v35 = vpop.f32.mrb[246].mxu1 }
 0x3f8   : > { %v3860_v3 = vpop.f32.mrb[230].mxu0  ;;  %10553 = vst [vmem:[#allocation26_spill] sm:$0xff] %v9846_v18  ;;  %v3385_v39 = vadd.f32 %v3384_v35, %v9760_v21  ;;  %v3386_v27 = vpop.f32.mrb[247].mxu1 }
 0x3f9   : > { %v3862_v25 = vpop.f32.mrb[231].mxu0  ;;  %v7873_v27 = vmov 1983009808  }
 0x3fa   : > { %v9851_v13 = vadd.f32 %v7098_v36, %v3385_v39 }
 0x3fb   : > { %v3389_v61 = vpop.f32.mrb[248].mxu1 }
 0x3fc   : > { %v9849_v11 = vpop.f32.mrb[232].mxu0  ;;  %10554 = vst [vmem:[#allocation27_spill] sm:$0xff] %v9851_v13  ;;  %v3390_v34 = vadd.f32 %v3389_v61, %v9763_v32  ;;  %v3391_v59 = vpop.f32.mrb[249].mxu1  ;;  %v4464_v61 = vlaneseq }
 0x3fd   : > { %v3867_v37 = vpop.f32.mrb[233].mxu0 }
 0x3fe   : > { %v9854_v52 = vadd.f32 %v3614_v56, %v3390_v34  ;;  %v4462_v37 = vunpack.c.l.s4 %v7873_v27 }
 0x3ff   : > { %v3394_v5 = vpop.f32.mrb[250].mxu1 }
 0x400   : > { %v3870_v17 = vpop.f32.mrb[234].mxu0  ;;  %10555 = vst [vmem:[#allocation28_spill] sm:$0xff] %v9854_v52  ;;  %v3395_v0 = vadd.f32 %v3394_v5, %v9766_v40  ;;  %v3396_v54 = vpop.f32.mrb[251].mxu1 }
 0x401   : > { %v3872_v16 = vpop.f32.mrb[235].mxu0 }
 0x402   : > { %v9859_v21 = vadd.f32 %v7101_v8, %v3395_v0  ;;  %v4465_v0 = vshrl.u32 %v4464_v61, 7 }
 0x403   : > { %v3399_v36 = vpop.f32.mrb[252].mxu1 }
 0x404   : > { %v9857_v15 = vpop.f32.mrb[236].mxu0  ;;  %10556 = vst [vmem:[#allocation29_spill] sm:$0xff] %v9859_v21  ;;  %v3400_v24 = vadd.f32 %v3399_v36, %v9769_v57  ;;  %v3401_v33 = vpop.f32.mrb[253].mxu1 }
 0x405   : > { %v3877_v50 = vpop.f32.mrb[237].mxu0 }
 0x406   : > { %v9864_v32 = vadd.f32 %v3624_v23, %v3400_v24 }
 0x407   : > { %v3404_v51 = vpop.f32.mrb[254].mxu1 }
 0x408   : > { %v9862_v29 = vpop.f32.mrb[238].mxu0  ;;  %10557 = vst [vmem:[#allocation30_spill] sm:$0xff] %v9864_v32  ;;  %v3405_v7 = vadd.f32 %v3404_v51, %v9772_v43  ;;  %v3406_v25 = vpop.f32.mrb[255].mxu1  ;;  %v9877_v43 = vld [vmem:[%s10441_s4] ss:$0 sm:$0xff] }
 0x409   : > { %v3882_v56 = vpop.f32.mrb[239].mxu0 }
 0x40a   : > { %v9869_v35 = vadd.f32 %v7104_v63, %v3405_v7  ;;  %v4463_v63 = vunpack.c.0.s8 %v4462_v37 }
 0x40b   : > { %v7139_v39 = vpop.f32.mrb[0].mxu1 }
 0x40c   : > { %v9867_v40 = vpop.f32.mrb[240].mxu0  ;;  %10558 = vst [vmem:[#allocation31_spill] sm:$0xff] %v9869_v35  ;;  %v4076_v57 = vadd.f32 %v7139_v39, %v3850_v9  ;;  %v4070_v34 = vpop.f32.mrb[1].mxu1  ;;  %v9884_v25 = vsub.s32 %v4463_v63, %v4465_v0 }
 0x40d   : > { %v3887_v8 = vpop.f32.mrb[241].mxu0  ;;  %v4071_v59 = vadd.f32 %v4070_v34, %v3845_v20 }
 0x40e   : > { %v4230_v23 = vadd.f32 %v4076_v57, %v9775_v53 }
 0x40f   : > { %v4229_v54 = vadd.f32 %v4071_v59, %v9777_v12  ;;  %v7142_v50 = vpop.f32.mrb[2].mxu1 }
 0x410   : > { %v9871_v16 = vpop.f32.mrb[242].mxu0  ;;  %v4262_v36 = vmul.f32 0.23570226, %v4230_v23  ;;  %v4086_v24 = vadd.f32 %v7142_v50, %v3860_v3  ;;  %v4080_v9 = vpop.f32.mrb[3].mxu1 }
 0x411   : > { %v3892_v5 = vpop.f32.mrb[243].mxu0  ;;  %v4261_v33 = vmul.f32 0.23570226, %v4229_v54  ;;  %v4081_v20 = vadd.f32 %v4080_v9, %v3855_v4 }
 0x412   : > { %v4301_v53 = vadd.f32 %v9877_v43, %v4262_v36  ;;  %v4232_v51 = vadd.f32 %v4086_v24, %v9780_v30  ;;  %v9894_v5 = vsub.s32 0, %v4465_v0 }
 0x413   : > { %v4300_v8 = vadd.f32 %v9877_v43, %v4261_v33  ;;  %v4231_v39 = vadd.f32 %v4081_v20, %v9782_v41  ;;  %v7145_v12 = vpop.f32.mrb[4].mxu1 }
 0x414   : > { %v9880_v56 = vpop.f32.mrb[244].mxu0  ;;  %vm4333_vm1 = vcmp.gt.f32.partialorder %v4301_v53, 0.0  ;;  %v4365_v27 = vmul.f32 0.2, %v4301_v53  ;;  %v4264_v3 = vmul.f32 0.23570226, %v4232_v51  ;;  %v4096_v37 = vadd.f32 %v7145_v12, %v3870_v17 }
 0x415   : > { %v3897_v7 = vpop.f32.mrb[245].mxu0  ;;  %v4090_v61 = vpop.f32.mrb[5].mxu1  ;;  %vm4332_vm2 = vcmp.gt.f32.partialorder %v4300_v8, 0.0  ;;  %v4364_v4 = vmul.f32 0.2, %v4300_v8 }
 0x416   : > { %v4263_v57 = vmul.f32 0.23570226, %v4231_v39  ;;  %v9889_v34 = vadd.f32 %v4090_v61, %v9849_v11  ;;  %v4397_v59 = vsel %vm4333_vm1, %v4301_v53, %v4365_v27  ;;  %v4303_v23 = vadd.f32 %v9877_v43, %v4264_v3 }
 0x417   : > { %v4234_v41 = vadd.f32 %v4096_v37, %v9785_v1  ;;  %v4477_v54 = vcombine.high %v4397_v59, %v4397_v59  ;;  %v4484_v17 = vrot.slane %v4397_v59, %v9884_v25  ;;  %v4396_v50 = vsel %vm4332_vm2, %v4300_v8, %v4364_v4  ;;  %v9899_v24 = vpop.f32.mrb[6].mxu1 }
 0x418   : > { %v9891_v30 = vpop.f32.mrb[246].mxu0  ;;  %v4302_v36 = vadd.f32 %v9877_v43, %v4263_v57  ;;  %v4460_v11 = vcombine.high %v4396_v50, %v4396_v50  ;;  %v4467_v9 = vrot.slane %v4396_v50, %v9884_v25  ;;  %vm4335_vm3 = vcmp.gt.f32.partialorder %v4303_v23, 0.0  ;;  %v9902_v20 = vpop.f32.mrb[7].mxu1 }
 0x419   : > { %v3902_v63 = vpop.f32.mrb[247].mxu0  ;;  %v4367_v33 = vmul.f32 0.2, %v4303_v23  ;;  %v4491_v0 = vrot.slane %v4477_v54, %v9884_v25  ;;  %v4492_v53 = vcombine.high %v4484_v17, %v4484_v17  ;;  %v6286_v1 = vrot.slane %v4484_v17, 9 }
 0x41a   : > { %vm4334_vm4 = vcmp.gt.f32.partialorder %v4302_v36, 0.0  ;;  %v4474_v7 = vrot.slane %v4460_v11, %v9884_v25  ;;  %v4475_v8 = vcombine.high %v4467_v9, %v4467_v9  ;;  %v6282_v39 = vrot.slane %v4467_v9, 9 }
 0x41b   : > { %v4399_v12 = vsel %vm4335_vm3, %v4303_v23, %v4367_v33  ;;  %v4493_v3 = vcombine.high %v4491_v0, %v4491_v0  ;;  %v6287_v37 = vrot.slane %v4492_v53, 9  ;;  %v6288_v61 = vrot.slane %v4491_v0, 9  ;;  %v9908_v57 = vpop.f32.mrb[8].mxu1 }
 0x41c   : > { %v9905_v51 = vpop.f32.mrb[248].mxu0  ;;  %v5328_v4 = vadd.f32 %v6286_v1, %v4484_v17  ;;  %v4476_v59 = vcombine.high %v4474_v7, %v4474_v7  ;;  %v6283_v63 = vrot.slane %v4475_v8, 9  ;;  %v6284_v54 = vrot.slane %v4474_v7, 9  ;;  %v9910_v35 = vpop.f32.mrb[9].mxu1 }
 0x41d   : > { %v3907_v27 = vpop.f32.mrb[249].mxu0  ;;  %v5324_v50 = vadd.f32 %v6282_v39, %v4467_v9  ;;  %v6289_v32 = vrot.slane %v4493_v3, 9  ;;  %v5329_v21 = vadd.f32 %v6287_v37, %v4492_v53  ;;  %v5330_v52 = vadd.f32 %v6288_v61, %v4491_v0 }
 0x41e   : > { %v4511_v11 = vcombine.high %v4399_v12, %v4399_v12  ;;  %v6285_v23 = vrot.slane %v4476_v59, 9  ;;  %v5325_v33 = vadd.f32 %v6283_v63, %v4475_v8  ;;  %v5326_v27 = vadd.f32 %v6284_v54, %v4474_v7 }
 0x41f   : > { %v4518_v18 = vrot.slane %v4399_v12, %v9884_v25  ;;  %v5331_v1 = vadd.f32 %v6289_v32, %v4493_v3  ;;  %v4366_v6 = vmul.f32 0.2, %v4302_v36  ;;  %v4266_v49 = vmul.f32 0.23570226, %v4234_v41  ;;  %v9916_v9 = vpop.f32.mrb[10].mxu1 }
 0x420   : > { %v9912_v13 = vpop.f32.mrb[250].mxu0  ;;  %v4525_v47 = vrot.slane %v4511_v11, %v9884_v25  ;;  %v5327_v39 = vadd.f32 %v6285_v23, %v4476_v59  ;;  %v9918_v37 = vpop.f32.mrb[11].mxu1 }
 0x421   : > { %v3912_v17 = vpop.f32.mrb[251].mxu0  ;;  %v4526_v58 = vcombine.high %v4518_v18, %v4518_v18  ;;  %v5392_v53 = vadd.f32 %v5328_v4, %v4518_v18  ;;  %v6350_v0 = vrot.slane %v4518_v18, 9  ;;  %v4398_v7 = vsel %vm4334_vm4, %v4302_v36, %v4366_v6 }
 0x422   : > { %v4527_v61 = vcombine.high %v4525_v47, %v4525_v47  ;;  %v5394_v60 = vadd.f32 %v5330_v52, %v4525_v47  ;;  %v6352_v8 = vrot.slane %v4525_v47, 9  ;;  %v4494_v54 = vcombine.high %v4398_v7, %v4398_v7 }
 0x423   : > { %v5393_v32 = vadd.f32 %v5329_v21, %v4526_v58  ;;  %v6351_v3 = vrot.slane %v4526_v58, 9  ;;  %v5648_v63 = vadd.f32 %v6350_v0, %v5392_v53  ;;  %v4501_v4 = vrot.slane %v4398_v7, %v9884_v25  ;;  %v9924_v18 = vpop.f32.mrb[12].mxu1 }
 0x424   : > { %v9921_v12 = vpop.f32.mrb[252].mxu0  ;;  %v5395_v11 = vadd.f32 %v5331_v1, %v4527_v61  ;;  %v6353_v17 = vrot.slane %v4527_v61, 9  ;;  %v5650_v59 = vadd.f32 %v6352_v8, %v5394_v60  ;;  %v4508_v47 = vrot.slane %v4494_v54, %v9884_v25  ;;  %v9930_v52 = vpop.f32.mrb[13].mxu1 }
 0x425   : > { %v3917_v41 = vpop.f32.mrb[253].mxu0  ;;  %v5649_v23 = vadd.f32 %v6351_v3, %v5393_v32  ;;  %v9926_v31 = vmul.f32 0.25, %v5648_v63  ;;  %v4305_v6 = vadd.f32 %v9877_v43, %v4266_v49  ;;  %v4509_v36 = vcombine.high %v4501_v4, %v4501_v4 }
 0x426   : > { %v5651_v58 = vadd.f32 %v6353_v17, %v5395_v11  ;;  %v9932_v21 = vmul.f32 0.25, %v5650_v59  ;;  %v5388_v1 = vadd.f32 %v5324_v50, %v4501_v4  ;;  %v4510_v61 = vcombine.high %v4508_v47, %v4508_v47 }
 0x427   : > { %v9936_v53 = vmul.f32 0.25, %v5649_v23  ;;  %v5390_v8 = vadd.f32 %v5326_v27, %v4508_v47  ;;  %v5389_v3 = vadd.f32 %v5325_v33, %v4509_v36  ;;  %v6346_v63 = vrot.slane %v4501_v4, 9  ;;  %v9944_v50 = vpop.f32.mrb[14].mxu1 }
 0x428   : > { %v9934_v60 = vpop.f32.mrb[254].mxu0  ;;  %v9940_v49 = vmul.f32 0.25, %v5651_v58  ;;  %v5391_v41 = vadd.f32 %v5327_v39, %v4510_v61  ;;  %v6347_v11 = vrot.slane %v4509_v36, 9  ;;  %v6348_v17 = vrot.slane %v4508_v47, 9  ;;  %v9948_v27 = vpop.f32.mrb[15].mxu1 }
 0x429   : > { %v3922_v7 = vpop.f32.mrb[255].mxu0  ;;  %v6349_v23 = vrot.slane %v4510_v61, 9  ;;  %v5644_v58 = vadd.f32 %v6346_v63, %v5388_v1  ;;  %vm4337_vm10 = vcmp.gt.f32.partialorder %v4305_v6, 0.0  ;;  %v4369_v32 = vmul.f32 0.2, %v4305_v6 }
 0x42a   : > { %v5645_v4 = vadd.f32 %v6347_v11, %v5389_v3  ;;  %v5646_v7 = vadd.f32 %v6348_v17, %v5390_v8  ;;  %v4233_v39 = vadd.f32 %v9889_v34, %v9787_v48  ;;  %v4106_v61 = vadd.f32 %v9899_v24, %v9862_v29 }
 0x42b   : > { %v5647_v36 = vadd.f32 %v6349_v23, %v5391_v41  ;;  %v5708_v54 = vmul.f32 0.25, %v5644_v58  ;;  %v4101_v1 = vadd.f32 %v9902_v20, %v9857_v15  ;;  %v9960_v63 = vpop.f32.mrb[16].mxu1  ;;  %v4401_v11 = vsel %vm4337_vm10, %v4305_v6, %v4369_v32 }
 0x42c   : > { %v9952_v33 = vpop.f32.mrb[0].mxu0  ;;  %v5709_v3 = vmul.f32 0.25, %v5645_v4  ;;  %v5710_v8 = vmul.f32 0.25, %v5646_v7  ;;  %v4265_v17 = vmul.f32 0.23570226, %v4233_v39  ;;  %v9963_v59 = vpop.f32.mrb[17].mxu1  ;;  %v4545_v41 = vcombine.high %v4401_v11, %v4401_v11 }
 0x42d   : > { %v3927_v47 = vpop.f32.mrb[1].mxu0  ;;  %v5711_v48 = vmul.f32 0.25, %v5647_v36  ;;  %v5839_v34 = vrot.slane %v5708_v54, %v9894_v5  ;;  %v4552_v23 = vrot.slane %v4401_v11, %v9884_v25  ;;  %v4236_v20 = vadd.f32 %v4106_v61, %v9790_v28 }
 0x42e   : > { %v5843_v15 = vrot.slane %v5709_v3, %v9894_v5  ;;  %v5847_v29 = vrot.slane %v5710_v8, %v9894_v5  ;;  %v4304_v24 = vadd.f32 %v9877_v43, %v4265_v17  ;;  %v4559_v54 = vrot.slane %v4545_v41, %v9884_v25 }
 0x42f   : > { %v5851_v32 = vrot.slane %v5711_v48, %v9894_v5  ;;  %v4560_v4 = vcombine.high %v4552_v23, %v4552_v23  ;;  %v6294_v7 = vrot.slane %v4552_v23, 9  ;;  %v9976_v39 = vpop.f32.mrb[18].mxu1  ;;  %v4268_v3 = vmul.f32 0.23570226, %v4236_v20 }
 0x430   : > { %v9967_v58 = vpop.f32.mrb[2].mxu0  ;;  %10559 = vst [vmem:[#allocation32_spill] sm:$0xff] %v9976_v39  ;;  %v6093_v47 = vsel %vm6092_vm5, %v5843_v15, %v5839_v34  ;;  %vm4336_vm13 = vcmp.gt.f32.partialorder %v4304_v24, 0.0  ;;  %v4368_v36 = vmul.f32 0.2, %v4304_v24  ;;  %v9979_v11 = vpop.f32.mrb[19].mxu1  ;;  %v4561_v61 = vcombine.high %v4559_v54, %v4559_v54 }
 0x431   : > { %v3932_v6 = vpop.f32.mrb[3].mxu0  ;;  %10560 = vst [vmem:[#allocation33_spill] sm:$0xff] %v9979_v11  ;;  %v6095_v28 = vsel %vm6094_vm6, %v5847_v29, %v6093_v47  ;;  %v6295_v8 = vrot.slane %v4560_v4, 9  ;;  %v6296_v17 = vrot.slane %v4559_v54, 9  ;;  %v4307_v34 = vadd.f32 %v9877_v43, %v4268_v3 }
 0x432   : > { %v6097_v41 = vsel %vm6096_vm7, %v5851_v32, %v6095_v28  ;;  %v5336_v6 = vadd.f32 %v6294_v7, %v4552_v23  ;;  %v4400_v0 = vsel %vm4336_vm13, %v4304_v24, %v4368_v36  ;;  %v10561_v20 = vrot.slane %v9926_v31, %v9894_v5 }
 0x433   : > { %v6297_v39 = vrot.slane %v4561_v61, 9  ;;  %v5337_v62 = vadd.f32 %v6295_v8, %v4560_v4  ;;  %v5338_v29 = vadd.f32 %v6296_v17, %v4559_v54  ;;  %v9994_v47 = vpop.f32.mrb[20].mxu1  ;;  %v10562_v11 = vrot.slane %v9936_v53, %v9894_v5 }
 0x434   : > { %v9986_v48 = vpop.f32.mrb[4].mxu0  ;;  %v6099_v19 = vsel %vm6098_vm8, %v10561_v20, %v6097_v41  ;;  %v4528_v24 = vcombine.high %v4400_v0, %v4400_v0  ;;  %v4535_v32 = vrot.slane %v4400_v0, %v9884_v25  ;;  %vm4339_vm14 = vcmp.gt.f32.partialorder %v4307_v34, 0.0  ;;  %v10001_v7 = vpop.f32.mrb[21].mxu1 }
 0x435   : > { %v3937_v15 = vpop.f32.mrb[5].mxu0  ;;  %v6101_v23 = vsel %vm6100_vm9, %v10562_v11, %v6099_v19  ;;  %v10563_v31 = vrot.slane %v9932_v21, %v9894_v5  ;;  %v5339_v54 = vadd.f32 %v6297_v39, %v4561_v61  ;;  %v4371_v36 = vmul.f32 0.2, %v4307_v34 }
 0x436   : > { %v4235_v3 = vadd.f32 %v4101_v1, %v9792_v44  ;;  %v10564_v19 = vrot.slane %v9940_v49, %v9894_v5  ;;  %v4542_v0 = vrot.slane %v4528_v24, %v9884_v25  ;;  %v4543_v11 = vcombine.high %v4535_v32, %v4535_v32 }
 0x437   : > { %v6103_v4 = vsel %vm6102_vm11, %v10563_v31, %v6101_v23  ;;  %v6290_v8 = vrot.slane %v4535_v32, 9  ;;  %v4403_v21 = vsel %vm4339_vm14, %v4307_v34, %v4371_v36  ;;  %v4116_v44 = vadd.f32 %v9908_v57, %v9871_v16  ;;  %v10023_v49 = vpop.f32.mrb[22].mxu1 }
 0x438   : > { %v10008_v28 = vpop.f32.mrb[6].mxu0  ;;  %v6105_v53 = vsel %vm6104_vm12, %v10564_v19, %v6103_v4  ;;  %v4267_v39 = vmul.f32 0.23570226, %v4235_v3  ;;  %v4111_v1 = vadd.f32 %v9910_v35, %v9867_v40  ;;  %10565 = vst [vmem:[#allocation34_spill] sm:$0xff] %v10023_v49  ;;  %v4544_v61 = vcombine.high %v4542_v0, %v4542_v0  ;;  %v10025_v23 = vpop.f32.mrb[23].mxu1 }
 0x439   : > { %v3942_v17 = vpop.f32.mrb[7].mxu0  ;;  %6163 = vst [vmem:[%s10016_s7] sm:$0xff] %v6105_v53  ;;  %v6291_v41 = vrot.slane %v4543_v11, 9  ;;  %v6292_v15 = vrot.slane %v4542_v0, 9  ;;  %v5332_v20 = vadd.f32 %v6290_v8, %v4535_v32  ;;  %10566 = vst [vmem:[#allocation35_spill] sm:$0xff] %v10025_v23  ;;  %v4579_v24 = vcombine.high %v4403_v21, %v4403_v21 }
 0x43a   : > { %v4586_v31 = vrot.slane %v4403_v21, %v9884_v25  ;;  %v4306_v34 = vadd.f32 %v9877_v43, %v4267_v39  ;;  %v4238_v4 = vadd.f32 %v4116_v44, %v9795_v22  ;;  %v6293_v16 = vrot.slane %v4544_v61, 9 }
 0x43b   : > { %v5333_v57 = vadd.f32 %v6291_v41, %v4543_v11  ;;  %v5334_v40 = vadd.f32 %v6292_v15, %v4542_v0  ;;  %v4237_v35 = vadd.f32 %v4111_v1, %v9797_v45  ;;  %v4593_v19 = vrot.slane %v4579_v24, %v9884_v25  ;;  %v10034_v17 = vpop.f32.mrb[24].mxu1 }
 0x43c   : > { %v10030_v36 = vpop.f32.mrb[8].mxu0  ;;  %v4594_v32 = vcombine.high %v4586_v31, %v4586_v31  ;;  %v5400_v53 = vadd.f32 %v5336_v6, %v4586_v31  ;;  %v6358_v8 = vrot.slane %v4586_v31, 9  ;;  %10567 = vst [vmem:[#allocation13_spill] sm:$0xff] %v10034_v17  ;;  %v5335_v21 = vadd.f32 %v6293_v16, %v4544_v61  ;;  %v10036_v22 = vpop.f32.mrb[25].mxu1 }
 0x43d   : > { %v3947_v3 = vpop.f32.mrb[9].mxu0  ;;  %vm4338_vm15 = vcmp.gt.f32.partialorder %v4306_v34, 0.0  ;;  %v4370_v39 = vmul.f32 0.2, %v4306_v34  ;;  %v4270_v49 = vmul.f32 0.23570226, %v4238_v4  ;;  %v4595_v44 = vcombine.high %v4593_v19, %v4593_v19 }
 0x43e   : > { %10568 = vst [vmem:[#allocation14_spill] sm:$0xff] %v10036_v22  ;;  %v5401_v23 = vadd.f32 %v5337_v62, %v4594_v32  ;;  %v5402_v11 = vadd.f32 %v5338_v29, %v4593_v19  ;;  %v6359_v0 = vrot.slane %v4594_v32, 9  ;;  %v6360_v45 = vrot.slane %v4593_v19, 9 }
 0x43f   : > { %v5656_v1 = vadd.f32 %v6358_v8, %v5400_v53  ;;  %v4402_v15 = vsel %vm4338_vm15, %v4306_v34, %v4370_v39  ;;  %v4309_v6 = vadd.f32 %v9877_v43, %v4270_v49  ;;  %v5403_v31 = vadd.f32 %v5339_v54, %v4595_v44  ;;  %v10041_v17 = vpop.f32.mrb[26].mxu1 }
 0x440   : > { %v10038_v41 = vpop.f32.mrb[10].mxu0  ;;  %v6361_v3 = vrot.slane %v4595_v44, 9  ;;  %v5657_v61 = vadd.f32 %v6359_v0, %v5401_v23  ;;  %v4562_v16 = vcombine.high %v4402_v15, %v4402_v15  ;;  %10569 = vst [vmem:[#allocation15_spill] sm:$0xff] %v10041_v17  ;;  %v5658_v4 = vadd.f32 %v6360_v45, %v5402_v11  ;;  %v10046_v29 = vpop.f32.mrb[27].mxu1 }
 0x441   : > { %v3952_v24 = vpop.f32.mrb[11].mxu0  ;;  %v10043_v22 = vmul.f32 0.25, %v5656_v1  ;;  %v4569_v62 = vrot.slane %v4402_v15, %v9884_v25  ;;  %vm4341_vm0 = vcmp.gt.f32.partialorder %v4309_v6, 0.0  ;;  %10570 = vst [vmem:[#allocation16_spill] sm:$0xff] %v10046_v29  ;;  %v4373_v34 = vmul.f32 0.2, %v4309_v6 }
 0x442   : > { %v5659_v19 = vadd.f32 %v6361_v3, %v5403_v31  ;;  %v10048_v32 = vmul.f32 0.25, %v5657_v61  ;;  %v4576_v49 = vrot.slane %v4562_v16, %v9884_v25  ;;  %v10053_v23 = vmul.f32 0.25, %v5658_v4 }
 0x443   : > { %v5887_v53 = vrot.slane %v10043_v22, %v9894_v5  ;;  %v4577_v8 = vcombine.high %v4569_v62, %v4569_v62  ;;  %v5396_v39 = vadd.f32 %v5332_v20, %v4569_v62  ;;  %v10061_v15 = vpop.f32.mrb[28].mxu1  ;;  %v6354_v3 = vrot.slane %v4569_v62, 9 }
 0x444   : > { %v10051_v54 = vpop.f32.mrb[12].mxu0  ;;  %v10057_v11 = vmul.f32 0.25, %v5659_v19  ;;  %v5891_v0 = vrot.slane %v10048_v32, %v9894_v5  ;;  %v4578_v45 = vcombine.high %v4576_v49, %v4576_v49  ;;  %v5398_v1 = vadd.f32 %v5334_v40, %v4576_v49  ;;  %10572 = vst [vmem:[#allocation36_spill] sm:$0xff] %v10061_v15  ;;  %v10065_v16 = vpop.f32.mrb[29].mxu1 }
 0x445   : > { %10571 = vst [vmem:[#allocation17_spill] sm:$0xff] %v10051_v54  ;;  %v3957_v44 = vpop.f32.mrb[13].mxu0  ;;  %v5895_v24 = vrot.slane %v10053_v23, %v9894_v5  ;;  %v5397_v31 = vadd.f32 %v5333_v57, %v4577_v8  ;;  %v6355_v61 = vrot.slane %v4577_v8, 9  ;;  %10573 = vst [vmem:[#allocation37_spill] sm:$0xff] %v10065_v16  ;;  %v6356_v4 = vrot.slane %v4576_v49, 9 }
 0x446   : > { %v5899_v20 = vrot.slane %v10057_v11, %v9894_v5  ;;  %v5399_v22 = vadd.f32 %v5335_v21, %v4578_v45  ;;  %v6357_v19 = vrot.slane %v4578_v45, 9  ;;  %v5652_v32 = vadd.f32 %v6354_v3, %v5396_v39 }
 0x447   : > { %v5653_v40 = vadd.f32 %v6355_v61, %v5397_v31  ;;  %v4405_v15 = vsel %vm4341_vm0, %v4309_v6, %v4373_v34  ;;  %v4269_v17 = vmul.f32 0.23570226, %v4237_v35  ;;  %v5654_v23 = vadd.f32 %v6356_v4, %v5398_v1 }
 0x448   : > { %v10069_v44 = vpop.f32.mrb[14].mxu0  ;;  %v5655_v57 = vadd.f32 %v6357_v19, %v5399_v22  ;;  %v4613_v62 = vcombine.high %v4405_v15, %v4405_v15  ;;  %v4620_v8 = vrot.slane %v4405_v15, %v9884_v25  ;;  %v5716_v16 = vmul.f32 0.25, %v5652_v32 }
 0x449   : > { %v3962_v29 = vpop.f32.mrb[15].mxu0  ;;  %v5717_v54 = vmul.f32 0.25, %v5653_v40  ;;  %v4308_v11 = vadd.f32 %v9877_v43, %v4269_v17  ;;  %v4126_v21 = vadd.f32 %v9916_v9, %v9891_v30  ;;  %v5718_v49 = vmul.f32 0.25, %v5654_v23 }
 0x44a   : > { %v5719_v45 = vmul.f32 0.25, %v5655_v57  ;;  %v4627_v39 = vrot.slane %v4613_v62, %v9884_v25  ;;  %v4628_v31 = vcombine.high %v4620_v8, %v4620_v8  ;;  %v5871_v35 = vrot.slane %v5716_v16, %v9894_v5 }
 0x44b   : > { %v5875_v29 = vrot.slane %v5717_v54, %v9894_v5  ;;  %v6302_v34 = vrot.slane %v4620_v8, 9  ;;  %vm4340_vm1 = vcmp.gt.f32.partialorder %v4308_v11, 0.0  ;;  %v5879_v15 = vrot.slane %v5718_v49, %v9894_v5 }
 0x44c   : > { %v10077_v6 = vpop.f32.mrb[16].mxu0  ;;  %v5883_v17 = vrot.slane %v5719_v45, %v9894_v5  ;;  %v4629_v3 = vcombine.high %v4627_v39, %v4627_v39  ;;  %v6303_v30 = vrot.slane %v4628_v31, 9  ;;  %v6304_v61 = vrot.slane %v4627_v39, 9 }
 0x44d   : > { %v3967_v1 = vpop.f32.mrb[17].mxu0  ;;  %v6106_v9 = vsel %vm6092_vm5, %v5875_v29, %v5871_v35  ;;  %v5344_v22 = vadd.f32 %v6302_v34, %v4620_v8  ;;  %v4372_v4 = vmul.f32 0.2, %v4308_v11  ;;  %v4240_v54 = vadd.f32 %v4126_v21, %v9800_v26  ;;  %v10104_v34 = vpop.f32.mrb[30].mxu1 }
 0x44e   : > { %v6107_v19 = vsel %vm6094_vm6, %v5879_v15, %v6106_v9  ;;  %v6305_v32 = vrot.slane %v4629_v3, 9  ;;  %v10085_v16 = vadd.f32 %v6303_v30, %v4628_v31  ;;  %v10091_v57 = vadd.f32 %v6304_v61, %v4627_v39 }
 0x44f   : > { %v6108_v23 = vsel %vm6096_vm7, %v5883_v17, %v6107_v19  ;;  %v4404_v62 = vsel %vm4340_vm1, %v4308_v11, %v4372_v4  ;;  %v4121_v49 = vadd.f32 %v9918_v37, %v9880_v56  ;;  %v4272_v21 = vmul.f32 0.23570226, %v4240_v54  ;;  %v10110_v17 = vpop.f32.mrb[31].mxu1 }
 0x450   : > { %v10088_v40 = vpop.f32.mrb[18].mxu0  ;;  %v6109_v45 = vsel %vm6098_vm8, %v5887_v53, %v6108_v23  ;;  %v10097_v35 = vadd.f32 %v6305_v32, %v4629_v3  ;;  %v4596_v31 = vcombine.high %v4404_v62, %v4404_v62  ;;  %v4603_v29 = vrot.slane %v4404_v62, %v9884_v25 }
 0x451   : > { %v3972_v8 = vpop.f32.mrb[19].mxu0  ;;  %v6110_v26 = vsel %vm6100_vm9, %v5891_v0, %v6109_v45  ;;  %v4239_v39 = vadd.f32 %v4121_v49, %v9802_v2  ;;  %v4136_v11 = vadd.f32 %v9924_v18, %v9912_v13  ;;  %v4311_v3 = vadd.f32 %v9877_v43, %v4272_v21 }
 0x452   : > { %v6111_v56 = vsel %vm6102_vm11, %v5895_v24, %v6110_v26  ;;  %v4610_v37 = vrot.slane %v4596_v31, %v9884_v25  ;;  %v4611_v53 = vcombine.high %v4603_v29, %v4603_v29  ;;  %v6298_v1 = vrot.slane %v4603_v29, 9 }
 0x453   : > { %v6112_v0 = vsel %vm6104_vm12, %v5899_v20, %v6111_v56  ;;  %v4271_v2 = vmul.f32 0.23570226, %v4239_v39  ;;  %v4242_v30 = vadd.f32 %v4136_v11, %v9805_v46  ;;  %vm4343_vm2 = vcmp.gt.f32.partialorder %v4311_v3, 0.0 }
 0x454   : > { %v10108_v15 = vpop.f32.mrb[20].mxu0  ;;  %6164 = vst [vmem:[%s10016_s7 + $0x8] sm:$0xff] %v6112_v0  ;;  %v4612_v18 = vcombine.high %v4610_v37, %v4610_v37  ;;  %v6299_v9 = vrot.slane %v4611_v53, 9  ;;  %v6300_v24 = vrot.slane %v4610_v37, 9  ;;  %v5340_v61 = vadd.f32 %v6298_v1, %v4603_v29 }
 0x455   : > { %v3977_v13 = vpop.f32.mrb[21].mxu0  ;;  %v4375_v4 = vmul.f32 0.2, %v4311_v3  ;;  %v4310_v19 = vadd.f32 %v9877_v43, %v4271_v2  ;;  %v4274_v32 = vmul.f32 0.23570226, %v4242_v30  ;;  %v4131_v20 = vadd.f32 %v9930_v52, %v9905_v51 }
 0x456   : > { %v6301_v54 = vrot.slane %v4612_v18, 9  ;;  %v5341_v23 = vadd.f32 %v6299_v9, %v4611_v53  ;;  %v5342_v62 = vadd.f32 %v6300_v24, %v4610_v37  ;;  %v10126_v51 = vadd.f32 %v9944_v50, %v9934_v60 }
 0x457   : > { %v4407_v46 = vsel %vm4343_vm2, %v4311_v3, %v4375_v4  ;;  %vm4342_vm3 = vcmp.gt.f32.partialorder %v4310_v19, 0.0  ;;  %v4374_v8 = vmul.f32 0.2, %v4310_v19  ;;  %v4313_v45 = vadd.f32 %v9877_v43, %v4274_v32 }
 0x458   : > { %v10119_v49 = vpop.f32.mrb[22].mxu0  ;;  %v5343_v29 = vadd.f32 %v6301_v54, %v4612_v18  ;;  %v4647_v26 = vcombine.high %v4407_v46, %v4407_v46  ;;  %v4654_v21 = vrot.slane %v4407_v46, %v9884_v25  ;;  %v4241_v39 = vadd.f32 %v4131_v20, %v9807_v55 }
 0x459   : > { %v3982_v31 = vpop.f32.mrb[23].mxu0  ;;  %v4406_v11 = vsel %vm4342_vm3, %v4310_v19, %v4374_v8  ;;  %vm4345_vm4 = vcmp.gt.f32.partialorder %v4313_v45, 0.0  ;;  %v4377_v56 = vmul.f32 0.2, %v4313_v45 }
 0x45a   : > { %v4661_v52 = vrot.slane %v4647_v26, %v9884_v25  ;;  %v4662_v37 = vcombine.high %v4654_v21, %v4654_v21  ;;  %v5408_v53 = vadd.f32 %v5344_v22, %v4654_v21  ;;  %v6366_v1 = vrot.slane %v4654_v21, 9 }
 0x45b   : > { %v4630_v3 = vcombine.high %v4406_v11, %v4406_v11  ;;  %v4637_v2 = vrot.slane %v4406_v11, %v9884_v25  ;;  %v4409_v30 = vsel %vm4345_vm4, %v4313_v45, %v4377_v56  ;;  %v4273_v13 = vmul.f32 0.23570226, %v4241_v39 }
 0x45c   : > { %v10129_v0 = vpop.f32.mrb[24].mxu0  ;;  %v4663_v18 = vcombine.high %v4661_v52, %v4661_v52  ;;  %v5409_v9 = vadd.f32 %v10085_v16, %v4662_v37  ;;  %v5410_v24 = vadd.f32 %v10091_v57, %v4661_v52  ;;  %v6367_v60 = vrot.slane %v4662_v37, 9 }
 0x45d   : > { %v3987_v55 = vpop.f32.mrb[25].mxu0  ;;  %v6368_v50 = vrot.slane %v4661_v52, 9  ;;  %v5664_v4 = vadd.f32 %v6366_v1, %v5408_v53  ;;  %v4644_v19 = vrot.slane %v4630_v3, %v9884_v25  ;;  %v4645_v22 = vcombine.high %v4637_v2, %v4637_v2 }
 0x45e   : > { %v5411_v32 = vadd.f32 %v10097_v35, %v4663_v18  ;;  %v6369_v54 = vrot.slane %v4663_v18, 9  ;;  %v5665_v20 = vadd.f32 %v6367_v60, %v5409_v9  ;;  %v5404_v46 = vadd.f32 %v5340_v61, %v4637_v2 }
 0x45f   : > { %v5666_v45 = vadd.f32 %v6368_v50, %v5410_v24  ;;  %v5728_v31 = vmul.f32 0.25, %v5664_v4  ;;  %v4646_v26 = vcombine.high %v4644_v19, %v4644_v19  ;;  %v5405_v21 = vadd.f32 %v5341_v23, %v4645_v22 }
 0x460   : > { %v10136_v8 = vpop.f32.mrb[26].mxu0  ;;  %v5667_v39 = vadd.f32 %v6369_v54, %v5411_v32  ;;  %v5729_v57 = vmul.f32 0.25, %v5665_v20  ;;  %v5406_v11 = vadd.f32 %v5342_v62, %v4644_v19  ;;  %v6362_v56 = vrot.slane %v4637_v2, 9 }
 0x461   : > { %v3992_v16 = vpop.f32.mrb[27].mxu0  ;;  %v5730_v52 = vmul.f32 0.25, %v5666_v45  ;;  %v5919_v37 = vrot.slane %v5728_v31, %v9894_v5  ;;  %v5407_v53 = vadd.f32 %v5343_v29, %v4646_v26  ;;  %v6363_v1 = vrot.slane %v4645_v22, 9 }
 0x462   : > { %v5731_v35 = vmul.f32 0.25, %v5667_v39  ;;  %v5923_v3 = vrot.slane %v5729_v57, %v9894_v5  ;;  %v6364_v61 = vrot.slane %v4644_v19, 9  ;;  %v6365_v55 = vrot.slane %v4646_v26, 9 }
 0x463   : > { %v5927_v9 = vrot.slane %v5730_v52, %v9894_v5  ;;  %v5660_v23 = vadd.f32 %v6362_v56, %v5404_v46  ;;  %v5661_v24 = vadd.f32 %v6363_v1, %v5405_v21  ;;  %v4681_v60 = vcombine.high %v4409_v30, %v4409_v30 }
 0x464   : > { %v10140_v18 = vpop.f32.mrb[28].mxu0  ;;  %v5931_v62 = vrot.slane %v5731_v35, %v9894_v5  ;;  %v5662_v2 = vadd.f32 %v6364_v61, %v5406_v11  ;;  %v5663_v4 = vadd.f32 %v6365_v55, %v5407_v53  ;;  %v4688_v29 = vrot.slane %v4409_v30, %v9884_v25 }
 0x465   : > { %v3997_v50 = vpop.f32.mrb[29].mxu0  ;;  %v5724_v22 = vmul.f32 0.25, %v5660_v23  ;;  %v5725_v32 = vmul.f32 0.25, %v5661_v24  ;;  %v4695_v54 = vrot.slane %v4681_v60, %v9884_v25  ;;  %v4312_v19 = vadd.f32 %v9877_v43, %v4273_v13 }
 0x466   : > { %v5726_v20 = vmul.f32 0.25, %v5662_v2  ;;  %v5727_v45 = vmul.f32 0.25, %v5663_v4  ;;  %v4696_v31 = vcombine.high %v4688_v29, %v4688_v29  ;;  %v6310_v26 = vrot.slane %v4688_v29, 9 }
 0x467   : > { %v5903_v21 = vrot.slane %v5724_v22, %v9894_v5  ;;  %v5907_v16 = vrot.slane %v5725_v32, %v9894_v5  ;;  %v4697_v39 = vcombine.high %v4695_v54, %v4695_v54  ;;  %v6312_v57 = vrot.slane %v4695_v54, 9 }
 0x468   : > { %v10147_v46 = vpop.f32.mrb[30].mxu0  ;;  %v5911_v30 = vrot.slane %v5726_v20, %v9894_v5  ;;  %v5915_v56 = vrot.slane %v5727_v45, %v9894_v5  ;;  %v6311_v52 = vrot.slane %v4696_v31, 9  ;;  %v5352_v53 = vadd.f32 %v6310_v26, %v4688_v29 }
 0x469   : > { %v4002_v11 = vpop.f32.mrb[31].mxu0  ;;  %v6113_v13 = vsel %vm6092_vm5, %v5907_v16, %v5903_v21  ;;  %v6313_v1 = vrot.slane %v4697_v39, 9  ;;  %v5354_v35 = vadd.f32 %v6312_v57, %v4695_v54  ;;  %vm4344_vm10 = vcmp.gt.f32.partialorder %v4312_v19, 0.0 }
 0x46a   : > { %v6114_v61 = vsel %vm6094_vm6, %v5911_v30, %v6113_v13  ;;  %v5353_v55 = vadd.f32 %v6311_v52, %v4696_v31  ;;  %v4376_v23 = vmul.f32 0.2, %v4312_v19  ;;  %v4244_v24 = vadd.f32 %v10126_v51, %v9813_v10 }
 0x46b   : > { %v6115_v60 = vsel %vm6096_vm7, %v5915_v56, %v6114_v61  ;;  %v5355_v50 = vadd.f32 %v6313_v1, %v4697_v39  ;;  %v4141_v2 = vadd.f32 %v9948_v27, %v9921_v12  ;;  %v4151_v4 = vadd.f32 %v9963_v59, %v9952_v33 }
 0x46c   : > { %v6116_v29 = vsel %vm6098_vm8, %v5919_v37, %v6115_v60  ;;  %v4408_v22 = vsel %vm4344_vm10, %v4312_v19, %v4376_v23  ;;  %v4276_v32 = vmul.f32 0.23570226, %v4244_v24  ;;  %v4156_v54 = vadd.f32 %v9960_v63, %v9967_v58  ;;  %v10575_v60 = vld [vmem:[#allocation18_spill] sm:$0xff] }
 0x46d   : > { %v6117_v20 = vsel %vm6100_vm9, %v5923_v3, %v6116_v29  ;;  %v4664_v10 = vcombine.high %v4408_v22, %v4408_v22  ;;  %v4671_v51 = vrot.slane %v4408_v22, %v9884_v25  ;;  %v4243_v45 = vadd.f32 %v4141_v2, %v9810_v38  ;;  %v10574_v38 = vld [vmem:[#allocation33_spill] sm:$0xff] }
 0x46e   : > { %v6118_v12 = vsel %vm6102_vm11, %v5927_v9, %v6117_v20  ;;  %v4315_v27 = vadd.f32 %v9877_v43, %v4276_v32  ;;  %v4245_v59 = vadd.f32 %v4151_v4, %v9816_v42  ;;  %v4246_v33 = vadd.f32 %v4156_v54, %v9819_v14 }
 0x46f   : > { %v6119_v37 = vsel %vm6104_vm12, %v5931_v62, %v6118_v12  ;;  %v4678_v19 = vrot.slane %v4664_v10, %v9884_v25  ;;  %v4679_v63 = vcombine.high %v4671_v51, %v4671_v51  ;;  %v6306_v58 = vrot.slane %v4671_v51, 9 }
 0x470   : > { %6165 = vst [vmem:[%s10016_s7 + $0x10] sm:$0xff] %v6119_v37  ;;  %vm4347_vm13 = vcmp.gt.f32.partialorder %v4315_v27, 0.0  ;;  %v4379_v3 = vmul.f32 0.2, %v4315_v27  ;;  %v4275_v31 = vmul.f32 0.23570226, %v4243_v45  ;;  %v4161_v26 = vadd.f32 %v10574_v38, %v9986_v48 }
 0x471   : > { %v4680_v9 = vcombine.high %v4678_v19, %v4678_v19  ;;  %v6307_v21 = vrot.slane %v4679_v63, 9  ;;  %v6308_v16 = vrot.slane %v4678_v19, 9  ;;  %v5348_v39 = vadd.f32 %v6306_v58, %v4671_v51 }
 0x472   : > { %v4411_v42 = vsel %vm4347_vm13, %v4315_v27, %v4379_v3  ;;  %v4314_v14 = vadd.f32 %v9877_v43, %v4275_v31  ;;  %v4277_v57 = vmul.f32 0.23570226, %v4245_v59  ;;  %v4278_v62 = vmul.f32 0.23570226, %v4246_v33 }
 0x473   : > { %v6309_v11 = vrot.slane %v4680_v9, 9  ;;  %v5349_v30 = vadd.f32 %v6307_v21, %v4679_v63  ;;  %v5350_v56 = vadd.f32 %v6308_v16, %v4678_v19  ;;  %v4715_v52 = vcombine.high %v4411_v42, %v4411_v42 }
 0x474   : > { %v4722_v13 = vrot.slane %v4411_v42, %v9884_v25  ;;  %vm4346_vm14 = vcmp.gt.f32.partialorder %v4314_v14, 0.0  ;;  %v4378_v1 = vmul.f32 0.2, %v4314_v14  ;;  %v4316_v61 = vadd.f32 %v9877_v43, %v4277_v57 }
 0x475   : > { %v5351_v48 = vadd.f32 %v6309_v11, %v4680_v9  ;;  %v4729_v23 = vrot.slane %v4715_v52, %v9884_v25  ;;  %v4317_v24 = vadd.f32 %v9877_v43, %v4278_v62  ;;  %v4247_v2 = vadd.f32 %v4161_v26, %v10575_v60 }
 0x476   : > { %v4730_v4 = vcombine.high %v4722_v13, %v4722_v13  ;;  %v5416_v29 = vadd.f32 %v5352_v53, %v4722_v13  ;;  %v6374_v22 = vrot.slane %v4722_v13, 9  ;;  %v4410_v32 = vsel %vm4346_vm14, %v4314_v14, %v4378_v1 }
 0x477   : > { %v4731_v54 = vcombine.high %v4729_v23, %v4729_v23  ;;  %v5418_v20 = vadd.f32 %v5354_v35, %v4729_v23  ;;  %v6376_v10 = vrot.slane %v4729_v23, 9  ;;  %v4698_v51 = vcombine.high %v4410_v32, %v4410_v32 }
 0x478   : > { %v5417_v45 = vadd.f32 %v5353_v55, %v4730_v4  ;;  %v6375_v12 = vrot.slane %v4730_v4, 9  ;;  %v5672_v27 = vadd.f32 %v6374_v22, %v5416_v29  ;;  %v4705_v59 = vrot.slane %v4410_v32, %v9884_v25 }
 0x479   : > { %v5419_v33 = vadd.f32 %v5355_v50, %v4731_v54  ;;  %v6377_v37 = vrot.slane %v4731_v54, 9  ;;  %v5674_v19 = vadd.f32 %v6376_v10, %v5418_v20  ;;  %v4712_v43 = vrot.slane %v4698_v51, %v9884_v25 }
 0x47a   : > { %v5673_v63 = vadd.f32 %v6375_v12, %v5417_v45  ;;  %v5736_v58 = vmul.f32 0.25, %v5672_v27  ;;  %v4713_v3 = vcombine.high %v4705_v59, %v4705_v59  ;;  %v5412_v53 = vadd.f32 %v5348_v39, %v4705_v59  ;;  %v10195_v27 = vld [vmem:[%s10441_s4] ss:$0 sm:$0xff] }
 0x47b   : > { %v5675_v31 = vadd.f32 %v6377_v37, %v5419_v33  ;;  %v5738_v38 = vmul.f32 0.25, %v5674_v19  ;;  %v4714_v26 = vcombine.high %v4712_v43, %v4712_v43  ;;  %v5414_v35 = vadd.f32 %v5350_v56, %v4712_v43 }
 0x47c   : > { %v5737_v9 = vmul.f32 0.25, %v5673_v63  ;;  %v5951_v55 = vrot.slane %v5736_v58, %v9894_v5  ;;  %v5413_v21 = vadd.f32 %v5349_v30, %v4713_v3  ;;  %v6370_v16 = vrot.slane %v4705_v59, 9 }
 0x47d   : > { %v5739_v42 = vmul.f32 0.25, %v5675_v31  ;;  %v5959_v50 = vrot.slane %v5738_v38, %v9894_v5  ;;  %v5415_v14 = vadd.f32 %v5351_v48, %v4714_v26  ;;  %v6371_v57 = vrot.slane %v4713_v3, 9 }
 0x47e   : > { %v5955_v62 = vrot.slane %v5737_v9, %v9894_v5  ;;  %v6372_v11 = vrot.slane %v4712_v43, 9  ;;  %v6373_v52 = vrot.slane %v4714_v26, 9  ;;  %v5668_v13 = vadd.f32 %v6370_v16, %v5412_v53 }
 0x47f   : > { %v5963_v39 = vrot.slane %v5739_v42, %v9894_v5  ;;  %v5669_v1 = vadd.f32 %v6371_v57, %v5413_v21  ;;  %vm4348_vm15 = vcmp.gt.f32.partialorder %v4316_v61, 0.0  ;;  %v4380_v56 = vmul.f32 0.2, %v4316_v61 }
 0x480   : > { %v5670_v23 = vadd.f32 %v6372_v11, %v5414_v35  ;;  %v5671_v60 = vadd.f32 %v6373_v52, %v5415_v14  ;;  %v5732_v4 = vmul.f32 0.25, %v5668_v13  ;;  %vm4349_vm0 = vcmp.gt.f32.partialorder %v4317_v24, 0.0 }
 0x481   : > { %v5733_v30 = vmul.f32 0.25, %v5669_v1  ;;  %v4412_v29 = vsel %vm4348_vm15, %v4316_v61, %v4380_v56  ;;  %v4381_v22 = vmul.f32 0.2, %v4317_v24  ;;  %v4279_v32 = vmul.f32 0.23570226, %v4247_v2 }
 0x482   : > { %v5734_v48 = vmul.f32 0.25, %v5670_v23  ;;  %v5735_v54 = vmul.f32 0.25, %v5671_v60  ;;  %v5935_v20 = vrot.slane %v5732_v4, %v9894_v5  ;;  %v4732_v10 = vcombine.high %v4412_v29, %v4412_v29 }
 0x483   : > { %v5939_v51 = vrot.slane %v5733_v30, %v9894_v5  ;;  %v4739_v45 = vrot.slane %v4412_v29, %v9884_v25  ;;  %v4413_v12 = vsel %vm4349_vm0, %v4317_v24, %v4381_v22  ;;  %v4318_v59 = vadd.f32 %v10195_v27, %v4279_v32  ;;  %v10576_v32 = vld [vmem:[#allocation32_spill] sm:$0xff] }
 0x484   : > { %v5943_v61 = vrot.slane %v5734_v48, %v9894_v5  ;;  %v5947_v2 = vrot.slane %v5735_v54, %v9894_v5  ;;  %v4746_v33 = vrot.slane %v4732_v10, %v9884_v25  ;;  %v4749_v37 = vcombine.high %v4413_v12, %v4413_v12 }
 0x485   : > { %v6120_v19 = vsel %vm6092_vm5, %v5939_v51, %v5935_v20  ;;  %v4747_v43 = vcombine.high %v4739_v45, %v4739_v45  ;;  %v6314_v63 = vrot.slane %v4739_v45, 9  ;;  %v4756_v24 = vrot.slane %v4413_v12, %v9884_v25  ;;  %v10578_v20 = vld [vmem:[#allocation35_spill] sm:$0xff]  ;;  %v10579_v51 = vld [vmem:[#allocation34_spill] sm:$0xff] }
 0x486   : > { %v6121_v58 = vsel %vm6094_vm6, %v5943_v61, %v6120_v19  ;;  %v4748_v3 = vcombine.high %v4746_v33, %v4746_v33  ;;  %v6316_v53 = vrot.slane %v4746_v33, 9  ;;  %v4763_v31 = vrot.slane %v4749_v37, %v9884_v25  ;;  %v10580_v61 = vld [vmem:[#allocation19_spill] sm:$0xff] }
 0x487   : > { %v6122_v38 = vsel %vm6096_vm7, %v5947_v2, %v6121_v58  ;;  %v6315_v26 = vrot.slane %v4747_v43, 9  ;;  %v5356_v35 = vadd.f32 %v6314_v63, %v4739_v45  ;;  %v4764_v9 = vcombine.high %v4756_v24, %v4756_v24  ;;  %v10585_v58 = vld [vmem:[#allocation22_spill] sm:$0xff] }
 0x488   : > { %v6123_v21 = vsel %vm6098_vm8, %v5951_v55, %v6122_v38  ;;  %v6317_v16 = vrot.slane %v4748_v3, 9  ;;  %v5358_v42 = vadd.f32 %v6316_v53, %v4746_v33  ;;  %v4765_v14 = vcombine.high %v4763_v31, %v4763_v31  ;;  %v10581_v33 = vld [vmem:[#allocation14_spill] sm:$0xff]  ;;  %v10587_v53 = vld [vmem:[#allocation24_spill] sm:$0xff] }
 0x489   : > { %v6124_v57 = vsel %vm6100_vm9, %v5955_v62, %v6123_v21  ;;  %v5357_v11 = vadd.f32 %v6315_v26, %v4747_v43  ;;  %v6318_v52 = vrot.slane %v4756_v24, 9  ;;  %v6319_v13 = vrot.slane %v4764_v9, 9  ;;  %v10584_v43 = vld [vmem:[#allocation21_spill] sm:$0xff] }
 0x48a   : > { %v6125_v1 = vsel %vm6102_vm11, %v5959_v50, %v6124_v57  ;;  %v5359_v56 = vadd.f32 %v6317_v16, %v4748_v3  ;;  %v6320_v23 = vrot.slane %v4763_v31, 9  ;;  %v6321_v60 = vrot.slane %v4765_v14, 9 }
 0x48b   : > { %v6126_v4 = vsel %vm6104_vm12, %v5963_v39, %v6125_v1  ;;  %v5360_v30 = vadd.f32 %v6318_v52, %v4756_v24  ;;  %v10210_v29 = vadd.f32 %v6319_v13, %v4764_v9  ;;  %vm4350_vm1 = vcmp.gt.f32.partialorder %v4318_v59, 0.0  ;;  %v10577_v39 = vld [vmem:[#allocation17_spill] sm:$0xff] }
 0x48c   : > { %6166 = vst [vmem:[%s10016_s7 + $0x18] sm:$0xff] %v6126_v4  ;;  %v10213_v55 = vadd.f32 %v6320_v23, %v4763_v31  ;;  %v10215_v22 = vadd.f32 %v6321_v60, %v4765_v14  ;;  %v4382_v62 = vmul.f32 0.2, %v4318_v59  ;;  %v4166_v48 = vadd.f32 %v10576_v32, %v10008_v28  ;;  %v10582_v28 = vld [vmem:[#allocation13_spill] sm:$0xff] }
 0x48d   : > { %v4171_v50 = vadd.f32 %v10001_v7, %v10030_v36  ;;  %v4176_v54 = vadd.f32 %v9994_v47, %v10038_v41  ;;  %v4181_v10 = vadd.f32 %v10578_v20, %v10577_v39  ;;  %v4186_v45 = vadd.f32 %v10579_v51, %v10069_v44  ;;  %v10583_v47 = vld [vmem:[#allocation20_spill] sm:$0xff] }
 0x48e   : > { %v4414_v12 = vsel %vm4350_vm1, %v4318_v59, %v4382_v62  ;;  %v4248_v2 = vadd.f32 %v4166_v48, %v10580_v61  ;;  %v4191_v37 = vadd.f32 %v10581_v33, %v10077_v6  ;;  %v10232_v19 = vadd.f32 %v10582_v28, %v10088_v40  ;;  %v10586_v59 = vld [vmem:[#allocation23_spill] sm:$0xff] }
 0x48f   : > { %v4766_v7 = vcombine.high %v4414_v12, %v4414_v12  ;;  %v4773_v36 = vrot.slane %v4414_v12, %v9884_v25  ;;  %v4249_v41 = vadd.f32 %v4171_v50, %v10583_v47  ;;  %v4250_v63 = vadd.f32 %v4176_v54, %v10584_v43 }
 0x490   : > { %v4280_v24 = vmul.f32 0.23570226, %v4248_v2  ;;  %v4251_v44 = vadd.f32 %v4181_v10, %v10585_v58  ;;  %v10239_v3 = vadd.f32 %v4186_v45, %v10586_v59  ;;  %v10242_v31 = vadd.f32 %v4191_v37, %v10587_v53 }
 0x491   : > { %v4780_v6 = vrot.slane %v4766_v7, %v9884_v25  ;;  %v4781_v40 = vcombine.high %v4773_v36, %v4773_v36  ;;  %v5420_v38 = vadd.f32 %v5356_v35, %v4773_v36  ;;  %v6378_v26 = vrot.slane %v4773_v36, 9 }
 0x492   : > { %v4319_v9 = vadd.f32 %v10195_v27, %v4280_v24  ;;  %v4281_v21 = vmul.f32 0.23570226, %v4249_v41  ;;  %v4282_v16 = vmul.f32 0.23570226, %v4250_v63  ;;  %v10246_v14 = vmul.f32 0.23570226, %v4251_v44 }
 0x493   : > { %v4782_v57 = vcombine.high %v4780_v6, %v4780_v6  ;;  %v5421_v52 = vadd.f32 %v5357_v11, %v4781_v40  ;;  %v5422_v13 = vadd.f32 %v5358_v42, %v4780_v6  ;;  %v6379_v1 = vrot.slane %v4781_v40, 9 }
 0x494   : > { %v6380_v23 = vrot.slane %v4780_v6, 9  ;;  %v5676_v60 = vadd.f32 %v6378_v26, %v5420_v38  ;;  %vm4351_vm2 = vcmp.gt.f32.partialorder %v4319_v9, 0.0  ;;  %v4383_v4 = vmul.f32 0.2, %v4319_v9 }
 0x495   : > { %v5423_v62 = vadd.f32 %v5359_v56, %v4782_v57  ;;  %v6381_v32 = vrot.slane %v4782_v57, 9  ;;  %v5677_v48 = vadd.f32 %v6379_v1, %v5421_v52  ;;  %v4320_v35 = vadd.f32 %v10195_v27, %v4281_v21 }
 0x496   : > { %v5678_v50 = vadd.f32 %v6380_v23, %v5422_v13  ;;  %v5740_v54 = vmul.f32 0.25, %v5676_v60  ;;  %v4415_v39 = vsel %vm4351_vm2, %v4319_v9, %v4383_v4  ;;  %v4321_v20 = vadd.f32 %v10195_v27, %v4282_v16 }
 0x497   : > { %v5679_v10 = vadd.f32 %v6381_v32, %v5423_v62  ;;  %v5741_v51 = vmul.f32 0.25, %v5677_v48  ;;  %v4783_v45 = vcombine.high %v4415_v39, %v4415_v39  ;;  %v4790_v42 = vrot.slane %v4415_v39, %v9884_v25 }
 0x498   : > { %v5742_v11 = vmul.f32 0.25, %v5678_v50  ;;  %v5967_v12 = vrot.slane %v5740_v54, %v9894_v5  ;;  %vm4352_vm3 = vcmp.gt.f32.partialorder %v4320_v35, 0.0  ;;  %v4384_v61 = vmul.f32 0.2, %v4320_v35 }
 0x499   : > { %v5743_v56 = vmul.f32 0.25, %v5679_v10  ;;  %v5971_v2 = vrot.slane %v5741_v51, %v9894_v5  ;;  %v4797_v33 = vrot.slane %v4783_v45, %v9884_v25  ;;  %v4798_v37 = vcombine.high %v4790_v42, %v4790_v42 }
 0x49a   : > { %v5975_v28 = vrot.slane %v5742_v11, %v9894_v5  ;;  %v5424_v7 = vadd.f32 %v5360_v30, %v4790_v42  ;;  %v6382_v36 = vrot.slane %v4790_v42, 9  ;;  %v4416_v47 = vsel %vm4352_vm3, %v4320_v35, %v4384_v61 }
 0x49b   : > { %v5979_v41 = vrot.slane %v5743_v56, %v9894_v5  ;;  %v6127_v43 = vsel %vm6092_vm5, %v5971_v2, %v5967_v12  ;;  %v4799_v63 = vcombine.high %v4797_v33, %v4797_v33  ;;  %v5425_v24 = vadd.f32 %v10210_v29, %v4798_v37 }
 0x49c   : > { %v6128_v58 = vsel %vm6094_vm6, %v5975_v28, %v6127_v43  ;;  %v5426_v44 = vadd.f32 %v10213_v55, %v4797_v33  ;;  %v6383_v59 = vrot.slane %v4798_v37, 9  ;;  %v6384_v53 = vrot.slane %v4797_v33, 9 }
 0x49d   : > { %v5427_v6 = vadd.f32 %v10215_v22, %v4799_v63  ;;  %v6385_v40 = vrot.slane %v4799_v63, 9  ;;  %v5680_v38 = vadd.f32 %v6382_v36, %v5424_v7  ;;  %v6129_v30 = vsel %vm6096_vm7, %v5979_v41, %v6128_v58 }
 0x49e   : > { %v5681_v26 = vadd.f32 %v6383_v59, %v5425_v24  ;;  %v5682_v9 = vadd.f32 %v6384_v53, %v5426_v44  ;;  %v4800_v21 = vcombine.high %v4416_v47, %v4416_v47  ;;  %v4807_v16 = vrot.slane %v4416_v47, %v9884_v25  ;;  %v10588_v53 = vld [vmem:[#allocation25_spill] sm:$0xff] }
 0x49f   : > { %v5683_v57 = vadd.f32 %v6385_v40, %v5427_v6  ;;  %v5744_v52 = vmul.f32 0.25, %v5680_v38  ;;  %vm4353_vm4 = vcmp.gt.f32.partialorder %v4321_v20, 0.0  ;;  %v4385_v29 = vmul.f32 0.2, %v4321_v20 }
 0x4a0   : > { %v5745_v13 = vmul.f32 0.25, %v5681_v26  ;;  %v5746_v1 = vmul.f32 0.25, %v5682_v9  ;;  %v4814_v55 = vrot.slane %v4800_v21, %v9884_v25  ;;  %v4815_v23 = vcombine.high %v4807_v16, %v4807_v16 }
 0x4a1   : > { %v5747_v60 = vmul.f32 0.25, %v5683_v57  ;;  %v5983_v22 = vrot.slane %v5744_v52, %v9894_v5  ;;  %v6322_v4 = vrot.slane %v4807_v16, 9  ;;  %v4417_v62 = vsel %vm4353_vm4, %v4321_v20, %v4385_v29 }
 0x4a2   : > { %v5987_v32 = vrot.slane %v5745_v13, %v9894_v5  ;;  %v5991_v48 = vrot.slane %v5746_v1, %v9894_v5  ;;  %v4816_v35 = vcombine.high %v4814_v55, %v4814_v55  ;;  %v6323_v50 = vrot.slane %v4815_v23, 9 }
 0x4a3   : > { %v5995_v54 = vrot.slane %v5747_v60, %v9894_v5  ;;  %v6130_v39 = vsel %vm6098_vm8, %v5983_v22, %v6129_v30  ;;  %v6324_v10 = vrot.slane %v4814_v55, 9  ;;  %v5364_v51 = vadd.f32 %v6322_v4, %v4807_v16 }
 0x4a4   : > { %v6131_v45 = vsel %vm6100_vm9, %v5987_v32, %v6130_v39  ;;  %v6325_v42 = vrot.slane %v4816_v35, 9  ;;  %v5365_v11 = vadd.f32 %v6323_v50, %v4815_v23  ;;  %v4817_v12 = vcombine.high %v4417_v62, %v4417_v62 }
 0x4a5   : > { %v6132_v20 = vsel %vm6102_vm11, %v5991_v48, %v6131_v45  ;;  %v5366_v61 = vadd.f32 %v6324_v10, %v4814_v55  ;;  %v4824_v56 = vrot.slane %v4417_v62, %v9884_v25  ;;  %v4322_v2 = vadd.f32 %v10195_v27, %v10246_v14 }
 0x4a6   : > { %v6133_v33 = vsel %vm6104_vm12, %v5995_v54, %v6132_v20  ;;  %v5367_v37 = vadd.f32 %v6325_v42, %v4816_v35  ;;  %v4831_v28 = vrot.slane %v4817_v12, %v9884_v25  ;;  %v4284_v7 = vmul.f32 0.23570226, %v10239_v3 }
 0x4a7   : > { %6167 = vst [vmem:[%s10016_s7 + $0x20] sm:$0xff] %v6133_v33  ;;  %v4832_v36 = vcombine.high %v4824_v56, %v4824_v56  ;;  %v6326_v47 = vrot.slane %v4824_v56, 9  ;;  %vm4354_vm10 = vcmp.gt.f32.partialorder %v4322_v2, 0.0  ;;  %v4386_v41 = vmul.f32 0.2, %v4322_v2 }
 0x4a8   : > { %v4833_v43 = vcombine.high %v4831_v28, %v4831_v28  ;;  %v6328_v63 = vrot.slane %v4831_v28, 9  ;;  %v4323_v24 = vadd.f32 %v10195_v27, %v4284_v7  ;;  %v4285_v58 = vmul.f32 0.23570226, %v10242_v31 }
 0x4a9   : > { %v6327_v44 = vrot.slane %v4832_v36, 9  ;;  %v5368_v14 = vadd.f32 %v6326_v47, %v4824_v56  ;;  %v4418_v59 = vsel %vm4354_vm10, %v4322_v2, %v4386_v41  ;;  %v10282_v6 = vadd.f32 %v10232_v19, %v10588_v53 }
 0x4aa   : > { %v6329_v40 = vrot.slane %v4833_v43, 9  ;;  %v5370_v3 = vadd.f32 %v6328_v63, %v4831_v28  ;;  %v4834_v38 = vcombine.high %v4418_v59, %v4418_v59  ;;  %v4841_v30 = vrot.slane %v4418_v59, %v9884_v25 }
 0x4ab   : > { %v5369_v26 = vadd.f32 %v6327_v44, %v4832_v36  ;;  %vm4355_vm13 = vcmp.gt.f32.partialorder %v4323_v24, 0.0  ;;  %v4387_v9 = vmul.f32 0.2, %v4323_v24  ;;  %v4324_v21 = vadd.f32 %v10195_v27, %v4285_v58 }
 0x4ac   : > { %v5371_v16 = vadd.f32 %v6329_v40, %v4833_v43  ;;  %v4848_v31 = vrot.slane %v4834_v38, %v9884_v25  ;;  %v4849_v57 = vcombine.high %v4841_v30, %v4841_v30  ;;  %v5428_v52 = vadd.f32 %v5364_v51, %v4841_v30 }
 0x4ad   : > { %v6386_v29 = vrot.slane %v4841_v30, 9  ;;  %v4419_v13 = vsel %vm4355_vm13, %v4323_v24, %v4387_v9  ;;  %vm4356_vm14 = vcmp.gt.f32.partialorder %v4324_v21, 0.0  ;;  %v4388_v19 = vmul.f32 0.2, %v4324_v21 }
 0x4ae   : > { %v4850_v1 = vcombine.high %v4848_v31, %v4848_v31  ;;  %v5429_v55 = vadd.f32 %v5365_v11, %v4849_v57  ;;  %v5430_v23 = vadd.f32 %v5366_v61, %v4848_v31  ;;  %v6387_v60 = vrot.slane %v4849_v57, 9 }
 0x4af   : > { %v6388_v22 = vrot.slane %v4848_v31, 9  ;;  %v5684_v4 = vadd.f32 %v6386_v29, %v5428_v52  ;;  %v4851_v62 = vcombine.high %v4419_v13, %v4419_v13  ;;  %v4858_v32 = vrot.slane %v4419_v13, %v9884_v25 }
 0x4b0   : > { %v5431_v48 = vadd.f32 %v5367_v37, %v4850_v1  ;;  %v6389_v35 = vrot.slane %v4850_v1, 9  ;;  %v5685_v50 = vadd.f32 %v6387_v60, %v5429_v55  ;;  %v4420_v54 = vsel %vm4356_vm14, %v4324_v21, %v4388_v19 }
 0x4b1   : > { %v5686_v39 = vadd.f32 %v6388_v22, %v5430_v23  ;;  %v5748_v10 = vmul.f32 0.25, %v5684_v4  ;;  %v4865_v51 = vrot.slane %v4851_v62, %v9884_v25  ;;  %v4866_v45 = vcombine.high %v4858_v32, %v4858_v32 }
 0x4b2   : > { %v5687_v42 = vadd.f32 %v6389_v35, %v5431_v48  ;;  %v5749_v12 = vmul.f32 0.25, %v5685_v50  ;;  %v5432_v20 = vadd.f32 %v5368_v14, %v4858_v32  ;;  %v6390_v11 = vrot.slane %v4858_v32, 9  ;;  %v10589_v35 = vld [vmem:[#allocation16_spill] sm:$0xff] }
 0x4b3   : > { %v5750_v61 = vmul.f32 0.25, %v5686_v39  ;;  %v5999_v56 = vrot.slane %v5748_v10, %v9894_v5  ;;  %v4867_v2 = vcombine.high %v4865_v51, %v4865_v51  ;;  %v5433_v33 = vadd.f32 %v5369_v26, %v4866_v45 }
 0x4b4   : > { %v5751_v28 = vmul.f32 0.25, %v5687_v42  ;;  %v6003_v37 = vrot.slane %v5749_v12, %v9894_v5  ;;  %v5434_v7 = vadd.f32 %v5370_v3, %v4865_v51  ;;  %v6391_v36 = vrot.slane %v4866_v45, 9  ;;  %v10590_v42 = vld [vmem:[#allocation26_spill] sm:$0xff] }
 0x4b5   : > { %v6007_v47 = vrot.slane %v5750_v61, %v9894_v5  ;;  %v5435_v41 = vadd.f32 %v5371_v16, %v4867_v2  ;;  %v6392_v43 = vrot.slane %v4865_v51, 9  ;;  %v6393_v63 = vrot.slane %v4867_v2, 9 }
 0x4b6   : > { %v6011_v24 = vrot.slane %v5751_v28, %v9894_v5  ;;  %v6134_v58 = vsel %vm6092_vm5, %v6003_v37, %v5999_v56  ;;  %v5688_v44 = vadd.f32 %v6390_v11, %v5432_v20  ;;  %v5689_v14 = vadd.f32 %v6391_v36, %v5433_v33  ;;  %v10591_v20 = vld [vmem:[#allocation15_spill] sm:$0xff]  ;;  %v10592_v56 = vld [vmem:[#allocation37_spill] sm:$0xff] }
 0x4b7   : > { %v6135_v59 = vsel %vm6094_vm6, %v6007_v47, %v6134_v58  ;;  %v5690_v53 = vadd.f32 %v6392_v43, %v5434_v7  ;;  %v5691_v40 = vadd.f32 %v6393_v63, %v5435_v41  ;;  %v4868_v38 = vcombine.high %v4420_v54, %v4420_v54  ;;  %v10594_v47 = vld [vmem:[#allocation27_spill] sm:$0xff]  ;;  %v10595_v43 = vld [vmem:[#allocation28_spill] sm:$0xff]  ;;  %v10597_v58 = vld [vmem:[#allocation30_spill] sm:$0xff] }
 0x4b8   : > { %v5752_v30 = vmul.f32 0.25, %v5688_v44  ;;  %v5753_v26 = vmul.f32 0.25, %v5689_v14  ;;  %v6136_v3 = vsel %vm6096_vm7, %v6011_v24, %v6135_v59  ;;  %v4875_v9 = vrot.slane %v4420_v54, %v9884_v25 }
 0x4b9   : > { %v5754_v21 = vmul.f32 0.25, %v5690_v53  ;;  %v5755_v16 = vmul.f32 0.25, %v5691_v40  ;;  %v4882_v31 = vrot.slane %v4868_v38, %v9884_v25  ;;  %v4286_v57 = vmul.f32 0.23570226, %v10282_v6  ;;  %v10598_v38 = vld [vmem:[#allocation31_spill] sm:$0xff] }
 0x4ba   : > { %v6015_v52 = vrot.slane %v5752_v30, %v9894_v5  ;;  %v6019_v29 = vrot.slane %v5753_v26, %v9894_v5  ;;  %v4883_v13 = vcombine.high %v4875_v9, %v4875_v9  ;;  %v6330_v19 = vrot.slane %v4875_v9, 9 }
 0x4bb   : > { %v6023_v1 = vrot.slane %v5754_v21, %v9894_v5  ;;  %v6027_v55 = vrot.slane %v5755_v16, %v9894_v5  ;;  %v4884_v23 = vcombine.high %v4882_v31, %v4882_v31  ;;  %v6332_v60 = vrot.slane %v4882_v31, 9 }
 0x4bc   : > { %v6137_v22 = vsel %vm6098_vm8, %v6015_v52, %v6136_v3  ;;  %v6331_v4 = vrot.slane %v4883_v13, 9  ;;  %v4325_v62 = vadd.f32 %v10195_v27, %v4286_v57  ;;  %v5372_v48 = vadd.f32 %v6330_v19, %v4875_v9 }
 0x4bd   : > { %v6138_v6 = vsel %vm6100_vm9, %v6019_v29, %v6137_v22  ;;  %v6333_v32 = vrot.slane %v4884_v23, 9  ;;  %v4201_v50 = vadd.f32 %v10589_v35, %v10108_v15  ;;  %v5374_v39 = vadd.f32 %v6332_v60, %v4882_v31  ;;  %v10593_v15 = vld [vmem:[#allocation36_spill] sm:$0xff] }
 0x4be   : > { %v6139_v54 = vsel %vm6102_vm11, %v6023_v1, %v6138_v6  ;;  %vm4357_vm15 = vcmp.gt.f32.partialorder %v4325_v62, 0.0  ;;  %v4389_v10 = vmul.f32 0.2, %v4325_v62  ;;  %v5373_v45 = vadd.f32 %v6331_v4, %v4883_v13 }
 0x4bf   : > { %v6140_v51 = vsel %vm6104_vm12, %v6027_v55, %v6139_v54  ;;  %v4255_v12 = vadd.f32 %v4201_v50, %v10590_v42  ;;  %v4206_v11 = vadd.f32 %v10591_v20, %v10119_v49  ;;  %v4211_v2 = vadd.f32 %v10592_v56, %v10129_v0  ;;  %v10596_v49 = vld [vmem:[#allocation29_spill] sm:$0xff] }
 0x4c0   : > { %6168 = vst [vmem:[%s10016_s7 + $0x28] sm:$0xff] %v6140_v51  ;;  %v4421_v61 = vsel %vm4357_vm15, %v4325_v62, %v4389_v10  ;;  %v4216_v33 = vadd.f32 %v10593_v15, %v10136_v8  ;;  %v4221_v28 = vadd.f32 %v10110_v17, %v10140_v18  ;;  %v4226_v0 = vadd.f32 %v10104_v34, %v10147_v46 }
 0x4c1   : > { %v4885_v37 = vcombine.high %v4421_v61, %v4421_v61  ;;  %v4892_v7 = vrot.slane %v4421_v61, %v9884_v25  ;;  %v4287_v36 = vmul.f32 0.23570226, %v4255_v12  ;;  %v4256_v41 = vadd.f32 %v4206_v11, %v10594_v47 }
 0x4c2   : > { %v4257_v63 = vadd.f32 %v4211_v2, %v10595_v43  ;;  %v4258_v24 = vadd.f32 %v4216_v33, %v10596_v49  ;;  %v10325_v44 = vadd.f32 %v4221_v28, %v10597_v58  ;;  %v10332_v30 = vadd.f32 %v4226_v0, %v10598_v38 }
 0x4c3   : > { %v4899_v8 = vrot.slane %v4885_v37, %v9884_v25  ;;  %v4900_v14 = vcombine.high %v4892_v7, %v4892_v7  ;;  %v6334_v17 = vrot.slane %v4892_v7, 9  ;;  %v4326_v18 = vadd.f32 %v10195_v27, %v4287_v36 }
 0x4c4   : > { %v4288_v59 = vmul.f32 0.23570226, %v4256_v41  ;;  %v4289_v53 = vmul.f32 0.23570226, %v4257_v63  ;;  %v4290_v40 = vmul.f32 0.23570226, %v4258_v24  ;;  %v5375_v26 = vadd.f32 %v6333_v32, %v4884_v23 }
 0x4c5   : > { %v4901_v3 = vcombine.high %v4899_v8, %v4899_v8  ;;  %v6335_v9 = vrot.slane %v4900_v14, 9  ;;  %v6336_v21 = vrot.slane %v4899_v8, 9  ;;  %vm4358_vm0 = vcmp.gt.f32.partialorder %v4326_v18, 0.0 }
 0x4c6   : > { %v4390_v16 = vmul.f32 0.2, %v4326_v18  ;;  %v4327_v34 = vadd.f32 %v10195_v27, %v4288_v59  ;;  %v4328_v46 = vadd.f32 %v10195_v27, %v4289_v53  ;;  %v5376_v57 = vadd.f32 %v6334_v17, %v4892_v7 }
 0x4c7   : > { %v6337_v31 = vrot.slane %v4901_v3, 9  ;;  %v5377_v52 = vadd.f32 %v6335_v9, %v4900_v14  ;;  %v4329_v29 = vadd.f32 %v10195_v27, %v4290_v40  ;;  %v5378_v13 = vadd.f32 %v6336_v21, %v4899_v8 }
 0x4c8   : > { %v4422_v19 = vsel %vm4358_vm0, %v4326_v18, %v4390_v16  ;;  %vm4359_vm1 = vcmp.gt.f32.partialorder %v4327_v34, 0.0  ;;  %v4391_v1 = vmul.f32 0.2, %v4327_v34  ;;  %vm4360_vm2 = vcmp.gt.f32.partialorder %v4328_v46, 0.0 }
 0x4c9   : > { %v4902_v55 = vcombine.high %v4422_v19, %v4422_v19  ;;  %v4909_v23 = vrot.slane %v4422_v19, %v9884_v25  ;;  %v4392_v60 = vmul.f32 0.2, %v4328_v46  ;;  %v5379_v22 = vadd.f32 %v6337_v31, %v4901_v3 }
 0x4ca   : > { %v4423_v4 = vsel %vm4359_vm1, %v4327_v34, %v4391_v1  ;;  %vm4361_vm3 = vcmp.gt.f32.partialorder %v4329_v29, 0.0  ;;  %v4393_v62 = vmul.f32 0.2, %v4329_v29 }
 0x4cb   : > { %v4916_v6 = vrot.slane %v4902_v55, %v9884_v25  ;;  %v4917_v32 = vcombine.high %v4909_v23, %v4909_v23  ;;  %v5436_v35 = vadd.f32 %v5372_v48, %v4909_v23  ;;  %v6394_v50 = vrot.slane %v4909_v23, 9 }
 0x4cc   : > { %v4919_v54 = vcombine.high %v4423_v4, %v4423_v4  ;;  %v4926_v10 = vrot.slane %v4423_v4, %v9884_v25  ;;  %v4424_v51 = vsel %vm4360_vm2, %v4328_v46, %v4392_v60  ;;  %v4425_v42 = vsel %vm4361_vm3, %v4329_v29, %v4393_v62 }
 0x4cd   : > { %v4918_v12 = vcombine.high %v4916_v6, %v4916_v6  ;;  %v5437_v20 = vadd.f32 %v5373_v45, %v4917_v32  ;;  %v5438_v11 = vadd.f32 %v5374_v39, %v4916_v6  ;;  %v6395_v61 = vrot.slane %v4917_v32, 9 }
 0x4ce   : > { %v6396_v56 = vrot.slane %v4916_v6, 9  ;;  %v5692_v2 = vadd.f32 %v6394_v50, %v5436_v35  ;;  %v4933_v15 = vrot.slane %v4919_v54, %v9884_v25  ;;  %v4934_v33 = vcombine.high %v4926_v10, %v4926_v10 }
 0x4cf   : > { %v5439_v28 = vadd.f32 %v5375_v26, %v4918_v12  ;;  %v6397_v37 = vrot.slane %v4918_v12, 9  ;;  %v5693_v7 = vadd.f32 %v6395_v61, %v5437_v20  ;;  %v5440_v36 = vadd.f32 %v5376_v57, %v4926_v10 }
 0x4d0   : > { %v5694_v48 = vadd.f32 %v6396_v56, %v5438_v11  ;;  %v5756_v47 = vmul.f32 0.25, %v5692_v2  ;;  %v4935_v41 = vcombine.high %v4933_v15, %v4933_v15  ;;  %v5441_v43 = vadd.f32 %v5377_v52, %v4934_v33 }
 0x4d1   : > { %v5695_v63 = vadd.f32 %v6397_v37, %v5439_v28  ;;  %v5757_v49 = vmul.f32 0.25, %v5693_v7  ;;  %v5442_v24 = vadd.f32 %v5378_v13, %v4933_v15  ;;  %v6398_v58 = vrot.slane %v4926_v10, 9 }
 0x4d2   : > { %v5758_v45 = vmul.f32 0.25, %v5694_v48  ;;  %v6031_v39 = vrot.slane %v5756_v47, %v9894_v5  ;;  %v5443_v0 = vadd.f32 %v5379_v22, %v4935_v41  ;;  %v6399_v8 = vrot.slane %v4934_v33, 9 }
 0x4d3   : > { %v5759_v14 = vmul.f32 0.25, %v5695_v63  ;;  %v6035_v17 = vrot.slane %v5757_v49, %v9894_v5  ;;  %v6400_v18 = vrot.slane %v4933_v15, 9  ;;  %v6401_v59 = vrot.slane %v4935_v41, 9 }
 0x4d4   : > { %v6039_v53 = vrot.slane %v5758_v45, %v9894_v5  ;;  %v5696_v40 = vadd.f32 %v6398_v58, %v5440_v36  ;;  %v5697_v38 = vadd.f32 %v6399_v8, %v5441_v43  ;;  %v4936_v26 = vcombine.high %v4424_v51, %v4424_v51 }
 0x4d5   : > { %v6043_v3 = vrot.slane %v5759_v14, %v9894_v5  ;;  %v6141_v9 = vsel %vm6092_vm5, %v6035_v17, %v6031_v39  ;;  %v5698_v21 = vadd.f32 %v6400_v18, %v5442_v24  ;;  %v5699_v16 = vadd.f32 %v6401_v59, %v5443_v0 }
 0x4d6   : > { %v6142_v34 = vsel %vm6094_vm6, %v6039_v53, %v6141_v9  ;;  %v5760_v46 = vmul.f32 0.25, %v5696_v40  ;;  %v5761_v31 = vmul.f32 0.25, %v5697_v38  ;;  %v4943_v57 = vrot.slane %v4424_v51, %v9884_v25 }
 0x4d7   : > { %v5762_v52 = vmul.f32 0.25, %v5698_v21  ;;  %v5763_v29 = vmul.f32 0.25, %v5699_v16  ;;  %v6143_v13 = vsel %vm6096_vm7, %v6043_v3, %v6142_v34  ;;  %v4950_v19 = vrot.slane %v4936_v26, %v9884_v25 }
 0x4d8   : > { %v6047_v1 = vrot.slane %v5760_v46, %v9894_v5  ;;  %v6051_v55 = vrot.slane %v5761_v31, %v9894_v5  ;;  %v4291_v23 = vmul.f32 0.23570226, %v10325_v44  ;;  %v4951_v4 = vcombine.high %v4943_v57, %v4943_v57 }
 0x4d9   : > { %v6055_v60 = vrot.slane %v5762_v52, %v9894_v5  ;;  %v6059_v22 = vrot.slane %v5763_v29, %v9894_v5  ;;  %v4952_v6 = vcombine.high %v4950_v19, %v4950_v19  ;;  %v4953_v32 = vcombine.high %v4425_v42, %v4425_v42 }
 0x4da   : > { %v6144_v62 = vsel %vm6098_vm8, %v6047_v1, %v6143_v13  ;;  %v4960_v50 = vrot.slane %v4425_v42, %v9884_v25  ;;  %v6338_v10 = vrot.slane %v4943_v57, 9  ;;  %v4330_v44 = vadd.f32 %v10195_v27, %v4291_v23 }
 0x4db   : > { %v6145_v35 = vsel %vm6100_vm9, %v6051_v55, %v6144_v62  ;;  %v4967_v51 = vrot.slane %v4953_v32, %v9884_v25  ;;  %v6339_v20 = vrot.slane %v4951_v4, 9  ;;  %v6340_v11 = vrot.slane %v4950_v19, 9 }
 0x4dc   : > { %v6146_v54 = vsel %vm6102_vm11, %v6055_v60, %v6145_v35  ;;  %v6341_v61 = vrot.slane %v4952_v6, 9  ;;  %v4968_v56 = vcombine.high %v4960_v50, %v4960_v50  ;;  %vm4362_vm4 = vcmp.gt.f32.partialorder %v4330_v44, 0.0 }
 0x4dd   : > { %v6147_v12 = vsel %vm6104_vm12, %v6059_v22, %v6146_v54  ;;  %v4394_v2 = vmul.f32 0.2, %v4330_v44  ;;  %v4292_v15 = vmul.f32 0.23570226, %v10332_v30  ;;  %v5380_v33 = vadd.f32 %v6338_v10, %v4943_v57 }
 0x4de   : > { %6169 = vst [vmem:[%s10016_s7 + $0x30] sm:$0xff] %v6147_v12  ;;  %v4969_v42 = vcombine.high %v4967_v51, %v4967_v51  ;;  %v6342_v28 = vrot.slane %v4960_v50, 9  ;;  %v5382_v7 = vadd.f32 %v6340_v11, %v4950_v19  ;;  %v5381_v41 = vadd.f32 %v6339_v20, %v4951_v4 }
 0x4df   : > { %v4426_v37 = vsel %vm4362_vm4, %v4330_v44, %v4394_v2  ;;  %v4331_v47 = vadd.f32 %v10195_v27, %v4292_v15  ;;  %v5383_v43 = vadd.f32 %v6341_v61, %v4952_v6  ;;  %v6343_v63 = vrot.slane %v4968_v56, 9 }
 0x4e0   : > { %v4970_v36 = vcombine.high %v4426_v37, %v4426_v37  ;;  %v4977_v48 = vrot.slane %v4426_v37, %v9884_v25  ;;  %v6344_v49 = vrot.slane %v4967_v51, 9  ;;  %v6345_v30 = vrot.slane %v4969_v42, 9 }
 0x4e1   : > { %v5384_v0 = vadd.f32 %v6342_v28, %v4960_v50  ;;  %vm4363_vm10 = vcmp.gt.f32.partialorder %v4331_v47, 0.0  ;;  %v4395_v8 = vmul.f32 0.2, %v4331_v47  ;;  %v5385_v16 = vadd.f32 %v6343_v63, %v4968_v56 }
 0x4e2   : > { %v4984_v24 = vrot.slane %v4970_v36, %v9884_v25  ;;  %v4985_v58 = vcombine.high %v4977_v48, %v4977_v48  ;;  %v5444_v45 = vadd.f32 %v5380_v33, %v4977_v48  ;;  %v6402_v39 = vrot.slane %v4977_v48, 9 }
 0x4e3   : > { %v5386_v53 = vadd.f32 %v6344_v49, %v4967_v51  ;;  %v4427_v38 = vsel %vm4363_vm10, %v4331_v47, %v4395_v8  ;;  %v5387_v57 = vadd.f32 %v6345_v30, %v4969_v42 }
 0x4e4   : > { %v4986_v14 = vcombine.high %v4984_v24, %v4984_v24  ;;  %v5445_v17 = vadd.f32 %v5381_v41, %v4985_v58  ;;  %v5446_v18 = vadd.f32 %v5382_v7, %v4984_v24  ;;  %v6403_v59 = vrot.slane %v4985_v58, 9 }
 0x4e5   : > { %v6404_v40 = vrot.slane %v4984_v24, 9  ;;  %v5700_v27 = vadd.f32 %v6402_v39, %v5444_v45  ;;  %v4987_v21 = vcombine.high %v4427_v38, %v4427_v38  ;;  %v4994_v31 = vrot.slane %v4427_v38, %v9884_v25 }
 0x4e6   : > { %v5447_v26 = vadd.f32 %v5383_v43, %v4986_v14  ;;  %v6405_v3 = vrot.slane %v4986_v14, 9  ;;  %v5701_v9 = vadd.f32 %v6403_v59, %v5445_v17 }
 0x4e7   : > { %v5702_v34 = vadd.f32 %v6404_v40, %v5446_v18  ;;  %v5764_v46 = vmul.f32 0.25, %v5700_v27  ;;  %v5001_v13 = vrot.slane %v4987_v21, %v9884_v25  ;;  %v5002_v55 = vcombine.high %v4994_v31, %v4994_v31 }
 0x4e8   : > { %v5703_v52 = vadd.f32 %v6405_v3, %v5447_v26  ;;  %v5765_v29 = vmul.f32 0.25, %v5701_v9  ;;  %v5448_v23 = vadd.f32 %v5384_v0, %v4994_v31  ;;  %v6406_v35 = vrot.slane %v4994_v31, 9 }
 0x4e9   : > { %v5766_v19 = vmul.f32 0.25, %v5702_v34  ;;  %v6063_v1 = vrot.slane %v5764_v46, %v9894_v5  ;;  %v5003_v4 = vcombine.high %v5001_v13, %v5001_v13  ;;  %v5450_v62 = vadd.f32 %v5386_v53, %v5001_v13 }
 0x4ea   : > { %v5767_v60 = vmul.f32 0.25, %v5703_v52  ;;  %v6067_v22 = vrot.slane %v5765_v29, %v9894_v5  ;;  %v5449_v32 = vadd.f32 %v5385_v16, %v5002_v55  ;;  %v6407_v50 = vrot.slane %v5002_v55, 9 }
 0x4eb   : > { %v6071_v6 = vrot.slane %v5766_v19, %v9894_v5  ;;  %v5451_v25 = vadd.f32 %v5387_v57, %v5003_v4  ;;  %v6408_v51 = vrot.slane %v5001_v13, 9  ;;  %v6409_v12 = vrot.slane %v5003_v4, 9 }
 0x4ec   : > { %v6075_v54 = vrot.slane %v5767_v60, %v9894_v5  ;;  %v6148_v10 = vsel %vm6092_vm5, %v6067_v22, %v6063_v1  ;;  %v5704_v20 = vadd.f32 %v6406_v35, %v5448_v23  ;;  %v5705_v11 = vadd.f32 %v6407_v50, %v5449_v32 }
 0x4ed   : > { %v6149_v44 = vsel %vm6094_vm6, %v6071_v6, %v6148_v10  ;;  %v5706_v61 = vadd.f32 %v6408_v51, %v5450_v62  ;;  %v5707_v2 = vadd.f32 %v6409_v12, %v5451_v25 }
 0x4ee   : > { %v6150_v56 = vsel %vm6096_vm7, %v6075_v54, %v6149_v44  ;;  %v5768_v15 = vmul.f32 0.25, %v5704_v20  ;;  %v5769_v33 = vmul.f32 0.25, %v5705_v11 }
 0x4ef   : > { %v5770_v42 = vmul.f32 0.25, %v5706_v61  ;;  %v5771_v28 = vmul.f32 0.25, %v5707_v2 }
 0x4f0   : > { %v6079_v37 = vrot.slane %v5768_v15, %v9894_v5  ;;  %v6083_v7 = vrot.slane %v5769_v33, %v9894_v5 }
 0x4f1   : > { %v6087_v36 = vrot.slane %v5770_v42, %v9894_v5  ;;  %v6091_v48 = vrot.slane %v5771_v28, %v9894_v5 }
 0x4f2   : > { %v6151_v47 = vsel %vm6098_vm8, %v6079_v37, %v6150_v56 }
 0x4f3   : > { %v6152_v41 = vsel %vm6100_vm9, %v6083_v7, %v6151_v47 }
 0x4f4   : > { %v6153_v43 = vsel %vm6102_vm11, %v6087_v36, %v6152_v41 }
 0x4f5   : > { %v6154_v63 = vsel %vm6104_vm12, %v6091_v48, %v6153_v43 }
 0x4f6   : > { %6170 = vst [vmem:[%s10016_s7 + $0x38] sm:$0xff] %v6154_v63 }
 0x4f7   : > { %7808 = shalt.err (!%p7805_p11)
}
 0x4f8   : > { %s7809_s14 = scalar_lea.hbm %s10387_s26, 1024  ;;  %s7813_s17 = scalar_lea.hbm %s10442_s5, 2048 }
 0x4f9   : > { %p7810_p13 = scmp.ne.s32.totalorder %s10387_s26, %s7809_s14  ;;  %p7814_p6 = scmp.lt.u32.totalorder %s10387_s26, %s10442_s5 }
 0x4fa   : > { %p7815_p9 = scmp.lt.u32.totalorder %s7813_s17, %s7809_s14  ;;  %p7817_p10 = scmp.lt.u32.totalorder %s7809_s14, %s10387_s26 }
 0x4fb   : > { %p7811_p5 = pnand %p7810_p13, %p10599_p1 }
 0x4fc   : > { %p7816_p12 = por %p7815_p9, %p7814_p6 }
 0x4fd   : > { %p7812_p0 = pneg %p7811_p5 }
 0x4fe   : > { %p7818_p2 = por %p7817_p10, %p7816_p12 }
 0x500   : > { %p7819_p3 = pnand %p7818_p2, %p7812_p0 }
 0x502   : > { %7822 = shalt.err (!%p7819_p3)
}
 0x503   : > { %s7875_s6 = smov 128   ;;  %s7876_s30 = smov 8  }
 0x504   : > { %7673 = dma.vmem_to_hbm [thread:$0]  (%p10599_p1), %s10389_s8, 1024, %s10387_s26, %s10396_s22, %s7875_s6, %s7875_s6, %s7876_s30  }
 0x505 PF: > { %p7690_p4 = scmp.ge.s32.totalorder %s7865_s21, 2  ;;  %s6200_s10 = sand.u32 1, %s7853_s18  }
 0x506   : > { %p10600_p7 = scmp.ne.s32.totalorder %s10476_s29, 0  ;;  %s6201_s25 = scalar_lea.sflag [#allocation6], %s6200_s10 }
 0x508   : > { %p7683_p8 = pnand %p7690_p4, %p10600_p7 }
 0x50a   : > { %7848 = dma.done.wait (!%p7683_p8), %s6201_s25, 1024  }
 0x50b   : > { %7850 = vsyncadd (!%p7683_p8), %s6201_s25, 4294966272  ;;  %p17_p11 = scmp.ge.s32.totalorder %s7932_s24, 4   ;;  %s10601_s18 = smov %s7857_s19 }
 0x50c   : > { %s10602_s19 = smov %s7861_s20  ;;  %s10603_s20 = smov %s7943_s27 }
 0x50d   : > { %s10604_s21 = smov %s7932_s24  ;;  %19 = sbr.rel (!%p17_p11) target bundleno = 5 (0x5), region = 92 }
 0x514   :  { %6206 = vsyncpa [#allocation5], 1 }
 0x515   :  { %6208 = vsyncpa [#allocation5 + $0x1], 1 }
 0x516   :  { %6209 = vsyncpa [#allocation8], 1 }
 0x517   :  { %6210 = vsyncpa [#allocation6], 1 }
 0x518   :  { %6212 = vsyncpa [#allocation6 + $0x1], 1 }

</bundles_post_ra>
